<compile_context>
chip_gen: v7x
topology: tpu7x:2x2x1
jax: 0.10.0
libtpu: 0.0.40
codegen_flags: <defaults>
</compile_context>

<pallas_src>
import numpy as np

import jax
import jax.numpy as jnp
from jax.experimental import pallas as pl
from jax.experimental.pallas import tpu as pltpu

# ---- KAN hyper-parameters (module defaults: grid_size=4, spline_order=3,
#      grid_range=[-1, 1]) --------------------------------------------------
GRID_SIZE = 4
SPLINE_ORDER = 3
NUM_BASES = GRID_SIZE + SPLINE_ORDER              # 7 spline bases per input
GRID_TOTAL = GRID_SIZE + 2 * SPLINE_ORDER + 1     # 11 knots per input
NUM_B0 = GRID_TOTAL - 1                           # 10 degree-0 bases per input
KNOT_H = 2.0 / GRID_SIZE                          # uniform knot spacing
KNOTS = tuple((t - SPLINE_ORDER) * KNOT_H - 1.0 for t in range(GRID_TOTAL))
# TODO(synk): KNOTS / baked reciprocals assume the uniform init grid; an
# adaptive (trained) KAN grid would need per-feature grid tensors again.

LANE = 128
MXU_DTYPE = jnp.bfloat16     # bf16-native MXUs on v5e/v6e/v7x; accum stays f32
NEG_INF = -1e30


def _pad_to(n, m):
    return ((n + m - 1) // m) * m


# ----------------------------------------------------------------------------
# In-kernel math helpers (pure jnp, traced inside the Pallas kernel)
# ----------------------------------------------------------------------------
def _silu(x):
    return x * jax.nn.sigmoid(x)


def _mxu_dot(a, b):
    return jnp.dot(a.astype(MXU_DTYPE), b.astype(MXU_DTYPE),
                   preferred_element_type=jnp.float32)


def _packed_bsplines(x, in_features, knot_row):
    """Lane-packed Cox-de Boor recursion (uniform grid).

    x        : (B, in_pad) f32, real data in lanes [0, in_features), zeros after.
    knot_row : (1, p0) f32; lane s*in_features + i holds KNOTS[s] for s < NUM_B0,
               a large sentinel on padded lanes (keeps them exactly zero).
    Returns  : (B, spline_pad) f32 where lane s*in_features + i holds the
               degree-SPLINE_ORDER basis B_s(x_i).  Lanes >= NUM_BASES*IN hold
               finite don't-care values that hit all-zero spline-weight rows.
    """
    bsz, in_pad = x.shape
    p0 = knot_row.shape[-1]

    # Widen to p0 lanes (extra lanes are zero).
    if p0 > in_pad:
        x_wide = jnp.concatenate(
            [x, jnp.zeros((bsz, p0 - in_pad), x.dtype)], axis=1)
    else:
        x_wide = x

    # Replicate the IN real lanes into all NUM_B0 basis slots:
    #   x_rep[s*IN + i] = x[i]
    # Log-doubling with pltpu.roll (XLU slot).  Every cyclic wrap only
    # reintroduces zero lanes because p0 >= NUM_B0 * IN.
    reps = {1: x_wide}
    x_rep, have = x_wide, 1
    while have * 2 <= NUM_B0:
        x_rep = x_rep + pltpu.roll(x_rep, shift=have * in_features, axis=1)
        have *= 2
        reps[have] = x_rep
    rem = NUM_B0 - have
    while rem > 0:
        chunk = 1 << (rem.bit_length() - 1)       # power of two, already in reps
        x_rep = x_rep + pltpu.roll(reps[chunk], shift=have * in_features, axis=1)
        have += chunk
        rem -= chunk

    # d[s*IN + i] = x_i - KNOTS[s]; hoisted once, reused at every level
    # (uniform grid: KNOTS[s+k] = KNOTS[s] + k*h, so no other knot diffs needed).
    d = x_rep - knot_row
    d_next = pltpu.roll(d, shift=p0 - in_features, axis=1)      # d[s+1] at slot s

    # Degree 0: 1 iff KNOTS[s] <= x < KNOTS[s+1].
    bases = jnp.logical_and(d >= 0.0, d < KNOT_H).astype(x.dtype)
    for k in range(1, SPLINE_ORDER + 1):
        inv = 1.0 / (k * KNOT_H)                  # compile-time reciprocal
        b_next = pltpu.roll(bases, shift=p0 - in_features, axis=1)
        bases = (d * bases + (k * KNOT_H - d_next) * b_next) * inv

    spline_pad = _pad_to(NUM_BASES * in_features, LANE)
    return bases[:, :spline_pad]


def _kan_linear(x, in_features, w_full, knot_row):
    """Fused KANLinear: ONE MXU matmul for the base + spline paths.
    w_full rows: [0, in_pad) = base_weight.T ; [in_pad + s*IN + i] = packed
    scaled spline weight.  (w_full is already bf16.)"""
    bases = _packed_bsplines(x, in_features, knot_row)
    feats = jnp.concatenate([_silu(x), bases], axis=1).astype(MXU_DTYPE)
    return jnp.dot(feats, w_full, preferred_element_type=jnp.float32)


# ----------------------------------------------------------------------------
# Fused Pallas kernel: all GCN layers + mean-pool + readout + log_softmax
# for one tile of whole graphs.
# ----------------------------------------------------------------------------
def make_kagcn_kernel(layer_in_feats, readout_in_feat):
    n_layers = len(layer_in_feats)

    def kernel(*refs):
        x_ref, a_ref, pool_ref = refs[:3]
        layer_refs = [refs[3 + 3 * l: 6 + 3 * l] for l in range(n_layers)]
        ro_w_ref, ro_knot_ref, mask_ref = refs[3 + 3 * n_layers: 6 + 3 * n_layers]
        out_ref = refs[6 + 3 * n_layers]

        x = x_ref[...]                             # (tile_m, F_pad) f32 node rows
        a = a_ref[...]                             # (tile_m, tile_m) bf16 diag block

        for l in range(n_layers):
            w_ref, knot_ref, bias_ref = layer_refs[l]
            y = _kan_linear(x, layer_in_feats[l], w_ref[...], knot_ref[...])
            # Graph propagation: A_norm is block-diagonal w.r.t. node tiles
            # (tiles contain whole graphs), so only this diagonal block matters.
            x = _silu(_mxu_dot(a, y) + bias_ref[...])
            # TODO(synk): training-mode dropout (stateful RNG) intentionally
            # omitted (eval mode => identity).

        # global_mean_pool restricted to the graphs owned by this tile.
        xp = _mxu_dot(pool_ref[...], x)            # (tile_g, H_pad)
        y = _kan_linear(xp, readout_in_feat, ro_w_ref[...], ro_knot_ref[...])

        # log_softmax over the real class lanes (additive -inf mask on padding).
        y = y + mask_ref[...]
        m = jnp.max(y, axis=1, keepdims=True)
        lse = m + jnp.log(jnp.sum(jnp.exp(y - m), axis=1, keepdims=True))
        out_ref[...] = y - lse

    return kernel


def kagcn_forward(x_pad, a_blocks, pool_blocks, layer_params, readout_params,
                  class_mask):
    n_tiles, tile_m, _ = a_blocks.shape
    tile_g = pool_blocks.shape[1]
    f_pad = x_pad.shape[1]
    c_pad = readout_params["w_full"].shape[1]

    def resident(arr):
        # Full-array block with a constant index_map -> fetched once, stays
        # VMEM-resident across grid steps.
        zeros = (0,) * arr.ndim
        # TODO(synk): for large hidden dims on v7x add pipeline_mode=
        # pl.Buffered(1) here (or stream weights over an 'arbitrary' axis).
        return pl.BlockSpec(arr.shape, lambda i: zeros)

    in_specs = [
        pl.BlockSpec((tile_m, f_pad), lambda i: (i, 0)),            # x row tile
        pl.BlockSpec((None, tile_m, tile_m), lambda i: (i, 0, 0)),  # A diag block
        pl.BlockSpec((None, tile_g, tile_m), lambda i: (i, 0, 0)),  # pool block
    ]
    args = [x_pad, a_blocks, pool_blocks]
    for p in layer_params:
        for name in ("w_full", "knot_row", "bias"):
            in_specs.append(resident(p[name]))
            args.append(p[name])
    for name in ("w_full", "knot_row"):
        in_specs.append(resident(readout_params[name]))
        args.append(readout_params[name])
    in_specs.append(resident(class_mask))
    args.append(class_mask)

    kernel = make_kagcn_kernel(
        tuple(p["in_features"] for p in layer_params),
        readout_params["in_features"])

    return pl.pallas_call(
        kernel,
        out_shape=jax.ShapeDtypeStruct((n_tiles * tile_g, c_pad), jnp.float32),
        grid=(n_tiles,),
        in_specs=in_specs,
        out_specs=pl.BlockSpec((tile_g, c_pad), lambda i: (i, 0)),
        compiler_params=pltpu.CompilerParams(
            # Tiles are fully independent -> shard across both TCs on v7x.
            dimension_semantics=("parallel",),
            vmem_limit_bytes=32 * 1024 * 1024),
    )(*args)


# ----------------------------------------------------------------------------
# Deterministic parameter / graph setup (host-side glue)
# ----------------------------------------------------------------------------
def make_grid_tensor(in_features):
    g = (jnp.arange(-SPLINE_ORDER, GRID_SIZE + SPLINE_ORDER + 1,
                    dtype=jnp.float32) * KNOT_H - 1.0)
    return jnp.tile(g[None, :], (in_features, 1))          # (IN, GRID_TOTAL)


def init_kan_linear(key, in_f, out_f):
    in_pad = _pad_to(in_f, LANE)
    out_pad = _pad_to(out_f, LANE)
    spline_pad = _pad_to(NUM_BASES * in_f, LANE)
    p0 = max(_pad_to(NUM_B0 * in_f, LANE), in_pad)

    k1, k2, k3 = jax.random.split(key, 3)
    scale = 1.0 / np.sqrt(in_f)
    base_w = jax.random.normal(k1, (out_f, in_f), jnp.float32) * scale
    spline_w = jax.random.normal(k2, (out_f, in_f, NUM_BASES), jnp.float32) * 0.1
    spline_scaler = jax.random.normal(k3, (out_f, in_f), jnp.float32) * scale
    scaled = spline_w * spline_scaler[:, :, None]           # standalone scale spline

    # Fused bf16 weight: base part stacked on top of the lane-packed spline part.
    w_full = np.zeros((in_pad + spline_pad, out_pad), np.float32)
    w_full[:in_f, :out_f] = np.asarray(base_w).T
    sp = np.transpose(np.asarray(scaled), (2, 1, 0)).reshape(NUM_BASES * in_f, out_f)
    w_full[in_pad:in_pad + NUM_BASES * in_f, :out_f] = sp   # row = in_pad + s*IN + i
    # Padded rows stay exactly zero -> don't-care basis lanes are annihilated
    # in the matmul (zero survives the bf16 cast).

    knot_row = np.full((1, p0), 1e9, np.float32)            # sentinel on padding
    for s in range(NUM_B0):
        knot_row[0, s * in_f:(s + 1) * in_f] = KNOTS[s]

    return {
        "in_features": in_f,
        "w_full": jnp.asarray(w_full).astype(MXU_DTYPE),
        "knot_row": jnp.asarray(knot_row),
        # Unpadded copies for the pure-JAX reference.
        "ref_grid": make_grid_tensor(in_f),
        "ref_base_w_t": base_w.T,
        "ref_spline_w": jnp.transpose(scaled, (2, 1, 0)),   # (S, IN, OUT)
    }


def init_kagcn_layer(key, in_f, out_f):
    p = init_kan_linear(key, in_f, out_f)
    out_pad = p["w_full"].shape[1]
    p["bias"] = jnp.zeros((1, out_pad), jnp.float32)        # GCNConv bias (zeros)
    p["ref_bias"] = jnp.zeros((1, out_f), jnp.float32)
    return p


def build_graph(num_graphs, nodes_per_graph):
    """Ring graph per 'molecule'; dense normalized adjacency + mean-pool matrix."""
    n = num_graphs * nodes_per_graph
    A = np.zeros((n, n), np.float32)
    for g in range(num_graphs):
        lo = g * nodes_per_graph
        for i in range(nodes_per_graph):
            a, b = lo + i, lo + (i + 1) % nodes_per_graph
            A[a, b] = 1.0
            A[b, a] = 1.0
    A_hat = A + np.eye(n, dtype=np.float32)                 # self loops
    dinv = 1.0 / np.sqrt(A_hat.sum(axis=1))
    a_norm = dinv[:, None] * A_hat * dinv[None, :]
    pool = np.zeros((num_graphs, n), np.float32)
    for g in range(num_graphs):
        pool[g, g * nodes_per_graph:(g + 1) * nodes_per_graph] = 1.0 / nodes_per_graph
    return a_norm, pool


def blockify(a_norm, pool, x, graphs_per_tile, nodes_per_graph, f_pad):
    """Pack x / A_norm / pool into per-tile blocks.  Node tiles are aligned to
    whole graphs, so A_norm and pool are exactly block-diagonal and only the
    diagonal blocks are stored / DMA'd (bf16 for the matmul operands)."""
    num_graphs, n = pool.shape
    tile_g = graphs_per_tile
    tile_m = graphs_per_tile * nodes_per_graph
    assert num_graphs % tile_g == 0 and n % tile_m == 0
    n_tiles = num_graphs // tile_g

    a_blocks = np.zeros((n_tiles, tile_m, tile_m), np.float32)
    pool_blocks = np.zeros((n_tiles, tile_g, tile_m), np.float32)
    for t in range(n_tiles):
        rs = slice(t * tile_m, (t + 1) * tile_m)
        gs = slice(t * tile_g, (t + 1) * tile_g)
        a_blocks[t] = a_norm[rs, rs]
        pool_blocks[t] = pool[gs, rs]
        off = a_norm[rs].copy(); off[:, rs] = 0.0
        assert not off.any(), "A_norm is not block-diagonal w.r.t. the tiles"
        offp = pool[gs].copy(); offp[:, rs] = 0.0
        assert not offp.any(), "pool is not block-diagonal w.r.t. the tiles"

    x_pad = np.zeros((n, f_pad), np.float32)
    x_pad[:, :x.shape[1]] = x
    return (jnp.asarray(x_pad),
            jnp.asarray(a_blocks).astype(MXU_DTYPE),
            jnp.asarray(pool_blocks).astype(MXU_DTYPE))


# ----------------------------------------------------------------------------
# Pure-JAX reference (original unpadded layout, explicit grid divisions).
# `dt` selects the matmul-operand dtype so the kernel can be checked tightly
# against a bf16-matmul reference and loosely against full f32 semantics.
# ----------------------------------------------------------------------------
def _ref_dot(a, b, dt):
    return jnp.dot(a.astype(dt), b.astype(dt), preferred_element_type=jnp.float32)


def _ref_b_splines(x, grid):
    xg = x[:, :, None]
    g = grid[None, :, :]
    bases = jnp.logical_and(xg >= g[:, :, :-1], xg < g[:, :, 1:]).astype(x.dtype)
    for k in range(1, SPLINE_ORDER + 1):
        left = (xg - g[:, :, :-(k + 1)]) / (g[:, :, k:-1] - g[:, :, :-(k + 1)])
        right = (g[:, :, k + 1:] - xg) / (g[:, :, k + 1:] - g[:, :, 1:-k])
        bases = left * bases[:, :, :-1] + right * bases[:, :, 1:]
    return bases


def _ref_kan_linear(x, p, dt):
    y = _ref_dot(jax.nn.silu(x), p["ref_base_w_t"], dt)
    b = _ref_b_splines(x, p["ref_grid"])
    return y + jnp.einsum("bis,sio->bo", b.astype(dt), p["ref_spline_w"].astype(dt),
                          preferred_element_type=jnp.float32)


def reference_forward(x, a_norm, pool, layer_params, readout_params, dt):
    for p in layer_params:
        x = jax.nn.silu(_ref_dot(a_norm, _ref_kan_linear(x, p, dt), dt) + p["ref_bias"])
    logits = _ref_kan_linear(_ref_dot(pool, x, dt), readout_params, dt)
    return jax.nn.log_softmax(logits, axis=1)


# ----------------------------------------------------------------------------
if __name__ == "__main__":
    # 2 GCN layers, 64 graphs x 8 nodes = 512 nodes, features=16, hidden=32,
    # classes=8.  16 graphs per tile -> tile_m = 128 node rows, grid = (4,)
    # (>= 2 steps per TensorCore on v7x so the per-step DMAs pipeline).
    GNN_LAYERS = 2
    NUM_FEATURES = 16
    HIDDEN_DIM = 32
    NUM_CLASSES = 8
    NODES_PER_GRAPH = 8
    NUM_GRAPHS = 64
    GRAPHS_PER_TILE = 16    # -> tile_m=128; use 32 (tile_m=256) on v6e when the
                            # grid still leaves >=2 steps per TensorCore.

    F_PAD = _pad_to(NUM_FEATURES, LANE)
    C_PAD = _pad_to(NUM_CLASSES, LANE)

    key = jax.random.PRNGKey(0)
    kx, k0, k1, kr = jax.random.split(key, 4)

    x = jax.random.normal(kx, (NUM_GRAPHS * NODES_PER_GRAPH, NUM_FEATURES),
                          jnp.float32)
    a_norm, pool = build_graph(NUM_GRAPHS, NODES_PER_GRAPH)

    layer_params = [init_kagcn_layer(k0, NUM_FEATURES, HIDDEN_DIM),
                    init_kagcn_layer(k1, HIDDEN_DIM, HIDDEN_DIM)]
    assert len(layer_params) == GNN_LAYERS
    # readout = make_kan(hidden, hidden, classes, hidden_layers=1, ...) ->
    # a single KANLinear(hidden -> classes).
    readout_params = init_kan_linear(kr, HIDDEN_DIM, NUM_CLASSES)

    class_mask = np.zeros((1, C_PAD), np.float32)
    class_mask[0, NUM_CLASSES:] = NEG_INF
    class_mask = jnp.asarray(class_mask)

    x_pad, a_blocks, pool_blocks = blockify(
        a_norm, pool, np.asarray(x), GRAPHS_PER_TILE, NODES_PER_GRAPH, F_PAD)

    out_pad = kagcn_forward(x_pad, a_blocks, pool_blocks, layer_params,
                            readout_params, class_mask)
    out_pad = jax.block_until_ready(out_pad)
    out = np.asarray(out_pad)[:NUM_GRAPHS, :NUM_CLASSES]

    a_j, pool_j = jnp.asarray(a_norm), jnp.asarray(pool)
    # 1) Tight check vs. a reference using the same bf16 matmul operands.
    ref_bf16 = reference_forward(x, a_j, pool_j, layer_params, readout_params,
                                 MXU_DTYPE)
    np.testing.assert_allclose(out, np.asarray(ref_bf16), rtol=1e-2, atol=1e-2)
    # 2) Coarse check vs. the full-f32 module semantics (bf16 MXU noise only).
    ref_f32 = reference_forward(x, a_j, pool_j, layer_params, readout_params,
                                jnp.float32)
    np.testing.assert_allclose(out, np.asarray(ref_f32), rtol=1.2e-1, atol=1.2e-1)

    assert out.shape == (NUM_GRAPHS, NUM_CLASSES)
    assert np.isfinite(out).all()
    print("KERNEL_OK")
</pallas_src>

<mosaic_0001>
module attributes {stable_mosaic.version = 11 : i64} {
  func.func @kernel(%arg0: i32, %arg1: memref<128x128xf32, #tpu.memory_space<vmem>>, %arg2: memref<1x128x128xbf16, #tpu.memory_space<vmem>>, %arg3: memref<1x16x128xbf16, #tpu.memory_space<vmem>>, %arg4: memref<256x128xbf16, #tpu.memory_space<vmem>>, %arg5: memref<1x256xf32, #tpu.memory_space<vmem>>, %arg6: memref<1x128xf32, #tpu.memory_space<vmem>>, %arg7: memref<384x128xbf16, #tpu.memory_space<vmem>>, %arg8: memref<1x384xf32, #tpu.memory_space<vmem>>, %arg9: memref<1x128xf32, #tpu.memory_space<vmem>>, %arg10: memref<384x128xbf16, #tpu.memory_space<vmem>>, %arg11: memref<1x384xf32, #tpu.memory_space<vmem>>, %arg12: memref<1x128xf32, #tpu.memory_space<vmem>>, %arg13: memref<16x128xf32, #tpu.memory_space<vmem>>) attributes {dimension_semantics = [#tpu.dimension_semantics<parallel>], iteration_bounds = array<i64: 4>, scalar_prefetch = 0 : i64, scratch_operands = 0 : i64, tpu.core_type = #tpu.core_type<tc>, window_params = [{transform_indices = @transform_0, window_bounds = array<i64: 128, 128>}, {transform_indices = @transform_1, window_bounds = array<i64: 1, 128, 128>}, {transform_indices = @transform_2, window_bounds = array<i64: 1, 16, 128>}, {pipeline_mode = #tpu.pipeline_mode<synchronous>, transform_indices = @transform_3, window_bounds = array<i64: 256, 128>}, {pipeline_mode = #tpu.pipeline_mode<synchronous>, transform_indices = @transform_4, window_bounds = array<i64: 1, 256>}, {pipeline_mode = #tpu.pipeline_mode<synchronous>, transform_indices = @transform_5, window_bounds = array<i64: 1, 128>}, {pipeline_mode = #tpu.pipeline_mode<synchronous>, transform_indices = @transform_6, window_bounds = array<i64: 384, 128>}, {pipeline_mode = #tpu.pipeline_mode<synchronous>, transform_indices = @transform_7, window_bounds = array<i64: 1, 384>}, {pipeline_mode = #tpu.pipeline_mode<synchronous>, transform_indices = @transform_8, window_bounds = array<i64: 1, 128>}, {pipeline_mode = #tpu.pipeline_mode<synchronous>, transform_indices = @transform_9, window_bounds = array<i64: 384, 128>}, {pipeline_mode = #tpu.pipeline_mode<synchronous>, transform_indices = @transform_10, window_bounds = array<i64: 1, 384>}, {pipeline_mode = #tpu.pipeline_mode<synchronous>, transform_indices = @transform_11, window_bounds = array<i64: 1, 128>}, {transform_indices = @transform_12, window_bounds = array<i64: 16, 128>}]} {
    %c0 = arith.constant 0 : index
    %c0_0 = arith.constant 0 : index
    %0 = vector.load %arg1[%c0, %c0_0] : memref<128x128xf32, #tpu.memory_space<vmem>>, vector<128x128xf32>
    %c0_1 = arith.constant 0 : index
    %c0_2 = arith.constant 0 : index
    %c0_3 = arith.constant 0 : index
    %1 = vector.load %arg2[%c0_1, %c0_2, %c0_3] : memref<1x128x128xbf16, #tpu.memory_space<vmem>>, vector<1x128x128xbf16>
    %2 = vector.shape_cast %1 : vector<1x128x128xbf16> to vector<128x128xbf16>
    %c0_4 = arith.constant 0 : index
    %c0_5 = arith.constant 0 : index
    %3 = vector.load %arg4[%c0_4, %c0_5] : memref<256x128xbf16, #tpu.memory_space<vmem>>, vector<256x128xbf16>
    %c0_6 = arith.constant 0 : index
    %c0_7 = arith.constant 0 : index
    %4 = vector.load %arg5[%c0_6, %c0_7] : memref<1x256xf32, #tpu.memory_space<vmem>>, vector<1x256xf32>
    %cst = arith.constant 0.000000e+00 : f32
    %5 = vector.broadcast %cst : f32 to vector<128x128xf32>
    %6 = tpu.concatenate %0, %5 in 1 : vector<128x128xf32>, vector<128x128xf32> -> vector<128x256xf32>
    %c16_i32 = arith.constant 16 : i32
    %7 = tpu.dynamic_rotate %6 by %c16_i32 dim 1 : vector<128x256xf32>, i32 -> vector<128x256xf32>
    %8 = arith.addf %6, %7 : vector<128x256xf32>
    %c32_i32 = arith.constant 32 : i32
    %9 = tpu.dynamic_rotate %8 by %c32_i32 dim 1 : vector<128x256xf32>, i32 -> vector<128x256xf32>
    %10 = arith.addf %8, %9 : vector<128x256xf32>
    %c64_i32 = arith.constant 64 : i32
    %11 = tpu.dynamic_rotate %10 by %c64_i32 dim 1 : vector<128x256xf32>, i32 -> vector<128x256xf32>
    %12 = arith.addf %10, %11 : vector<128x256xf32>
    %c128_i32 = arith.constant 128 : i32
    %13 = tpu.dynamic_rotate %8 by %c128_i32 dim 1 : vector<128x256xf32>, i32 -> vector<128x256xf32>
    %14 = arith.addf %12, %13 : vector<128x256xf32>
    %15 = vector.broadcast %4 : vector<1x256xf32> to vector<128x256xf32>
    %16 = arith.subf %14, %15 : vector<128x256xf32>
    %c240_i32 = arith.constant 240 : i32
    %17 = tpu.dynamic_rotate %16 by %c240_i32 dim 1 : vector<128x256xf32>, i32 -> vector<128x256xf32>
    %cst_8 = arith.constant 0.000000e+00 : f32
    %18 = vector.broadcast %cst_8 : f32 to vector<128x256xf32>
    %19 = arith.cmpf oge, %16, %18 : vector<128x256xf32>
    %cst_9 = arith.constant 5.000000e-01 : f32
    %20 = vector.broadcast %cst_9 : f32 to vector<128x256xf32>
    %21 = arith.cmpf olt, %16, %20 : vector<128x256xf32>
    %22 = arith.andi %19, %21 : vector<128x256xi1>
    %23 = arith.extui %22 : vector<128x256xi1> to vector<128x256xi32>
    %24 = arith.sitofp %23 : vector<128x256xi32> to vector<128x256xf32>
    %c240_i32_10 = arith.constant 240 : i32
    %25 = tpu.dynamic_rotate %24 by %c240_i32_10 dim 1 : vector<128x256xf32>, i32 -> vector<128x256xf32>
    %26 = arith.mulf %16, %24 : vector<128x256xf32>
    %cst_11 = arith.constant 5.000000e-01 : f32
    %27 = vector.broadcast %cst_11 : f32 to vector<128x256xf32>
    %28 = arith.subf %27, %17 : vector<128x256xf32>
    %29 = arith.mulf %28, %25 : vector<128x256xf32>
    %30 = arith.addf %26, %29 : vector<128x256xf32>
    %cst_12 = arith.constant 2.000000e+00 : f32
    %31 = vector.broadcast %cst_12 : f32 to vector<128x256xf32>
    %32 = arith.mulf %30, %31 : vector<128x256xf32>
    %c240_i32_13 = arith.constant 240 : i32
    %33 = tpu.dynamic_rotate %32 by %c240_i32_13 dim 1 : vector<128x256xf32>, i32 -> vector<128x256xf32>
    %34 = arith.mulf %16, %32 : vector<128x256xf32>
    %cst_14 = arith.constant 1.000000e+00 : f32
    %35 = vector.broadcast %cst_14 : f32 to vector<128x256xf32>
    %36 = arith.subf %35, %17 : vector<128x256xf32>
    %37 = arith.mulf %36, %33 : vector<128x256xf32>
    %38 = arith.addf %34, %37 : vector<128x256xf32>
    %cst_15 = arith.constant 1.000000e+00 : f32
    %39 = vector.broadcast %cst_15 : f32 to vector<128x256xf32>
    %40 = arith.mulf %38, %39 : vector<128x256xf32>
    %c240_i32_16 = arith.constant 240 : i32
    %41 = tpu.dynamic_rotate %40 by %c240_i32_16 dim 1 : vector<128x256xf32>, i32 -> vector<128x256xf32>
    %42 = arith.mulf %16, %40 : vector<128x256xf32>
    %cst_17 = arith.constant 1.500000e+00 : f32
    %43 = vector.broadcast %cst_17 : f32 to vector<128x256xf32>
    %44 = arith.subf %43, %17 : vector<128x256xf32>
    %45 = arith.mulf %44, %41 : vector<128x256xf32>
    %46 = arith.addf %42, %45 : vector<128x256xf32>
    %cst_18 = arith.constant 0.666666686 : f32
    %47 = vector.broadcast %cst_18 : f32 to vector<128x256xf32>
    %48 = arith.mulf %46, %47 : vector<128x256xf32>
    %49 = vector.extract_strided_slice %48 {offsets = [0, 0], sizes = [128, 128], strides = [1, 1]} : vector<128x256xf32> to vector<128x128xf32>
    %50 = arith.negf %0 : vector<128x128xf32>
    %51 = math.exp %50 : vector<128x128xf32>
    %cst_19 = arith.constant 1.000000e+00 : f32
    %52 = vector.broadcast %cst_19 : f32 to vector<128x128xf32>
    %53 = arith.addf %52, %51 : vector<128x128xf32>
    %54 = arith.divf %52, %53 : vector<128x128xf32>
    %55 = arith.mulf %0, %54 : vector<128x128xf32>
    %56 = tpu.concatenate %55, %49 in 1 : vector<128x128xf32>, vector<128x128xf32> -> vector<128x256xf32>
    %57 = arith.truncf %56 : vector<128x256xf32> to vector<128x256xbf16>
    %cst_20 = arith.constant dense<0.000000e+00> : vector<128x128xf32>
    %58 = tpu.matmul %57, %3, %cst_20 {dimension_numbers = #tpu.dot_dimension_numbers<[1], [0], [0], [1], [0, 0, 1, 1], [], []>} : vector<128x256xbf16>, vector<256x128xbf16>, vector<128x128xf32> -> vector<128x128xf32>
    %59 = arith.truncf %58 : vector<128x128xf32> to vector<128x128xbf16>
    %cst_21 = arith.constant dense<0.000000e+00> : vector<128x128xf32>
    %60 = tpu.matmul %2, %59, %cst_21 {dimension_numbers = #tpu.dot_dimension_numbers<[1], [0], [0], [1], [0, 0, 1, 1], [], []>} : vector<128x128xbf16>, vector<128x128xbf16>, vector<128x128xf32> -> vector<128x128xf32>
    %c0_22 = arith.constant 0 : index
    %c0_23 = arith.constant 0 : index
    %61 = vector.load %arg6[%c0_22, %c0_23] : memref<1x128xf32, #tpu.memory_space<vmem>>, vector<1x128xf32>
    %62 = vector.broadcast %61 : vector<1x128xf32> to vector<128x128xf32>
    %63 = arith.addf %60, %62 : vector<128x128xf32>
    %64 = arith.negf %63 : vector<128x128xf32>
    %65 = math.exp %64 : vector<128x128xf32>
    %cst_24 = arith.constant 1.000000e+00 : f32
    %66 = vector.broadcast %cst_24 : f32 to vector<128x128xf32>
    %67 = arith.addf %66, %65 : vector<128x128xf32>
    %68 = arith.divf %66, %67 : vector<128x128xf32>
    %69 = arith.mulf %63, %68 : vector<128x128xf32>
    %c0_25 = arith.constant 0 : index
    %c0_26 = arith.constant 0 : index
    %70 = vector.load %arg7[%c0_25, %c0_26] : memref<384x128xbf16, #tpu.memory_space<vmem>>, vector<384x128xbf16>
    %c0_27 = arith.constant 0 : index
    %c0_28 = arith.constant 0 : index
    %71 = vector.load %arg8[%c0_27, %c0_28] : memref<1x384xf32, #tpu.memory_space<vmem>>, vector<1x384xf32>
    %cst_29 = arith.constant 0.000000e+00 : f32
    %72 = vector.broadcast %cst_29 : f32 to vector<128x256xf32>
    %73 = tpu.concatenate %69, %72 in 1 : vector<128x128xf32>, vector<128x256xf32> -> vector<128x384xf32>
    %c32_i32_30 = arith.constant 32 : i32
    %74 = tpu.dynamic_rotate %73 by %c32_i32_30 dim 1 : vector<128x384xf32>, i32 -> vector<128x384xf32>
    %75 = arith.addf %73, %74 : vector<128x384xf32>
    %c64_i32_31 = arith.constant 64 : i32
    %76 = tpu.dynamic_rotate %75 by %c64_i32_31 dim 1 : vector<128x384xf32>, i32 -> vector<128x384xf32>
    %77 = arith.addf %75, %76 : vector<128x384xf32>
    %c128_i32_32 = arith.constant 128 : i32
    %78 = tpu.dynamic_rotate %77 by %c128_i32_32 dim 1 : vector<128x384xf32>, i32 -> vector<128x384xf32>
    %79 = arith.addf %77, %78 : vector<128x384xf32>
    %c256_i32 = arith.constant 256 : i32
    %80 = tpu.dynamic_rotate %75 by %c256_i32 dim 1 : vector<128x384xf32>, i32 -> vector<128x384xf32>
    %81 = arith.addf %79, %80 : vector<128x384xf32>
    %82 = vector.broadcast %71 : vector<1x384xf32> to vector<128x384xf32>
    %83 = arith.subf %81, %82 : vector<128x384xf32>
    %c352_i32 = arith.constant 352 : i32
    %84 = tpu.dynamic_rotate %83 by %c352_i32 dim 1 : vector<128x384xf32>, i32 -> vector<128x384xf32>
    %cst_33 = arith.constant 0.000000e+00 : f32
    %85 = vector.broadcast %cst_33 : f32 to vector<128x384xf32>
    %86 = arith.cmpf oge, %83, %85 : vector<128x384xf32>
    %cst_34 = arith.constant 5.000000e-01 : f32
    %87 = vector.broadcast %cst_34 : f32 to vector<128x384xf32>
    %88 = arith.cmpf olt, %83, %87 : vector<128x384xf32>
    %89 = arith.andi %86, %88 : vector<128x384xi1>
    %90 = arith.extui %89 : vector<128x384xi1> to vector<128x384xi32>
    %91 = arith.sitofp %90 : vector<128x384xi32> to vector<128x384xf32>
    %c352_i32_35 = arith.constant 352 : i32
    %92 = tpu.dynamic_rotate %91 by %c352_i32_35 dim 1 : vector<128x384xf32>, i32 -> vector<128x384xf32>
    %93 = arith.mulf %83, %91 : vector<128x384xf32>
    %cst_36 = arith.constant 5.000000e-01 : f32
    %94 = vector.broadcast %cst_36 : f32 to vector<128x384xf32>
    %95 = arith.subf %94, %84 : vector<128x384xf32>
    %96 = arith.mulf %95, %92 : vector<128x384xf32>
    %97 = arith.addf %93, %96 : vector<128x384xf32>
    %cst_37 = arith.constant 2.000000e+00 : f32
    %98 = vector.broadcast %cst_37 : f32 to vector<128x384xf32>
    %99 = arith.mulf %97, %98 : vector<128x384xf32>
    %c352_i32_38 = arith.constant 352 : i32
    %100 = tpu.dynamic_rotate %99 by %c352_i32_38 dim 1 : vector<128x384xf32>, i32 -> vector<128x384xf32>
    %101 = arith.mulf %83, %99 : vector<128x384xf32>
    %cst_39 = arith.constant 1.000000e+00 : f32
    %102 = vector.broadcast %cst_39 : f32 to vector<128x384xf32>
    %103 = arith.subf %102, %84 : vector<128x384xf32>
    %104 = arith.mulf %103, %100 : vector<128x384xf32>
    %105 = arith.addf %101, %104 : vector<128x384xf32>
    %cst_40 = arith.constant 1.000000e+00 : f32
    %106 = vector.broadcast %cst_40 : f32 to vector<128x384xf32>
    %107 = arith.mulf %105, %106 : vector<128x384xf32>
    %c352_i32_41 = arith.constant 352 : i32
    %108 = tpu.dynamic_rotate %107 by %c352_i32_41 dim 1 : vector<128x384xf32>, i32 -> vector<128x384xf32>
    %109 = arith.mulf %83, %107 : vector<128x384xf32>
    %cst_42 = arith.constant 1.500000e+00 : f32
    %110 = vector.broadcast %cst_42 : f32 to vector<128x384xf32>
    %111 = arith.subf %110, %84 : vector<128x384xf32>
    %112 = arith.mulf %111, %108 : vector<128x384xf32>
    %113 = arith.addf %109, %112 : vector<128x384xf32>
    %cst_43 = arith.constant 0.666666686 : f32
    %114 = vector.broadcast %cst_43 : f32 to vector<128x384xf32>
    %115 = arith.mulf %113, %114 : vector<128x384xf32>
    %116 = vector.extract_strided_slice %115 {offsets = [0, 0], sizes = [128, 256], strides = [1, 1]} : vector<128x384xf32> to vector<128x256xf32>
    %117 = arith.negf %69 : vector<128x128xf32>
    %118 = math.exp %117 : vector<128x128xf32>
    %cst_44 = arith.constant 1.000000e+00 : f32
    %119 = vector.broadcast %cst_44 : f32 to vector<128x128xf32>
    %120 = arith.addf %119, %118 : vector<128x128xf32>
    %121 = arith.divf %119, %120 : vector<128x128xf32>
    %122 = arith.mulf %69, %121 : vector<128x128xf32>
    %123 = tpu.concatenate %122, %116 in 1 : vector<128x128xf32>, vector<128x256xf32> -> vector<128x384xf32>
    %124 = arith.truncf %123 : vector<128x384xf32> to vector<128x384xbf16>
    %cst_45 = arith.constant dense<0.000000e+00> : vector<128x128xf32>
    %125 = tpu.matmul %124, %70, %cst_45 {dimension_numbers = #tpu.dot_dimension_numbers<[1], [0], [0], [1], [0, 0, 1, 1], [], []>} : vector<128x384xbf16>, vector<384x128xbf16>, vector<128x128xf32> -> vector<128x128xf32>
    %126 = arith.truncf %125 : vector<128x128xf32> to vector<128x128xbf16>
    %cst_46 = arith.constant dense<0.000000e+00> : vector<128x128xf32>
    %127 = tpu.matmul %2, %126, %cst_46 {dimension_numbers = #tpu.dot_dimension_numbers<[1], [0], [0], [1], [0, 0, 1, 1], [], []>} : vector<128x128xbf16>, vector<128x128xbf16>, vector<128x128xf32> -> vector<128x128xf32>
    %c0_47 = arith.constant 0 : index
    %c0_48 = arith.constant 0 : index
    %128 = vector.load %arg9[%c0_47, %c0_48] : memref<1x128xf32, #tpu.memory_space<vmem>>, vector<1x128xf32>
    %129 = vector.broadcast %128 : vector<1x128xf32> to vector<128x128xf32>
    %130 = arith.addf %127, %129 : vector<128x128xf32>
    %131 = arith.negf %130 : vector<128x128xf32>
    %132 = math.exp %131 : vector<128x128xf32>
    %cst_49 = arith.constant 1.000000e+00 : f32
    %133 = vector.broadcast %cst_49 : f32 to vector<128x128xf32>
    %134 = arith.addf %133, %132 : vector<128x128xf32>
    %135 = arith.divf %133, %134 : vector<128x128xf32>
    %136 = arith.mulf %130, %135 : vector<128x128xf32>
    %c0_50 = arith.constant 0 : index
    %c0_51 = arith.constant 0 : index
    %c0_52 = arith.constant 0 : index
    %137 = vector.load %arg3[%c0_50, %c0_51, %c0_52] : memref<1x16x128xbf16, #tpu.memory_space<vmem>>, vector<1x16x128xbf16>
    %138 = vector.shape_cast %137 : vector<1x16x128xbf16> to vector<16x128xbf16>
    %139 = arith.truncf %136 : vector<128x128xf32> to vector<128x128xbf16>
    %cst_53 = arith.constant dense<0.000000e+00> : vector<16x128xf32>
    %140 = tpu.matmul %138, %139, %cst_53 {dimension_numbers = #tpu.dot_dimension_numbers<[1], [0], [0], [1], [0, 0, 1, 1], [], []>} : vector<16x128xbf16>, vector<128x128xbf16>, vector<16x128xf32> -> vector<16x128xf32>
    %c0_54 = arith.constant 0 : index
    %c0_55 = arith.constant 0 : index
    %141 = vector.load %arg10[%c0_54, %c0_55] : memref<384x128xbf16, #tpu.memory_space<vmem>>, vector<384x128xbf16>
    %c0_56 = arith.constant 0 : index
    %c0_57 = arith.constant 0 : index
    %142 = vector.load %arg11[%c0_56, %c0_57] : memref<1x384xf32, #tpu.memory_space<vmem>>, vector<1x384xf32>
    %cst_58 = arith.constant 0.000000e+00 : f32
    %143 = vector.broadcast %cst_58 : f32 to vector<16x256xf32>
    %144 = tpu.concatenate %140, %143 in 1 : vector<16x128xf32>, vector<16x256xf32> -> vector<16x384xf32>
    %c32_i32_59 = arith.constant 32 : i32
    %145 = tpu.dynamic_rotate %144 by %c32_i32_59 dim 1 : vector<16x384xf32>, i32 -> vector<16x384xf32>
    %146 = arith.addf %144, %145 : vector<16x384xf32>
    %c64_i32_60 = arith.constant 64 : i32
    %147 = tpu.dynamic_rotate %146 by %c64_i32_60 dim 1 : vector<16x384xf32>, i32 -> vector<16x384xf32>
    %148 = arith.addf %146, %147 : vector<16x384xf32>
    %c128_i32_61 = arith.constant 128 : i32
    %149 = tpu.dynamic_rotate %148 by %c128_i32_61 dim 1 : vector<16x384xf32>, i32 -> vector<16x384xf32>
    %150 = arith.addf %148, %149 : vector<16x384xf32>
    %c256_i32_62 = arith.constant 256 : i32
    %151 = tpu.dynamic_rotate %146 by %c256_i32_62 dim 1 : vector<16x384xf32>, i32 -> vector<16x384xf32>
    %152 = arith.addf %150, %151 : vector<16x384xf32>
    %153 = vector.broadcast %142 : vector<1x384xf32> to vector<16x384xf32>
    %154 = arith.subf %152, %153 : vector<16x384xf32>
    %c352_i32_63 = arith.constant 352 : i32
    %155 = tpu.dynamic_rotate %154 by %c352_i32_63 dim 1 : vector<16x384xf32>, i32 -> vector<16x384xf32>
    %cst_64 = arith.constant 0.000000e+00 : f32
    %156 = vector.broadcast %cst_64 : f32 to vector<16x384xf32>
    %157 = arith.cmpf oge, %154, %156 : vector<16x384xf32>
    %cst_65 = arith.constant 5.000000e-01 : f32
    %158 = vector.broadcast %cst_65 : f32 to vector<16x384xf32>
    %159 = arith.cmpf olt, %154, %158 : vector<16x384xf32>
    %160 = arith.andi %157, %159 : vector<16x384xi1>
    %161 = arith.extui %160 : vector<16x384xi1> to vector<16x384xi32>
    %162 = arith.sitofp %161 : vector<16x384xi32> to vector<16x384xf32>
    %c352_i32_66 = arith.constant 352 : i32
    %163 = tpu.dynamic_rotate %162 by %c352_i32_66 dim 1 : vector<16x384xf32>, i32 -> vector<16x384xf32>
    %164 = arith.mulf %154, %162 : vector<16x384xf32>
    %cst_67 = arith.constant 5.000000e-01 : f32
    %165 = vector.broadcast %cst_67 : f32 to vector<16x384xf32>
    %166 = arith.subf %165, %155 : vector<16x384xf32>
    %167 = arith.mulf %166, %163 : vector<16x384xf32>
    %168 = arith.addf %164, %167 : vector<16x384xf32>
    %cst_68 = arith.constant 2.000000e+00 : f32
    %169 = vector.broadcast %cst_68 : f32 to vector<16x384xf32>
    %170 = arith.mulf %168, %169 : vector<16x384xf32>
    %c352_i32_69 = arith.constant 352 : i32
    %171 = tpu.dynamic_rotate %170 by %c352_i32_69 dim 1 : vector<16x384xf32>, i32 -> vector<16x384xf32>
    %172 = arith.mulf %154, %170 : vector<16x384xf32>
    %cst_70 = arith.constant 1.000000e+00 : f32
    %173 = vector.broadcast %cst_70 : f32 to vector<16x384xf32>
    %174 = arith.subf %173, %155 : vector<16x384xf32>
    %175 = arith.mulf %174, %171 : vector<16x384xf32>
    %176 = arith.addf %172, %175 : vector<16x384xf32>
    %cst_71 = arith.constant 1.000000e+00 : f32
    %177 = vector.broadcast %cst_71 : f32 to vector<16x384xf32>
    %178 = arith.mulf %176, %177 : vector<16x384xf32>
    %c352_i32_72 = arith.constant 352 : i32
    %179 = tpu.dynamic_rotate %178 by %c352_i32_72 dim 1 : vector<16x384xf32>, i32 -> vector<16x384xf32>
    %180 = arith.mulf %154, %178 : vector<16x384xf32>
    %cst_73 = arith.constant 1.500000e+00 : f32
    %181 = vector.broadcast %cst_73 : f32 to vector<16x384xf32>
    %182 = arith.subf %181, %155 : vector<16x384xf32>
    %183 = arith.mulf %182, %179 : vector<16x384xf32>
    %184 = arith.addf %180, %183 : vector<16x384xf32>
    %cst_74 = arith.constant 0.666666686 : f32
    %185 = vector.broadcast %cst_74 : f32 to vector<16x384xf32>
    %186 = arith.mulf %184, %185 : vector<16x384xf32>
    %187 = vector.extract_strided_slice %186 {offsets = [0, 0], sizes = [16, 256], strides = [1, 1]} : vector<16x384xf32> to vector<16x256xf32>
    %188 = arith.negf %140 : vector<16x128xf32>
    %189 = math.exp %188 : vector<16x128xf32>
    %cst_75 = arith.constant 1.000000e+00 : f32
    %190 = vector.broadcast %cst_75 : f32 to vector<16x128xf32>
    %191 = arith.addf %190, %189 : vector<16x128xf32>
    %192 = arith.divf %190, %191 : vector<16x128xf32>
    %193 = arith.mulf %140, %192 : vector<16x128xf32>
    %194 = tpu.concatenate %193, %187 in 1 : vector<16x128xf32>, vector<16x256xf32> -> vector<16x384xf32>
    %195 = arith.truncf %194 : vector<16x384xf32> to vector<16x384xbf16>
    %cst_76 = arith.constant dense<0.000000e+00> : vector<16x128xf32>
    %196 = tpu.matmul %195, %141, %cst_76 {dimension_numbers = #tpu.dot_dimension_numbers<[1], [0], [0], [1], [0, 0, 1, 1], [], []>} : vector<16x384xbf16>, vector<384x128xbf16>, vector<16x128xf32> -> vector<16x128xf32>
    %c0_77 = arith.constant 0 : index
    %c0_78 = arith.constant 0 : index
    %197 = vector.load %arg12[%c0_77, %c0_78] : memref<1x128xf32, #tpu.memory_space<vmem>>, vector<1x128xf32>
    %198 = vector.broadcast %197 : vector<1x128xf32> to vector<16x128xf32>
    %199 = arith.addf %196, %198 : vector<16x128xf32>
    %cst_79 = arith.constant dense<0xFF800000> : vector<16xf32>
    %200 = vector.multi_reduction <maximumf>, %199, %cst_79 [1] : vector<16x128xf32> to vector<16xf32>
    %201 = vector.shape_cast %200 : vector<16xf32> to vector<16x1xf32>
    %202 = vector.broadcast %201 : vector<16x1xf32> to vector<16x128xf32>
    %203 = arith.subf %199, %202 : vector<16x128xf32>
    %204 = math.exp %203 : vector<16x128xf32>
    %cst_80 = arith.constant dense<0.000000e+00> : vector<16xf32>
    %205 = vector.multi_reduction <add>, %204, %cst_80 [1] : vector<16x128xf32> to vector<16xf32>
    %206 = vector.shape_cast %205 : vector<16xf32> to vector<16x1xf32>
    %207 = math.log %206 : vector<16x1xf32>
    %208 = arith.addf %201, %207 : vector<16x1xf32>
    %209 = vector.broadcast %208 : vector<16x1xf32> to vector<16x128xf32>
    %210 = arith.subf %199, %209 : vector<16x128xf32>
    %c0_81 = arith.constant 0 : index
    %c0_82 = arith.constant 0 : index
    %211 = vector.load %arg13[%c0_81, %c0_82] : memref<16x128xf32, #tpu.memory_space<vmem>>, vector<16x128xf32>
    tpu.vector_store %arg13[%c0_81, %c0_82], %210 {strides = array<i32>} : memref<16x128xf32, #tpu.memory_space<vmem>>, vector<16x128xf32>,
    return
  }
  func.func @transform_0(%arg0: i32) -> (i32, i32) {
    %c0_i32 = arith.constant 0 : i32
    %c0_i32_0 = arith.constant 0 : i32
    return %arg0, %c0_i32 : i32, i32
  }
  func.func @transform_1(%arg0: i32) -> (i32, i32, i32) {
    %c0_i32 = arith.constant 0 : i32
    %c0_i32_0 = arith.constant 0 : i32
    %c0_i32_1 = arith.constant 0 : i32
    return %arg0, %c0_i32, %c0_i32_0 : i32, i32, i32
  }
  func.func @transform_2(%arg0: i32) -> (i32, i32, i32) {
    %c0_i32 = arith.constant 0 : i32
    %c0_i32_0 = arith.constant 0 : i32
    %c0_i32_1 = arith.constant 0 : i32
    return %arg0, %c0_i32, %c0_i32_0 : i32, i32, i32
  }
  func.func @transform_3(%arg0: i32) -> (i32, i32) {
    %c0_i32 = arith.constant 0 : i32
    %c0_i32_0 = arith.constant 0 : i32
    %c0_i32_1 = arith.constant 0 : i32
    return %c0_i32, %c0_i32_0 : i32, i32
  }
  func.func @transform_4(%arg0: i32) -> (i32, i32) {
    %c0_i32 = arith.constant 0 : i32
    %c0_i32_0 = arith.constant 0 : i32
    %c0_i32_1 = arith.constant 0 : i32
    return %c0_i32, %c0_i32_0 : i32, i32
  }
  func.func @transform_5(%arg0: i32) -> (i32, i32) {
    %c0_i32 = arith.constant 0 : i32
    %c0_i32_0 = arith.constant 0 : i32
    %c0_i32_1 = arith.constant 0 : i32
    return %c0_i32, %c0_i32_0 : i32, i32
  }
  func.func @transform_6(%arg0: i32) -> (i32, i32) {
    %c0_i32 = arith.constant 0 : i32
    %c0_i32_0 = arith.constant 0 : i32
    %c0_i32_1 = arith.constant 0 : i32
    return %c0_i32, %c0_i32_0 : i32, i32
  }
  func.func @transform_7(%arg0: i32) -> (i32, i32) {
    %c0_i32 = arith.constant 0 : i32
    %c0_i32_0 = arith.constant 0 : i32
    %c0_i32_1 = arith.constant 0 : i32
    return %c0_i32, %c0_i32_0 : i32, i32
  }
  func.func @transform_8(%arg0: i32) -> (i32, i32) {
    %c0_i32 = arith.constant 0 : i32
    %c0_i32_0 = arith.constant 0 : i32
    %c0_i32_1 = arith.constant 0 : i32
    return %c0_i32, %c0_i32_0 : i32, i32
  }
  func.func @transform_9(%arg0: i32) -> (i32, i32) {
    %c0_i32 = arith.constant 0 : i32
    %c0_i32_0 = arith.constant 0 : i32
    %c0_i32_1 = arith.constant 0 : i32
    return %c0_i32, %c0_i32_0 : i32, i32
  }
  func.func @transform_10(%arg0: i32) -> (i32, i32) {
    %c0_i32 = arith.constant 0 : i32
    %c0_i32_0 = arith.constant 0 : i32
    %c0_i32_1 = arith.constant 0 : i32
    return %c0_i32, %c0_i32_0 : i32, i32
  }
  func.func @transform_11(%arg0: i32) -> (i32, i32) {
    %c0_i32 = arith.constant 0 : i32
    %c0_i32_0 = arith.constant 0 : i32
    %c0_i32_1 = arith.constant 0 : i32
    return %c0_i32, %c0_i32_0 : i32, i32
  }
  func.func @transform_12(%arg0: i32) -> (i32, i32) {
    %c0_i32 = arith.constant 0 : i32
    %c0_i32_0 = arith.constant 0 : i32
    return %arg0, %c0_i32 : i32, i32
  }
}

</mosaic_0001>

<bundles_post_ra>
// kernel: tpu_custom_call.1
= control target key start
LH: loop header
LB: loop body
LE: loop exit
PB: predicated region body
PF: predicated region fallthrough
CT: control target
= control target key end

     0   :  { %s13002_s0 = inlined_call_operand.hbm [shape: f32[512,128], index: 0, kind: input, shape index: {}]   ;;  %s13003_s1 = inlined_call_operand.hbm [shape: bf16[4,128,128], index: 1, kind: input, shape index: {}]   ;;  %s13004_s2 = inlined_call_operand.hbm [shape: bf16[4,16,128], index: 2, kind: input, shape index: {}]   ;;  %s13005_s3 = inlined_call_operand.hbm [shape: bf16[256,128], index: 3, kind: input, shape index: {}]   ;;  %s13006_s4 = inlined_call_operand.vmem [shape: f32[1,256], index: 4, kind: input, shape index: {}]   ;;  %s13007_s5 = inlined_call_operand.vmem [shape: f32[1,128], index: 5, kind: input, shape index: {}]   ;;  %s13008_s6 = inlined_call_operand.hbm [shape: bf16[384,128], index: 6, kind: input, shape index: {}]   ;;  %s13009_s7 = inlined_call_operand.vmem [shape: f32[1,384], index: 7, kind: input, shape index: {}]   ;;  %s13010_s8 = inlined_call_operand.vmem [shape: f32[1,128], index: 8, kind: input, shape index: {}]   ;;  %s13011_s9 = inlined_call_operand.hbm [shape: bf16[384,128], index: 9, kind: input, shape index: {}]   ;;  %s13012_s10 = inlined_call_operand.vmem [shape: f32[1,384], index: 10, kind: input, shape index: {}]   ;;  %s13013_s11 = inlined_call_operand.vmem [shape: f32[1,128], index: 11, kind: input, shape index: {}]   ;;  %s13014_s12 = inlined_call_operand.hbm [shape: f32[64,128], index: 12, kind: output, shape index: {}]  }
   0x1   :  { %13458 = sst [smem:[#allocation160_spill]] %s13003_s1 }
   0x2   :  { %13459 = sst [smem:[#allocation161_spill]] %s13005_s3 }
   0x3   :  { %13460 = sst [smem:[#allocation162_spill]] %s13007_s5 }
   0x4   :  { %13461 = sst [smem:[#allocation163_spill]] %s13009_s7 }
   0x5   :  { %13462 = sst [smem:[#allocation164_spill]] %s13010_s8 }
   0x6   :  { %13463 = sst [smem:[#allocation165_spill]] %s13012_s10 }
   0x7   :  { %13464 = sst [smem:[#allocation166_spill]] %s13013_s11 }
   0x8   :  { %13465 = sst [smem:[#allocation167_spill]] %s13014_s12 }
   0x9   :  { %17 = vsyncpa [#allocation3], 0 }
   0xa   :  { %19 = vsyncpa [#allocation3 + $0x1], 0 }
   0xb   :  { %20 = vsyncpa [#allocation6], 0 }
   0xc   :  { %22 = vsyncpa [#allocation6 + $0x1], 0 }
   0xd   :  { %23 = vsyncpa [#allocation9], 0 }
   0xe   :  { %24 = vsyncpa [#allocation12], 0 }
   0xf   :  { %25 = vsyncpa [#allocation4], 0 }
  0x10   :  { %27 = vsyncpa [#allocation4 + $0x1], 0  ;;  %s7520_s21 = smov 0   ;;  %s7522_s22 = smov 0  }
  0x11   :  { %s7524_s23 = smov 0   ;;  %s7526_s24 = smov 0  }
  0x12 LB: > { %13466 = sst [smem:[#allocation19_spill]] %s7421_s21  ;;  %s7541_s25 = sadd.s32 4294967295, %s7433_s24   ;;  %s7433_s24 = sphi %s7526_s24, %s14226_s24   ;;  %s7429_s23 = sphi %s7524_s23, %s14228_s23   ;;  %s7425_s22 = sphi %s7522_s22, %s14230_s22   ;;  %s7421_s21 = sphi %s7520_s21, %s14229_s21  }
  0x13   : > { %13467 = sst [smem:[#allocation20_spill]] %s7429_s23  ;;  %s5885_s26 = sadd.s32 4294967294, %s7433_s24  }
  0x14   : > { %s7545_s27 = sadd.s32 1, %s7433_s24   ;;  %s40_s28 = sadd.s32 1, %s7429_s23 }
  0x15   : > { %13468 = sst [smem:[#allocation21_spill]] %s7545_s27  ;;  %s37_s29 = ssub.s32 %s7433_s24, %s7545_s27 }
  0x16   : > { %p47_p0 = scmp.ne.s32.totalorder %s7429_s23, %s7425_s22  ;;  %p38_p1 = scmp.eq.s32.totalorder %s37_s29, 0 }
  0x17   : > { %p48_p2 = scmp.eq.s32.totalorder %s7433_s24, 0  ;;  %p53_p3 = scmp.ne.s32.totalorder %s7425_s22, %s7421_s21 }
  0x18   : > { %p13021_p4 = scmp.eq.s32.totalorder %s7541_s25, 0  ;;  %p318_p7 = scmp.eq.s32.totalorder %s7541_s25, 3 }
  0x19   : > { %s7557_s30 = scalar_select %p38_p1, %s7429_s23, %s40_s28  }
  0x1a   : > { %p7559_p5 = por %p48_p2, %p47_p0  ;;  %p7565_p6 = por %p13021_p4, %p53_p3 }
  0x1b   : > { %13469 = sst [smem:[#allocation22_spill]] %s7557_s30  ;;  %p324_p8 = scmp.eq.s32.totalorder %s5885_s26, 3 }
  0x1c   : > { %s13470_s13 = scalar_select %p7559_p5, 1, 0 }
  0x1d   : > { %s13471_s14 = scalar_select %p7565_p6, 1, 0 }
  0x1e   : > { %p5886_p9 = scmp.ge.s32.totalorder %s7433_s24, 1  ;;  %p331_p10 = scmp.lt.s32.totalorder %s7433_s24, 5 }
  0x1f   : > { %p7572_p11 = por %p318_p7, %p47_p0  ;;  %p7576_p12 = por %p324_p8, %p53_p3 }
  0x20   : > { %p7580_p13 = pnand %p5886_p9, %p331_p10  ;;  %s7435_s18 = smov [#allocation8]  }
  0x21   : > { %s13472_s15 = scalar_select %p7572_p11, 1, 0 }
  0x22   : > { %s13474_s16 = scalar_select %p7576_p12, 1, 0 }
  0x23   : > { %13473 = sst [smem:[#allocation23_spill]] %s13472_s15  ;;  %p6517_p1 = pneg %p7580_p13 }
  0x24   : > { %13475 = sst [smem:[#allocation24_spill]] %s13474_s16  ;;  %s343_s19 = sshll.u32 %s7435_s18, 4  ;;  %s344_s19 = int_to_ptr.vmem [resolvable:$true] %s343_s19 }
  0x25   : > { %s13476_s17 = scalar_select %p7580_p13, 1, 0 }
  0x26   : > { %p7588_p2 = pnand %p6517_p1, %p13021_p4  ;;  %s7594_s26 = sand.u32 1, %s7429_s23  }
  0x27   : > { %s422_s28 = sand.u32 1, %s7433_s24   ;;  %s13478_s3 = sld [smem:[#allocation161_spill]] }
  0x28   : > { %s13477_s20 = scalar_select %p7588_p2, 1, 0 }
  0x29   : > { %p7605_p7 = pneg %p7588_p2 }
  0x2b   : > { %s13479_s18 = scalar_select %p7605_p7, 1, 0 }
  0x2d   : > { %s7181_s27 = scalar_lea.hbm %s13478_s3, 2048 }
  0x2e   : > { %p7182_p3 = scmp.ne.s32.totalorder %s13478_s3, %s7181_s27  ;;  %p7188_p10 = scmp.lt.u32.totalorder %s7181_s27, %s13478_s3 }
  0x30   : > { %p7184_p8 = pnand %p7605_p7, %p7182_p3 }
  0x32   : > { %p7185_p9 = pneg %p7184_p8 }
  0x34   : > { %p7190_p1 = pnand %p7188_p10, %p7185_p9 }
  0x36   : > { %7193 = shalt.err (!%p7190_p1)
}
  0x37   : > { %s7194_s30 = scalar_lea.vmem %s344_s19, 2048  ;;  %p7202_p11 = scmp.lt.s32.totalorder %s344_s19, %s344_s19 }
  0x38   : > { %p7195_p4 = scmp.ne.s32.totalorder %s344_s19, %s7194_s30  ;;  %p7203_p6 = scmp.lt.s32.totalorder %s7194_s30, %s7194_s30 }
  0x3a   : > { %p7197_p0 = pnand %p7195_p4, %p7605_p7  ;;  %p7204_p13 = por %p7203_p6, %p7202_p11 }
  0x3c   : > { %p7198_p12 = pneg %p7197_p0 }
  0x3e   : > { %p7205_p5 = pnand %p7204_p13, %p7198_p12 }
  0x40   : > { %7208 = shalt.err (!%p7205_p5)
}
  0x41   : > { %s13027_s21 = smov 64   ;;  %s7437_s12 = smov 4  }
  0x42   : > { %6520 = dma.hbm_to_vmem [thread:$0]  (!%p7588_p2), %s13478_s3, 2048, %s344_s19, [#allocation9], %s13027_s21, %s13027_s21, %s7437_s12  }
  0x43   : > { %p13480_p4 = scmp.ne.s32.totalorder %s13470_s13, 0  ;;  %p13481_p0 = scmp.lt.s32.totalorder %s7433_s24, 4 }
  0x44   : > { %s5894_s29 = sshll.u32 %s7594_s26, 6  ;;  %s6142_s30 = sshll.u32 %s7433_s24, 10 }
  0x45   : > { %p7628_p6 = pnand %p13481_p0, %p13480_p4  ;;  %s13483_s1 = sld [smem:[#allocation160_spill]] }
  0x46   : > { %s426_s23 = scalar_lea.vmem [#allocation5], %s5894_s29  ;;  %s7641_s13 = scalar_lea.sflag [#allocation6], %s422_s28 }
  0x47   : > { %s13482_s16 = scalar_select %p7628_p6, 1, 0 }
  0x48   : > { %s433_s19 = sshll.u32 %s426_s23, 4  ;;  %p7647_p11 = pneg %p7628_p6  ;;  %s7639_s19 = int_to_ptr.vmem [resolvable:$true] %s433_s19 }
  0x4a   : > { %s13484_s21 = scalar_select %p7647_p11, 1, 0 }
  0x4b   : > { %s7637_s10 = scalar_lea.hbm %s13483_s1, %s6142_s30  ;;  %s7214_s29 = scalar_lea.hbm %s13483_s1, 4096 }
  0x4c   : > { %s7209_s27 = scalar_lea.hbm %s7637_s10, 1024  ;;  %p7215_p3 = scmp.lt.u32.totalorder %s7637_s10, %s13483_s1 }
  0x4d   : > { %p7210_p5 = scmp.ne.s32.totalorder %s7637_s10, %s7209_s27  ;;  %p7216_p8 = scmp.lt.u32.totalorder %s7214_s29, %s7209_s27 }
  0x4e   : > { %p7218_p10 = scmp.lt.u32.totalorder %s7209_s27, %s7637_s10 }
  0x4f   : > { %p7212_p12 = pnand %p7647_p11, %p7210_p5  ;;  %p7217_p9 = por %p7216_p8, %p7215_p3 }
  0x51   : > { %p7213_p13 = pneg %p7212_p12  ;;  %p7219_p1 = por %p7218_p10, %p7217_p9 }
  0x53   : > { %p7220_p4 = pnand %p7219_p1, %p7213_p13 }
  0x55   : > { %7223 = shalt.err (!%p7220_p4)
}
  0x56   : > { %s7224_s28 = scalar_lea.vmem %s7639_s19, 1024  ;;  %s7438_s11 = smov [#allocation5]  }
  0x57   : > { %p7225_p0 = scmp.ne.s32.totalorder %s7639_s19, %s7224_s28  ;;  %s7229_s15 = sshll.u32 %s7438_s11, 4  ;;  %s7230_s15 = int_to_ptr.vmem [resolvable:$false] %s7229_s15 }
  0x58   : > { %s7231_s30 = scalar_lea.vmem %s7230_s15, 2048  ;;  %p7232_p2 = scmp.lt.s32.totalorder %s7639_s19, %s7230_s15 }
  0x59   : > { %p7227_p5 = pnand %p7225_p0, %p7647_p11  ;;  %p7233_p7 = scmp.lt.s32.totalorder %s7231_s30, %s7224_s28 }
  0x5b   : > { %p7228_p12 = pneg %p7227_p5  ;;  %p7234_p3 = por %p7233_p7, %p7232_p2 }
  0x5d   : > { %p7235_p8 = pnand %p7234_p3, %p7228_p12 }
  0x5f   : > { %7238 = shalt.err (!%p7235_p8)
}
  0x60   : > { %s13485_s27 = smov 64   ;;  %s7439_s29 = smov [#allocation10]  }
  0x61   : > { %6533 = dma.hbm_to_vmem [thread:$0]  (!%p7628_p6), %s7637_s10, 1024, %s7639_s19, %s7641_s13, %s13485_s27, %s13485_s27, %s7437_s12  }
  0x62   : > { %s362_s23 = sshll.u32 %s7439_s29, 4  ;;  %s7440_s11 = smov [#allocation11]   ;;  %s363_s23 = int_to_ptr.vmem [resolvable:$true] %s362_s23 }
  0x63   : > { %s381_s1 = sshll.u32 %s7440_s11, 4  ;;  %s7239_s30 = scalar_lea.hbm %s13008_s6, 3072  ;;  %s382_s1 = int_to_ptr.vmem [resolvable:$true] %s381_s1 }
  0x64   : > { %p7240_p2 = scmp.ne.s32.totalorder %s13008_s6, %s7239_s30  ;;  %p13486_p7 = scmp.ne.s32.totalorder %s13479_s18, 0 }
  0x65   : > { %p7246_p10 = scmp.lt.u32.totalorder %s7239_s30, %s13008_s6 }
  0x66   : > { %p7242_p13 = pnand %p7240_p2, %p13486_p7 }
  0x68   : > { %p7243_p9 = pneg %p7242_p13 }
  0x6a   : > { %p7248_p1 = pnand %p7246_p10, %p7243_p9 }
  0x6c   : > { %7251 = shalt.err (!%p7248_p1)
}
  0x6d   : > { %s7252_s10 = scalar_lea.vmem %s363_s23, 3072  ;;  %p7260_p12 = scmp.lt.s32.totalorder %s363_s23, %s363_s23 }
  0x6e   : > { %p7253_p4 = scmp.ne.s32.totalorder %s363_s23, %s7252_s10  ;;  %p7261_p3 = scmp.lt.s32.totalorder %s7252_s10, %s7252_s10 }
  0x70   : > { %p7255_p0 = pnand %p7253_p4, %p13486_p7  ;;  %p7262_p8 = por %p7261_p3, %p7260_p12 }
  0x72   : > { %p7256_p5 = pneg %p7255_p0 }
  0x74   : > { %p7263_p6 = pnand %p7262_p8, %p7256_p5 }
  0x76   : > { %7266 = shalt.err (!%p7263_p6)
}
  0x77   : > { %p13487_p2 = scmp.ne.s32.totalorder %s13477_s20, 0  ;;  %s7267_s19 = scalar_lea.hbm %s13011_s9, 3072 }
  0x78   : > { %p7268_p13 = scmp.ne.s32.totalorder %s13011_s9, %s7267_s19  ;;  %p7274_p10 = scmp.lt.u32.totalorder %s7267_s19, %s13011_s9 }
  0x79   : > { %6523 = dma.hbm_to_vmem [thread:$0]  (!%p13487_p2), %s13008_s6, 3072, %s363_s23, [#allocation9], %s13485_s27, %s13485_s27, %s7437_s12  }
  0x7a   : > { %p7270_p6 = pnand %p7268_p13, %p13486_p7 }
  0x7c   : > { %p7271_p9 = pneg %p7270_p6 }
  0x7e   : > { %p7276_p1 = pnand %p7274_p10, %p7271_p9 }
  0x80   : > { %7279 = shalt.err (!%p7276_p1)
}
  0x81   : > { %s7280_s30 = scalar_lea.vmem %s382_s1, 3072  ;;  %p7288_p12 = scmp.lt.s32.totalorder %s382_s1, %s382_s1 }
  0x82   : > { %p7281_p4 = scmp.ne.s32.totalorder %s382_s1, %s7280_s30  ;;  %p7289_p3 = scmp.lt.s32.totalorder %s7280_s30, %s7280_s30 }
  0x84   : > { %p7283_p0 = pnand %p7281_p4, %p13486_p7  ;;  %p7290_p8 = por %p7289_p3, %p7288_p12 }
  0x86   : > { %p7284_p5 = pneg %p7283_p0 }
  0x88   : > { %p7291_p11 = pnand %p7290_p8, %p7284_p5 }
  0x8a   : > { %7294 = shalt.err (!%p7291_p11)
}
  0x8b   : > { %6526 = dma.hbm_to_vmem [thread:$0]  (!%p13487_p2), %s13011_s9, 3072, %s382_s1, [#allocation12], %s13485_s27, %s13485_s27, %s7437_s12  }
  0x8c   : > { %s5891_s18 = sshll.u32 %s7594_s26, 7  ;;  %s6141_s3 = sshll.u32 %s7433_s24, 11 }
  0x8d   : > { %s7721_s8 = scalar_lea.hbm %s13002_s0, %s6141_s3  ;;  %s405_s20 = scalar_lea.vmem [#allocation2], %s5891_s18 }
  0x8e   : > { %s412_s19 = sshll.u32 %s405_s20, 4  ;;  %s402_s29 = scalar_lea.sflag [#allocation3], %s7594_s26  ;;  %s7723_s19 = int_to_ptr.vmem [resolvable:$true] %s412_s19 }
  0x8f   : > { %s7295_s11 = scalar_lea.hbm %s7721_s8, 2048  ;;  %p13488_p7 = scmp.ne.s32.totalorder %s13484_s21, 0 }
  0x90   : > { %p7296_p11 = scmp.ne.s32.totalorder %s7721_s8, %s7295_s11  ;;  %s7300_s28 = scalar_lea.hbm %s13002_s0, 8192 }
  0x91   : > { %p7301_p6 = scmp.lt.u32.totalorder %s7721_s8, %s13002_s0  ;;  %p7302_p9 = scmp.lt.u32.totalorder %s7300_s28, %s7295_s11 }
  0x92   : > { %p7298_p2 = pnand %p7296_p11, %p13488_p7  ;;  %p7304_p1 = scmp.lt.u32.totalorder %s7295_s11, %s7721_s8 }
  0x93   : > { %p7303_p10 = por %p7302_p9, %p7301_p6 }
  0x94   : > { %p7299_p13 = pneg %p7298_p2 }
  0x95   : > { %p7305_p4 = por %p7304_p1, %p7303_p10 }
  0x97   : > { %p7306_p0 = pnand %p7305_p4, %p7299_p13 }
  0x99   : > { %7309 = shalt.err (!%p7306_p0)
}
  0x9a   : > { %s7310_s10 = scalar_lea.vmem %s7723_s19, 2048  ;;  %s7441_s18 = smov [#allocation2]  }
  0x9b   : > { %p7311_p5 = scmp.ne.s32.totalorder %s7723_s19, %s7310_s10  ;;  %s7315_s3 = sshll.u32 %s7441_s18, 4  ;;  %s7316_s3 = int_to_ptr.vmem [resolvable:$false] %s7315_s3 }
  0x9c   : > { %s7317_s5 = scalar_lea.vmem %s7316_s3, 4096  ;;  %p7318_p8 = scmp.lt.s32.totalorder %s7723_s19, %s7316_s3 }
  0x9d   : > { %p7313_p12 = pnand %p7311_p5, %p13488_p7  ;;  %p7319_p11 = scmp.lt.s32.totalorder %s7317_s5, %s7310_s10 }
  0x9f   : > { %p7314_p3 = pneg %p7313_p12  ;;  %p7320_p2 = por %p7319_p11, %p7318_p8 }
  0xa1   : > { %p7321_p6 = pnand %p7320_p2, %p7314_p3 }
  0xa3   : > { %7324 = shalt.err (!%p7321_p6)
}
  0xa4   : > { %s7442_s7 = smov 128   ;;  %s7443_s20 = smov 8  }
  0xa5   : > { %p13489_p13 = scmp.ne.s32.totalorder %s13482_s16, 0  ;;  %s5897_s11 = sshll.u32 %s7594_s26, 3 }
  0xa6   : > { %s6143_s1 = sshll.u32 %s7433_s24, 7  ;;  %s447_s23 = scalar_lea.vmem [#allocation7], %s5897_s11 }
  0xa7   : > { %6530 = dma.hbm_to_vmem [thread:$0]  (!%p13489_p13), %s7721_s8, 2048, %s7723_s19, %s402_s29, %s7442_s7, %s7442_s7, %s7443_s20  }
  0xa8   : > { %s7754_s30 = scalar_lea.hbm %s13004_s2, %s6143_s1  ;;  %s454_s10 = sshll.u32 %s447_s23, 4  ;;  %s7756_s10 = int_to_ptr.vmem [resolvable:$true] %s454_s10 }
  0xa9   : > { %s7325_s18 = scalar_lea.hbm %s7754_s30, 128  ;;  %s7330_s19 = scalar_lea.hbm %s13004_s2, 512 }
  0xaa   : > { %p7326_p9 = scmp.ne.s32.totalorder %s7754_s30, %s7325_s18  ;;  %p7331_p4 = scmp.lt.u32.totalorder %s7754_s30, %s13004_s2 }
  0xab   : > { %p7332_p0 = scmp.lt.u32.totalorder %s7330_s19, %s7325_s18  ;;  %p7334_p12 = scmp.lt.u32.totalorder %s7325_s18, %s7754_s30 }
  0xac   : > { %p7328_p10 = pnand %p7326_p9, %p13488_p7 }
  0xad   : > { %p7333_p5 = por %p7332_p0, %p7331_p4 }
  0xae   : > { %p7329_p1 = pneg %p7328_p10 }
  0xaf   : > { %p7335_p3 = por %p7334_p12, %p7333_p5 }
  0xb1   : > { %p7336_p8 = pnand %p7335_p3, %p7329_p1 }
  0xb3   : > { %7339 = shalt.err (!%p7336_p8)
}
  0xb4   : > { %s7340_s5 = scalar_lea.vmem %s7756_s10, 128  ;;  %s7444_s7 = smov [#allocation7]  }
  0xb5   : > { %p7341_p11 = scmp.ne.s32.totalorder %s7756_s10, %s7340_s5  ;;  %s7345_s20 = sshll.u32 %s7444_s7, 4  ;;  %s7346_s20 = int_to_ptr.vmem [resolvable:$false] %s7345_s20 }
  0xb6   : > { %s7347_s11 = scalar_lea.vmem %s7346_s20, 256  ;;  %p7348_p9 = scmp.lt.s32.totalorder %s7756_s10, %s7346_s20 }
  0xb7   : > { %p7343_p2 = pnand %p7341_p11, %p13488_p7  ;;  %p7349_p10 = scmp.lt.s32.totalorder %s7347_s11, %s7340_s5 }
  0xb9   : > { %p7344_p6 = pneg %p7343_p2  ;;  %p7350_p4 = por %p7349_p10, %p7348_p9 }
  0xbb   : > { %p7351_p0 = pnand %p7350_p4, %p7344_p6 }
  0xbd   : > { %7354 = shalt.err (!%p7351_p0)
}
  0xbe   : > { %6536 = dma.hbm_to_vmem [thread:$0]  (!%p13489_p13), %s7754_s30, 128, %s7756_s10, %s7641_s13, %s13485_s27, %s13485_s27, %s7437_s12  }
  0xbf   : > { %p13490_p7 = scmp.ne.s32.totalorder %s13476_s17, 0 }
  0xc1   : > { %466 = sbr.rel (%p13490_p7) target bundleno = 4239 (0x108f), region = 68 }
  0xc8   : > { %s7786_s21 = sand.u32 1, %s7425_s22   ;;  %p13491_p1 = scmp.ne.s32.totalorder %s13471_s14, 0 }
  0xc9   : > { %s5901_s1 = sshll.u32 %s7786_s21, 7  ;;  %s469_s15 = scalar_lea.sflag [#allocation3], %s7786_s21 }
  0xca   : > { %s7790_s28 = scalar_lea.vmem [#allocation2], %s5901_s1 }
  0xcb   : > { %7400 = dma.done.wait (%p13491_p1), %s469_s15, 2048  }
  0xcc   : > { %7402 = vsyncadd (%p13491_p1), %s469_s15, 4294965248  ;;  %s477_s17 = sand.u32 1, %s7541_s25   ;;  %s5902_s12 = sshll.u32 %s7786_s21, 6 }
  0xcd   : > { %s478_s16 = scalar_lea.sflag [#allocation6], %s477_s17  ;;  %s7798_s13 = scalar_lea.vmem [#allocation5], %s5902_s12 }
  0xce   : > { %7404 = dma.done.wait (%p13491_p1), %s478_s16, 1152  }
  0xcf   : > { %7406 = vsyncadd (%p13491_p1), %s478_s16, 4294966144  ;;  %s5903_s27 = sshll.u32 %s7786_s21, 3  ;;  %p13492_p13 = scmp.eq.s32.totalorder %s7541_s25, 0 }
  0xd0   : > { %s7805_s30 = scalar_lea.vmem [#allocation7], %s5903_s27 }
  0xd1   : > { %7408 = dma.done.wait (%p13492_p13), [#allocation9], 5120   ;;  %p13493_p5 = pmov %p13492_p13 }
  0xd3   : > { %7410 = vsyncadd (%p13493_p5), [#allocation9], 4294962176  ;;  %p13494_p12 = pmov %p13493_p5 }
  0xd4   : > { %p13495_p3 = pmov %p13493_p5 }
  0xd5   : > { %7412 = dma.done.wait (%p13494_p12), [#allocation12], 3072  }
  0xd6   : > { %7414 = vsyncadd (%p13495_p3), [#allocation12], 4294964224  ;;  %v13037_v0 = vmov 0.0   ;;  %s7446_s14 = smov 16   ;;  %v7818_v1 = vld [vmem:[%s7790_s28 + $0x10] sm:$0xff]  ;;  %v7821_v2 = vld [vmem:[%s7790_s28] sm:$0xff]  ;;  %v13039_v17 = vlaneseq }
  0xd7   : > { %653 = vrot.lane.b32.xlu1 %v13037_v0, %s7446_s14  ;;  %621 = vrot.lane.b32.xlu0 %v7821_v2, %s7446_s14  ;;  %v7828_v3 = vld [vmem:[%s7790_s28 + $0x20] sm:$0xff]  ;;  %v7831_v4 = vld [vmem:[%s7790_s28 + $0x8] sm:$0xff]  ;;  %s7447_s23 = smov 32   ;;  %s7448_s10 = smov 64  }
  0xd8   : > { %v7838_v5 = vld [vmem:[%s7790_s28 + $0x30] sm:$0xff]  ;;  %v7841_v6 = vld [vmem:[%s7790_s28 + $0x18] sm:$0xff]  ;;  %v7848_v7 = vld [vmem:[%s7790_s28 + $0x40] sm:$0xff]  ;;  %v7900_v19 = vand.u32 127, %v13039_v17  ;;  %s7449_s8 = smov 112   ;;  %s13726_s3 = sld [smem:[#allocation162_spill]] }
  0xd9   : > { %v7851_v8 = vld [vmem:[%s7790_s28 + $0x28] sm:$0xff]  ;;  %v7854_v9 = vld [vmem:[%s7790_s28 + $0x50] sm:$0xff]  ;;  %v7861_v10 = vld [vmem:[%s7790_s28 + $0x38] sm:$0xff]  ;;  %s13744_s20 = sld [smem:[#allocation163_spill]]  ;;  %s7450_s11 = smov 96  }
  0xda   : > { %v7868_v11 = vld [vmem:[%s7790_s28 + $0x60] sm:$0xff]  ;;  %v7871_v12 = vld [vmem:[%s7790_s28 + $0x48] sm:$0xff]  ;;  %v7878_v13 = vld [vmem:[%s7790_s28 + $0x70] sm:$0xff]  ;;  %vm657_vm0 = vcmp.lt.s32.totalorder %v7900_v19, 16  ;;  %vm786_vm1 = vcmp.lt.s32.totalorder %v7900_v19, 32  ;;  %vm13291_vm2 = vcmp.lt.s32.totalorder %v7900_v19, 64 }
  0xdb   : > { %625 = vrot.lane.b32.xlu1 %v7818_v1, %s7446_s14  ;;  %623 = vrot.lane.b32.xlu0 %v7831_v4, %s7446_s14  ;;  %v7881_v14 = vld [vmem:[%s7790_s28 + $0x58] sm:$0xff]  ;;  %v7888_v15 = vld [vmem:[%s7790_s28 + $0x68] sm:$0xff]  ;;  %s14210_s16 = sld [smem:[#allocation165_spill]]  ;;  %s14221_s29 = sld [smem:[#allocation167_spill]] }
  0xdc   : > { %v7891_v16 = vld [vmem:[%s7790_s28 + $0x78] sm:$0xff]  ;;  %s5727_s5 = scalar_lea.sflag [#allocation4], %s7786_s21 }
  0xdf   : > { %629 = vrot.lane.b32.xlu1 %v7828_v3, %s7446_s14  ;;  %627 = vrot.lane.b32.xlu0 %v7841_v6, %s7446_s14 }
  0xe3   : > { %633 = vrot.lane.b32.xlu1 %v7838_v5, %s7446_s14  ;;  %631 = vrot.lane.b32.xlu0 %v7851_v8, %s7446_s14 }
  0xe7   : > { %637 = vrot.lane.b32.xlu1 %v7848_v7, %s7446_s14  ;;  %635 = vrot.lane.b32.xlu0 %v7861_v10, %s7446_s14 }
  0xeb   : > { %641 = vrot.lane.b32.xlu1 %v7854_v9, %s7446_s14  ;;  %639 = vrot.lane.b32.xlu0 %v7871_v12, %s7446_s14 }
  0xef   : > { %645 = vrot.lane.b32.xlu1 %v7868_v11, %s7446_s14  ;;  %643 = vrot.lane.b32.xlu0 %v7881_v14, %s7446_s14 }
  0xf3   : > { %649 = vrot.lane.b32.xlu1 %v7878_v13, %s7446_s14  ;;  %647 = vrot.lane.b32.xlu0 %v7888_v15, %s7446_s14 }
  0xf7   : > { %651 = vrot.lane.b32.xlu0 %v7891_v16, %s7446_s14  ;;  %s5907_s14 = sshll.u32 %s7786_s21, 4 }
  0xf8   : > { %s552_s18 = scalar_lea.vmem [#allocation13], %s5907_s14 }
  0xf9   : > { %s5740_s26 = sshll.u32 %s552_s18, 4  ;;  %s12959_s26 = int_to_ptr.vmem [resolvable:$true] %s5740_s26 }
  0xfa   : > { %s7355_s7 = scalar_lea.vmem %s12959_s26, 256 }
  0xfb   : > { %p7356_p8 = scmp.ne.s32.totalorder %s12959_s26, %s7355_s7 }
 0x149   : > { %v7897_v18 = vpop.permute.xlu1 %653  ;;  %v622_v21 = vpop.permute.xlu0 %621 }
 0x14a   : > { %v7906_v22 = vsel %vm657_vm0, %v622_v21, %v7897_v18  ;;  %v674_v48 = vsel %vm657_vm0, %v7897_v18, %v622_v21 }
 0x14b   : > { %754 = vrot.lane.b32.xlu1 %v7906_v22, %s7447_s23  ;;  %v8012_v52 = vadd.f32 %v674_v48, %v7821_v2 }
 0x14d   : > { %v626_v20 = vpop.permute.xlu1 %625  ;;  %v624_v25 = vpop.permute.xlu0 %623 }
 0x14e   : > { %v7913_v23 = vsel %vm657_vm0, %v626_v20, %v7897_v18  ;;  %v7918_v26 = vsel %vm657_vm0, %v624_v25, %v7897_v18  ;;  %v676_v53 = vsel %vm657_vm0, %v7897_v18, %v626_v20  ;;  %v675_v54 = vsel %vm657_vm0, %v7897_v18, %v624_v25 }
 0x14f   : > { %758 = vrot.lane.b32.xlu1 %v7913_v23, %s7447_s23  ;;  %756 = vrot.lane.b32.xlu0 %v7918_v26, %s7447_s23  ;;  %v8030_v56 = vadd.f32 %v676_v53, %v7818_v1  ;;  %v8033_v57 = vadd.f32 %v675_v54, %v7831_v4 }
 0x151   : > { %v630_v24 = vpop.permute.xlu1 %629  ;;  %v628_v28 = vpop.permute.xlu0 %627 }
 0x152   : > { %v7927_v29 = vsel %vm657_vm0, %v630_v24, %v7897_v18  ;;  %v7932_v30 = vsel %vm657_vm0, %v628_v28, %v7897_v18  ;;  %v678_v58 = vsel %vm657_vm0, %v7897_v18, %v630_v24  ;;  %v677_v59 = vsel %vm657_vm0, %v7897_v18, %v628_v28 }
 0x153   : > { %762 = vrot.lane.b32.xlu1 %v7927_v29, %s7447_s23  ;;  %760 = vrot.lane.b32.xlu0 %v7932_v30, %s7447_s23  ;;  %v8046_v60 = vadd.f32 %v678_v58, %v7828_v3  ;;  %v8049_v61 = vadd.f32 %v677_v59, %v7841_v6 }
 0x155   : > { %v634_v27 = vpop.permute.xlu1 %633  ;;  %v632_v32 = vpop.permute.xlu0 %631 }
 0x156   : > { %v7941_v33 = vsel %vm657_vm0, %v634_v27, %v7897_v18  ;;  %v7946_v34 = vsel %vm657_vm0, %v632_v32, %v7897_v18  ;;  %v680_v62 = vsel %vm657_vm0, %v7897_v18, %v634_v27  ;;  %v679_v63 = vsel %vm657_vm0, %v7897_v18, %v632_v32 }
 0x157   : > { %766 = vrot.lane.b32.xlu1 %v7941_v33, %s7447_s23  ;;  %764 = vrot.lane.b32.xlu0 %v7946_v34, %s7447_s23  ;;  %v8062_v1 = vadd.f32 %v680_v62, %v7838_v5  ;;  %v8065_v2 = vadd.f32 %v679_v63, %v7851_v8 }
 0x159   : > { %v638_v31 = vpop.permute.xlu1 %637  ;;  %v636_v36 = vpop.permute.xlu0 %635 }
 0x15a   : > { %v7955_v37 = vsel %vm657_vm0, %v638_v31, %v7897_v18  ;;  %v7960_v38 = vsel %vm657_vm0, %v636_v36, %v7897_v18  ;;  %v682_v3 = vsel %vm657_vm0, %v7897_v18, %v638_v31  ;;  %v681_v4 = vsel %vm657_vm0, %v7897_v18, %v636_v36 }
 0x15b   : > { %770 = vrot.lane.b32.xlu1 %v7955_v37, %s7447_s23  ;;  %768 = vrot.lane.b32.xlu0 %v7960_v38, %s7447_s23  ;;  %v8078_v5 = vadd.f32 %v682_v3, %v7848_v7  ;;  %v8081_v6 = vadd.f32 %v681_v4, %v7861_v10 }
 0x15d   : > { %v642_v35 = vpop.permute.xlu1 %641  ;;  %v640_v40 = vpop.permute.xlu0 %639  ;;  %13499 = vst [vmem:[#allocation28_spill] sm:$0xff] %v8078_v5  ;;  %13500 = vst [vmem:[#allocation29_spill] sm:$0xff] %v8081_v6 }
 0x15e   : > { %v7969_v41 = vsel %vm657_vm0, %v642_v35, %v7897_v18  ;;  %v7974_v42 = vsel %vm657_vm0, %v640_v40, %v7897_v18  ;;  %v684_v8 = vsel %vm657_vm0, %v7897_v18, %v642_v35  ;;  %v683_v20 = vsel %vm657_vm0, %v7897_v18, %v640_v40 }
 0x15f   : > { %774 = vrot.lane.b32.xlu1 %v7969_v41, %s7447_s23  ;;  %772 = vrot.lane.b32.xlu0 %v7974_v42, %s7447_s23  ;;  %v8094_v7 = vadd.f32 %v684_v8, %v7854_v9  ;;  %v8097_v10 = vadd.f32 %v683_v20, %v7871_v12 }
 0x161   : > { %v646_v39 = vpop.permute.xlu1 %645  ;;  %v644_v43 = vpop.permute.xlu0 %643  ;;  %13501 = vst [vmem:[#allocation30_spill] sm:$0xff] %v8094_v7  ;;  %13502 = vst [vmem:[#allocation31_spill] sm:$0xff] %v8097_v10 }
 0x162   : > { %v7983_v44 = vsel %vm657_vm0, %v646_v39, %v7897_v18  ;;  %v7988_v45 = vsel %vm657_vm0, %v644_v43, %v7897_v18  ;;  %v686_v21 = vsel %vm657_vm0, %v7897_v18, %v646_v39  ;;  %v685_v24 = vsel %vm657_vm0, %v7897_v18, %v644_v43 }
 0x163   : > { %778 = vrot.lane.b32.xlu1 %v7983_v44, %s7447_s23  ;;  %776 = vrot.lane.b32.xlu0 %v7988_v45, %s7447_s23  ;;  %v8110_v9 = vadd.f32 %v686_v21, %v7868_v11  ;;  %v8113_v12 = vadd.f32 %v685_v24, %v7881_v14 }
 0x165   : > { %v650_v46 = vpop.permute.xlu1 %649  ;;  %v648_v47 = vpop.permute.xlu0 %647  ;;  %13503 = vst [vmem:[#allocation32_spill] sm:$0xff] %v8110_v9  ;;  %13504 = vst [vmem:[#allocation33_spill] sm:$0xff] %v8113_v12 }
 0x166   : > { %v8000_v49 = vsel %vm657_vm0, %v650_v46, %v7897_v18  ;;  %v8005_v50 = vsel %vm657_vm0, %v648_v47, %v7897_v18  ;;  %v688_v25 = vsel %vm657_vm0, %v7897_v18, %v650_v46  ;;  %v687_v27 = vsel %vm657_vm0, %v7897_v18, %v648_v47 }
 0x167   : > { %13496 = vst [vmem:[#allocation25_spill] sm:$0xff] %v8000_v49  ;;  %13497 = vst [vmem:[#allocation26_spill] sm:$0xff] %v8005_v50  ;;  %782 = vrot.lane.b32.xlu1 %v8000_v49, %s7447_s23  ;;  %780 = vrot.lane.b32.xlu0 %v8005_v50, %s7447_s23  ;;  %v8126_v11 = vadd.f32 %v688_v25, %v7878_v13  ;;  %v8129_v14 = vadd.f32 %v687_v27, %v7888_v15 }
 0x169   : > { %v652_v51 = vpop.permute.xlu0 %651  ;;  %13505 = vst [vmem:[#allocation34_spill] sm:$0xff] %v8126_v11  ;;  %13506 = vst [vmem:[#allocation35_spill] sm:$0xff] %v8129_v14 }
 0x16a   : > { %v8023_v55 = vsel %vm657_vm0, %v652_v51, %v7897_v18  ;;  %v689_v28 = vsel %vm657_vm0, %v7897_v18, %v652_v51 }
 0x16b   : > { %13498 = vst [vmem:[#allocation27_spill] sm:$0xff] %v8023_v55  ;;  %722 = vrot.lane.b32.xlu1 %v8012_v52, %s7447_s23  ;;  %784 = vrot.lane.b32.xlu0 %v8023_v55, %s7447_s23  ;;  %v8139_v31 = vadd.f32 %v689_v28, %v7891_v16 }
 0x16d   : > { %13507 = vst [vmem:[#allocation36_spill] sm:$0xff] %v8139_v31 }
 0x16f   : > { %726 = vrot.lane.b32.xlu1 %v8030_v56, %s7447_s23  ;;  %724 = vrot.lane.b32.xlu0 %v8033_v57, %s7447_s23 }
 0x173   : > { %730 = vrot.lane.b32.xlu1 %v8046_v60, %s7447_s23  ;;  %728 = vrot.lane.b32.xlu0 %v8049_v61, %s7447_s23 }
 0x177   : > { %734 = vrot.lane.b32.xlu1 %v8062_v1, %s7447_s23  ;;  %732 = vrot.lane.b32.xlu0 %v8065_v2, %s7447_s23 }
 0x17b   : > { %738 = vrot.lane.b32.xlu1 %v8078_v5, %s7447_s23  ;;  %736 = vrot.lane.b32.xlu0 %v8081_v6, %s7447_s23 }
 0x17f   : > { %742 = vrot.lane.b32.xlu1 %v8094_v7, %s7447_s23  ;;  %740 = vrot.lane.b32.xlu0 %v8097_v10, %s7447_s23 }
 0x183   : > { %746 = vrot.lane.b32.xlu1 %v8110_v9, %s7447_s23  ;;  %744 = vrot.lane.b32.xlu0 %v8113_v12, %s7447_s23 }
 0x187   : > { %750 = vrot.lane.b32.xlu1 %v8126_v11, %s7447_s23  ;;  %748 = vrot.lane.b32.xlu0 %v8129_v14, %s7447_s23 }
 0x18b   : > { %752 = vrot.lane.b32.xlu0 %v8139_v31, %s7447_s23 }
 0x1bd   : > { %v755_v13 = vpop.permute.xlu1 %754 }
 0x1c1   : > { %v759_v32 = vpop.permute.xlu1 %758  ;;  %v757_v15 = vpop.permute.xlu0 %756 }
 0x1c5   : > { %v763_v35 = vpop.permute.xlu1 %762  ;;  %v761_v36 = vpop.permute.xlu0 %760 }
 0x1c9   : > { %v767_v39 = vpop.permute.xlu1 %766  ;;  %v765_v40 = vpop.permute.xlu0 %764 }
 0x1cd   : > { %v8143_v18 = vpop.permute.xlu1 %770  ;;  %v8145_v43 = vpop.permute.xlu0 %768 }
 0x1d1   : > { %v8147_v46 = vpop.permute.xlu1 %774  ;;  %v8149_v47 = vpop.permute.xlu0 %772 }
 0x1d5   : > { %v8151_v16 = vpop.permute.xlu1 %778  ;;  %v8153_v48 = vpop.permute.xlu0 %776 }
 0x1d9   : > { %v8155_v51 = vpop.permute.xlu1 %782  ;;  %v8157_v53 = vpop.permute.xlu0 %780 }
 0x1dd   : > { %v723_v54 = vpop.permute.xlu1 %722  ;;  %v8160_v58 = vpop.permute.xlu0 %784 }
 0x1de   : > { %v803_v59 = vsel %vm786_vm1, %v755_v13, %v723_v54  ;;  %v787_v63 = vsel %vm786_vm1, %v723_v54, %v755_v13 }
 0x1df   : > { %v8165_v62 = vadd.f32 %v803_v59, %v8012_v52  ;;  %v8174_v20 = vadd.f32 %v787_v63, %v7906_v22 }
 0x1e1   : > { %851 = vrot.lane.b32.xlu1 %v8165_v62, %s7448_s10  ;;  %v727_v3 = vpop.permute.xlu1 %726  ;;  %v725_v4 = vpop.permute.xlu0 %724 }
 0x1e2   : > { %v804_v8 = vsel %vm786_vm1, %v757_v15, %v725_v4  ;;  %v805_v24 = vsel %vm786_vm1, %v759_v32, %v727_v3  ;;  %v788_v25 = vsel %vm786_vm1, %v725_v4, %v757_v15  ;;  %v789_v54 = vsel %vm786_vm1, %v727_v3, %v759_v32 }
 0x1e3   : > { %v8177_v21 = vadd.f32 %v804_v8, %v8033_v57  ;;  %v8188_v28 = vadd.f32 %v805_v24, %v8030_v56  ;;  %v8191_v13 = vadd.f32 %v788_v25, %v7918_v26  ;;  %v8202_v63 = vadd.f32 %v789_v54, %v7913_v23 }
 0x1e5   : > { %883 = vrot.lane.b32.xlu1 %v8174_v20, %s7448_s10  ;;  %853 = vrot.lane.b32.xlu0 %v8177_v21, %s7448_s10  ;;  %v729_v27 = vpop.permute.xlu0 %728  ;;  %v731_v15 = vpop.permute.xlu1 %730 }
 0x1e6   : > { %v806_v59 = vsel %vm786_vm1, %v761_v36, %v729_v27  ;;  %v807_v8 = vsel %vm786_vm1, %v763_v35, %v731_v15  ;;  %v790_v32 = vsel %vm786_vm1, %v729_v27, %v761_v36  ;;  %v791_v54 = vsel %vm786_vm1, %v731_v15, %v763_v35 }
 0x1e7   : > { %v8205_v4 = vadd.f32 %v806_v59, %v8049_v61  ;;  %v8216_v24 = vadd.f32 %v807_v8, %v8046_v60  ;;  %v8219_v25 = vadd.f32 %v790_v32, %v7932_v30  ;;  %v8230_v27 = vadd.f32 %v791_v54, %v7927_v29 }
 0x1e9   : > { %855 = vrot.lane.b32.xlu1 %v8188_v28, %s7448_s10  ;;  %885 = vrot.lane.b32.xlu0 %v8191_v13, %s7448_s10  ;;  %v733_v3 = vpop.permute.xlu0 %732  ;;  %v735_v36 = vpop.permute.xlu1 %734 }
 0x1ea   : > { %v808_v59 = vsel %vm786_vm1, %v765_v40, %v733_v3  ;;  %v809_v32 = vsel %vm786_vm1, %v767_v39, %v735_v36  ;;  %v792_v35 = vsel %vm786_vm1, %v733_v3, %v765_v40 }
 0x1eb   : > { %v8233_v8 = vadd.f32 %v808_v59, %v8065_v2  ;;  %v8244_v0 = vadd.f32 %v809_v32, %v8062_v1  ;;  %v8247_v54 = vadd.f32 %v792_v35, %v7946_v34  ;;  %v793_v59 = vsel %vm786_vm1, %v735_v36, %v767_v39 }
 0x1ec   : > { %v8259_v32 = vadd.f32 %v793_v59, %v7941_v33 }
 0x1ed   : > { %887 = vrot.lane.b32.xlu1 %v8202_v63, %s7448_s10  ;;  %857 = vrot.lane.b32.xlu0 %v8205_v4, %s7448_s10  ;;  %v737_v15 = vpop.permute.xlu0 %736  ;;  %v739_v3 = vpop.permute.xlu1 %738 }
 0x1ee   : > { %v810_v40 = vsel %vm786_vm1, %v8145_v43, %v737_v15  ;;  %v811_v39 = vsel %vm786_vm1, %v8143_v18, %v739_v3  ;;  %v794_v36 = vsel %vm786_vm1, %v737_v15, %v8145_v43 }
 0x1ef   : > { %v8262_v35 = vadd.f32 %v810_v40, %v8081_v6  ;;  %v8275_v59 = vadd.f32 %v811_v39, %v8078_v5  ;;  %v8278_v40 = vadd.f32 %v794_v36, %v7960_v38  ;;  %v795_v6 = vsel %vm786_vm1, %v739_v3, %v8143_v18 }
 0x1f0   : > { %v8291_v39 = vadd.f32 %v795_v6, %v7955_v37 }
 0x1f1   : > { %859 = vrot.lane.b32.xlu1 %v8216_v24, %s7448_s10  ;;  %889 = vrot.lane.b32.xlu0 %v8219_v25, %s7448_s10  ;;  %v741_v17 = vpop.permute.xlu0 %740  ;;  %v743_v15 = vpop.permute.xlu1 %742 }
 0x1f2   : > { %v812_v43 = vsel %vm786_vm1, %v8149_v47, %v741_v17  ;;  %v813_v18 = vsel %vm786_vm1, %v8147_v46, %v743_v15  ;;  %v796_v3 = vsel %vm786_vm1, %v741_v17, %v8149_v47 }
 0x1f3   : > { %v8294_v36 = vadd.f32 %v812_v43, %v8097_v10  ;;  %v8307_v6 = vadd.f32 %v813_v18, %v8094_v7  ;;  %v8310_v43 = vadd.f32 %v796_v3, %v7974_v42  ;;  %v797_v10 = vsel %vm786_vm1, %v743_v15, %v8147_v46 }
 0x1f4   : > { %v8323_v18 = vadd.f32 %v797_v10, %v7969_v41 }
 0x1f5   : > { %891 = vrot.lane.b32.xlu1 %v8230_v27, %s7448_s10  ;;  %861 = vrot.lane.b32.xlu0 %v8233_v8, %s7448_s10  ;;  %v745_v5 = vpop.permute.xlu0 %744  ;;  %v747_v47 = vpop.permute.xlu1 %746 }
 0x1f6   : > { %v814_v17 = vsel %vm786_vm1, %v8153_v48, %v745_v5  ;;  %v815_v46 = vsel %vm786_vm1, %v8151_v16, %v747_v47  ;;  %v798_v15 = vsel %vm786_vm1, %v745_v5, %v8153_v48 }
 0x1f7   : > { %v8326_v3 = vadd.f32 %v814_v17, %v8113_v12  ;;  %v8339_v10 = vadd.f32 %v815_v46, %v8110_v9  ;;  %v8342_v17 = vadd.f32 %v798_v15, %v7988_v45  ;;  %v799_v12 = vsel %vm786_vm1, %v747_v47, %v8151_v16 }
 0x1f8   : > { %v8355_v46 = vadd.f32 %v799_v12, %v7983_v44 }
 0x1f9   : > { %863 = vrot.lane.b32.xlu1 %v8244_v0, %s7448_s10  ;;  %893 = vrot.lane.b32.xlu0 %v8247_v54, %s7448_s10  ;;  %v749_v7 = vpop.permute.xlu0 %748  ;;  %v751_v48 = vpop.permute.xlu1 %750 }
 0x1fa   : > { %v816_v5 = vsel %vm786_vm1, %v8157_v53, %v749_v7  ;;  %v817_v16 = vsel %vm786_vm1, %v8155_v51, %v751_v48  ;;  %v800_v47 = vsel %vm786_vm1, %v749_v7, %v8157_v53 }
 0x1fb   : > { %v8358_v15 = vadd.f32 %v816_v5, %v8129_v14  ;;  %v8371_v12 = vadd.f32 %v817_v16, %v8126_v11  ;;  %v8374_v5 = vadd.f32 %v800_v47, %v8005_v50  ;;  %v801_v14 = vsel %vm786_vm1, %v751_v48, %v8155_v51 }
 0x1fc   : > { %v8387_v53 = vadd.f32 %v801_v14, %v8000_v49  ;;  %v13513_v14 = vlaneseq }
 0x1fd   : > { %895 = vrot.lane.b32.xlu1 %v8259_v32, %s7448_s10  ;;  %865 = vrot.lane.b32.xlu0 %v8262_v35, %s7448_s10  ;;  %v753_v9 = vpop.permute.xlu0 %752  ;;  %13508 = vst [vmem:[#allocation37_spill] sm:$0xff] %v8371_v12  ;;  %13509 = vst [vmem:[#allocation38_spill] sm:$0xff] %v8374_v5 }
 0x1fe   : > { %v818_v7 = vsel %vm786_vm1, %v8160_v58, %v753_v9  ;;  %13510 = vst [vmem:[#allocation39_spill] sm:$0xff] %v8387_v53  ;;  %v802_v51 = vsel %vm786_vm1, %v753_v9, %v8160_v58  ;;  %v8405_v47 = vshrl.u32 %v13513_v14, 7  ;;  %v620_v58 = vld [vmem:[%s13006_s4] sm:$0x3] }
 0x1ff   : > { %v8390_v16 = vadd.f32 %v818_v7, %v8139_v31  ;;  %v8400_v48 = vadd.f32 %v802_v51, %v8023_v55 }
 0x200   : > { %13514 = vst [vmem:[#allocation42_spill] sm:$0xff] %v8405_v47  ;;  %v8409_v9 = vsub.s32 0, %v8405_v47  ;;  %v8415_v51 = vsub.s32 1, %v8405_v47 }
 0x201   : > { %867 = vrot.lane.b32.xlu1 %v8275_v59, %s7448_s10  ;;  %897 = vrot.lane.b32.xlu0 %v8278_v40, %s7448_s10  ;;  %13511 = vst [vmem:[#allocation40_spill] sm:$0xff] %v8390_v16  ;;  %13512 = vst [vmem:[#allocation41_spill] sm:$0xff] %v8400_v48 }
 0x202   : > { %13515 = vst [vmem:[#allocation43_spill] sm:$0xff] %v8409_v9  ;;  %13516 = vst [vmem:[#allocation44_spill] sm:$0xff] %v8415_v51  ;;  %v8422_v49 = vrot.slane %v620_v58, %v8409_v9  ;;  %v8428_v47 = vrot.slane %v620_v58, %v8415_v51 }
 0x205   : > { %899 = vrot.lane.b32.xlu1 %v8291_v39, %s7448_s10  ;;  %869 = vrot.lane.b32.xlu0 %v8294_v36, %s7448_s10 }
 0x209   : > { %871 = vrot.lane.b32.xlu1 %v8307_v6, %s7448_s10  ;;  %901 = vrot.lane.b32.xlu0 %v8310_v43, %s7448_s10 }
 0x20d   : > { %903 = vrot.lane.b32.xlu1 %v8323_v18, %s7448_s10  ;;  %873 = vrot.lane.b32.xlu0 %v8326_v3, %s7448_s10 }
 0x211   : > { %875 = vrot.lane.b32.xlu1 %v8339_v10, %s7448_s10  ;;  %905 = vrot.lane.b32.xlu0 %v8342_v17, %s7448_s10 }
 0x215   : > { %907 = vrot.lane.b32.xlu1 %v8355_v46, %s7448_s10  ;;  %877 = vrot.lane.b32.xlu0 %v8358_v15, %s7448_s10 }
 0x219   : > { %879 = vrot.lane.b32.xlu1 %v8371_v12, %s7448_s10  ;;  %909 = vrot.lane.b32.xlu0 %v8374_v5, %s7448_s10 }
 0x21d   : > { %911 = vrot.lane.b32.xlu1 %v8387_v53, %s7448_s10  ;;  %881 = vrot.lane.b32.xlu0 %v8390_v16, %s7448_s10 }
 0x221   : > { %913 = vrot.lane.b32.xlu0 %v8400_v48, %s7448_s10 }
 0x253   : > { %v852_v7 = vpop.permute.xlu1 %851 }
 0x257   : > { %v884_v11 = vpop.permute.xlu1 %883  ;;  %v854_v31 = vpop.permute.xlu0 %853 }
 0x258   : > { %v916_v53 = vsel %vm13291_vm2, %v852_v7, %v884_v11  ;;  %v932_v14 = vsel %vm13291_vm2, %v884_v11, %v852_v7 }
 0x259   : > { %v948_v55 = vadd.f32 %v932_v14, %v8165_v62  ;;  %v949_v48 = vadd.f32 %v916_v53, %v8174_v20 }
 0x25b   : > { %v980_v12 = vadd.f32 %v948_v55, %v7906_v22  ;;  %v856_v16 = vpop.permute.xlu1 %855  ;;  %v886_v5 = vpop.permute.xlu0 %885  ;;  %v981_v7 = vadd.f32 %v949_v48, %v8012_v52 }
 0x25c   : > { %v917_v50 = vsel %vm13291_vm2, %v854_v31, %v886_v5  ;;  %v933_v11 = vsel %vm13291_vm2, %v886_v5, %v854_v31 }
 0x25d   : > { %v8436_v9 = vsub.f32 %v980_v12, %v8422_v49  ;;  %v950_v62 = vadd.f32 %v933_v11, %v8177_v21  ;;  %v951_v22 = vadd.f32 %v917_v50, %v8191_v13  ;;  %v8449_v21 = vsub.f32 %v981_v7, %v8428_v47 }
 0x25f   : > { %13517 = vst [vmem:[#allocation45_spill] sm:$0xff] %v8436_v9  ;;  %v982_v55 = vadd.f32 %v950_v62, %v7918_v26  ;;  %1055 = vrot.lane.b32.xlu1 %v8436_v9, %s7449_s8  ;;  %v888_v20 = vpop.permute.xlu1 %887  ;;  %v858_v53 = vpop.permute.xlu0 %857  ;;  %v983_v58 = vadd.f32 %v951_v22, %v8033_v57  ;;  %13518 = vst [vmem:[#allocation46_spill] sm:$0xff] %v8449_v21  ;;  %vm1152_vm5 = vcmp.ge.f32.partialorder %v8436_v9, 0.0  ;;  %vm1184_vm6 = vcmp.lt.f32.partialorder %v8436_v9, 0.5 }
 0x260   : > { %v918_v52 = vsel %vm13291_vm2, %v856_v16, %v888_v20  ;;  %v934_v31 = vsel %vm13291_vm2, %v888_v20, %v856_v16  ;;  %vm8582_vm10 = vmand %vm1152_vm5, %vm1184_vm6  ;;  %vm1153_vm11 = vcmp.ge.f32.partialorder %v8449_v21, 0.0  ;;  %vm1185_vm12 = vcmp.lt.f32.partialorder %v8449_v21, 0.5 }
 0x261   : > { %v8452_v50 = vsub.f32 %v982_v55, %v8422_v49  ;;  %v952_v26 = vadd.f32 %v934_v31, %v8188_v28  ;;  %v953_v13 = vadd.f32 %v918_v52, %v8202_v63  ;;  %v8462_v16 = vsub.f32 %v983_v58, %v8428_v47  ;;  %vm1217_vm0 = vmand %vm1153_vm11, %vm1185_vm12 }
 0x263   : > { %13519 = vst [vmem:[#allocation47_spill] sm:$0xff] %v8452_v50  ;;  %v984_v12 = vadd.f32 %v952_v26, %v7913_v23  ;;  %1087 = vrot.lane.b32.xlu1 %v8449_v21, %s7449_s8  ;;  %v860_v57 = vpop.permute.xlu1 %859  ;;  %1057 = vrot.lane.b32.xlu0 %v8452_v50, %s7449_s8  ;;  %v890_v5 = vpop.permute.xlu0 %889  ;;  %v985_v63 = vadd.f32 %v953_v13, %v8030_v56  ;;  %vm1154_vm3 = vcmp.ge.f32.partialorder %v8452_v50, 0.0  ;;  %vm1186_vm4 = vcmp.lt.f32.partialorder %v8452_v50, 0.5 }
 0x264   : > { %v919_v48 = vsel %vm13291_vm2, %v858_v53, %v890_v5  ;;  %v935_v28 = vsel %vm13291_vm2, %v890_v5, %v858_v53  ;;  %vm1218_vm7 = vmand %vm1154_vm3, %vm1186_vm4  ;;  %vm1155_vm8 = vcmp.ge.f32.partialorder %v8462_v16, 0.0  ;;  %vm1187_vm9 = vcmp.lt.f32.partialorder %v8462_v16, 0.5 }
 0x265   : > { %v8470_v23 = vsub.f32 %v984_v12, %v8422_v49  ;;  %v954_v14 = vadd.f32 %v935_v28, %v8205_v4  ;;  %v955_v11 = vadd.f32 %v919_v48, %v8219_v25  ;;  %v8485_v25 = vsub.f32 %v985_v63, %v8428_v47  ;;  %vm1219_vm13 = vmand %vm1155_vm8, %vm1187_vm9 }
 0x267   : > { %13520 = vst [vmem:[#allocation48_spill] sm:$0xff] %v8470_v23  ;;  %v986_v7 = vadd.f32 %v954_v14, %v7932_v30  ;;  %1059 = vrot.lane.b32.xlu1 %v8470_v23, %s7449_s8  ;;  %v892_v62 = vpop.permute.xlu1 %891  ;;  %1089 = vrot.lane.b32.xlu0 %v8462_v16, %s7449_s8  ;;  %v862_v22 = vpop.permute.xlu0 %861  ;;  %v987_v55 = vadd.f32 %v955_v11, %v8049_v61  ;;  %vm1156_vm3 = vcmp.ge.f32.partialorder %v8470_v23, 0.0  ;;  %vm1188_vm4 = vcmp.lt.f32.partialorder %v8470_v23, 0.5 }
 0x268   : > { %v920_v56 = vsel %vm13291_vm2, %v860_v57, %v892_v62  ;;  %v936_v4 = vsel %vm13291_vm2, %v892_v62, %v860_v57  ;;  %vm1220_vm8 = vmand %vm1156_vm3, %vm1188_vm4  ;;  %vm1157_vm9 = vcmp.ge.f32.partialorder %v8485_v25, 0.0 }
 0x269   : > { %v8488_v30 = vsub.f32 %v986_v7, %v8422_v49  ;;  %v956_v20 = vadd.f32 %v936_v4, %v8216_v24  ;;  %v957_v53 = vadd.f32 %v920_v56, %v8230_v27  ;;  %v8498_v31 = vsub.f32 %v987_v55, %v8428_v47 }
 0x26b   : > { %v988_v58 = vadd.f32 %v956_v20, %v7927_v29  ;;  %1091 = vrot.lane.b32.xlu1 %v8485_v25, %s7449_s8  ;;  %v864_v61 = vpop.permute.xlu1 %863  ;;  %1061 = vrot.lane.b32.xlu0 %v8488_v30, %s7449_s8  ;;  %v894_v52 = vpop.permute.xlu0 %893  ;;  %v989_v27 = vadd.f32 %v957_v53, %v8046_v60  ;;  %vm1158_vm14 = vcmp.ge.f32.partialorder %v8488_v30, 0.0  ;;  %vm1190_vm15 = vcmp.lt.f32.partialorder %v8488_v30, 0.5 }
 0x26c   : > { %v921_v26 = vsel %vm13291_vm2, %v862_v22, %v894_v52  ;;  %v937_v24 = vsel %vm13291_vm2, %v894_v52, %v862_v22  ;;  %vm1222_vm5 = vmand %vm1158_vm14, %vm1190_vm15  ;;  %vm1159_vm6 = vcmp.ge.f32.partialorder %v8498_v31, 0.0 }
 0x26d   : > { %v8506_v29 = vsub.f32 %v988_v58, %v8422_v49  ;;  %v958_v13 = vadd.f32 %v937_v24, %v8233_v8  ;;  %v959_v12 = vadd.f32 %v921_v26, %v8247_v54  ;;  %v8521_v54 = vsub.f32 %v989_v27, %v8428_v47 }
 0x26f   : > { %v990_v57 = vadd.f32 %v958_v13, %v7946_v34  ;;  %1063 = vrot.lane.b32.xlu1 %v8506_v29, %s7449_s8  ;;  %v896_v5 = vpop.permute.xlu1 %895  ;;  %1093 = vrot.lane.b32.xlu0 %v8498_v31, %s7449_s8  ;;  %v866_v48 = vpop.permute.xlu0 %865  ;;  %v991_v28 = vadd.f32 %v959_v12, %v8065_v2  ;;  %13521 = vst [vmem:[#allocation49_spill] sm:$0xff] %v8521_v54  ;;  %vm1160_vm15 = vcmp.ge.f32.partialorder %v8506_v29, 0.0 }
 0x270   : > { %v922_v60 = vsel %vm13291_vm2, %v864_v61, %v896_v5  ;;  %v938_v8 = vsel %vm13291_vm2, %v896_v5, %v864_v61 }
 0x271   : > { %v8524_v34 = vsub.f32 %v990_v57, %v8422_v49  ;;  %v960_v63 = vadd.f32 %v938_v8, %v8244_v0  ;;  %v961_v14 = vadd.f32 %v922_v60, %v8259_v32  ;;  %v8534_v62 = vsub.f32 %v991_v28, %v8428_v47 }
 0x273   : > { %v992_v11 = vadd.f32 %v960_v63, %v7941_v33  ;;  %1095 = vrot.lane.b32.xlu1 %v8521_v54, %s7449_s8  ;;  %v868_v2 = vpop.permute.xlu1 %867  ;;  %1065 = vrot.lane.b32.xlu0 %v8524_v34, %s7449_s8  ;;  %v898_v7 = vpop.permute.xlu0 %897  ;;  %v993_v32 = vadd.f32 %v961_v14, %v8062_v1  ;;  %vm1162_vm12 = vcmp.ge.f32.partialorder %v8524_v34, 0.0  ;;  %vm1163_vm4 = vcmp.ge.f32.partialorder %v8534_v62, 0.0 }
 0x274   : > { %v923_v22 = vsel %vm13291_vm2, %v866_v48, %v898_v7  ;;  %v939_v0 = vsel %vm13291_vm2, %v898_v7, %v866_v48 }
 0x275   : > { %v8542_v33 = vsub.f32 %v992_v11, %v8422_v49  ;;  %v962_v55 = vadd.f32 %v939_v0, %v8262_v35  ;;  %v963_v56 = vadd.f32 %v923_v22, %v8278_v40  ;;  %v8558_v35 = vsub.f32 %v993_v32, %v8428_v47  ;;  %v13524_v40 = vld [vmem:[#allocation29_spill] sm:$0xff]  ;;  %v13531_v11 = vld [vmem:[#allocation28_spill] sm:$0xff] }
 0x277   : > { %13522 = vst [vmem:[#allocation50_spill] sm:$0xff] %v8542_v33  ;;  %v994_v4 = vadd.f32 %v962_v55, %v7960_v38  ;;  %1067 = vrot.lane.b32.xlu1 %v8542_v33, %s7449_s8  ;;  %v900_v20 = vpop.permute.xlu1 %899  ;;  %1097 = vrot.lane.b32.xlu0 %v8534_v62, %s7449_s8  ;;  %v870_v1 = vpop.permute.xlu0 %869  ;;  %13523 = vst [vmem:[#allocation51_spill] sm:$0xff] %v8558_v35  ;;  %v995_v38 = vadd.f32 %v963_v56, %v13524_v40 }
 0x278   : > { %v940_v53 = vsel %vm13291_vm2, %v900_v20, %v868_v2  ;;  %v924_v52 = vsel %vm13291_vm2, %v868_v2, %v900_v20  ;;  %v13534_v20 = vld [vmem:[#allocation31_spill] sm:$0xff] }
 0x279   : > { %v8562_v58 = vsub.f32 %v994_v4, %v8422_v49  ;;  %v964_v61 = vadd.f32 %v940_v53, %v8275_v59  ;;  %v8592_v57 = vsub.f32 %v995_v38, %v8428_v47  ;;  %v965_v5 = vadd.f32 %v924_v52, %v8291_v39 }
 0x27b   : > { %13525 = vst [vmem:[#allocation29_spill] sm:$0xff] %v8562_v58  ;;  %v996_v26 = vadd.f32 %v964_v61, %v7955_v37  ;;  %1099 = vrot.lane.b32.xlu1 %v8558_v35, %s7449_s8  ;;  %v8572_v24 = vpop.permute.xlu1 %871  ;;  %1069 = vrot.lane.b32.xlu0 %v8562_v58, %s7449_s8  ;;  %v902_v27 = vpop.permute.xlu0 %901  ;;  %v13528_v37 = vmov 0.0   ;;  %13529 = vst [vmem:[#allocation52_spill] sm:$0xff] %v8592_v57  ;;  %v997_v2 = vadd.f32 %v965_v5, %v13531_v11 }
 0x27c   : > { %v941_v59 = vsel %vm13291_vm2, %v902_v27, %v870_v1  ;;  %v8587_v12 = vsel %vm1218_vm7, 1.0, %v13528_v37  ;;  %v925_v60 = vsel %vm13291_vm2, %v870_v1, %v902_v27  ;;  %v8615_v63 = vsel %vm8582_vm10, 1.0, %v13528_v37 }
 0x27d   : > { %v8596_v48 = vsub.f32 %v996_v26, %v8422_v49  ;;  %v966_v28 = vadd.f32 %v941_v59, %v8294_v36  ;;  %v6597_v14 = vpack.i.bf16 %v8587_v12, %v8615_v63  ;;  %v967_v7 = vadd.f32 %v925_v60, %v8310_v43 }
 0x27e   : > { %vm1191_vm7 = vcmp.lt.f32.partialorder %v8498_v31, 0.5  ;;  %v8646_v32 = vsel %vm1217_vm0, 1.0, %v13528_v37  ;;  %v8651_v56 = vsel %vm1222_vm5, 1.0, %v13528_v37  ;;  %v8655_v4 = vsub.f32 %v997_v2, %v8428_v47 }
 0x27f   : > { %13530 = vst [vmem:[#allocation53_spill] sm:$0xff] %v8596_v48  ;;  %v998_v8 = vadd.f32 %v966_v28, %v7974_v42  ;;  %1071 = vrot.lane.b32.xlu1 %v8596_v48, %s7449_s8  ;;  %v904_v39 = vpop.permute.xlu1 %903  ;;  %1101 = vrot.lane.b32.xlu0 %v8592_v57, %s7449_s8  ;;  %v874_v36 = vpop.permute.xlu0 %873  ;;  %v8624_v42 = vsel %vm1219_vm13, 1.0, %v13528_v37  ;;  %v999_v1 = vadd.f32 %v967_v7, %v13534_v20  ;;  %vm1189_vm10 = vcmp.lt.f32.partialorder %v8485_v25, 0.5  ;;  %vm1223_vm11 = vmand %vm1159_vm6, %vm1191_vm7 }
 0x280   : > { %v942_v0 = vsel %vm13291_vm2, %v904_v39, %v8572_v24  ;;  %v6602_v55 = vpack.i.bf16 %v8624_v42, %v8646_v32  ;;  %13533 = vst [vmem:[#allocation54_spill] sm:$0xff] %v8655_v4  ;;  %vm1194_vm13 = vcmp.lt.f32.partialorder %v8524_v34, 0.5  ;;  %v8668_v38 = vsel %vm1220_vm8, 1.0, %v13528_v37  ;;  %vm1221_vm14 = vmand %vm1157_vm9, %vm1189_vm10 }
 0x281   : > { %v8630_v22 = vsub.f32 %v998_v8, %v8422_v49  ;;  %v968_v53 = vadd.f32 %v942_v0, %v8307_v6  ;;  %v6607_v6 = vpack.i.bf16 %v8651_v56, %v8668_v38  ;;  %v8673_v61 = vsel %vm1223_vm11, 1.0, %v13528_v37  ;;  %vm1226_vm3 = vmand %vm1162_vm12, %vm1194_vm13 }
 0x282   : > { %v8677_v52 = vsub.f32 %v999_v1, %v8428_v47  ;;  %vm1192_vm0 = vcmp.lt.f32.partialorder %v8506_v29, 0.5  ;;  %v926_v13 = vsel %vm13291_vm2, %v8572_v24, %v904_v39  ;;  %vm1195_vm5 = vcmp.lt.f32.partialorder %v8534_v62, 0.5 }
 0x283   : > { %13532 = vst [vmem:[#allocation28_spill] sm:$0xff] %v8630_v22  ;;  %6598 = vrot.lane.b32.xlu1 %v6597_v14, %s7449_s8  ;;  %1073 = vrot.lane.b32.xlu0 %v8630_v22, %s7449_s8  ;;  %v906_v43 = vpop.permute.xlu0 %905  ;;  %v1000_v26 = vadd.f32 %v968_v53, %v7969_v41  ;;  %v876_v27 = vpop.permute.xlu1 %875  ;;  %v8691_v41 = vsel %vm1221_vm14, 1.0, %v13528_v37  ;;  %vm1224_vm6 = vmand %vm1160_vm15, %vm1192_vm0  ;;  %v8700_v24 = vsel %vm1226_vm3, 1.0, %v13528_v37  ;;  %vm1161_vm7 = vcmp.ge.f32.partialorder %v8521_v54, 0.0  ;;  %v13540_v53 = vld [vmem:[#allocation33_spill] sm:$0xff] }
 0x284   : > { %v943_v40 = vsel %vm13291_vm2, %v906_v43, %v874_v36  ;;  %13535 = vst [vmem:[#allocation31_spill] sm:$0xff] %v8677_v52  ;;  %v6612_v5 = vpack.i.bf16 %v8673_v61, %v8691_v41  ;;  %v969_v28 = vadd.f32 %v926_v13, %v8323_v18  ;;  %vm1193_vm8 = vcmp.lt.f32.partialorder %v8521_v54, 0.5  ;;  %vm1227_vm9 = vmand %vm1163_vm4, %vm1195_vm5 }
 0x285   : > { %v970_v59 = vadd.f32 %v943_v40, %v8326_v3  ;;  %v8705_v60 = vsub.f32 %v1000_v26, %v8422_v49  ;;  %v927_v39 = vsel %vm13291_vm2, %v874_v36, %v906_v43  ;;  %v8715_v11 = vsel %vm1224_vm6, 1.0, %v13528_v37  ;;  %vm1225_vm12 = vmand %vm1161_vm7, %vm1193_vm8  ;;  %v13537_v36 = vld [vmem:[#allocation30_spill] sm:$0xff] }
 0x286   : > { %vm1166_vm10 = vcmp.ge.f32.partialorder %v8562_v58, 0.0  ;;  %vm1198_vm11 = vcmp.lt.f32.partialorder %v8562_v58, 0.5  ;;  %v8722_v18 = vsel %vm1227_vm9, 1.0, %v13528_v37  ;;  %vm1164_vm13 = vcmp.ge.f32.partialorder %v8542_v33, 0.0 }
 0x287   : > { %1103 = vrot.lane.b32.xlu1 %v8655_v4, %s7449_s8  ;;  %6603 = vrot.lane.b32.xlu0 %v6602_v55, %s7449_s8  ;;  %v8693_v3 = vpop.permute.xlu0 %877  ;;  %13536 = vst [vmem:[#allocation55_spill] sm:$0xff] %v8705_v60  ;;  %v1002_v8 = vadd.f32 %v970_v59, %v7988_v45  ;;  %v908_v14 = vpop.permute.xlu1 %907  ;;  %v6617_v45 = vpack.i.bf16 %v8700_v24, %v8715_v11  ;;  %vm1196_vm14 = vcmp.lt.f32.partialorder %v8542_v33, 0.5  ;;  %vm1230_vm15 = vmand %vm1166_vm10, %vm1198_vm11  ;;  %vm1167_vm0 = vcmp.ge.f32.partialorder %v8592_v57, 0.0 }
 0x288   : > { %v1001_v2 = vadd.f32 %v969_v28, %v13537_v36  ;;  %v971_v7 = vadd.f32 %v927_v39, %v8342_v17  ;;  %v944_v43 = vsel %vm13291_vm2, %v908_v14, %v876_v27  ;;  %vm1199_vm3 = vcmp.lt.f32.partialorder %v8592_v57, 0.5  ;;  %vm1228_vm4 = vmand %vm1164_vm13, %vm1196_vm14 }
 0x289   : > { %v8728_v0 = vsub.f32 %v1002_v8, %v8422_v49  ;;  %v8739_v17 = vsel %vm1225_vm12, 1.0, %v13528_v37  ;;  %vm1165_vm5 = vcmp.ge.f32.partialorder %v8558_v35, 0.0  ;;  %vm1197_vm6 = vcmp.lt.f32.partialorder %v8558_v35, 0.5  ;;  %vm1231_vm7 = vmand %vm1167_vm0, %vm1199_vm3 }
 0x28a   : > { %v6622_v20 = vpack.i.bf16 %v8722_v18, %v8739_v17  ;;  %v8746_v1 = vsub.f32 %v1001_v2, %v8428_v47  ;;  %v1003_v40 = vadd.f32 %v971_v7, %v13540_v53  ;;  %v8751_v26 = vsel %vm1230_vm15, 1.0, %v13528_v37  ;;  %vm1229_vm10 = vmand %vm1165_vm5, %vm1197_vm6  ;;  %v13543_v7 = vld [vmem:[#allocation26_spill] sm:$0xff] }
 0x28b   : > { %6608 = vrot.lane.b32.xlu1 %v6607_v6, %s7449_s8  ;;  %1105 = vrot.lane.b32.xlu0 %v8677_v52, %s7449_s8  ;;  %13538 = vst [vmem:[#allocation30_spill] sm:$0xff] %v8728_v0  ;;  %v910_v55 = vpop.permute.xlu0 %909  ;;  %v972_v6 = vadd.f32 %v944_v43, %v8339_v10  ;;  %v8760_v13 = vsel %vm1228_vm4, 1.0, %v13528_v37  ;;  %vm1170_vm8 = vcmp.ge.f32.partialorder %v8630_v22, 0.0  ;;  %vm1202_vm9 = vcmp.lt.f32.partialorder %v8630_v22, 0.5 }
 0x28c   : > { %13539 = vst [vmem:[#allocation56_spill] sm:$0xff] %v8746_v1  ;;  %v945_v59 = vsel %vm13291_vm2, %v910_v55, %v8693_v3  ;;  %v928_v10 = vsel %vm13291_vm2, %v876_v27, %v908_v14  ;;  %v6627_v28 = vpack.i.bf16 %v8751_v26, %v8760_v13  ;;  %v8773_v8 = vsel %vm1231_vm7, 1.0, %v13528_v37  ;;  %v880_v27 = vpop.permute.xlu1 %879  ;;  %vm1234_vm13 = vmand %vm1170_vm8, %vm1202_vm9 }
 0x28d   : > { %vm1168_vm11 = vcmp.ge.f32.partialorder %v8596_v48, 0.0  ;;  %v8777_v39 = vsub.f32 %v1003_v40, %v8428_v47  ;;  %v974_v14 = vadd.f32 %v945_v59, %v8358_v15  ;;  %vm1200_vm12 = vcmp.lt.f32.partialorder %v8596_v48, 0.5  ;;  %v13546_v40 = vld [vmem:[#allocation38_spill] sm:$0xff] }
 0x28e   : > { %v973_v36 = vadd.f32 %v928_v10, %v8355_v46  ;;  %v8787_v2 = vsel %vm1229_vm10, 1.0, %v13528_v37  ;;  %vm1171_vm14 = vcmp.ge.f32.partialorder %v8677_v52, 0.0  ;;  %vm1203_vm15 = vcmp.lt.f32.partialorder %v8677_v52, 0.5  ;;  %vm1232_vm0 = vmand %vm1168_vm11, %vm1200_vm12 }
 0x28f   : > { %1075 = vrot.lane.b32.xlu1 %v8705_v60, %s7449_s8  ;;  %6613 = vrot.lane.b32.xlu0 %v6612_v5, %s7449_s8  ;;  %v882_v5 = vpop.permute.xlu0 %881  ;;  %13541 = vst [vmem:[#allocation33_spill] sm:$0xff] %v8777_v39  ;;  %v6632_v15 = vpack.i.bf16 %v8773_v8, %v8787_v2  ;;  %vm1169_vm3 = vcmp.ge.f32.partialorder %v8655_v4, 0.0  ;;  %v1006_v43 = vadd.f32 %v974_v14, %v13543_v7  ;;  %vm1201_vm4 = vcmp.lt.f32.partialorder %v8655_v4, 0.5  ;;  %vm1235_vm5 = vmand %vm1171_vm14, %vm1203_vm15  ;;  %v13551_v7 = vld [vmem:[#allocation35_spill] sm:$0xff] }
 0x290   : > { %v912_v59 = vpop.permute.xlu1 %911  ;;  %v8813_v10 = vsel %vm1232_vm0, 1.0, %v13528_v37  ;;  %vm1233_vm6 = vmand %vm1169_vm3, %vm1201_vm4  ;;  %vm1172_vm7 = vcmp.ge.f32.partialorder %v8705_v60, 0.0  ;;  %vm1174_vm8 = vcmp.ge.f32.partialorder %v8728_v0, 0.0  ;;  %vm1206_vm9 = vcmp.lt.f32.partialorder %v8728_v0, 0.5 }
 0x291   : > { %vm1204_vm10 = vcmp.lt.f32.partialorder %v8705_v60, 0.5  ;;  %vm1238_vm11 = vmand %vm1174_vm8, %vm1206_vm9  ;;  %vm1207_vm14 = vcmp.lt.f32.partialorder %v8777_v39, 0.5  ;;  %vm1173_vm15 = vcmp.ge.f32.partialorder %v8746_v1, 0.0  ;;  %vm1205_vm0 = vcmp.lt.f32.partialorder %v8746_v1, 0.5 }
 0x292   : > { %vm1236_vm12 = vmand %vm1172_vm7, %vm1204_vm10 }
 0x293   : > { %6618 = vrot.lane.b32.xlu1 %v6617_v45, %s7449_s8  ;;  %1077 = vrot.lane.b32.xlu0 %v8728_v0, %s7449_s8  ;;  %v1004_v45 = vadd.f32 %v972_v6, %v7983_v44  ;;  %v929_v44 = vsel %vm13291_vm2, %v8693_v3, %v910_v55  ;;  %v914_v53 = vpop.permute.xlu0 %913  ;;  %v13545_v3 = vld [vmem:[#allocation32_spill] sm:$0xff]  ;;  %vm1237_vm4 = vmand %vm1173_vm15, %vm1205_vm0 }
 0x294   : > { %v1005_v55 = vadd.f32 %v973_v36, %v13545_v3  ;;  %v975_v6 = vadd.f32 %v929_v44, %v13546_v40  ;;  %13547 = vst [vmem:[#allocation32_spill] sm:$0xff] %v8813_v10  ;;  %v947_v14 = vsel %vm13291_vm2, %v914_v53, %v882_v5  ;;  %v8826_v36 = vsel %vm1235_vm5, 1.0, %v13528_v37  ;;  %v13553_v40 = vld [vmem:[#allocation40_spill] sm:$0xff] }
 0x295   : > { %v8800_v46 = vsub.f32 %v1004_v45, %v8422_v49  ;;  %v8821_v45 = vsub.f32 %v1006_v43, %v8422_v49  ;;  %13549 = vst [vmem:[#allocation58_spill] sm:$0xff] %v8826_v36  ;;  %v946_v44 = vsel %vm13291_vm2, %v912_v59, %v880_v27  ;;  %v8839_v43 = vsel %vm1233_vm6, 1.0, %v13528_v37 }
 0x296   : > { %v1007_v3 = vadd.f32 %v975_v6, %v13551_v7  ;;  %13552 = vst [vmem:[#allocation35_spill] sm:$0xff] %v8839_v43  ;;  %v978_v51 = vadd.f32 %v947_v14, %v13553_v40  ;;  %v6642_v0 = vpack.i.bf16 %v8826_v36, %v8839_v43  ;;  %v8854_v14 = vsel %vm1238_vm11, 1.0, %v13528_v37 }
 0x297   : > { %1107 = vrot.lane.b32.xlu1 %v8746_v1, %s7449_s8  ;;  %6623 = vrot.lane.b32.xlu0 %v6622_v20, %s7449_s8  ;;  %13542 = vst [vmem:[#allocation57_spill] sm:$0xff] %v8800_v46  ;;  %v8804_v20 = vsel %vm1234_vm13, 1.0, %v13528_v37  ;;  %13548 = vst [vmem:[#allocation38_spill] sm:$0xff] %v8821_v45  ;;  %vm1175_vm13 = vcmp.ge.f32.partialorder %v8777_v39, 0.0  ;;  %v930_v40 = vsel %vm13291_vm2, %v880_v27, %v912_v59  ;;  %vm1178_vm5 = vcmp.ge.f32.partialorder %v8821_v45, 0.0  ;;  %v13561_v1 = vld [vmem:[#allocation39_spill] sm:$0xff] }
 0x298   : > { %13544 = vst [vmem:[#allocation26_spill] sm:$0xff] %v8804_v20  ;;  %13555 = vst [vmem:[#allocation40_spill] sm:$0xff] %v8854_v14  ;;  %v8857_v7 = vsub.f32 %v1007_v3, %v8428_v47  ;;  %vm1210_vm6 = vcmp.lt.f32.partialorder %v8821_v45, 0.5  ;;  %v13560_v3 = vld [vmem:[#allocation25_spill] sm:$0xff]  ;;  %vm1176_vm7 = vcmp.ge.f32.partialorder %v8800_v46, 0.0  ;;  %vm1208_vm8 = vcmp.lt.f32.partialorder %v8800_v46, 0.5 }
 0x299   : > { %vm1239_vm3 = vmand %vm1175_vm13, %vm1207_vm14 }
 0x29a   : > { %v8876_v60 = vsel %vm1239_vm3, 1.0, %v13528_v37  ;;  %vm1242_vm9 = vmand %vm1178_vm5, %vm1210_vm6  ;;  %vm1179_vm10 = vcmp.ge.f32.partialorder %v8857_v7, 0.0  ;;  %vm1211_vm11 = vcmp.lt.f32.partialorder %v8857_v7, 0.5 }
 0x29b   : > { %6628 = vrot.lane.b32.xlu1 %v6627_v28, %s7449_s8  ;;  %1109 = vrot.lane.b32.xlu0 %v8777_v39, %s7449_s8  ;;  %v6637_v28 = vpack.i.bf16 %v8804_v20, %v8813_v10  ;;  %vm1243_vm15 = vmand %vm1179_vm10, %vm1211_vm11 }
 0x29f   : > { %1079 = vrot.lane.b32.xlu1 %v8800_v46, %s7449_s8  ;;  %6633 = vrot.lane.b32.xlu0 %v6632_v15, %s7449_s8  ;;  %v8832_v15 = vsub.f32 %v1005_v55, %v8428_v47  ;;  %v13554_v55 = vld [vmem:[#allocation37_spill] sm:$0xff] }
 0x2a0   : > { %v976_v6 = vadd.f32 %v946_v44, %v13554_v55  ;;  %13556 = vst [vmem:[#allocation37_spill] sm:$0xff] %v8857_v7  ;;  %v13559_v55 = vld [vmem:[#allocation27_spill] sm:$0xff] }
 0x2a1   : > { %13550 = vst [vmem:[#allocation59_spill] sm:$0xff] %v8832_v15  ;;  %v1010_v39 = vadd.f32 %v978_v51, %v13559_v55  ;;  %v8884_v51 = vsel %vm1237_vm4, 1.0, %v13528_v37  ;;  %v13567_v55 = vld [vmem:[#allocation34_spill] sm:$0xff]  ;;  %vm1177_vm13 = vcmp.ge.f32.partialorder %v8832_v15, 0.0  ;;  %vm1209_vm14 = vcmp.lt.f32.partialorder %v8832_v15, 0.5 }
 0x2a2   : > { %v1008_v27 = vadd.f32 %v976_v6, %v13560_v3  ;;  %13563 = vst [vmem:[#allocation27_spill] sm:$0xff] %v8884_v51  ;;  %v13564_v6 = vld [vmem:[#allocation36_spill] sm:$0xff]  ;;  %vm1241_vm4 = vmand %vm1177_vm13, %vm1209_vm14 }
 0x2a3   : > { %6638 = vrot.lane.b32.xlu1 %v6637_v28, %s7449_s8  ;;  %1081 = vrot.lane.b32.xlu0 %v8821_v45, %s7449_s8  ;;  %v931_v28 = vsel %vm13291_vm2, %v882_v5, %v914_v53  ;;  %v8865_v5 = vsel %vm1236_vm12, 1.0, %v13528_v37  ;;  %v13558_v53 = vld [vmem:[#allocation41_spill] sm:$0xff]  ;;  %vm1240_vm12 = vmand %vm1176_vm7, %vm1208_vm8 }
 0x2a4   : > { %13557 = vst [vmem:[#allocation60_spill] sm:$0xff] %v8865_v5  ;;  %v979_v44 = vadd.f32 %v931_v28, %v13558_v53  ;;  %v6647_v59 = vpack.i.bf16 %v8854_v14, %v8865_v5  ;;  %13562 = vst [vmem:[#allocation41_spill] sm:$0xff] %v8876_v60  ;;  %v6652_v53 = vpack.i.bf16 %v8876_v60, %v8884_v51 }
 0x2a6   : > { %v1011_v28 = vadd.f32 %v979_v44, %v13564_v6  ;;  %v8928_v6 = vsel %vm1241_vm4, 1.0, %v13528_v37 }
 0x2a7   : > { %1111 = vrot.lane.b32.xlu1 %v8832_v15, %s7449_s8  ;;  %6643 = vrot.lane.b32.xlu0 %v6642_v0, %s7449_s8  ;;  %v977_v0 = vadd.f32 %v930_v40, %v13561_v1  ;;  %v8888_v1 = vsub.f32 %v1010_v39, %v8422_v49  ;;  %v8893_v40 = vsub.f32 %v1008_v27, %v8422_v49  ;;  %v8910_v39 = vsel %vm1240_vm12, 1.0, %v13528_v37 }
 0x2a8   : > { %v8907_v49 = vsub.f32 %v1011_v28, %v8428_v47  ;;  %13570 = vst [vmem:[#allocation61_spill] sm:$0xff] %v8910_v39  ;;  %13573 = vst [vmem:[#allocation64_spill] sm:$0xff] %v8928_v6 }
 0x2a9   : > { %13565 = vst [vmem:[#allocation25_spill] sm:$0xff] %v8888_v1  ;;  %13566 = vst [vmem:[#allocation39_spill] sm:$0xff] %v8893_v40  ;;  %v1009_v3 = vadd.f32 %v977_v0, %v13567_v55  ;;  %vm1182_vm0 = vcmp.ge.f32.partialorder %v8888_v1, 0.0  ;;  %vm1214_vm3 = vcmp.lt.f32.partialorder %v8888_v1, 0.5  ;;  %v8920_v0 = vsel %vm1243_vm15, 1.0, %v13528_v37 }
 0x2aa   : > { %13569 = vst [vmem:[#allocation34_spill] sm:$0xff] %v8907_v49  ;;  %13572 = vst [vmem:[#allocation63_spill] sm:$0xff] %v8920_v0  ;;  %vm1180_vm5 = vcmp.ge.f32.partialorder %v8893_v40, 0.0  ;;  %vm1212_vm6 = vcmp.lt.f32.partialorder %v8893_v40, 0.5  ;;  %vm1183_vm8 = vcmp.ge.f32.partialorder %v8907_v49, 0.0  ;;  %vm1119_vm15 = vcmp.lt.s32.totalorder %v7900_v19, 112 }
 0x2ab   : > { %6648 = vrot.lane.b32.xlu1 %v6647_v59, %s7449_s8  ;;  %1113 = vrot.lane.b32.xlu0 %v8857_v7, %s7449_s8  ;;  %v8899_v59 = vsel %vm1242_vm9, 1.0, %v13528_v37  ;;  %v8917_v27 = vsub.f32 %v1009_v3, %v8428_v47  ;;  %vm1246_vm7 = vmand %vm1182_vm0, %vm1214_vm3  ;;  %vm1215_vm9 = vcmp.lt.f32.partialorder %v8907_v49, 0.5  ;;  %v6662_v47 = vpack.i.bf16 %v8920_v0, %v8928_v6 }
 0x2ac   : > { %13568 = vst [vmem:[#allocation36_spill] sm:$0xff] %v8899_v59  ;;  %v6657_v44 = vpack.i.bf16 %v8899_v59, %v8910_v39  ;;  %vm1244_vm10 = vmand %vm1180_vm5, %vm1212_vm6  ;;  %v8935_v28 = vsel %vm1246_vm7, 1.0, %v13528_v37 }
 0x2ad   : > { %13571 = vst [vmem:[#allocation62_spill] sm:$0xff] %v8917_v27  ;;  %13574 = vst [vmem:[#allocation65_spill] sm:$0xff] %v8935_v28  ;;  %vm1181_vm11 = vcmp.ge.f32.partialorder %v8917_v27, 0.0  ;;  %vm1213_vm12 = vcmp.lt.f32.partialorder %v8917_v27, 0.5 }
 0x2ae   : > { %vm1247_vm13 = vmand %vm1183_vm8, %vm1215_vm9 }
 0x2af   : > { %1083 = vrot.lane.b32.xlu1 %v8893_v40, %s7449_s8  ;;  %6653 = vrot.lane.b32.xlu0 %v6652_v53, %s7449_s8  ;;  %v8943_v53 = vsel %vm1244_vm10, 1.0, %v13528_v37  ;;  %vm1245_vm14 = vmand %vm1181_vm11, %vm1213_vm12  ;;  %v8948_v3 = vsel %vm1247_vm13, 1.0, %v13528_v37 }
 0x2b0   : > { %13575 = vst [vmem:[#allocation66_spill] sm:$0xff] %v8943_v53  ;;  %v6667_v55 = vpack.i.bf16 %v8935_v28, %v8943_v53  ;;  %13576 = vst [vmem:[#allocation67_spill] sm:$0xff] %v8948_v3 }
 0x2b3   : > { %6658 = vrot.lane.b32.xlu1 %v6657_v44, %s7449_s8  ;;  %1085 = vrot.lane.b32.xlu0 %v8888_v1, %s7449_s8  ;;  %v8954_v44 = vsel %vm1245_vm14, 1.0, %v13528_v37 }
 0x2b4   : > { %13577 = vst [vmem:[#allocation68_spill] sm:$0xff] %v8954_v44 }
 0x2b7   : > { %1115 = vrot.lane.b32.xlu1 %v8917_v27, %s7449_s8  ;;  %6663 = vrot.lane.b32.xlu0 %v6662_v47, %s7449_s8  ;;  %v6672_v47 = vpack.i.bf16 %v8948_v3, %v8954_v44 }
 0x2bb   : > { %6668 = vrot.lane.b32.xlu1 %v6667_v55, %s7449_s8  ;;  %1117 = vrot.lane.b32.xlu0 %v8907_v49, %s7449_s8 }
 0x2bf   : > { %6673 = vrot.lane.b32.xlu0 %v6672_v47, %s7449_s8 }
 0x2d1   : > { %v1056_v27 = vpop.permute.xlu1 %1055 }
 0x2d5   : > { %v1088_v1 = vpop.permute.xlu1 %1087  ;;  %v1058_v28 = vpop.permute.xlu0 %1057 }
 0x2d6   : > { %v8982_v60 = vsel %vm1119_vm15, %v1056_v27, %v1088_v1  ;;  %v8994_v5 = vsel %vm1119_vm15, %v1088_v1, %v1056_v27 }
 0x2d7   : > { %13580 = vst [vmem:[#allocation71_spill] sm:$0xff] %v8982_v60 }
 0x2d9   : > { %v1060_v53 = vpop.permute.xlu1 %1059  ;;  %v1090_v40 = vpop.permute.xlu0 %1089 }
 0x2da   : > { %v8986_v51 = vsel %vm1119_vm15, %v1058_v28, %v1090_v40  ;;  %v8990_v14 = vsel %vm1119_vm15, %v1090_v40, %v1058_v28 }
 0x2db   : > { %13581 = vst [vmem:[#allocation72_spill] sm:$0xff] %v8986_v51  ;;  %13582 = vst [vmem:[#allocation73_spill] sm:$0xff] %v8990_v14  ;;  %v1443_v10 = vsub.f32 0.5, %v8990_v14  ;;  %v1408_v14 = vmul.f32 %v8615_v63, %v8436_v9 }
 0x2dd   : > { %v1092_v0 = vpop.permute.xlu1 %1091  ;;  %v1062_v7 = vpop.permute.xlu0 %1061 }
 0x2e1   : > { %v8959_v6 = vpop.permute.xlu1 %1063  ;;  %v1094_v55 = vpop.permute.xlu0 %1093 }
 0x2e2   : > { %v9028_v63 = vsel %vm1119_vm15, %v1062_v7, %v1094_v55 }
 0x2e5   : > { %v8961_v15 = vpop.permute.xlu1 %1095  ;;  %v8963_v49 = vpop.permute.xlu0 %1065 }
 0x2e9   : > { %v8965_v37 = vpop.permute.xlu1 %1067  ;;  %v8967_v59 = vpop.permute.xlu0 %1097 }
 0x2ed   : > { %v8969_v44 = vpop.permute.xlu1 %1099  ;;  %v8971_v47 = vpop.permute.xlu0 %1069 }
 0x2f1   : > { %v8973_v3 = vpop.permute.xlu1 %1071  ;;  %v8975_v45 = vpop.permute.xlu0 %1101 }
 0x2f2   : > { %13578 = vst [vmem:[#allocation69_spill] sm:$0xff] %v8973_v3  ;;  %v1442_v3 = vsub.f32 0.5, %v8986_v51 }
 0x2f5   : > { %v6599_v39 = vpop.permute.xlu1 %6598  ;;  %v8978_v46 = vpop.permute.xlu0 %1073 }
 0x2f6   : > { %13579 = vst [vmem:[#allocation70_spill] sm:$0xff] %v8978_v46  ;;  %v6601_v43 = vunpack.i.h.bf16 %v6599_v39  ;;  %v6600_v4 = vunpack.i.l.bf16 %v6599_v39  ;;  %v1440_v46 = vsub.f32 0.5, %v8982_v60 }
 0x2f9   : > { %v8996_v36 = vpop.permute.xlu1 %1103  ;;  %v6604_v52 = vpop.permute.xlu0 %6603 }
 0x2fa   : > { %13583 = vst [vmem:[#allocation74_spill] sm:$0xff] %v8996_v36  ;;  %v6606_v20 = vunpack.i.h.bf16 %v6604_v52  ;;  %v6605_v22 = vunpack.i.l.bf16 %v6604_v52  ;;  %v1441_v52 = vsub.f32 0.5, %v8994_v5 }
 0x2fc   : > { %v1377_v40 = vsel %vm1119_vm15, %v6601_v43, %v6606_v20  ;;  %v1393_v1 = vsel %vm1119_vm15, %v6606_v20, %v6601_v43  ;;  %v1376_v27 = vsel %vm1119_vm15, %v6600_v4, %v6605_v22  ;;  %v1392_v39 = vsel %vm1119_vm15, %v6605_v22, %v6600_v4 }
 0x2fd   : > { %v1474_v28 = vmul.f32 %v1442_v3, %v1377_v40  ;;  %v1475_v60 = vmul.f32 %v1443_v10, %v1393_v1  ;;  %v1472_v36 = vmul.f32 %v1440_v46, %v1376_v27  ;;  %v6609_v51 = vpop.permute.xlu1 %6608  ;;  %v9010_v48 = vpop.permute.xlu0 %1105  ;;  %v1410_v20 = vmul.f32 %v8587_v12, %v8452_v50 }
 0x2fe   : > { %v1409_v43 = vmul.f32 %v8646_v32, %v8449_v21  ;;  %v1411_v22 = vmul.f32 %v8624_v42, %v8462_v16  ;;  %v1412_v4 = vmul.f32 %v8668_v38, %v8470_v23  ;;  %v9024_v46 = vsel %vm1119_vm15, %v1060_v53, %v1092_v0 }
 0x2ff   : > { %v1473_v10 = vmul.f32 %v1441_v52, %v1392_v39  ;;  %v9032_v12 = vsel %vm1119_vm15, %v1094_v55, %v1062_v7  ;;  %v1506_v32 = vadd.f32 %v1474_v28, %v1410_v20  ;;  %v1504_v3 = vadd.f32 %v1472_v36, %v1408_v14 }
 0x300   : > { %v9036_v42 = vsel %vm1119_vm15, %v1092_v0, %v1060_v53  ;;  %v6611_v38 = vunpack.i.h.bf16 %v6609_v51  ;;  %v6610_v40 = vunpack.i.l.bf16 %v6609_v51  ;;  %v1507_v39 = vadd.f32 %v1475_v60, %v1411_v22 }
 0x301   : > { %v9038_v1 = vpop.permute.xlu1 %1075  ;;  %v6614_v27 = vpop.permute.xlu0 %6613  ;;  %v9040_v9 = vmul.f32 2.0, %v1506_v32  ;;  %v9042_v21 = vmul.f32 2.0, %v1504_v3  ;;  %v1444_v7 = vsub.f32 0.5, %v9024_v46  ;;  %v1446_v36 = vsub.f32 0.5, %v9028_v63 }
 0x302   : > { %v6616_v52 = vunpack.i.h.bf16 %v6614_v27  ;;  %v6615_v23 = vunpack.i.l.bf16 %v6614_v27  ;;  %v1447_v14 = vsub.f32 0.5, %v9032_v12  ;;  %v1505_v0 = vadd.f32 %v1473_v10, %v1409_v43 }
 0x303   : > { %1570 = vrot.lane.b32.xlu0 %v9040_v9, %s7449_s8  ;;  %v1414_v28 = vmul.f32 %v8651_v56, %v8488_v30  ;;  %v1445_v20 = vsub.f32 0.5, %v9036_v42  ;;  %1568 = vrot.lane.b32.xlu1 %v9042_v21, %s7449_s8  ;;  %v1413_v3 = vmul.f32 %v8691_v41, %v8485_v25  ;;  %v9090_v41 = vsel %vm1119_vm15, %v8967_v59, %v8963_v49 }
 0x304   : > { %v1379_v51 = vsel %vm1119_vm15, %v6611_v38, %v6616_v52  ;;  %v1395_v53 = vsel %vm1119_vm15, %v6616_v52, %v6611_v38  ;;  %v1378_v60 = vsel %vm1119_vm15, %v6610_v40, %v6615_v23  ;;  %v1394_v55 = vsel %vm1119_vm15, %v6615_v23, %v6610_v40 }
 0x305   : > { %v1478_v43 = vmul.f32 %v1446_v36, %v1379_v51  ;;  %v1476_v22 = vmul.f32 %v1444_v7, %v1378_v60  ;;  %v6619_v10 = vpop.permute.xlu1 %6618  ;;  %v9062_v32 = vpop.permute.xlu0 %1077  ;;  %v1415_v23 = vmul.f32 %v8673_v61, %v8498_v31  ;;  %v1479_v38 = vmul.f32 %v1447_v14, %v1395_v53 }
 0x306   : > { %v9068_v40 = vmul.f32 2.0, %v1507_v39  ;;  %v1477_v56 = vmul.f32 %v1445_v20, %v1394_v55  ;;  %v9070_v27 = vmul.f32 2.0, %v1505_v0  ;;  %v1416_v36 = vmul.f32 %v8715_v11, %v8506_v29 }
 0x307   : > { %v1510_v52 = vadd.f32 %v1478_v43, %v1414_v28  ;;  %v1508_v7 = vadd.f32 %v1476_v22, %v1412_v4  ;;  %v9078_v51 = vsel %vm1119_vm15, %v8959_v6, %v8961_v15  ;;  %v9084_v61 = vsel %vm1119_vm15, %v8963_v49, %v8967_v59 }
 0x308   : > { %1602 = vrot.lane.b32.xlu0 %v9068_v40, %s7449_s8  ;;  %v9098_v11 = vsel %vm1119_vm15, %v8961_v15, %v8959_v6  ;;  %v6621_v4 = vunpack.i.h.bf16 %v6619_v10  ;;  %1600 = vrot.lane.b32.xlu1 %v9070_v27, %s7449_s8  ;;  %v6620_v49 = vunpack.i.l.bf16 %v6619_v10  ;;  %v1511_v55 = vadd.f32 %v1479_v38, %v1415_v23 }
 0x309   : > { %v9102_v39 = vpop.permute.xlu1 %1107  ;;  %v6624_v14 = vpop.permute.xlu0 %6623  ;;  %v9104_v0 = vmul.f32 2.0, %v1510_v52  ;;  %v9106_v59 = vmul.f32 2.0, %v1508_v7  ;;  %v1448_v28 = vsub.f32 0.5, %v9078_v51  ;;  %v1450_v15 = vsub.f32 0.5, %v9084_v61 }
 0x30a   : > { %v6626_v53 = vunpack.i.h.bf16 %v6624_v14  ;;  %v6625_v60 = vunpack.i.l.bf16 %v6624_v14  ;;  %v1451_v6 = vsub.f32 0.5, %v9090_v41  ;;  %v1509_v20 = vadd.f32 %v1477_v56, %v1413_v3 }
 0x30b   : > { %v1449_v23 = vsub.f32 0.5, %v9098_v11 }
 0x30c   : > { %v1381_v43 = vsel %vm1119_vm15, %v6621_v4, %v6626_v53  ;;  %v1397_v22 = vsel %vm1119_vm15, %v6626_v53, %v6621_v4  ;;  %v1380_v52 = vsel %vm1119_vm15, %v6620_v49, %v6625_v60  ;;  %v1396_v10 = vsel %vm1119_vm15, %v6625_v60, %v6620_v49  ;;  %1574 = vrot.lane.b32.xlu0 %v9104_v0, %s7449_s8 }
 0x30d   : > { %v1482_v38 = vmul.f32 %v1450_v15, %v1381_v43  ;;  %v1483_v7 = vmul.f32 %v1451_v6, %v1397_v22  ;;  %v1480_v3 = vmul.f32 %v1448_v28, %v1380_v52  ;;  %1572 = vrot.lane.b32.xlu1 %v9106_v59, %s7449_s8  ;;  %v6629_v56 = vpop.permute.xlu1 %6628  ;;  %v9124_v14 = vpop.permute.xlu0 %1109  ;;  %v1418_v4 = vmul.f32 %v8700_v24, %v8524_v34 }
 0x30e   : > { %v1417_v49 = vmul.f32 %v8739_v17, %v8521_v54  ;;  %v1419_v53 = vmul.f32 %v8722_v18, %v8534_v62  ;;  %v9132_v60 = vmul.f32 2.0, %v1511_v55  ;;  %v1420_v28 = vmul.f32 %v8760_v13, %v8542_v33 }
 0x30f   : > { %v9140_v15 = vsel %vm1119_vm15, %v8965_v37, %v8969_v44  ;;  %v1481_v6 = vmul.f32 %v1449_v23, %v1396_v10  ;;  %v9142_v43 = vmul.f32 2.0, %v1509_v20  ;;  %v9148_v24 = vsel %vm1119_vm15, %v8971_v47, %v8975_v45 }
 0x310   : > { %13584 = vst [vmem:[#allocation75_spill] sm:$0xff] %v9140_v15  ;;  %13585 = vst [vmem:[#allocation76_spill] sm:$0xff] %v9148_v24  ;;  %v9154_v18 = vsel %vm1119_vm15, %v8975_v45, %v8971_v47  ;;  %1606 = vrot.lane.b32.xlu0 %v9132_v60, %s7449_s8  ;;  %v1514_v17 = vadd.f32 %v1482_v38, %v1418_v4  ;;  %v1512_v13 = vadd.f32 %v1480_v3, %v1416_v36 }
 0x311   : > { %13586 = vst [vmem:[#allocation77_spill] sm:$0xff] %v9154_v18  ;;  %v9162_v55 = vsel %vm1119_vm15, %v8969_v44, %v8965_v37  ;;  %v6631_v20 = vunpack.i.h.bf16 %v6629_v56  ;;  %v6630_v22 = vunpack.i.l.bf16 %v6629_v56  ;;  %1604 = vrot.lane.b32.xlu1 %v9142_v43, %s7449_s8  ;;  %v9166_v52 = vpop.permute.xlu1 %1079  ;;  %v6634_v45 = vpop.permute.xlu0 %6633  ;;  %v1515_v47 = vadd.f32 %v1483_v7, %v1419_v53 }
 0x312   : > { %13587 = vst [vmem:[#allocation78_spill] sm:$0xff] %v9162_v55  ;;  %v6636_v10 = vunpack.i.h.bf16 %v6634_v45  ;;  %v6635_v23 = vunpack.i.l.bf16 %v6634_v45  ;;  %v9168_v33 = vmul.f32 2.0, %v1514_v17  ;;  %v9170_v36 = vmul.f32 2.0, %v1512_v13 }
 0x313   : > { %v1452_v38 = vsub.f32 0.5, %v9140_v15  ;;  %v1454_v37 = vsub.f32 0.5, %v9148_v24  ;;  %v1455_v44 = vsub.f32 0.5, %v9154_v18  ;;  %v1513_v3 = vadd.f32 %v1481_v6, %v1417_v49  ;;  %v13592_v15 = vld [vmem:[#allocation69_spill] sm:$0xff] }
 0x314   : > { %v1383_v56 = vsel %vm1119_vm15, %v6631_v20, %v6636_v10  ;;  %v1399_v4 = vsel %vm1119_vm15, %v6636_v10, %v6631_v20  ;;  %v1382_v7 = vsel %vm1119_vm15, %v6630_v22, %v6635_v23  ;;  %v1398_v53 = vsel %vm1119_vm15, %v6635_v23, %v6630_v22  ;;  %1578 = vrot.lane.b32.xlu0 %v9168_v33, %s7449_s8 }
 0x315   : > { %v1422_v17 = vmul.f32 %v8751_v26, %v8562_v58  ;;  %v1453_v49 = vsub.f32 0.5, %v9162_v55  ;;  %v1486_v6 = vmul.f32 %v1454_v37, %v1383_v56  ;;  %v1484_v13 = vmul.f32 %v1452_v38, %v1382_v7  ;;  %1576 = vrot.lane.b32.xlu1 %v9170_v36, %s7449_s8  ;;  %v6639_v20 = vpop.permute.xlu1 %6638  ;;  %v9190_v45 = vpop.permute.xlu0 %1081  ;;  %v13589_v56 = vld [vmem:[#allocation53_spill] sm:$0xff]  ;;  %v13590_v7 = vld [vmem:[#allocation32_spill] sm:$0xff]  ;;  %v13591_v55 = vld [vmem:[#allocation74_spill] sm:$0xff] }
 0x316   : > { %v1421_v10 = vmul.f32 %v8787_v2, %v8558_v35  ;;  %v1423_v22 = vmul.f32 %v8773_v8, %v8592_v57  ;;  %v1487_v23 = vmul.f32 %v1455_v44, %v1399_v4  ;;  %v9196_v18 = vmul.f32 2.0, %v1515_v47  ;;  %v13594_v2 = vld [vmem:[#allocation70_spill] sm:$0xff]  ;;  %v13603_v35 = vld [vmem:[#allocation35_spill] sm:$0xff] }
 0x317   : > { %v1485_v26 = vmul.f32 %v1453_v49, %v1398_v53  ;;  %v9198_v58 = vmul.f32 2.0, %v1513_v3  ;;  %v1518_v37 = vadd.f32 %v1486_v6, %v1422_v17  ;;  %v1516_v38 = vadd.f32 %v1484_v13, %v1420_v28 }
 0x318   : > { %v1424_v24 = vmul.f32 %v13590_v7, %v13589_v56  ;;  %v9206_v54 = vsel %vm1119_vm15, %v13592_v15, %v13591_v55  ;;  %v9212_v8 = vsel %vm1119_vm15, %v13594_v2, %v9010_v48  ;;  %v9218_v28 = vsel %vm1119_vm15, %v9010_v48, %v13594_v2  ;;  %1610 = vrot.lane.b32.xlu0 %v9196_v18, %s7449_s8 }
 0x319   : > { %13588 = vst [vmem:[#allocation79_spill] sm:$0xff] %v9198_v58  ;;  %13593 = vst [vmem:[#allocation32_spill] sm:$0xff] %v9206_v54  ;;  %v9226_v47 = vsel %vm1119_vm15, %v13591_v55, %v13592_v15  ;;  %v6641_v44 = vunpack.i.h.bf16 %v6639_v20  ;;  %1608 = vrot.lane.b32.xlu1 %v9198_v58, %s7449_s8  ;;  %v9230_v3 = vpop.permute.xlu1 %1111  ;;  %v6644_v4 = vpop.permute.xlu0 %6643  ;;  %v9232_v53 = vmul.f32 2.0, %v1518_v37  ;;  %v9234_v48 = vmul.f32 2.0, %v1516_v38 }
 0x31a   : > { %13595 = vst [vmem:[#allocation74_spill] sm:$0xff] %v9212_v8  ;;  %13596 = vst [vmem:[#allocation69_spill] sm:$0xff] %v9218_v28  ;;  %v6640_v17 = vunpack.i.l.bf16 %v6639_v20  ;;  %v6646_v49 = vunpack.i.h.bf16 %v6644_v4  ;;  %v6645_v6 = vunpack.i.l.bf16 %v6644_v4  ;;  %v1519_v13 = vadd.f32 %v1487_v23, %v1423_v22 }
 0x31b   : > { %13597 = vst [vmem:[#allocation70_spill] sm:$0xff] %v9226_v47  ;;  %13598 = vst [vmem:[#allocation80_spill] sm:$0xff] %v9232_v53  ;;  %v1456_v7 = vsub.f32 0.5, %v9206_v54  ;;  %v1458_v15 = vsub.f32 0.5, %v9212_v8  ;;  %v1459_v55 = vsub.f32 0.5, %v9218_v28  ;;  %v1517_v2 = vadd.f32 %v1485_v26, %v1421_v10  ;;  %v13602_v54 = vld [vmem:[#allocation54_spill] sm:$0xff] }
 0x31c   : > { %13599 = vst [vmem:[#allocation81_spill] sm:$0xff] %v9234_v48  ;;  %v1385_v56 = vsel %vm1119_vm15, %v6641_v44, %v6646_v49  ;;  %v1401_v37 = vsel %vm1119_vm15, %v6646_v49, %v6641_v44  ;;  %v1384_v38 = vsel %vm1119_vm15, %v6640_v17, %v6645_v6  ;;  %v1400_v20 = vsel %vm1119_vm15, %v6645_v6, %v6640_v17  ;;  %v13600_v44 = vld [vmem:[#allocation28_spill] sm:$0xff]  ;;  %v13601_v49 = vld [vmem:[#allocation26_spill] sm:$0xff]  ;;  %v13604_v17 = vld [vmem:[#allocation31_spill] sm:$0xff] }
 0x31d   : > { %1582 = vrot.lane.b32.xlu0 %v9232_v53, %s7449_s8  ;;  %v1457_v22 = vsub.f32 0.5, %v9226_v47  ;;  %v1490_v23 = vmul.f32 %v1458_v15, %v1385_v56  ;;  %v1491_v4 = vmul.f32 %v1459_v55, %v1401_v37  ;;  %v1488_v10 = vmul.f32 %v1456_v7, %v1384_v38  ;;  %1580 = vrot.lane.b32.xlu1 %v9234_v48, %s7449_s8  ;;  %v6649_v26 = vpop.permute.xlu1 %6648  ;;  %v1114_v28 = vpop.permute.xlu0 %1113  ;;  %v13605_v6 = vld [vmem:[#allocation58_spill] sm:$0xff]  ;;  %v13606_v47 = vld [vmem:[#allocation55_spill] sm:$0xff]  ;;  %v13607_v56 = vld [vmem:[#allocation60_spill] sm:$0xff] }
 0x31e   : > { %v1426_v8 = vmul.f32 %v13601_v49, %v13600_v44  ;;  %v1425_v57 = vmul.f32 %v13603_v35, %v13602_v54  ;;  %v1427_v58 = vmul.f32 %v13605_v6, %v13604_v17  ;;  %v9258_v53 = vmul.f32 2.0, %v1519_v13  ;;  %v13618_v44 = vld [vmem:[#allocation33_spill] sm:$0xff] }
 0x31f   : > { %v1428_v15 = vmul.f32 %v13607_v56, %v13606_v47  ;;  %v9266_v7 = vsel %vm1119_vm15, %v9038_v1, %v9102_v39  ;;  %v1489_v55 = vmul.f32 %v1457_v22, %v1400_v20  ;;  %v9268_v37 = vmul.f32 2.0, %v1517_v2 }
 0x320   : > { %13608 = vst [vmem:[#allocation26_spill] sm:$0xff] %v9266_v7  ;;  %v9274_v35 = vsel %vm1119_vm15, %v9062_v32, %v9124_v14  ;;  %v9280_v13 = vsel %vm1119_vm15, %v9124_v14, %v9062_v32  ;;  %v1522_v38 = vadd.f32 %v1490_v23, %v1426_v8  ;;  %v1520_v49 = vadd.f32 %v1488_v10, %v1424_v24 }
 0x321   : > { %13609 = vst [vmem:[#allocation35_spill] sm:$0xff] %v9268_v37  ;;  %13610 = vst [vmem:[#allocation58_spill] sm:$0xff] %v9274_v35  ;;  %1614 = vrot.lane.b32.xlu0 %v9258_v53, %s7449_s8  ;;  %v9288_v2 = vsel %vm1119_vm15, %v9102_v39, %v9038_v1  ;;  %v6651_v20 = vunpack.i.h.bf16 %v6649_v26  ;;  %v6650_v22 = vunpack.i.l.bf16 %v6649_v26  ;;  %1612 = vrot.lane.b32.xlu1 %v9268_v37, %s7449_s8  ;;  %v9292_v6 = vpop.permute.xlu1 %1083  ;;  %v6654_v32 = vpop.permute.xlu0 %6653  ;;  %v1460_v8 = vsub.f32 0.5, %v9266_v7  ;;  %v13617_v7 = vld [vmem:[#allocation27_spill] sm:$0xff] }
 0x322   : > { %13611 = vst [vmem:[#allocation60_spill] sm:$0xff] %v9280_v13  ;;  %13612 = vst [vmem:[#allocation82_spill] sm:$0xff] %v9288_v2  ;;  %v1523_v14 = vadd.f32 %v1491_v4, %v1427_v58  ;;  %v6656_v56 = vunpack.i.h.bf16 %v6654_v32  ;;  %v6655_v47 = vunpack.i.l.bf16 %v6654_v32  ;;  %v9294_v54 = vmul.f32 2.0, %v1522_v38  ;;  %v13614_v38 = vld [vmem:[#allocation30_spill] sm:$0xff] }
 0x323   : > { %v9296_v24 = vmul.f32 2.0, %v1520_v49  ;;  %v1462_v1 = vsub.f32 0.5, %v9274_v35  ;;  %v1463_v39 = vsub.f32 0.5, %v9280_v13  ;;  %v1521_v23 = vadd.f32 %v1489_v55, %v1425_v57  ;;  %v13615_v49 = vld [vmem:[#allocation40_spill] sm:$0xff] }
 0x324   : > { %13613 = vst [vmem:[#allocation83_spill] sm:$0xff] %v9294_v54  ;;  %v1387_v10 = vsel %vm1119_vm15, %v6651_v20, %v6656_v56  ;;  %v1403_v26 = vsel %vm1119_vm15, %v6656_v56, %v6651_v20  ;;  %v1386_v58 = vsel %vm1119_vm15, %v6650_v22, %v6655_v47  ;;  %v1402_v4 = vsel %vm1119_vm15, %v6655_v47, %v6650_v22  ;;  %v13616_v35 = vld [vmem:[#allocation56_spill] sm:$0xff]  ;;  %v13619_v47 = vld [vmem:[#allocation41_spill] sm:$0xff] }
 0x325   : > { %1586 = vrot.lane.b32.xlu0 %v9294_v54, %s7449_s8  ;;  %v1430_v32 = vmul.f32 %v13615_v49, %v13614_v38  ;;  %v1461_v57 = vsub.f32 0.5, %v9288_v2  ;;  %v1494_v55 = vmul.f32 %v1462_v1, %v1387_v10  ;;  %v1492_v13 = vmul.f32 %v1460_v8, %v1386_v58  ;;  %1584 = vrot.lane.b32.xlu1 %v9296_v24, %s7449_s8  ;;  %v6659_v20 = vpop.permute.xlu1 %6658  ;;  %v1086_v56 = vpop.permute.xlu0 %1085  ;;  %v13620_v8 = vld [vmem:[#allocation57_spill] sm:$0xff] }
 0x326   : > { %v1429_v17 = vmul.f32 %v13617_v7, %v13616_v35  ;;  %v1431_v22 = vmul.f32 %v13619_v47, %v13618_v44  ;;  %v1495_v37 = vmul.f32 %v1463_v39, %v1403_v26  ;;  %v9320_v54 = vmul.f32 2.0, %v1523_v14  ;;  %v13621_v10 = vld [vmem:[#allocation61_spill] sm:$0xff] }
 0x327   : > { %v1493_v48 = vmul.f32 %v1461_v57, %v1402_v4  ;;  %v9322_v49 = vmul.f32 2.0, %v1521_v23  ;;  %v1526_v38 = vadd.f32 %v1494_v55, %v1430_v32  ;;  %v1524_v1 = vadd.f32 %v1492_v13, %v1428_v15  ;;  %v13631_v35 = vld [vmem:[#allocation37_spill] sm:$0xff] }
 0x328   : > { %v1432_v58 = vmul.f32 %v13621_v10, %v13620_v8  ;;  %v9330_v2 = vsel %vm1119_vm15, %v9166_v52, %v9230_v3  ;;  %v9335_v7 = vsel %vm1119_vm15, %v9190_v45, %v1114_v28  ;;  %v9340_v14 = vsel %vm1119_vm15, %v1114_v28, %v9190_v45  ;;  %v13627_v8 = vld [vmem:[#allocation38_spill] sm:$0xff] }
 0x329   : > { %13622 = vst [vmem:[#allocation40_spill] sm:$0xff] %v9330_v2  ;;  %13623 = vst [vmem:[#allocation27_spill] sm:$0xff] %v9335_v7  ;;  %1618 = vrot.lane.b32.xlu0 %v9320_v54, %s7449_s8  ;;  %v9348_v15 = vsel %vm1119_vm15, %v9230_v3, %v9166_v52  ;;  %v6661_v13 = vunpack.i.h.bf16 %v6659_v20  ;;  %1616 = vrot.lane.b32.xlu1 %v9322_v49, %s7449_s8  ;;  %v1116_v39 = vpop.permute.xlu1 %1115  ;;  %v6664_v23 = vpop.permute.xlu0 %6663  ;;  %v9352_v26 = vmul.f32 2.0, %v1526_v38  ;;  %v9354_v4 = vmul.f32 2.0, %v1524_v1 }
 0x32a   : > { %13624 = vst [vmem:[#allocation41_spill] sm:$0xff] %v9340_v14  ;;  %13625 = vst [vmem:[#allocation61_spill] sm:$0xff] %v9348_v15  ;;  %v6660_v45 = vunpack.i.l.bf16 %v6659_v20  ;;  %v6666_v28 = vunpack.i.h.bf16 %v6664_v23  ;;  %v6665_v32 = vunpack.i.l.bf16 %v6664_v23  ;;  %v1527_v57 = vadd.f32 %v1495_v37, %v1431_v22 }
 0x32b   : > { %13626 = vst [vmem:[#allocation84_spill] sm:$0xff] %v9352_v26  ;;  %v1464_v55 = vsub.f32 0.5, %v9330_v2  ;;  %v1466_v47 = vsub.f32 0.5, %v9335_v7  ;;  %v1467_v52 = vsub.f32 0.5, %v9340_v14  ;;  %v1525_v3 = vadd.f32 %v1493_v48, %v1429_v17  ;;  %v13629_v14 = vld [vmem:[#allocation59_spill] sm:$0xff]  ;;  %v13630_v7 = vld [vmem:[#allocation64_spill] sm:$0xff] }
 0x32c   : > { %v1389_v10 = vsel %vm1119_vm15, %v6661_v13, %v6666_v28  ;;  %v1405_v38 = vsel %vm1119_vm15, %v6666_v28, %v6661_v13  ;;  %v1388_v1 = vsel %vm1119_vm15, %v6660_v45, %v6665_v32  ;;  %v1404_v20 = vsel %vm1119_vm15, %v6665_v32, %v6660_v45  ;;  %v13628_v13 = vld [vmem:[#allocation36_spill] sm:$0xff]  ;;  %v13632_v45 = vld [vmem:[#allocation63_spill] sm:$0xff] }
 0x32d   : > { %1590 = vrot.lane.b32.xlu0 %v9352_v26, %s7449_s8  ;;  %v1465_v37 = vsub.f32 0.5, %v9348_v15  ;;  %v1498_v22 = vmul.f32 %v1466_v47, %v1389_v10  ;;  %v1499_v23 = vmul.f32 %v1467_v52, %v1405_v38  ;;  %v1496_v48 = vmul.f32 %v1464_v55, %v1388_v1  ;;  %1588 = vrot.lane.b32.xlu1 %v9354_v4, %s7449_s8  ;;  %v1118_v17 = vpop.permute.xlu0 %1117  ;;  %v6669_v44 = vpop.permute.xlu1 %6668  ;;  %v13633_v15 = vld [vmem:[#allocation39_spill] sm:$0xff]  ;;  %v13634_v47 = vld [vmem:[#allocation66_spill] sm:$0xff] }
 0x32e   : > { %v1434_v28 = vmul.f32 %v13628_v13, %v13627_v8  ;;  %v1433_v2 = vmul.f32 %v13630_v7, %v13629_v14  ;;  %v1435_v32 = vmul.f32 %v13632_v45, %v13631_v35  ;;  %v9378_v26 = vmul.f32 2.0, %v1527_v57  ;;  %v13642_v35 = vld [vmem:[#allocation67_spill] sm:$0xff] }
 0x32f   : > { %v1436_v52 = vmul.f32 %v13634_v47, %v13633_v15  ;;  %v9385_v55 = vsel %vm1119_vm15, %v9292_v6, %v1116_v39  ;;  %v1497_v10 = vmul.f32 %v1465_v37, %v1404_v20  ;;  %v9387_v38 = vmul.f32 2.0, %v1525_v3 }
 0x330   : > { %13635 = vst [vmem:[#allocation36_spill] sm:$0xff] %v9385_v55  ;;  %v9391_v7 = vsel %vm1119_vm15, %v1086_v56, %v1118_v17  ;;  %v9395_v1 = vsel %vm1119_vm15, %v1118_v17, %v1086_v56  ;;  %v1530_v57 = vadd.f32 %v1498_v22, %v1434_v28  ;;  %v1528_v13 = vadd.f32 %v1496_v48, %v1432_v58 }
 0x331   : > { %13636 = vst [vmem:[#allocation64_spill] sm:$0xff] %v9391_v7  ;;  %13637 = vst [vmem:[#allocation63_spill] sm:$0xff] %v9395_v1  ;;  %1622 = vrot.lane.b32.xlu0 %v9378_v26, %s7449_s8  ;;  %v9402_v45 = vsel %vm1119_vm15, %v1116_v39, %v9292_v6  ;;  %v6671_v3 = vunpack.i.h.bf16 %v6669_v44  ;;  %v6670_v20 = vunpack.i.l.bf16 %v6669_v44  ;;  %1620 = vrot.lane.b32.xlu1 %v9387_v38, %s7449_s8  ;;  %v6674_v37 = vpop.permute.xlu0 %6673  ;;  %v1468_v58 = vsub.f32 0.5, %v9385_v55  ;;  %v13641_v55 = vld [vmem:[#allocation34_spill] sm:$0xff] }
 0x332   : > { %v1531_v47 = vadd.f32 %v1499_v23, %v1435_v32  ;;  %v6676_v15 = vunpack.i.h.bf16 %v6674_v37  ;;  %v6675_v56 = vunpack.i.l.bf16 %v6674_v37  ;;  %v9406_v17 = vmul.f32 2.0, %v1530_v57  ;;  %v13639_v32 = vld [vmem:[#allocation25_spill] sm:$0xff] }
 0x333   : > { %v9408_v14 = vmul.f32 2.0, %v1528_v13  ;;  %v1470_v22 = vsub.f32 0.5, %v9391_v7  ;;  %v1471_v6 = vsub.f32 0.5, %v9395_v1  ;;  %v1529_v39 = vadd.f32 %v1497_v10, %v1433_v2  ;;  %v13640_v57 = vld [vmem:[#allocation65_spill] sm:$0xff] }
 0x334   : > { %13638 = vst [vmem:[#allocation66_spill] sm:$0xff] %v9406_v17  ;;  %v1391_v44 = vsel %vm1119_vm15, %v6671_v3, %v6676_v15  ;;  %v1407_v48 = vsel %vm1119_vm15, %v6676_v15, %v6671_v3  ;;  %v1390_v23 = vsel %vm1119_vm15, %v6670_v20, %v6675_v56  ;;  %v1406_v28 = vsel %vm1119_vm15, %v6675_v56, %v6670_v20 }
 0x335   : > { %1594 = vrot.lane.b32.xlu0 %v9406_v17, %s7449_s8  ;;  %v1438_v13 = vmul.f32 %v13640_v57, %v13639_v32  ;;  %v1469_v2 = vsub.f32 0.5, %v9402_v45  ;;  %v1502_v10 = vmul.f32 %v1470_v22, %v1391_v44  ;;  %v1500_v37 = vmul.f32 %v1468_v58, %v1390_v23  ;;  %1592 = vrot.lane.b32.xlu1 %v9408_v14, %s7449_s8  ;;  %v13643_v57 = vld [vmem:[#allocation62_spill] sm:$0xff]  ;;  %v13644_v22 = vld [vmem:[#allocation68_spill] sm:$0xff] }
 0x336   : > { %v1503_v15 = vmul.f32 %v1471_v6, %v1407_v48  ;;  %v9428_v3 = vmul.f32 2.0, %v1531_v47  ;;  %v9430_v7 = vmul.f32 2.0, %v1529_v39  ;;  %v1439_v17 = vmul.f32 %v13642_v35, %v13641_v55  ;;  %v6812_v35 = vld [vmem:[#allocation8 + $0x40] sm:$0xff]   ;;  %v6814_v48 = vld [vmem:[#allocation8 + $0x48] sm:$0xff]  }
 0x337   : > { %v1501_v1 = vmul.f32 %v1469_v2, %v1406_v28  ;;  %v1534_v20 = vadd.f32 %v1502_v10, %v1438_v13  ;;  %v1532_v56 = vadd.f32 %v1500_v37, %v1436_v52  ;;  %v1437_v58 = vmul.f32 %v13644_v22, %v13643_v57  ;;  %v6813_v52 = vld [vmem:[#allocation8] sm:$0xff]   ;;  %6145 = vmatprep.subr.bf16.mxu0 %v6812_v35  ;;  %v6817_v13 = vld [vmem:[#allocation8 + $0x10] sm:$0xff]   ;;  %v6818_v2 = vld [vmem:[#allocation8 + $0x58] sm:$0xff]  }
 0x338   : > { %v1535_v39 = vadd.f32 %v1503_v15, %v1439_v17  ;;  %6146 = vmatpush3.bf16.msra.mxu0 %v6813_v52  ;;  %v6815_v17 = vld [vmem:[#allocation8 + $0x8] sm:$0xff]   ;;  %v6819_v10 = vld [vmem:[#allocation8 + $0x18] sm:$0xff]   ;;  %v6820_v37 = vld [vmem:[#allocation8 + $0x60] sm:$0xff]  }
 0x339   : > { %1626 = vrot.lane.b32.xlu0 %v9428_v3, %s7449_s8  ;;  %1624 = vrot.lane.b32.xlu1 %v9430_v7, %s7449_s8  ;;  %v9440_v6 = vmul.f32 2.0, %v1534_v20  ;;  %v9442_v47 = vmul.f32 2.0, %v1532_v56  ;;  %v1533_v44 = vadd.f32 %v1501_v1, %v1437_v58  ;;  %v6816_v1 = vld [vmem:[#allocation8 + $0x50] sm:$0xff]   ;;  %v6821_v15 = vld [vmem:[#allocation8 + $0x20] sm:$0xff]   ;;  %v6822_v20 = vld [vmem:[#allocation8 + $0x68] sm:$0xff]  }
 0x33a   : > { %v9448_v23 = vmul.f32 2.0, %v1535_v39  ;;  %6147 = vmatprep.subr.bf16.mxu0 %v6814_v48  ;;  %v6823_v56 = vld [vmem:[#allocation8 + $0x28] sm:$0xff]   ;;  %v6824_v39 = vld [vmem:[#allocation8 + $0x70] sm:$0xff]   ;;  %v1697_v48 = vsub.f32 1.0, %v8994_v5  ;;  %v6826_v5 = vld [vmem:[#allocation8 + $0x78] sm:$0xff]  }
 0x33b   : > { %13645 = vst [vmem:[#allocation65_spill] sm:$0xff] %v9442_v47  ;;  %v9450_v28 = vmul.f32 2.0, %v1533_v44  ;;  %v6825_v44 = vld [vmem:[#allocation8 + $0x30] sm:$0xff]   ;;  %v13651_v57 = vld [vmem:[#allocation46_spill] sm:$0xff] }
 0x33c   : > { %13646 = vst [vmem:[#allocation34_spill] sm:$0xff] %v9448_v23  ;;  %6148 = vmatpush3.bf16.msra.mxu0 %v6815_v17  ;;  %v13648_v35 = vld [vmem:[#allocation71_spill] sm:$0xff]  ;;  %v13649_v17 = vld [vmem:[#allocation72_spill] sm:$0xff] }
 0x33d   : > { %1598 = vrot.lane.b32.xlu0 %v9440_v6, %s7449_s8  ;;  %1596 = vrot.lane.b32.xlu1 %v9442_v47, %s7449_s8  ;;  %13647 = vst [vmem:[#allocation67_spill] sm:$0xff] %v9450_v28  ;;  %v1696_v52 = vsub.f32 1.0, %v13648_v35  ;;  %v1665_v47 = vmul.f32 %v9070_v27, %v13651_v57  ;;  %v1701_v27 = vsub.f32 1.0, %v9036_v42  ;;  %v1702_v57 = vsub.f32 1.0, %v9028_v63 }
 0x33e   : > { %6149 = vmatprep.subr.bf16.mxu0 %v6816_v1  ;;  %v1698_v1 = vsub.f32 1.0, %v13649_v17 }
 0x340   : > { %6150 = vmatpush3.bf16.msra.mxu0 %v6817_v13  ;;  %v13650_v13 = vld [vmem:[#allocation73_spill] sm:$0xff] }
 0x341   : > { %1630 = vrot.lane.b32.xlu0 %v9448_v23, %s7449_s8  ;;  %1628 = vrot.lane.b32.xlu1 %v9450_v28, %s7449_s8 }
 0x342   : > { %6151 = vmatprep.subr.bf16.mxu0 %v6818_v2  ;;  %v1699_v2 = vsub.f32 1.0, %v13650_v13 }
 0x344   : > { %6152 = vmatpush3.bf16.msra.mxu0 %v6819_v10 }
 0x345   : > { %6153 = vmatprep.subr.bf16.mxu0 %v6820_v37  ;;  %v1667_v37 = vmul.f32 %v9068_v40, %v8462_v16  ;;  %v6827_v40 = vld [vmem:[#allocation8 + $0x38] sm:$0xff]  }
 0x348   : > { %6154 = vmatpush3.bf16.msra.mxu0 %v6821_v15 }
 0x349   : > { %6155 = vmatprep.subr.bf16.mxu0 %v6822_v20 }
 0x34c   : > { %6156 = vmatpush3.bf16.msra.mxu0 %v6823_v56  ;;  %v1666_v56 = vmul.f32 %v9040_v9, %v8452_v50 }
 0x34d   : > { %6157 = vmatprep.subr.bf16.mxu0 %v6824_v39 }
 0x350   : > { %6158 = vmatpush3.bf16.msra.mxu0 %v6825_v44 }
 0x351   : > { %6159 = vmatprep.subr.bf16.mxu0 %v6826_v5 }
 0x354   : > { %6160 = vmatpush3.bf16.msra.mxu0 %v6827_v40 }
 0x375   : > { %v1571_v22 = vpop.permute.xlu0 %1570  ;;  %v1569_v58 = vpop.permute.xlu1 %1568 }
 0x37a   : > { %v1603_v10 = vpop.permute.xlu0 %1602  ;;  %v1601_v35 = vpop.permute.xlu1 %1600 }
 0x37b   : > { %v1633_v15 = vsel %vm1119_vm15, %v1571_v22, %v1603_v10  ;;  %v1649_v20 = vsel %vm1119_vm15, %v1603_v10, %v1571_v22  ;;  %v1632_v13 = vsel %vm1119_vm15, %v1569_v58, %v1601_v35  ;;  %v1648_v16 = vsel %vm1119_vm15, %v1601_v35, %v1569_v58  ;;  %v13652_v22 = vld [vmem:[#allocation45_spill] sm:$0xff] }
 0x37c   : > { %v1730_v28 = vmul.f32 %v1698_v1, %v1633_v15  ;;  %v1731_v17 = vmul.f32 %v1699_v2, %v1649_v20  ;;  %v1664_v10 = vmul.f32 %v9042_v21, %v13652_v22  ;;  %v1728_v9 = vmul.f32 %v1696_v52, %v1632_v13 }
 0x37d   : > { %v1729_v50 = vmul.f32 %v1697_v48, %v1648_v16  ;;  %v1700_v21 = vsub.f32 1.0, %v9024_v46 }
 0x37e   : > { %v9476_v39 = vadd.f32 %v1730_v28, %v1666_v56  ;;  %v1763_v1 = vadd.f32 %v1731_v17, %v1667_v37  ;;  %v1575_v2 = vpop.permute.xlu0 %1574  ;;  %v9478_v15 = vadd.f32 %v1728_v9, %v1664_v10  ;;  %v1703_v28 = vsub.f32 1.0, %v9032_v12 }
 0x37f   : > { %v1761_v20 = vadd.f32 %v1729_v50, %v1665_v47  ;;  %v1573_v23 = vpop.permute.xlu1 %1572  ;;  %v1670_v50 = vmul.f32 %v9104_v0, %v8488_v30  ;;  %v1671_v47 = vmul.f32 %v9132_v60, %v8498_v31  ;;  %v13653_v0 = vld [vmem:[#allocation48_spill] sm:$0xff]  ;;  %v1669_v60 = vmul.f32 %v9142_v43, %v8485_v25 }
 0x380   : > { %1794 = vrot.lane.b32.xlu0 %v9476_v39, %s7449_s8  ;;  %1792 = vrot.lane.b32.xlu1 %v9478_v15, %s7449_s8  ;;  %v1668_v31 = vmul.f32 %v9106_v59, %v13653_v0  ;;  %v1704_v25 = vsub.f32 1.0, %v9078_v51  ;;  %v1705_v59 = vsub.f32 1.0, %v9098_v11  ;;  %v1706_v43 = vsub.f32 1.0, %v9084_v61 }
 0x381   : > { %v1707_v9 = vsub.f32 1.0, %v9090_v41 }
 0x382   : > { %v1607_v58 = vpop.permute.xlu0 %1606 }
 0x383   : > { %v1635_v44 = vsel %vm1119_vm15, %v1575_v2, %v1607_v58  ;;  %v1651_v35 = vsel %vm1119_vm15, %v1607_v58, %v1575_v2  ;;  %v1605_v52 = vpop.permute.xlu1 %1604  ;;  %v1674_v2 = vmul.f32 %v9168_v33, %v8524_v34  ;;  %v13654_v33 = vld [vmem:[#allocation49_spill] sm:$0xff] }
 0x384   : > { %v1734_v48 = vmul.f32 %v1702_v57, %v1635_v44  ;;  %v1735_v42 = vmul.f32 %v1703_v28, %v1651_v35  ;;  %v1634_v17 = vsel %vm1119_vm15, %v1573_v23, %v1605_v52  ;;  %v1650_v12 = vsel %vm1119_vm15, %v1605_v52, %v1573_v23  ;;  %1826 = vrot.lane.b32.xlu0 %v1763_v1, %s7449_s8 }
 0x385   : > { %v1732_v37 = vmul.f32 %v1700_v21, %v1634_v17  ;;  %v1733_v56 = vmul.f32 %v1701_v27, %v1650_v12  ;;  %1824 = vrot.lane.b32.xlu1 %v1761_v20, %s7449_s8  ;;  %v1675_v20 = vmul.f32 %v9196_v18, %v8534_v62  ;;  %v1672_v62 = vmul.f32 %v9170_v36, %v8506_v29  ;;  %v13655_v18 = vld [vmem:[#allocation79_spill] sm:$0xff] }
 0x386   : > { %v9506_v5 = vadd.f32 %v1734_v48, %v1670_v50  ;;  %v1767_v13 = vadd.f32 %v1735_v42, %v1671_v47  ;;  %v1579_v16 = vpop.permute.xlu0 %1578  ;;  %v1673_v50 = vmul.f32 %v13655_v18, %v13654_v33  ;;  %v13656_v36 = vld [vmem:[#allocation75_spill] sm:$0xff] }
 0x387   : > { %v9508_v40 = vadd.f32 %v1732_v37, %v1668_v31  ;;  %v1765_v10 = vadd.f32 %v1733_v56, %v1669_v60  ;;  %v1577_v23 = vpop.permute.xlu1 %1576  ;;  %v1708_v31 = vsub.f32 1.0, %v13656_v36  ;;  %v13657_v60 = vld [vmem:[#allocation78_spill] sm:$0xff]  ;;  %v13658_v56 = vld [vmem:[#allocation76_spill] sm:$0xff]  ;;  %v13666_v33 = vld [vmem:[#allocation35_spill] sm:$0xff] }
 0x388   : > { %1798 = vrot.lane.b32.xlu0 %v9506_v5, %s7449_s8  ;;  %v1709_v37 = vsub.f32 1.0, %v13657_v60 }
 0x389   : > { %1796 = vrot.lane.b32.xlu1 %v9508_v40, %s7449_s8 }
 0x38a   : > { %v1611_v1 = vpop.permute.xlu0 %1610 }
 0x38b   : > { %v1637_v21 = vsel %vm1119_vm15, %v1579_v16, %v1611_v1  ;;  %v1653_v27 = vsel %vm1119_vm15, %v1611_v1, %v1579_v16  ;;  %v1609_v57 = vpop.permute.xlu1 %1608  ;;  %v13659_v16 = vld [vmem:[#allocation77_spill] sm:$0xff] }
 0x38c   : > { %v1738_v28 = vmul.f32 %v1706_v43, %v1637_v21  ;;  %v1739_v11 = vmul.f32 %v1707_v9, %v1653_v27  ;;  %v1636_v58 = vsel %vm1119_vm15, %v1577_v23, %v1609_v57  ;;  %v1652_v41 = vsel %vm1119_vm15, %v1609_v57, %v1577_v23  ;;  %1830 = vrot.lane.b32.xlu0 %v1767_v13, %s7449_s8  ;;  %v13662_v9 = vld [vmem:[#allocation52_spill] sm:$0xff] }
 0x38d   : > { %v1736_v47 = vmul.f32 %v1704_v25, %v1636_v58  ;;  %v1737_v44 = vmul.f32 %v1705_v59, %v1652_v41  ;;  %1828 = vrot.lane.b32.xlu1 %v1765_v10, %s7449_s8  ;;  %v1710_v13 = vsub.f32 1.0, %v13658_v56  ;;  %v1711_v10 = vsub.f32 1.0, %v13659_v16  ;;  %v13660_v25 = vld [vmem:[#allocation29_spill] sm:$0xff]  ;;  %v13661_v59 = vld [vmem:[#allocation80_spill] sm:$0xff]  ;;  %v13663_v58 = vld [vmem:[#allocation50_spill] sm:$0xff] }
 0x38e   : > { %v9536_v35 = vadd.f32 %v1738_v28, %v1674_v2  ;;  %v1771_v52 = vadd.f32 %v1739_v11, %v1675_v20  ;;  %v1678_v43 = vmul.f32 %v13661_v59, %v13660_v25  ;;  %v1679_v1 = vmul.f32 %v9258_v53, %v13662_v9  ;;  %v13664_v41 = vld [vmem:[#allocation81_spill] sm:$0xff] }
 0x38f   : > { %v1583_v48 = vpop.permute.xlu0 %1582  ;;  %v9538_v42 = vadd.f32 %v1736_v47, %v1672_v62  ;;  %v1769_v17 = vadd.f32 %v1737_v44, %v1673_v50  ;;  %v1581_v12 = vpop.permute.xlu1 %1580  ;;  %v1676_v53 = vmul.f32 %v13664_v41, %v13663_v58  ;;  %v13665_v62 = vld [vmem:[#allocation51_spill] sm:$0xff]  ;;  %v13670_v59 = vld [vmem:[#allocation69_spill] sm:$0xff] }
 0x390   : > { %1802 = vrot.lane.b32.xlu0 %v9536_v35, %s7449_s8  ;;  %v1677_v18 = vmul.f32 %v13666_v33, %v13665_v62 }
 0x391   : > { %1800 = vrot.lane.b32.xlu1 %v9538_v42, %s7449_s8 }
 0x393   : > { %v1615_v23 = vpop.permute.xlu0 %1614  ;;  %v1613_v21 = vpop.permute.xlu1 %1612 }
 0x394   : > { %v1639_v2 = vsel %vm1119_vm15, %v1583_v48, %v1615_v23  ;;  %v1655_v20 = vsel %vm1119_vm15, %v1615_v23, %v1583_v48  ;;  %v1638_v28 = vsel %vm1119_vm15, %v1581_v12, %v1613_v21  ;;  %v1654_v11 = vsel %vm1119_vm15, %v1613_v21, %v1581_v12  ;;  %1834 = vrot.lane.b32.xlu0 %v1771_v52, %s7449_s8  ;;  %v13667_v52 = vld [vmem:[#allocation32_spill] sm:$0xff]  ;;  %v13669_v23 = vld [vmem:[#allocation74_spill] sm:$0xff]  ;;  %v13673_v21 = vld [vmem:[#allocation31_spill] sm:$0xff] }
 0x395   : > { %v1742_v27 = vmul.f32 %v1710_v13, %v1639_v2  ;;  %v1743_v57 = vmul.f32 %v1711_v10, %v1655_v20  ;;  %v1740_v50 = vmul.f32 %v1708_v31, %v1638_v28  ;;  %v1741_v47 = vmul.f32 %v1709_v37, %v1654_v11  ;;  %1832 = vrot.lane.b32.xlu1 %v1769_v17, %s7449_s8  ;;  %v13668_v31 = vld [vmem:[#allocation70_spill] sm:$0xff]  ;;  %v13672_v2 = vld [vmem:[#allocation83_spill] sm:$0xff] }
 0x396   : > { %v1712_v10 = vsub.f32 1.0, %v13667_v52  ;;  %v1713_v37 = vsub.f32 1.0, %v13668_v31  ;;  %v1714_v17 = vsub.f32 1.0, %v13669_v23 }
 0x397   : > { %v9566_v44 = vadd.f32 %v1742_v27, %v1678_v43  ;;  %v1775_v48 = vadd.f32 %v1743_v57, %v1679_v1  ;;  %v1587_v60 = vpop.permute.xlu0 %1586  ;;  %v9568_v13 = vadd.f32 %v1740_v50, %v1676_v53  ;;  %v1773_v16 = vadd.f32 %v1741_v47, %v1677_v18  ;;  %v1585_v12 = vpop.permute.xlu1 %1584  ;;  %v13671_v1 = vld [vmem:[#allocation28_spill] sm:$0xff]  ;;  %v13674_v18 = vld [vmem:[#allocation53_spill] sm:$0xff]  ;;  %v13675_v50 = vld [vmem:[#allocation54_spill] sm:$0xff] }
 0x398   : > { %v1715_v43 = vsub.f32 1.0, %v13670_v59  ;;  %v1682_v20 = vmul.f32 %v13672_v2, %v13671_v1  ;;  %v1683_v27 = vmul.f32 %v9320_v54, %v13673_v21  ;;  %v1680_v54 = vmul.f32 %v9296_v24, %v13674_v18  ;;  %v13676_v24 = vld [vmem:[#allocation26_spill] sm:$0xff] }
 0x399   : > { %1806 = vrot.lane.b32.xlu0 %v9566_v44, %s7449_s8  ;;  %1804 = vrot.lane.b32.xlu1 %v9568_v13, %s7449_s8  ;;  %v1681_v47 = vmul.f32 %v9322_v49, %v13675_v50  ;;  %v1716_v49 = vsub.f32 1.0, %v13676_v24 }
 0x39b   : > { %v1619_v9 = vpop.permute.xlu0 %1618  ;;  %v1617_v11 = vpop.permute.xlu1 %1616 }
 0x39c   : > { %v1641_v57 = vsel %vm1119_vm15, %v1587_v60, %v1619_v9  ;;  %v1657_v28 = vsel %vm1119_vm15, %v1619_v9, %v1587_v60  ;;  %v1640_v62 = vsel %vm1119_vm15, %v1585_v12, %v1617_v11  ;;  %v1656_v33 = vsel %vm1119_vm15, %v1617_v11, %v1585_v12 }
 0x39d   : > { %v1746_v41 = vmul.f32 %v1714_v17, %v1641_v57  ;;  %v1747_v53 = vmul.f32 %v1715_v43, %v1657_v28  ;;  %1838 = vrot.lane.b32.xlu0 %v1775_v48, %s7449_s8  ;;  %v1744_v31 = vmul.f32 %v1712_v10, %v1640_v62  ;;  %v1745_v59 = vmul.f32 %v1713_v37, %v1656_v33  ;;  %v13677_v48 = vld [vmem:[#allocation82_spill] sm:$0xff]  ;;  %v13681_v28 = vld [vmem:[#allocation84_spill] sm:$0xff] }
 0x39e   : > { %1836 = vrot.lane.b32.xlu1 %v1773_v16, %s7449_s8  ;;  %v1717_v10 = vsub.f32 1.0, %v13677_v48  ;;  %v13678_v37 = vld [vmem:[#allocation58_spill] sm:$0xff]  ;;  %v13683_v48 = vld [vmem:[#allocation55_spill] sm:$0xff] }
 0x39f   : > { %v9596_v60 = vadd.f32 %v1746_v41, %v1682_v20  ;;  %v1779_v17 = vadd.f32 %v1747_v53, %v1683_v27  ;;  %v1591_v43 = vpop.permute.xlu0 %1590  ;;  %v9598_v9 = vadd.f32 %v1744_v31, %v1680_v54  ;;  %v1777_v2 = vadd.f32 %v1745_v59, %v1681_v47  ;;  %v1589_v12 = vpop.permute.xlu1 %1588  ;;  %v13679_v20 = vld [vmem:[#allocation60_spill] sm:$0xff]  ;;  %v13680_v57 = vld [vmem:[#allocation30_spill] sm:$0xff]  ;;  %v13682_v41 = vld [vmem:[#allocation33_spill] sm:$0xff] }
 0x3a0   : > { %v1718_v16 = vsub.f32 1.0, %v13678_v37  ;;  %v1719_v21 = vsub.f32 1.0, %v13679_v20  ;;  %v1686_v11 = vmul.f32 %v13681_v28, %v13680_v57  ;;  %v1687_v53 = vmul.f32 %v9378_v26, %v13682_v41  ;;  %v13684_v20 = vld [vmem:[#allocation56_spill] sm:$0xff] }
 0x3a1   : > { %1810 = vrot.lane.b32.xlu0 %v9596_v60, %s7449_s8  ;;  %v1684_v26 = vmul.f32 %v9354_v4, %v13683_v48  ;;  %v1685_v28 = vmul.f32 %v9387_v38, %v13684_v20  ;;  %v13686_v4 = vld [vmem:[#allocation40_spill] sm:$0xff] }
 0x3a2   : > { %1808 = vrot.lane.b32.xlu1 %v9598_v9, %s7449_s8  ;;  %v1720_v38 = vsub.f32 1.0, %v13686_v4 }
 0x3a3   : > { %v1623_v27 = vpop.permute.xlu0 %1622  ;;  %v1621_v54 = vpop.permute.xlu1 %1620 }
 0x3a4   : > { %v1643_v62 = vsel %vm1119_vm15, %v1591_v43, %v1623_v27  ;;  %v1659_v33 = vsel %vm1119_vm15, %v1623_v27, %v1591_v43  ;;  %v1642_v31 = vsel %vm1119_vm15, %v1589_v12, %v1621_v54  ;;  %v1658_v59 = vsel %vm1119_vm15, %v1621_v54, %v1589_v12  ;;  %v13690_v54 = vld [vmem:[#allocation66_spill] sm:$0xff] }
 0x3a5   : > { %v1750_v50 = vmul.f32 %v1718_v16, %v1643_v62  ;;  %v1751_v47 = vmul.f32 %v1719_v21, %v1659_v33  ;;  %1842 = vrot.lane.b32.xlu0 %v1779_v17, %s7449_s8  ;;  %v1748_v41 = vmul.f32 %v1716_v49, %v1642_v31  ;;  %v1749_v57 = vmul.f32 %v1717_v10, %v1658_v59  ;;  %v13687_v17 = vld [vmem:[#allocation61_spill] sm:$0xff]  ;;  %v13688_v10 = vld [vmem:[#allocation27_spill] sm:$0xff] }
 0x3a6   : > { %1840 = vrot.lane.b32.xlu1 %v1777_v2, %s7449_s8  ;;  %v1721_v49 = vsub.f32 1.0, %v13687_v17  ;;  %v1722_v2 = vsub.f32 1.0, %v13688_v10 }
 0x3a7   : > { %v9626_v43 = vadd.f32 %v1750_v50, %v1686_v11  ;;  %v1783_v16 = vadd.f32 %v1751_v47, %v1687_v53  ;;  %v1595_v21 = vpop.permute.xlu0 %1594  ;;  %v9628_v27 = vadd.f32 %v1748_v41, %v1684_v26  ;;  %v1781_v62 = vadd.f32 %v1749_v57, %v1685_v28  ;;  %v1593_v12 = vpop.permute.xlu1 %1592  ;;  %v13689_v11 = vld [vmem:[#allocation41_spill] sm:$0xff] }
 0x3a8   : > { %v1723_v33 = vsub.f32 1.0, %v13689_v11  ;;  %v1690_v50 = vmul.f32 %v13690_v54, %v13627_v8  ;;  %v13691_v57 = vld [vmem:[#allocation37_spill] sm:$0xff]  ;;  %v13693_v54 = vld [vmem:[#allocation59_spill] sm:$0xff] }
 0x3a9   : > { %13685 = vst [vmem:[#allocation68_spill] sm:$0xff] %v9628_v27  ;;  %1814 = vrot.lane.b32.xlu0 %v9626_v43, %s7449_s8  ;;  %v1691_v47 = vmul.f32 %v9428_v3, %v13691_v57  ;;  %v13692_v11 = vld [vmem:[#allocation57_spill] sm:$0xff]  ;;  %v1689_v57 = vmul.f32 %v9430_v7, %v13693_v54 }
 0x3aa   : > { %1812 = vrot.lane.b32.xlu1 %v9628_v27, %s7449_s8  ;;  %v1688_v3 = vmul.f32 %v9408_v14, %v13692_v11  ;;  %v13696_v14 = vld [vmem:[#allocation36_spill] sm:$0xff]  ;;  %v13709_v11 = vld [vmem:[#allocation47_spill] sm:$0xff]  ;;  %v1872_v27 = vmul.f32 %v9478_v15, %v13652_v22  ;;  %v1891_v15 = vsub.f32 1.5, %v9028_v63 }
 0x3ab   : > { %v1627_v53 = vpop.permute.xlu0 %1626  ;;  %v1625_v26 = vpop.permute.xlu1 %1624  ;;  %v1724_v7 = vsub.f32 1.0, %v13696_v14 }
 0x3ac   : > { %v1645_v31 = vsel %vm1119_vm15, %v1595_v21, %v1627_v53  ;;  %v1661_v59 = vsel %vm1119_vm15, %v1627_v53, %v1595_v21  ;;  %v1644_v41 = vsel %vm1119_vm15, %v1593_v12, %v1625_v26  ;;  %v1660_v17 = vsel %vm1119_vm15, %v1625_v26, %v1593_v12 }
 0x3ad   : > { %v1754_v20 = vmul.f32 %v1722_v2, %v1645_v31  ;;  %v1755_v28 = vmul.f32 %v1723_v33, %v1661_v59  ;;  %1846 = vrot.lane.b32.xlu0 %v1783_v16, %s7449_s8  ;;  %v1752_v8 = vmul.f32 %v1720_v38, %v1644_v41  ;;  %v1753_v4 = vmul.f32 %v1721_v49, %v1660_v17  ;;  %v13697_v38 = vld [vmem:[#allocation64_spill] sm:$0xff]  ;;  %v13698_v49 = vld [vmem:[#allocation63_spill] sm:$0xff] }
 0x3ae   : > { %1844 = vrot.lane.b32.xlu1 %v1781_v62, %s7449_s8  ;;  %v1725_v16 = vsub.f32 1.0, %v9402_v45  ;;  %v1726_v62 = vsub.f32 1.0, %v13697_v38 }
 0x3af   : > { %v9656_v21 = vadd.f32 %v1754_v20, %v1690_v50  ;;  %v1787_v2 = vadd.f32 %v1755_v28, %v1691_v47  ;;  %v1599_v33 = vpop.permute.xlu0 %1598  ;;  %v9658_v53 = vadd.f32 %v1752_v8, %v1688_v3  ;;  %v1785_v31 = vadd.f32 %v1753_v4, %v1689_v57  ;;  %v1597_v12 = vpop.permute.xlu1 %1596  ;;  %v13699_v4 = vld [vmem:[#allocation34_spill] sm:$0xff] }
 0x3b0   : > { %v1727_v50 = vsub.f32 1.0, %v13698_v49  ;;  %v1694_v8 = vmul.f32 %v9440_v6, %v13639_v32  ;;  %v1695_v59 = vmul.f32 %v13699_v4, %v13641_v55  ;;  %v13700_v6 = vld [vmem:[#allocation39_spill] sm:$0xff]  ;;  %v13701_v55 = vld [vmem:[#allocation65_spill] sm:$0xff]  ;;  %v13702_v57 = vld [vmem:[#allocation62_spill] sm:$0xff] }
 0x3b1   : > { %13694 = vst [vmem:[#allocation73_spill] sm:$0xff] %v9656_v21  ;;  %13695 = vst [vmem:[#allocation46_spill] sm:$0xff] %v9658_v53  ;;  %1818 = vrot.lane.b32.xlu0 %v9656_v21, %s7449_s8  ;;  %v1692_v54 = vmul.f32 %v13701_v55, %v13700_v6  ;;  %v13703_v49 = vld [vmem:[#allocation67_spill] sm:$0xff] }
 0x3b2   : > { %1816 = vrot.lane.b32.xlu1 %v9658_v53, %s7449_s8  ;;  %v1693_v4 = vmul.f32 %v13703_v49, %v13702_v57 }
 0x3b3   : > { %v1631_v47 = vpop.permute.xlu0 %1630  ;;  %v1629_v28 = vpop.permute.xlu1 %1628 }
 0x3b4   : > { %v1647_v26 = vsel %vm1119_vm15, %v1599_v33, %v1631_v47  ;;  %v1663_v20 = vsel %vm1119_vm15, %v1631_v47, %v1599_v33  ;;  %v1646_v17 = vsel %vm1119_vm15, %v1597_v12, %v1629_v28  ;;  %v1662_v3 = vsel %vm1119_vm15, %v1629_v28, %v1597_v12  ;;  %v9705_v28 = vld [vmem:[%s7790_s28 + $0x18] sm:$0xff] }
 0x3b5   : > { %v1758_v41 = vmul.f32 %v1726_v62, %v1647_v26  ;;  %v1759_v45 = vmul.f32 %v1727_v50, %v1663_v20  ;;  %1850 = vrot.lane.b32.xlu0 %v1787_v2, %s7449_s8  ;;  %v1756_v33 = vmul.f32 %v1724_v7, %v1646_v17  ;;  %v1757_v47 = vmul.f32 %v1725_v16, %v1662_v3  ;;  %v7158_v16 = vld [vmem:[%s7790_s28 + $0x8] sm:$0xff]  ;;  %v9709_v3 = vld [vmem:[%s7790_s28 + $0x20] sm:$0xff] }
 0x3b6   : > { %1848 = vrot.lane.b32.xlu1 %v1785_v31, %s7449_s8  ;;  %v13706_v2 = vmov 0.0   ;;  %v7157_v31 = vld [vmem:[%s7790_s28] sm:$0xff]  ;;  %v5944_v55 = vmul.f32 -1.442695, %v9709_v3 }
 0x3b7   : > { %v9686_v62 = vadd.f32 %v1758_v41, %v1694_v8  ;;  %v1791_v50 = vadd.f32 %v1759_v45, %v1695_v59  ;;  %v9688_v12 = vadd.f32 %v1756_v33, %v1692_v54  ;;  %v1789_v26 = vadd.f32 %v1757_v47, %v1693_v4  ;;  %v9701_v59 = vld [vmem:[%s7790_s28 + $0x10] sm:$0xff]  ;;  %v9713_v54 = vld [vmem:[%s7790_s28 + $0x28] sm:$0xff] }
 0x3b8   : > { %v5940_v7 = vmul.f32 -1.442695, %v7157_v31  ;;  %v5941_v8 = vmul.f32 -1.442695, %v7158_v16  ;;  %v5942_v20 = vmul.f32 -1.442695, %v9701_v59 }
 0x3b9   : > { %13704 = vst [vmem:[#allocation45_spill] sm:$0xff] %v9686_v62  ;;  %13705 = vst [vmem:[#allocation48_spill] sm:$0xff] %v9688_v12  ;;  %1822 = vrot.lane.b32.xlu0 %v9686_v62, %s7449_s8  ;;  %v5943_v41 = vmul.f32 -1.442695, %v9705_v28  ;;  %v5945_v57 = vmul.f32 -1.442695, %v9713_v54 }
 0x3ba   : > { %1820 = vrot.lane.b32.xlu1 %v9688_v12, %s7449_s8  ;;  %6885 = vpow2.f32 %v5940_v7  ;;  %v9721_v7 = vld [vmem:[%s7790_s28 + $0x38] sm:$0xff]  ;;  %v13707_v12 = vld [vmem:[#allocation72_spill] sm:$0xff] }
 0x3bb   : > { %6887 = vpow2.f32 %v5941_v8  ;;  %v5947_v8 = vmul.f32 -1.442695, %v9721_v7  ;;  %v1889_v6 = vsub.f32 1.5, %v13707_v12  ;;  %v1873_v12 = vmul.f32 %v9476_v39, %v13709_v11 }
 0x3bc   : > { %6889 = vpow2.f32 %v5942_v20 }
 0x3bd   : > { %1854 = vrot.lane.b32.xlu0 %v1791_v50, %s7449_s8  ;;  %6891 = vpow2.f32 %v5943_v41  ;;  %v9717_v50 = vld [vmem:[%s7790_s28 + $0x30] sm:$0xff] }
 0x3be   : > { %1852 = vrot.lane.b32.xlu1 %v1789_v26, %s7449_s8  ;;  %6893 = vpow2.f32 %v5944_v55  ;;  %v5946_v26 = vmul.f32 -1.442695, %v9717_v50 }
 0x3bf   : > { %6895 = vpow2.f32 %v5945_v57 }
 0x3c2   : > { %2626 = vrot.lane.b32.xlu1 %v13706_v2, %s7447_s23 }
 0x3c4   : > { %v6886_v45 = vpop.eup %6885 }
 0x3c5   : > { %v6888_v17 = vpop.eup %6887  ;;  %v2000_v49 = vadd.f32 1.0, %v6886_v45 }
 0x3c6   : > { %v2001_v4 = vadd.f32 1.0, %v6888_v17  ;;  %v6890_v33 = vpop.eup %6889 }
 0x3c7   : > { %6897 = vrcp.f32 %v2000_v49  ;;  %v6892_v47 = vpop.eup %6891  ;;  %v2002_v20 = vadd.f32 1.0, %v6890_v33  ;;  %v9730_v33 = vld [vmem:[%s7790_s28 + $0x48] sm:$0xff] }
 0x3c8   : > { %6899 = vrcp.f32 %v2001_v4  ;;  %v2003_v41 = vadd.f32 1.0, %v6892_v47  ;;  %v6894_v55 = vpop.eup %6893  ;;  %v9725_v4 = vld [vmem:[%s7790_s28 + $0x40] sm:$0xff]  ;;  %v5949_v47 = vmul.f32 -1.442695, %v9730_v33 }
 0x3c9   : > { %6901 = vpow2.f32 %v5946_v26  ;;  %v6896_v57 = vpop.eup %6895  ;;  %v5948_v2 = vmul.f32 -1.442695, %v9725_v4 }
 0x3ca   : > { %6903 = vpow2.f32 %v5947_v8  ;;  %v13708_v8 = vld [vmem:[#allocation71_spill] sm:$0xff]  ;;  %v2005_v21 = vadd.f32 1.0, %v6896_v57 }
 0x3cb   : > { %6905 = vrcp.f32 %v2002_v20  ;;  %v1888_v20 = vsub.f32 1.5, %v13708_v8 }
 0x3cc   : > { %6907 = vrcp.f32 %v2003_v41  ;;  %v2004_v41 = vadd.f32 1.0, %v6894_v55 }
 0x3cd   : > { %6909 = vpow2.f32 %v5948_v2 }
 0x3ce   : > { %6911 = vpow2.f32 %v5949_v47  ;;  %v1875_v47 = vmul.f32 %v9506_v5, %v8488_v30 }
 0x3cf   : > { %6913 = vrcp.f32 %v2004_v41 }
 0x3d0   : > { %6915 = vrcp.f32 %v2005_v21  ;;  %v9751_v21 = vld [vmem:[%s7790_s28 + $0x58] sm:$0xff] }
 0x3d1   : > { %v6898_v49 = vpop.eup %6897 }
 0x3d2   : > { %v6900_v32 = vpop.eup %6899 }
 0x3d3   : > { %v2049_v8 = vmul.f32 %v7158_v16, %v6900_v32 }
 0x3f2   : > { %v1795_v45 = vpop.permute.xlu0 %1794  ;;  %v1793_v17 = vpop.permute.xlu1 %1792 }
 0x3f6   : > { %v1827_v62 = vpop.permute.xlu0 %1826 }
 0x3f7   : > { %v1857_v26 = vsel %vm1119_vm15, %v1795_v45, %v1827_v62  ;;  %v1825_v14 = vpop.permute.xlu1 %1824  ;;  %v2048_v45 = vmul.f32 %v7157_v31, %v6898_v49  ;;  %v5951_v49 = vmul.f32 -1.442695, %v9751_v21 }
 0x3f8   : > { %v1905_v38 = vmul.f32 %v1889_v6, %v1857_v26  ;;  %v1856_v53 = vsel %vm1119_vm15, %v1793_v17, %v1825_v14  ;;  %v6902_v26 = vpop.eup %6901 }
 0x3f9   : > { %v1904_v10 = vmul.f32 %v1888_v20, %v1856_v53  ;;  %v6904_v17 = vpop.eup %6903  ;;  %v9743_v53 = vld [vmem:[%s7790_s28 + $0x50] sm:$0xff]  ;;  %v2064_v2 = vpack.c.bf16 %v2049_v8, %v2048_v45  ;;  %v2006_v31 = vadd.f32 1.0, %v6902_v26 }
 0x3fa   : > { %v1799_v48 = vpop.permute.xlu0 %1798  ;;  %v1921_v62 = vadd.f32 %v1905_v38, %v1873_v12  ;;  %v6906_v11 = vpop.eup %6905  ;;  %v5950_v22 = vmul.f32 -1.442695, %v9743_v53  ;;  %v2007_v41 = vadd.f32 1.0, %v6904_v17  ;;  %v1874_v12 = vmul.f32 %v9508_v40, %v13653_v0 }
 0x3fb   : > { %v1797_v55 = vpop.permute.xlu1 %1796  ;;  %v1920_v6 = vadd.f32 %v1904_v10, %v1872_v27  ;;  %v6908_v32 = vpop.eup %6907  ;;  %v1890_v10 = vsub.f32 1.5, %v9024_v46  ;;  %v2050_v45 = vmul.f32 %v9701_v59, %v6906_v11 }
 0x3fc   : > { %v1937_v14 = vmul.f32 0.6666667, %v1921_v62  ;;  %6917 = vpow2.f32 %v5950_v22  ;;  %v2051_v8 = vmul.f32 %v9705_v28, %v6908_v32 }
 0x3fd   : > { %v1936_v39 = vmul.f32 0.6666667, %v1920_v6  ;;  %6919 = vrcp.f32 %v2006_v31  ;;  %v6910_v6 = vpop.eup %6909  ;;  %v9771_v31 = vld [vmem:[%s7790_s28 + $0x68] sm:$0xff] }
 0x3fe   : > { %v1831_v38 = vpop.permute.xlu0 %1830  ;;  %6921 = vpow2.f32 %v5951_v49  ;;  %v6912_v26 = vpop.eup %6911  ;;  %v2066_v11 = vpack.c.bf16 %v2051_v8, %v2050_v45  ;;  %v2008_v22 = vadd.f32 1.0, %v6910_v6  ;;  %v1876_v49 = vmul.f32 %v9538_v42, %v8506_v29 }
 0x3ff   : > { %v1859_v27 = vsel %vm1119_vm15, %v1799_v48, %v1831_v38  ;;  %v1829_v16 = vpop.permute.xlu1 %1828  ;;  %v2065_v57 = vpack.c.bf16 %v1937_v14, %v1936_v39  ;;  %6923 = vrcp.f32 %v2007_v41  ;;  %v6914_v40 = vpop.eup %6913  ;;  %v9763_v14 = vld [vmem:[%s7790_s28 + $0x60] sm:$0xff]  ;;  %v1893_v39 = vsub.f32 1.5, %v9084_v61 }
 0x400   : > { %v1907_v20 = vmul.f32 %v1891_v15, %v1859_v27  ;;  %v1858_v63 = vsel %vm1119_vm15, %v1797_v55, %v1829_v16  ;;  %v5952_v17 = vmul.f32 -1.442695, %v9763_v14  ;;  %v6916_v28 = vpop.eup %6915  ;;  %v1892_v38 = vsub.f32 1.5, %v9078_v51 }
 0x401   : > { %v1906_v48 = vmul.f32 %v1890_v10, %v1858_v63  ;;  %2208 = vmatprep.mubr.bf16.mxu0 %v2065_v57  ;;  %v5953_v27 = vmul.f32 -1.442695, %v9771_v31  ;;  %v1877_v10 = vmul.f32 %v9536_v35, %v8524_v34  ;;  %v2009_v57 = vadd.f32 1.0, %v6912_v26 }
 0x402   : > { %v1923_v46 = vadd.f32 %v1907_v20, %v1875_v47  ;;  %2209 = vmatmul.mubr.bf16.vlgmr.msra.gmra.mrb[0].mxu0 %v2064_v2  ;;  %v1803_v62 = vpop.permute.xlu0 %1802  ;;  %6925 = vpow2.f32 %v5952_v17  ;;  %v2052_v63 = vmul.f32 %v9709_v3, %v6914_v40  ;;  %v2053_v41 = vmul.f32 %v9713_v54, %v6916_v28  ;;  %v9791_v40 = vld [vmem:[%s7790_s28 + $0x78] sm:$0xff] }
 0x403   : > { %v1922_v30 = vadd.f32 %v1906_v48, %v1874_v12  ;;  %v1801_v5 = vpop.permute.xlu1 %1800  ;;  %6927 = vrcp.f32 %v2008_v22  ;;  %v1895_v8 = vsub.f32 1.5, %v13658_v56  ;;  %v5955_v17 = vmul.f32 -1.442695, %v9791_v40 }
 0x404   : > { %v1939_v55 = vmul.f32 0.6666667, %v1923_v46  ;;  %6929 = vpow2.f32 %v5953_v27  ;;  %v1878_v28 = vmul.f32 %v9568_v13, %v13663_v58  ;;  %v1897_v13 = vsub.f32 1.5, %v13669_v23 }
 0x405   : > { %v1938_v0 = vmul.f32 0.6666667, %v1922_v30  ;;  %6931 = vrcp.f32 %v2009_v57  ;;  %v2068_v30 = vpack.c.bf16 %v2053_v41, %v2052_v63  ;;  %v1881_v63 = vmul.f32 %v9596_v60, %v13671_v1 }
 0x406   : > { %v1835_v59 = vpop.permute.xlu0 %1834  ;;  %v6918_v12 = vpop.eup %6917  ;;  %v1880_v23 = vmul.f32 %v9598_v9, %v13674_v18  ;;  %v1899_v18 = vsub.f32 1.5, %v13678_v37  ;;  %v13711_v37 = vld [vmem:[#allocation55_spill] sm:$0xff] }
 0x407   : > { %v1861_v15 = vsel %vm1119_vm15, %v1803_v62, %v1835_v59  ;;  %v1833_v2 = vpop.permute.xlu1 %1832  ;;  %v2067_v32 = vpack.c.bf16 %v1939_v55, %v1938_v0  ;;  %v6920_v46 = vpop.eup %6919  ;;  %v9783_v62 = vld [vmem:[%s7790_s28 + $0x70] sm:$0xff]  ;;  %v1894_v55 = vsub.f32 1.5, %v13656_v36  ;;  %s14205_s28 = sld [smem:[#allocation164_spill]] }
 0x408   : > { %v1909_v16 = vmul.f32 %v1893_v39, %v1861_v15  ;;  %v1860_v61 = vsel %vm1119_vm15, %v1801_v5, %v1833_v2  ;;  %v6922_v42 = vpop.eup %6921  ;;  %v5954_v45 = vmul.f32 -1.442695, %v9783_v62  ;;  %v2010_v5 = vadd.f32 1.0, %v6918_v12 }
 0x409   : > { %v1908_v47 = vmul.f32 %v1892_v38, %v1860_v61  ;;  %2216 = vmatprep.mubr.bf16.mxu0 %v2067_v32  ;;  %v6924_v54 = vpop.eup %6923  ;;  %v1879_v39 = vmul.f32 %v9566_v44, %v13660_v25  ;;  %v2054_v38 = vmul.f32 %v9717_v50, %v6920_v46 }
 0x40a   : > { %v1925_v51 = vadd.f32 %v1909_v16, %v1877_v10  ;;  %2217 = vmatmul.mubr.bf16.gmra.mrb[4].mxu0 %v2066_v11  ;;  %v2011_v11 = vadd.f32 1.0, %v6922_v42  ;;  %6933 = vpow2.f32 %v5954_v45  ;;  %v2055_v2 = vmul.f32 %v9721_v7, %v6924_v54 }
 0x40b   : > { %v1807_v20 = vpop.permute.xlu0 %1806  ;;  %v1924_v34 = vadd.f32 %v1908_v47, %v1876_v49  ;;  %v1805_v35 = vpop.permute.xlu1 %1804  ;;  %6935 = vrcp.f32 %v2010_v5  ;;  %v1896_v7 = vsub.f32 1.5, %v13667_v52 }
 0x40c   : > { %v1941_v48 = vmul.f32 0.6666667, %v1925_v51  ;;  %v6926_v32 = vpop.eup %6925  ;;  %6937 = vpow2.f32 %v5955_v17  ;;  %v2070_v57 = vpack.c.bf16 %v2055_v2, %v2054_v38 }
 0x40d   : > { %v1940_v29 = vmul.f32 0.6666667, %v1924_v34  ;;  %v6928_v10 = vpop.eup %6927  ;;  %6939 = vrcp.f32 %v2011_v11  ;;  %v13712_v11 = vld [vmem:[#allocation68_spill] sm:$0xff] }
 0x40e   : > { %v6930_v58 = vpop.eup %6929  ;;  %v2056_v52 = vmul.f32 %v9725_v4, %v6928_v10  ;;  %v1898_v4 = vsub.f32 1.5, %v13676_v24 }
 0x40f   : > { %v1839_v3 = vpop.permute.xlu0 %1838  ;;  %v2069_v0 = vpack.c.bf16 %v1941_v48, %v1940_v29  ;;  %v6932_v49 = vpop.eup %6931 }
 0x410   : > { %v1863_v6 = vsel %vm1119_vm15, %v1807_v20, %v1839_v3  ;;  %v1837_v26 = vpop.permute.xlu1 %1836  ;;  %v2012_v20 = vadd.f32 1.0, %v6926_v32  ;;  %v2057_v29 = vmul.f32 %v9730_v33, %v6932_v49 }
 0x411   : > { %v1911_v59 = vmul.f32 %v1895_v8, %v1863_v6  ;;  %v1862_v56 = vsel %vm1119_vm15, %v1805_v35, %v1837_v26  ;;  %2224 = vmatprep.mubr.bf16.mxu0 %v2069_v0  ;;  %v2013_v35 = vadd.f32 1.0, %v6930_v58  ;;  %v13710_v0 = vld [vmem:[#allocation30_spill] sm:$0xff] }
 0x412   : > { %v1910_v22 = vmul.f32 %v1894_v55, %v1862_v56  ;;  %2225 = vmatmul.mubr.bf16.gmra.mrb[8].mxu0 %v2068_v30  ;;  %6941 = vrcp.f32 %v2012_v20  ;;  %v2072_v54 = vpack.c.bf16 %v2057_v29, %v2056_v52  ;;  %v1883_v17 = vmul.f32 %v9626_v43, %v13710_v0  ;;  %v13723_v0 = vld [vmem:[#allocation39_spill] sm:$0xff] }
 0x413   : > { %v1927_v36 = vadd.f32 %v1911_v59, %v1879_v39  ;;  %v1811_v15 = vpop.permute.xlu0 %1810  ;;  %6943 = vrcp.f32 %v2013_v35 }
 0x414   : > { %v1926_v25 = vadd.f32 %v1910_v22, %v1878_v28  ;;  %v1809_v44 = vpop.permute.xlu1 %1808  ;;  %v6934_v1 = vpop.eup %6933  ;;  %v1882_v28 = vmul.f32 %v13712_v11, %v13711_v37 }
 0x415   : > { %v1943_v27 = vmul.f32 0.6666667, %v1927_v36  ;;  %v6936_v8 = vpop.eup %6935  ;;  %v2014_v26 = vadd.f32 1.0, %v6934_v1 }
 0x416   : > { %v1942_v16 = vmul.f32 0.6666667, %v1926_v25  ;;  %v6938_v30 = vpop.eup %6937  ;;  %v2058_v24 = vmul.f32 %v9743_v53, %v6936_v8 }
 0x417   : > { %v1843_v61 = vpop.permute.xlu0 %1842  ;;  %v6940_v5 = vpop.eup %6939  ;;  %v2015_v56 = vadd.f32 1.0, %v6938_v30  ;;  %6945 = vrcp.f32 %v2014_v26 }
 0x418   : > { %v1865_v50 = vsel %vm1119_vm15, %v1811_v15, %v1843_v61  ;;  %v1841_v47 = vpop.permute.xlu1 %1840  ;;  %v2071_v51 = vpack.c.bf16 %v1943_v27, %v1942_v16  ;;  %v2059_v38 = vmul.f32 %v9751_v21, %v6940_v5  ;;  %v13713_v27 = vld [vmem:[#allocation27_spill] sm:$0xff]  ;;  %v13715_v21 = vld [vmem:[#allocation38_spill] sm:$0xff] }
 0x419   : > { %v1913_v41 = vmul.f32 %v1897_v13, %v1865_v50  ;;  %v1864_v34 = vsel %vm1119_vm15, %v1809_v44, %v1841_v47  ;;  %6947 = vrcp.f32 %v2015_v56  ;;  %v1901_v10 = vsub.f32 1.5, %v13713_v27 }
 0x41a   : > { %v1912_v12 = vmul.f32 %v1896_v7, %v1864_v34  ;;  %2232 = vmatprep.mubr.bf16.mxu0 %v2071_v51  ;;  %v2074_v58 = vpack.c.bf16 %v2059_v38, %v2058_v24  ;;  %v13716_v7 = vld [vmem:[#allocation73_spill] sm:$0xff]  ;;  %v6828_v38 = vld [vmem:[%s7798_s13] sm:$0xff]  }
 0x41b   : > { %v1929_v48 = vadd.f32 %v1913_v41, %v1881_v63  ;;  %2233 = vmatmul.mubr.bf16.gmra.mrb[12].mxu0 %v2070_v57  ;;  %v1815_v46 = vpop.permute.xlu0 %1814  ;;  %v13714_v57 = vld [vmem:[#allocation40_spill] sm:$0xff]  ;;  %v1885_v47 = vmul.f32 %v13716_v7, %v13715_v21  ;;  %v13717_v63 = vld [vmem:[#allocation57_spill] sm:$0xff]  ;;  %v13718_v41 = vld [vmem:[#allocation46_spill] sm:$0xff]  ;;  %6377 = vmatprep.mubr.bf16.mxu1 %v6828_v38 }
 0x41c   : > { %v1928_v42 = vadd.f32 %v1912_v12, %v1880_v23  ;;  %v1813_v45 = vpop.permute.xlu1 %1812  ;;  %v6942_v32 = vpop.eup %6941  ;;  %v1900_v49 = vsub.f32 1.5, %v13714_v57  ;;  %v1884_v34 = vmul.f32 %v13718_v41, %v13717_v63  ;;  %v6835_v38 = vld [vmem:[%s7798_s13 + $0x38] sm:$0xff]  }
 0x41d   : > { %v1945_v60 = vmul.f32 0.6666667, %v1929_v48  ;;  %v6944_v13 = vpop.eup %6943  ;;  %v2060_v48 = vmul.f32 %v9763_v14, %v6942_v32  ;;  %v13721_v14 = vld [vmem:[#allocation25_spill] sm:$0xff] }
 0x41e   : > { %v1944_v3 = vmul.f32 0.6666667, %v1928_v42 }
 0x41f   : > { %v1847_v9 = vpop.permute.xlu0 %1846 }
 0x420   : > { %v1867_v6 = vsel %vm1119_vm15, %v1815_v46, %v1847_v9  ;;  %v1845_v33 = vpop.permute.xlu1 %1844  ;;  %v2073_v55 = vpack.c.bf16 %v1945_v60, %v1944_v3  ;;  %v2061_v46 = vmul.f32 %v9771_v31, %v6944_v13  ;;  %v13719_v60 = vld [vmem:[#allocation64_spill] sm:$0xff] }
 0x421   : > { %v1915_v39 = vmul.f32 %v1899_v18, %v1867_v6  ;;  %v1866_v59 = vsel %vm1119_vm15, %v1813_v45, %v1845_v33  ;;  %v6946_v1 = vpop.eup %6945  ;;  %v1903_v8 = vsub.f32 1.5, %v13719_v60  ;;  %v13722_v33 = vld [vmem:[#allocation45_spill] sm:$0xff] }
 0x422   : > { %v1914_v22 = vmul.f32 %v1898_v4, %v1866_v59  ;;  %2240 = vmatprep.mubr.bf16.mxu0 %v2073_v55  ;;  %v2076_v30 = vpack.c.bf16 %v2061_v46, %v2060_v48  ;;  %v1887_v31 = vmul.f32 %v13722_v33, %v13721_v14  ;;  %v2062_v37 = vmul.f32 %v9783_v62, %v6946_v1 }
 0x423   : > { %v1931_v36 = vadd.f32 %v1915_v39, %v1883_v17  ;;  %2241 = vmatmul.mubr.bf16.gmra.mrb[16].mxu0 %v2072_v54  ;;  %v1819_v15 = vpop.permute.xlu0 %1818  ;;  %v6948_v18 = vpop.eup %6947  ;;  %v13720_v54 = vld [vmem:[#allocation36_spill] sm:$0xff] }
 0x424   : > { %v1930_v2 = vadd.f32 %v1914_v22, %v1882_v28  ;;  %v1817_v25 = vpop.permute.xlu1 %1816  ;;  %v1902_v5 = vsub.f32 1.5, %v13720_v54  ;;  %v13724_v17 = vld [vmem:[#allocation48_spill] sm:$0xff]  ;;  %v2063_v11 = vmul.f32 %v9791_v40, %v6948_v18 }
 0x425   : > { %v1947_v43 = vmul.f32 0.6666667, %v1931_v36  ;;  %v1886_v39 = vmul.f32 %v13724_v17, %v13723_v0 }
 0x426   : > { %v1946_v44 = vmul.f32 0.6666667, %v1930_v2 }
 0x427   : > { %v1851_v16 = vpop.permute.xlu0 %1850 }
 0x428   : > { %v1869_v61 = vsel %vm1119_vm15, %v1819_v15, %v1851_v16  ;;  %v1849_v53 = vpop.permute.xlu1 %1848  ;;  %v2075_v50 = vpack.c.bf16 %v1947_v43, %v1946_v44  ;;  %v2078_v15 = vpack.c.bf16 %v2063_v11, %v2062_v37  ;;  %v6829_v11 = vld [vmem:[%s7798_s13 + $0x8] sm:$0xff]  }
 0x429   : > { %v1917_v51 = vmul.f32 %v1901_v10, %v1869_v61  ;;  %v1868_v20 = vsel %vm1119_vm15, %v1817_v25, %v1849_v53 }
 0x42a   : > { %v1916_v35 = vmul.f32 %v1900_v49, %v1868_v20  ;;  %2248 = vmatprep.mubr.bf16.mxu0 %v2075_v50 }
 0x42b   : > { %v1933_v23 = vadd.f32 %v1917_v51, %v1885_v47  ;;  %2249 = vmatmul.mubr.bf16.gmra.mrb[20].mxu0 %v2074_v58  ;;  %v1823_v12 = vpop.permute.xlu0 %1822 }
 0x42c   : > { %v1932_v52 = vadd.f32 %v1916_v35, %v1884_v34  ;;  %v1821_v29 = vpop.permute.xlu1 %1820 }
 0x42d   : > { %v1949_v42 = vmul.f32 0.6666667, %v1933_v23 }
 0x42e   : > { %v1948_v45 = vmul.f32 0.6666667, %v1932_v52 }
 0x42f   : > { %v1855_v3 = vpop.permute.xlu0 %1854 }
 0x430   : > { %v1871_v9 = vsel %vm1119_vm15, %v1823_v12, %v1855_v3  ;;  %v1853_v6 = vpop.permute.xlu1 %1852  ;;  %v2077_v4 = vpack.c.bf16 %v1949_v42, %v1948_v45 }
 0x431   : > { %v1919_v55 = vmul.f32 %v1903_v8, %v1871_v9  ;;  %v1870_v26 = vsel %vm1119_vm15, %v1821_v29, %v1853_v6 }
 0x432   : > { %v1918_v59 = vmul.f32 %v1902_v5, %v1870_v26  ;;  %2256 = vmatprep.mubr.bf16.mxu0 %v2077_v4 }
 0x433   : > { %v1935_v56 = vadd.f32 %v1919_v55, %v1887_v31  ;;  %2257 = vmatmul.mubr.bf16.gmra.mrb[24].mxu0 %v2076_v30 }
 0x434   : > { %v1934_v28 = vadd.f32 %v1918_v59, %v1886_v39 }
 0x435   : > { %v1951_v22 = vmul.f32 0.6666667, %v1935_v56 }
 0x436   : > { %v1950_v36 = vmul.f32 0.6666667, %v1934_v28  ;;  %v6830_v28 = vld [vmem:[%s7798_s13 + $0x10] sm:$0xff]  }
 0x438   : > { %v2079_v24 = vpack.c.bf16 %v1951_v22, %v1950_v36  ;;  %v6831_v22 = vld [vmem:[%s7798_s13 + $0x18] sm:$0xff]   ;;  %v6832_v36 = vld [vmem:[%s7798_s13 + $0x20] sm:$0xff]  }
 0x43a   : > { %2264 = vmatprep.mubr.bf16.mxu0 %v2079_v24  ;;  %v6834_v24 = vld [vmem:[%s7798_s13 + $0x30] sm:$0xff]  }
 0x43b   : > { %2265 = vmatmul.mubr.bf16.gmra.mrb[28].mxu0 %v2078_v15  ;;  %v6833_v15 = vld [vmem:[%s7798_s13 + $0x28] sm:$0xff]  }
 0x4d5   : > { %v6161_v2 = vpop.f32.mrb[0].mxu0 }
 0x4d6   : > { %v6162_v25 = vpop.f32.mrb[1].mxu0 }
 0x4d7   : > { %v6163_v43 = vadd.f32 %v6162_v25, %v6161_v2  ;;  %v6164_v44 = vpop.f32.mrb[2].mxu0  ;;  %v9858_v2 = vpop.permute.xlu1 %2626  ;;  %v9865_v25 = vld [vmem:[%s13726_s3] ss:$0 sm:$0xff] }
 0x4d8   : > { %v6165_v32 = vpop.f32.mrb[3].mxu0  ;;  %13725 = vst [vmem:[#allocation49_spill] sm:$0xff] %v9858_v2  ;;  %2757 = vrot.lane.b32.xlu0 %v9858_v2, %s7448_s10 }
 0x4d9   : > { %v6166_v27 = vadd.f32 %v6165_v32, %v6164_v44 }
 0x4db   : > { %v2273_v10 = vpack.c.bf16 %v6166_v27, %v6163_v43 }
 0x4dd   : > { %v6167_v16 = vpop.f32.mrb[4].mxu0  ;;  %6361 = vmatprep.subr.bf16.mxu1 %v2273_v10 }
 0x4de   : > { %v6168_v62 = vpop.f32.mrb[5].mxu0  ;;  %6362 = vmatpush3.bf16.msra.mxu1 %v2273_v10 }
 0x4df   : > { %v6169_v40 = vadd.f32 %v6168_v62, %v6167_v16  ;;  %v6170_v58 = vpop.f32.mrb[6].mxu0 }
 0x4e0   : > { %v6171_v13 = vpop.f32.mrb[7].mxu0 }
 0x4e1   : > { %v6172_v61 = vadd.f32 %v6171_v13, %v6170_v58 }
 0x4e3   : > { %v2274_v57 = vpack.c.bf16 %v6172_v61, %v6169_v40 }
 0x4e5   : > { %v6173_v49 = vpop.f32.mrb[8].mxu0  ;;  %6363 = vmatprep.subr.bf16.mxu1 %v2274_v57 }
 0x4e6   : > { %v6174_v53 = vpop.f32.mrb[9].mxu0  ;;  %6364 = vmatpush3.bf16.msra.mxu1 %v2274_v57 }
 0x4e7   : > { %v6175_v50 = vadd.f32 %v6174_v53, %v6173_v49  ;;  %v6176_v21 = vpop.f32.mrb[10].mxu0 }
 0x4e8   : > { %v6177_v7 = vpop.f32.mrb[11].mxu0 }
 0x4e9   : > { %v6178_v47 = vadd.f32 %v6177_v7, %v6176_v21 }
 0x4eb   : > { %v2275_v51 = vpack.c.bf16 %v6178_v47, %v6175_v50 }
 0x4ed   : > { %6365 = vmatprep.subr.bf16.mxu1 %v2275_v51 }
 0x4ee   : > { %v6179_v20 = vpop.f32.mrb[12].mxu0  ;;  %6366 = vmatpush3.bf16.msra.mxu1 %v2275_v51 }
 0x4ef   : > { %v6180_v63 = vpop.f32.mrb[13].mxu0 }
 0x4f0   : > { %v6181_v41 = vadd.f32 %v6180_v63, %v6179_v20  ;;  %v6182_v34 = vpop.f32.mrb[14].mxu0 }
 0x4f1   : > { %v6183_v35 = vpop.f32.mrb[15].mxu0 }
 0x4f2   : > { %v6184_v23 = vadd.f32 %v6183_v35, %v6182_v34 }
 0x4f4   : > { %v2276_v12 = vpack.c.bf16 %v6184_v23, %v6181_v41 }
 0x4f6   : > { %v6185_v48 = vpop.f32.mrb[16].mxu0  ;;  %6367 = vmatprep.subr.bf16.mxu1 %v2276_v12 }
 0x4f7   : > { %v6186_v46 = vpop.f32.mrb[17].mxu0  ;;  %6368 = vmatpush3.bf16.msra.mxu1 %v2276_v12 }
 0x4f8   : > { %v6187_v52 = vadd.f32 %v6186_v46, %v6185_v48  ;;  %v6188_v29 = vpop.f32.mrb[18].mxu0 }
 0x4f9   : > { %v6189_v42 = vpop.f32.mrb[19].mxu0 }
 0x4fa   : > { %v6190_v45 = vadd.f32 %v6189_v42, %v6188_v29 }
 0x4fc   : > { %v2277_v1 = vpack.c.bf16 %v6190_v45, %v6187_v52 }
 0x4fe   : > { %v6191_v60 = vpop.f32.mrb[20].mxu0  ;;  %6369 = vmatprep.subr.bf16.mxu1 %v2277_v1 }
 0x4ff   : > { %v6192_v8 = vpop.f32.mrb[21].mxu0  ;;  %6370 = vmatpush3.bf16.msra.mxu1 %v2277_v1 }
 0x500   : > { %v6193_v3 = vadd.f32 %v6192_v8, %v6191_v60  ;;  %v6194_v30 = vpop.f32.mrb[22].mxu0 }
 0x501   : > { %v6195_v18 = vpop.f32.mrb[23].mxu0 }
 0x502   : > { %v6196_v9 = vadd.f32 %v6195_v18, %v6194_v30 }
 0x504   : > { %v2278_v54 = vpack.c.bf16 %v6196_v9, %v6193_v3 }
 0x506   : > { %v6197_v5 = vpop.f32.mrb[24].mxu0  ;;  %6371 = vmatprep.subr.bf16.mxu1 %v2278_v54 }
 0x507   : > { %v6198_v6 = vpop.f32.mrb[25].mxu0  ;;  %6372 = vmatpush3.bf16.msra.mxu1 %v2278_v54 }
 0x508   : > { %v6199_v4 = vadd.f32 %v6198_v6, %v6197_v5  ;;  %v6200_v14 = vpop.f32.mrb[26].mxu0 }
 0x509   : > { %v6201_v33 = vpop.f32.mrb[27].mxu0 }
 0x50a   : > { %v6202_v31 = vadd.f32 %v6201_v33, %v6200_v14 }
 0x50c   : > { %v2279_v55 = vpack.c.bf16 %v6202_v31, %v6199_v4 }
 0x50e   : > { %v6203_v26 = vpop.f32.mrb[28].mxu0  ;;  %6373 = vmatprep.subr.bf16.mxu1 %v2279_v55 }
 0x50f   : > { %v6204_v0 = vpop.f32.mrb[29].mxu0  ;;  %6374 = vmatpush3.bf16.msra.mxu1 %v2279_v55 }
 0x510   : > { %v6205_v17 = vadd.f32 %v6204_v0, %v6203_v26  ;;  %v6206_v39 = vpop.f32.mrb[30].mxu0 }
 0x511   : > { %v6207_v59 = vpop.f32.mrb[31].mxu0 }
 0x512   : > { %v6208_v56 = vadd.f32 %v6207_v59, %v6206_v39 }
 0x514   : > { %v2280_v37 = vpack.c.bf16 %v6208_v56, %v6205_v17 }
 0x516   : > { %6375 = vmatprep.subr.bf16.mxu1 %v2280_v37 }
 0x517   : > { %6376 = vmatpush3.bf16.msra.mxu1 %v2280_v37 }
 0x51a   : > { %6378 = vmatmul.mubr.bf16.vlgmr.msra.gmra.mrb[0].mxu1 %v6829_v11 }
 0x51b   : > { %6381 = vmatprep.mubr.bf16.mxu1 %v6830_v28 }
 0x522   : > { %6382 = vmatmul.mubr.bf16.gmra.mrb[4].mxu1 %v6831_v22 }
 0x523   : > { %6385 = vmatprep.mubr.bf16.mxu1 %v6832_v36 }
 0x52a   : > { %6386 = vmatmul.mubr.bf16.gmra.mrb[8].mxu1 %v6833_v15 }
 0x52b   : > { %6389 = vmatprep.mubr.bf16.mxu1 %v6834_v24 }
 0x532   : > { %6390 = vmatmul.mubr.bf16.gmra.mrb[12].mxu1 %v6835_v38 }
 0x5ed   : > { %v6379_v43 = vpop.f32.mrb[0].mxu1 }
 0x5ee   : > { %v9868_v44 = vadd.f32 %v6379_v43, %v9865_v25  ;;  %v2370_v32 = vpop.f32.mrb[1].mxu1 }
 0x5ef   : > { %v9871_v27 = vadd.f32 %v9865_v25, %v2370_v32  ;;  %v6380_v10 = vpop.f32.mrb[2].mxu1 }
 0x5f0   : > { %v5983_v16 = vmul.f32 -1.442695, %v9868_v44  ;;  %v9875_v62 = vadd.f32 %v6380_v10, %v9865_v25  ;;  %v2373_v40 = vpop.f32.mrb[3].mxu1 }
 0x5f1   : > { %v5981_v58 = vmul.f32 -1.442695, %v9871_v27  ;;  %v9879_v13 = vadd.f32 %v9865_v25, %v2373_v40 }
 0x5f2   : > { %6949 = vpow2.f32 %v5983_v16  ;;  %v5984_v61 = vmul.f32 -1.442695, %v9875_v62 }
 0x5f3   : > { %6951 = vpow2.f32 %v5981_v58  ;;  %v5982_v57 = vmul.f32 -1.442695, %v9879_v13 }
 0x5f4   : > { %6953 = vpow2.f32 %v5984_v61 }
 0x5f5   : > { %6955 = vpow2.f32 %v5982_v57  ;;  %v6383_v49 = vpop.f32.mrb[4].mxu1 }
 0x5f6   : > { %v9884_v53 = vadd.f32 %v6383_v49, %v9865_v25  ;;  %v2386_v50 = vpop.f32.mrb[5].mxu1 }
 0x5f7   : > { %v9887_v21 = vadd.f32 %v9865_v25, %v2386_v50  ;;  %v6384_v7 = vpop.f32.mrb[6].mxu1 }
 0x5f8   : > { %v5987_v47 = vmul.f32 -1.442695, %v9884_v53  ;;  %v9891_v51 = vadd.f32 %v6384_v7, %v9865_v25  ;;  %v2389_v20 = vpop.f32.mrb[7].mxu1 }
 0x5f9   : > { %v5985_v63 = vmul.f32 -1.442695, %v9887_v21  ;;  %v9895_v41 = vadd.f32 %v9865_v25, %v2389_v20 }
 0x5fa   : > { %6957 = vpow2.f32 %v5987_v47  ;;  %v5988_v34 = vmul.f32 -1.442695, %v9891_v51 }
 0x5fb   : > { %6959 = vpow2.f32 %v5985_v63  ;;  %v5986_v35 = vmul.f32 -1.442695, %v9895_v41 }
 0x5fc   : > { %v6950_v23 = vpop.eup %6949  ;;  %6961 = vpow2.f32 %v5988_v34 }
 0x5fd   : > { %v6952_v12 = vpop.eup %6951  ;;  %v2483_v48 = vadd.f32 1.0, %v6950_v23  ;;  %6963 = vpow2.f32 %v5986_v35  ;;  %v6387_v46 = vpop.f32.mrb[8].mxu1 }
 0x5fe   : > { %v6954_v52 = vpop.eup %6953  ;;  %v2481_v29 = vadd.f32 1.0, %v6952_v12  ;;  %v9900_v42 = vadd.f32 %v6387_v46, %v9865_v25  ;;  %v2402_v45 = vpop.f32.mrb[9].mxu1 }
 0x5ff   : > { %v6956_v1 = vpop.eup %6955  ;;  %6965 = vrcp.f32 %v2483_v48  ;;  %v2484_v60 = vadd.f32 1.0, %v6954_v52  ;;  %v9903_v8 = vadd.f32 %v9865_v25, %v2402_v45  ;;  %v6388_v3 = vpop.f32.mrb[10].mxu1 }
 0x600   : > { %6967 = vrcp.f32 %v2481_v29  ;;  %v2482_v30 = vadd.f32 1.0, %v6956_v1  ;;  %v5991_v18 = vmul.f32 -1.442695, %v9900_v42  ;;  %v9907_v9 = vadd.f32 %v6388_v3, %v9865_v25  ;;  %v2405_v54 = vpop.f32.mrb[11].mxu1 }
 0x601   : > { %6969 = vrcp.f32 %v2484_v60  ;;  %v5989_v5 = vmul.f32 -1.442695, %v9903_v8  ;;  %v9911_v6 = vadd.f32 %v9865_v25, %v2405_v54 }
 0x602   : > { %6971 = vrcp.f32 %v2482_v30  ;;  %v5992_v4 = vmul.f32 -1.442695, %v9907_v9 }
 0x603   : > { %6973 = vpow2.f32 %v5991_v18  ;;  %v5990_v14 = vmul.f32 -1.442695, %v9911_v6 }
 0x604   : > { %v6958_v33 = vpop.eup %6957  ;;  %6975 = vpow2.f32 %v5989_v5 }
 0x605   : > { %v6960_v31 = vpop.eup %6959  ;;  %v2487_v55 = vadd.f32 1.0, %v6958_v33  ;;  %6977 = vpow2.f32 %v5992_v4  ;;  %v6391_v26 = vpop.f32.mrb[12].mxu1 }
 0x606   : > { %v6962_v0 = vpop.eup %6961  ;;  %v2485_v17 = vadd.f32 1.0, %v6960_v31  ;;  %6979 = vpow2.f32 %v5990_v14  ;;  %v9916_v39 = vadd.f32 %v6391_v26, %v9865_v25  ;;  %v2418_v59 = vpop.f32.mrb[13].mxu1 }
 0x607   : > { %v6964_v56 = vpop.eup %6963  ;;  %6981 = vrcp.f32 %v2487_v55  ;;  %v2488_v37 = vadd.f32 1.0, %v6962_v0  ;;  %v9919_v11 = vadd.f32 %v9865_v25, %v2418_v59  ;;  %v6392_v28 = vpop.f32.mrb[14].mxu1 }
 0x608   : > { %6983 = vrcp.f32 %v2485_v17  ;;  %v2486_v22 = vadd.f32 1.0, %v6964_v56  ;;  %v5995_v36 = vmul.f32 -1.442695, %v9916_v39  ;;  %v9923_v15 = vadd.f32 %v6392_v28, %v9865_v25  ;;  %v2421_v24 = vpop.f32.mrb[15].mxu1 }
 0x609   : > { %v6966_v38 = vpop.eup %6965  ;;  %6985 = vrcp.f32 %v2488_v37  ;;  %v5993_v10 = vmul.f32 -1.442695, %v9919_v11  ;;  %v2422_v4 = vadd.f32 %v9865_v25, %v2421_v24 }
 0x60a   : > { %v6968_v43 = vpop.eup %6967  ;;  %v9926_v32 = vmul.f32 %v6966_v38, %v9868_v44  ;;  %6987 = vrcp.f32 %v2486_v22  ;;  %v5996_v58 = vmul.f32 -1.442695, %v9923_v15 }
 0x60b   : > { %v6970_v16 = vpop.eup %6969  ;;  %v9930_v40 = vmul.f32 %v6968_v43, %v9871_v27  ;;  %6989 = vpow2.f32 %v5995_v36 }
 0x60c   : > { %13727 = vst [vmem:[#allocation79_spill] sm:$0xff] %v9926_v32  ;;  %v6972_v61 = vpop.eup %6971  ;;  %2598 = vrot.lane.b32.xlu0 %v9926_v32, %s7447_s23  ;;  %6991 = vpow2.f32 %v5993_v10  ;;  %v9941_v27 = vmul.f32 %v6970_v16, %v9875_v62 }
 0x60d   : > { %13728 = vst [vmem:[#allocation75_spill] sm:$0xff] %v9930_v40  ;;  %v6974_v57 = vpop.eup %6973  ;;  %v9936_v49 = vmul.f32 %v6972_v61, %v9879_v13  ;;  %2594 = vrot.lane.b32.xlu1 %v9930_v40, %s7447_s23  ;;  %6993 = vpow2.f32 %v5996_v58 }
 0x60e   : > { %v6976_v44 = vpop.eup %6975  ;;  %v2491_v50 = vadd.f32 1.0, %v6974_v57  ;;  %13730 = vst [vmem:[#allocation76_spill] sm:$0xff] %v9941_v27 }
 0x60f   : > { %13729 = vst [vmem:[#allocation78_spill] sm:$0xff] %v9936_v49  ;;  %v6978_v7 = vpop.eup %6977  ;;  %v2489_v47 = vadd.f32 1.0, %v6976_v44 }
 0x610   : > { %v6980_v20 = vpop.eup %6979  ;;  %v2492_v63 = vadd.f32 1.0, %v6978_v7  ;;  %2596 = vrot.lane.b32.xlu0 %v9936_v49, %s7447_s23  ;;  %6995 = vrcp.f32 %v2491_v50 }
 0x611   : > { %v6982_v34 = vpop.eup %6981  ;;  %2600 = vrot.lane.b32.xlu1 %v9941_v27, %s7447_s23  ;;  %v2490_v23 = vadd.f32 1.0, %v6980_v20  ;;  %6997 = vrcp.f32 %v2489_v47 }
 0x612   : > { %v6984_v13 = vpop.eup %6983  ;;  %v9948_v35 = vmul.f32 %v6982_v34, %v9884_v53  ;;  %6999 = vrcp.f32 %v2492_v63 }
 0x613   : > { %v6986_v12 = vpop.eup %6985  ;;  %v9956_v52 = vmul.f32 %v6984_v13, %v9887_v21  ;;  %7001 = vrcp.f32 %v2490_v23 }
 0x614   : > { %13731 = vst [vmem:[#allocation77_spill] sm:$0xff] %v9948_v35  ;;  %v6988_v62 = vpop.eup %6987  ;;  %v9951_v48 = vmul.f32 %v6986_v12, %v9891_v51  ;;  %2606 = vrot.lane.b32.xlu0 %v9948_v35, %s7447_s23 }
 0x615   : > { %v6990_v46 = vpop.eup %6989  ;;  %13733 = vst [vmem:[#allocation80_spill] sm:$0xff] %v9956_v52  ;;  %v9961_v45 = vmul.f32 %v6988_v62, %v9895_v41 }
 0x616   : > { %13732 = vst [vmem:[#allocation29_spill] sm:$0xff] %v9951_v48  ;;  %v2495_v29 = vadd.f32 1.0, %v6990_v46  ;;  %2608 = vrot.lane.b32.xlu1 %v9951_v48, %s7447_s23  ;;  %v6992_v53 = vpop.eup %6991 }
 0x617   : > { %13734 = vst [vmem:[#allocation52_spill] sm:$0xff] %v9961_v45  ;;  %v6994_v51 = vpop.eup %6993  ;;  %v2493_v1 = vadd.f32 1.0, %v6992_v53 }
 0x618   : > { %2602 = vrot.lane.b32.xlu0 %v9956_v52, %s7447_s23  ;;  %7003 = vrcp.f32 %v2495_v29  ;;  %v2496_v60 = vadd.f32 1.0, %v6994_v51 }
 0x619   : > { %7005 = vrcp.f32 %v2493_v1 }
 0x61a   : > { %2604 = vrot.lane.b32.xlu1 %v9961_v45, %s7447_s23  ;;  %v6996_v21 = vpop.eup %6995  ;;  %7007 = vrcp.f32 %v2496_v60 }
 0x61b   : > { %v6998_v3 = vpop.eup %6997  ;;  %v9968_v30 = vmul.f32 %v6996_v21, %v9900_v42 }
 0x61c   : > { %v7000_v18 = vpop.eup %6999  ;;  %v9976_v5 = vmul.f32 %v6998_v3, %v9903_v8  ;;  %v5994_v8 = vmul.f32 -1.442695, %v2422_v4 }
 0x61d   : > { %13735 = vst [vmem:[#allocation50_spill] sm:$0xff] %v9968_v30  ;;  %v9971_v54 = vmul.f32 %v7000_v18, %v9907_v9  ;;  %2614 = vrot.lane.b32.xlu0 %v9968_v30, %s7447_s23  ;;  %v7002_v41 = vpop.eup %7001 }
 0x61e   : > { %13737 = vst [vmem:[#allocation51_spill] sm:$0xff] %v9976_v5  ;;  %v9982_v42 = vmul.f32 %v7002_v41, %v9911_v6  ;;  %7009 = vpow2.f32 %v5994_v8 }
 0x61f   : > { %13736 = vst [vmem:[#allocation81_spill] sm:$0xff] %v9971_v54  ;;  %2616 = vrot.lane.b32.xlu1 %v9971_v54, %s7447_s23 }
 0x620   : > { %13738 = vst [vmem:[#allocation35_spill] sm:$0xff] %v9982_v42 }
 0x621   : > { %2610 = vrot.lane.b32.xlu0 %v9976_v5, %s7447_s23 }
 0x622   : > { %v7004_v9 = vpop.eup %7003 }
 0x623   : > { %v9987_v14 = vmul.f32 %v7004_v9, %v9916_v39  ;;  %2612 = vrot.lane.b32.xlu1 %v9982_v42, %s7447_s23  ;;  %v7006_v33 = vpop.eup %7005  ;;  %v10007_v39 = vpop.permute.xlu0 %2757 }
 0x624   : > { %v7008_v31 = vpop.eup %7007  ;;  %v9994_v25 = vmul.f32 %v7006_v33, %v9919_v11  ;;  %13743 = vst [vmem:[#allocation28_spill] sm:$0xff] %v10007_v39 }
 0x625   : > { %13739 = vst [vmem:[#allocation32_spill] sm:$0xff] %v9987_v14  ;;  %2622 = vrot.lane.b32.xlu0 %v9987_v14, %s7447_s23  ;;  %v9997_v6 = vmul.f32 %v7008_v31, %v9923_v15 }
 0x626   : > { %13740 = vst [vmem:[#allocation70_spill] sm:$0xff] %v9994_v25 }
 0x627   : > { %13741 = vst [vmem:[#allocation74_spill] sm:$0xff] %v9997_v6  ;;  %2624 = vrot.lane.b32.xlu1 %v9997_v6, %s7447_s23 }
 0x628   : > { %v7010_v55 = vpop.eup %7009 }
 0x629   : > { %2618 = vrot.lane.b32.xlu0 %v9994_v25, %s7447_s23  ;;  %v2494_v26 = vadd.f32 1.0, %v7010_v55 }
 0x62b   : > { %7011 = vrcp.f32 %v2494_v26 }
 0x635   : > { %v7012_v0 = vpop.eup %7011 }
 0x636   : > { %v10003_v17 = vmul.f32 %v7012_v0, %v2422_v4 }
 0x638   : > { %13742 = vst [vmem:[#allocation69_spill] sm:$0xff] %v10003_v17  ;;  %2620 = vrot.lane.b32.xlu1 %v10003_v17, %s7447_s23 }
 0x67e   : > { %v2599_v59 = vpop.permute.xlu0 %2598 }
 0x67f   : > { %v2646_v56 = vsel %vm786_vm1, %v9858_v2, %v2599_v59  ;;  %v2595_v37 = vpop.permute.xlu1 %2594  ;;  %v10015_v11 = vsel %vm786_vm1, %v2599_v59, %v9858_v2 }
 0x680   : > { %2729 = vrot.lane.b32.xlu1 %v10015_v11, %s7448_s10  ;;  %v10022_v28 = vsel %vm786_vm1, %v2595_v37, %v9858_v2  ;;  %v10027_v22 = vadd.f32 %v2646_v56, %v9926_v32  ;;  %v2644_v15 = vsel %vm786_vm1, %v9858_v2, %v2595_v37 }
 0x681   : > { %2725 = vrot.lane.b32.xlu0 %v10022_v28, %s7448_s10  ;;  %v10042_v43 = vadd.f32 %v2644_v15, %v9930_v40 }
 0x682   : > { %v2597_v24 = vpop.permute.xlu0 %2596 }
 0x683   : > { %v2601_v36 = vpop.permute.xlu1 %2600  ;;  %v2645_v10 = vsel %vm786_vm1, %v9858_v2, %v2597_v24  ;;  %v10050_v16 = vsel %vm786_vm1, %v2597_v24, %v9858_v2 }
 0x684   : > { %2697 = vrot.lane.b32.xlu1 %v10027_v22, %s7448_s10  ;;  %v10037_v38 = vsel %vm786_vm1, %v2601_v36, %v9858_v2  ;;  %v2647_v58 = vsel %vm786_vm1, %v9858_v2, %v2601_v36  ;;  %v10060_v61 = vadd.f32 %v2645_v10, %v9936_v49 }
 0x685   : > { %2731 = vrot.lane.b32.xlu0 %v10037_v38, %s7448_s10  ;;  %v10063_v44 = vadd.f32 %v2647_v58, %v9941_v27 }
 0x686   : > { %v2607_v57 = vpop.permute.xlu0 %2606 }
 0x687   : > { %v10072_v7 = vsel %vm786_vm1, %v2607_v57, %v9858_v2  ;;  %v2650_v34 = vsel %vm786_vm1, %v9858_v2, %v2607_v57 }
 0x688   : > { %2727 = vrot.lane.b32.xlu1 %v10050_v16, %s7448_s10  ;;  %v2609_v50 = vpop.permute.xlu1 %2608  ;;  %v10104_v62 = vadd.f32 %v2650_v34, %v9948_v35 }
 0x689   : > { %2693 = vrot.lane.b32.xlu0 %v10042_v43, %s7448_s10  ;;  %v10079_v20 = vsel %vm786_vm1, %v2609_v50, %v9858_v2  ;;  %v2651_v23 = vsel %vm786_vm1, %v9858_v2, %v2609_v50 }
 0x68a   : > { %v2603_v47 = vpop.permute.xlu0 %2602  ;;  %v10107_v46 = vadd.f32 %v2651_v23, %v9951_v48 }
 0x68b   : > { %v10089_v13 = vsel %vm786_vm1, %v2603_v47, %v9858_v2  ;;  %v2648_v29 = vsel %vm786_vm1, %v9858_v2, %v2603_v47 }
 0x68c   : > { %2695 = vrot.lane.b32.xlu1 %v10060_v61, %s7448_s10  ;;  %v2605_v63 = vpop.permute.xlu1 %2604  ;;  %v10120_v51 = vadd.f32 %v2648_v29, %v9956_v52 }
 0x68d   : > { %2699 = vrot.lane.b32.xlu0 %v10063_v44, %s7448_s10  ;;  %v10099_v12 = vsel %vm786_vm1, %v2605_v63, %v9858_v2  ;;  %v2649_v53 = vsel %vm786_vm1, %v9858_v2, %v2605_v63 }
 0x68e   : > { %v10123_v21 = vadd.f32 %v2649_v53, %v9961_v45 }
 0x68f   : > { %v2615_v1 = vpop.permute.xlu0 %2614 }
 0x690   : > { %2737 = vrot.lane.b32.xlu1 %v10072_v7, %s7448_s10  ;;  %v10132_v3 = vsel %vm786_vm1, %v2615_v1, %v9858_v2  ;;  %v2654_v9 = vsel %vm786_vm1, %v9858_v2, %v2615_v1 }
 0x691   : > { %2739 = vrot.lane.b32.xlu0 %v10079_v20, %s7448_s10  ;;  %v2617_v60 = vpop.permute.xlu1 %2616  ;;  %v10164_v55 = vadd.f32 %v2654_v9, %v9968_v30  ;;  %v13747_v30 = vld [vmem:[#allocation42_spill] sm:$0xff] }
 0x692   : > { %v10139_v41 = vsel %vm786_vm1, %v2617_v60, %v9858_v2  ;;  %v2655_v33 = vsel %vm786_vm1, %v9858_v2, %v2617_v60 }
 0x693   : > { %v2611_v18 = vpop.permute.xlu0 %2610  ;;  %v10167_v26 = vadd.f32 %v2655_v33, %v9971_v54  ;;  %v13746_v54 = vld [vmem:[#allocation44_spill] sm:$0xff] }
 0x694   : > { %2733 = vrot.lane.b32.xlu1 %v10089_v13, %s7448_s10  ;;  %v10149_v8 = vsel %vm786_vm1, %v2611_v18, %v9858_v2  ;;  %v2652_v0 = vsel %vm786_vm1, %v9858_v2, %v2611_v18 }
 0x695   : > { %2735 = vrot.lane.b32.xlu0 %v10099_v12, %s7448_s10  ;;  %v2613_v4 = vpop.permute.xlu1 %2612  ;;  %v10180_v56 = vadd.f32 %v2652_v0, %v9976_v5 }
 0x696   : > { %v10159_v31 = vsel %vm786_vm1, %v2613_v4, %v9858_v2  ;;  %v2653_v59 = vsel %vm786_vm1, %v9858_v2, %v2613_v4 }
 0x697   : > { %v2623_v37 = vpop.permute.xlu0 %2622  ;;  %v10183_v36 = vadd.f32 %v2653_v59, %v9982_v42  ;;  %v2593_v59 = vld [vmem:[%s13744_s20] sm:$0x7] }
 0x698   : > { %2705 = vrot.lane.b32.xlu1 %v10104_v62, %s7448_s10  ;;  %v10192_v24 = vsel %vm786_vm1, %v2623_v37, %v9858_v2  ;;  %v2658_v57 = vsel %vm786_vm1, %v9858_v2, %v2623_v37 }
 0x699   : > { %2707 = vrot.lane.b32.xlu0 %v10107_v46, %s7448_s10  ;;  %v2625_v15 = vpop.permute.xlu1 %2624  ;;  %v10214_v47 = vadd.f32 %v2658_v57, %v9987_v14 }
 0x69a   : > { %v10199_v58 = vsel %vm786_vm1, %v2625_v15, %v9858_v2  ;;  %v2659_v34 = vsel %vm786_vm1, %v9858_v2, %v2625_v15 }
 0x69b   : > { %v2619_v10 = vpop.permute.xlu0 %2618  ;;  %v10232_v53 = vadd.f32 %v2659_v34, %v9997_v6 }
 0x69c   : > { %2701 = vrot.lane.b32.xlu1 %v10120_v51, %s7448_s10  ;;  %v10209_v50 = vsel %vm786_vm1, %v2619_v10, %v9858_v2  ;;  %v2656_v23 = vsel %vm786_vm1, %v9858_v2, %v2619_v10 }
 0x69d   : > { %2703 = vrot.lane.b32.xlu0 %v10123_v21, %s7448_s10  ;;  %v10235_v1 = vadd.f32 %v2656_v23, %v9994_v25  ;;  %v13745_v23 = vld [vmem:[#allocation43_spill] sm:$0xff] }
 0x6a0   : > { %2745 = vrot.lane.b32.xlu1 %v10132_v3, %s7448_s10 }
 0x6a1   : > { %2747 = vrot.lane.b32.xlu0 %v10139_v41, %s7448_s10 }
 0x6a4   : > { %2741 = vrot.lane.b32.xlu1 %v10149_v8, %s7448_s10 }
 0x6a5   : > { %2743 = vrot.lane.b32.xlu0 %v10159_v31, %s7448_s10 }
 0x6a8   : > { %2713 = vrot.lane.b32.xlu1 %v10164_v55, %s7448_s10 }
 0x6a9   : > { %2715 = vrot.lane.b32.xlu0 %v10167_v26, %s7448_s10 }
 0x6aa   : > { %v2621_v63 = vpop.permute.xlu1 %2620 }
 0x6ab   : > { %v10225_v29 = vsel %vm786_vm1, %v2621_v63, %v9858_v2  ;;  %v2657_v60 = vsel %vm786_vm1, %v9858_v2, %v2621_v63 }
 0x6ac   : > { %2709 = vrot.lane.b32.xlu1 %v10180_v56, %s7448_s10  ;;  %v10245_v18 = vadd.f32 %v2657_v60, %v10003_v17  ;;  %v10264_v60 = vrot.slane %v2593_v59, %v13745_v23 }
 0x6ad   : > { %2711 = vrot.lane.b32.xlu0 %v10183_v36, %s7448_s10 }
 0x6b0   : > { %2753 = vrot.lane.b32.xlu1 %v10192_v24, %s7448_s10 }
 0x6b1   : > { %2755 = vrot.lane.b32.xlu0 %v10199_v58, %s7448_s10 }
 0x6b4   : > { %2749 = vrot.lane.b32.xlu1 %v10209_v50, %s7448_s10 }
 0x6b5   : > { %2751 = vrot.lane.b32.xlu0 %v10225_v29, %s7448_s10 }
 0x6b8   : > { %2721 = vrot.lane.b32.xlu1 %v10214_v47, %s7448_s10 }
 0x6b9   : > { %2723 = vrot.lane.b32.xlu0 %v10232_v53, %s7448_s10 }
 0x6bc   : > { %2717 = vrot.lane.b32.xlu1 %v10235_v1, %s7448_s10 }
 0x6bd   : > { %2719 = vrot.lane.b32.xlu0 %v10245_v18, %s7448_s10 }
 0x6f2   : > { %v2730_v4 = vpop.permute.xlu1 %2729 }
 0x6f3   : > { %v2726_v9 = vpop.permute.xlu0 %2725  ;;  %v2761_v33 = vsel %vm13291_vm2, %v2730_v4, %v10007_v39 }
 0x6f4   : > { %v2815_v57 = vadd.f32 %v2761_v33, %v9858_v2 }
 0x6f6   : > { %v2698_v0 = vpop.permute.xlu1 %2697 }
 0x6f7   : > { %v2777_v37 = vsel %vm13291_vm2, %v2698_v0, %v2730_v4  ;;  %v2793_v15 = vsel %vm13291_vm2, %v10007_v39, %v2698_v0  ;;  %v2732_v10 = vpop.permute.xlu0 %2731  ;;  %v2759_v4 = vsel %vm13291_vm2, %v2726_v9, %v10007_v39  ;;  %v10270_v0 = vrot.slane %v2593_v59, %v13746_v54 }
 0x6f8   : > { %v2813_v63 = vadd.f32 %v2793_v15, %v10027_v22  ;;  %v2814_v34 = vadd.f32 %v2777_v37, %v10015_v11  ;;  %v2809_v42 = vadd.f32 %v2759_v4, %v9858_v2 }
 0x6fa   : > { %v2861_v6 = vadd.f32 %v2815_v57, %v2813_v63  ;;  %v2862_v14 = vadd.f32 %v2814_v34, %v2813_v63  ;;  %v2728_v17 = vpop.permute.xlu1 %2727  ;;  %v2863_v5 = vadd.f32 %v2815_v57, %v2814_v34 }
 0x6fb   : > { %v2694_v25 = vpop.permute.xlu0 %2693  ;;  %v2760_v37 = vsel %vm13291_vm2, %v2728_v17, %v10007_v39 }
 0x6fc   : > { %v2909_v15 = vadd.f32 %v2861_v6, %v10015_v11  ;;  %v2775_v63 = vsel %vm13291_vm2, %v2694_v25, %v2726_v9  ;;  %v2791_v23 = vsel %vm13291_vm2, %v10007_v39, %v2694_v25  ;;  %v2910_v54 = vadd.f32 %v2862_v14, %v9858_v2 }
 0x6fd   : > { %v2807_v6 = vadd.f32 %v2791_v23, %v10042_v43  ;;  %v2808_v57 = vadd.f32 %v2775_v63, %v10022_v28  ;;  %v2762_v14 = vsel %vm13291_vm2, %v2732_v10, %v10007_v39  ;;  %v2812_v4 = vadd.f32 %v2760_v37, %v9858_v2 }
 0x6fe   : > { %v10285_v33 = vsub.f32 %v2909_v15, %v10264_v60  ;;  %v2696_v11 = vpop.permute.xlu1 %2695  ;;  %v10310_v37 = vsub.f32 %v2910_v54, %v10270_v0  ;;  %v2818_v27 = vadd.f32 %v2762_v14, %v9858_v2 }
 0x6ff   : > { %v2776_v34 = vsel %vm13291_vm2, %v2696_v11, %v2728_v17  ;;  %v2792_v9 = vsel %vm13291_vm2, %v10007_v39, %v2696_v11  ;;  %v2700_v25 = vpop.permute.xlu0 %2699  ;;  %v2855_v15 = vadd.f32 %v2809_v42, %v2807_v6  ;;  %v13749_v17 = vsub.s32 2, %v13747_v30 }
 0x700   : > { %13748 = vst [vmem:[#allocation83_spill] sm:$0xff] %v10285_v33  ;;  %v2810_v23 = vadd.f32 %v2792_v9, %v10060_v61  ;;  %3019 = vrot.lane.b32.xlu0 %v10285_v33, %s7450_s11  ;;  %v2911_v11 = vadd.f32 %v2863_v5, %v10027_v22  ;;  %v2856_v35 = vadd.f32 %v2808_v57, %v2807_v6  ;;  %13750 = vst [vmem:[#allocation31_spill] sm:$0xff] %v10310_v37 }
 0x701   : > { %v10303_v63 = vrot.slane %v2593_v59, %v13749_v17  ;;  %v2794_v48 = vsel %vm13291_vm2, %v10007_v39, %v2700_v25  ;;  %v2903_v9 = vadd.f32 %v2855_v15, %v10022_v28  ;;  %v2811_v45 = vadd.f32 %v2776_v34, %v10050_v16 }
 0x702   : > { %v2858_v52 = vadd.f32 %v2812_v4, %v2810_v23  ;;  %v2816_v59 = vadd.f32 %v2794_v48, %v10063_v44  ;;  %v2857_v17 = vadd.f32 %v2809_v42, %v2808_v57  ;;  %v2904_v5 = vadd.f32 %v2856_v35, %v9858_v2 }
 0x703   : > { %v10318_v22 = vsub.f32 %v2903_v9, %v10264_v60  ;;  %v2778_v54 = vsel %vm13291_vm2, %v2700_v25, %v2732_v10  ;;  %v10325_v6 = vsub.f32 %v2911_v11, %v10303_v63  ;;  %v2859_v34 = vadd.f32 %v2811_v45, %v2810_v23  ;;  %v2738_v9 = vpop.permute.xlu1 %2737 }
 0x704   : > { %3051 = vrot.lane.b32.xlu0 %v10310_v37, %s7450_s11  ;;  %v2864_v28 = vadd.f32 %v2818_v27, %v2816_v59  ;;  %v2906_v14 = vadd.f32 %v2858_v52, %v10050_v16  ;;  %v2905_v35 = vadd.f32 %v2857_v17, %v10042_v43  ;;  %v10332_v48 = vsub.f32 %v2904_v5, %v10270_v0 }
 0x705   : > { %13751 = vst [vmem:[#allocation53_spill] sm:$0xff] %v10318_v22  ;;  %13752 = vst [vmem:[#allocation54_spill] sm:$0xff] %v10325_v6  ;;  %3015 = vrot.lane.b32.xlu1 %v10318_v22, %s7450_s11  ;;  %v2817_v42 = vadd.f32 %v2778_v54, %v10037_v38  ;;  %v2860_v57 = vadd.f32 %v2812_v4, %v2811_v45  ;;  %v2907_v25 = vadd.f32 %v2859_v34, %v9858_v2 }
 0x706   : > { %13753 = vst [vmem:[#allocation26_spill] sm:$0xff] %v10332_v48  ;;  %v2912_v10 = vadd.f32 %v2864_v28, %v10037_v38  ;;  %v10340_v52 = vsub.f32 %v2906_v14, %v10264_v60  ;;  %v10345_v43 = vsub.f32 %v2905_v35, %v10303_v63  ;;  %vm3166_vm4 = vcmp.ge.f32.partialorder %v10285_v33, 0.0  ;;  %v2740_v28 = vpop.permute.xlu0 %2739 }
 0x707   : > { %v2865_v16 = vadd.f32 %v2817_v42, %v2816_v59  ;;  %v2908_v45 = vadd.f32 %v2860_v57, %v10060_v61  ;;  %v10354_v38 = vsub.f32 %v2907_v25, %v10270_v0  ;;  %v2866_v4 = vadd.f32 %v2818_v27, %v2817_v42  ;;  %v2734_v34 = vpop.permute.xlu1 %2733 }
 0x708   : > { %3083 = vrot.lane.b32.xlu0 %v10325_v6, %s7450_s11  ;;  %13754 = vst [vmem:[#allocation82_spill] sm:$0xff] %v10340_v52  ;;  %13755 = vst [vmem:[#allocation58_spill] sm:$0xff] %v10345_v43  ;;  %v10350_v15 = vsub.f32 %v2912_v10, %v10264_v60  ;;  %vm3214_vm5 = vcmp.lt.f32.partialorder %v10285_v33, 0.5  ;;  %v13760_v59 = vmov 0.0   ;;  %vm3168_vm8 = vcmp.ge.f32.partialorder %v10325_v6, 0.0 }
 0x709   : > { %3047 = vrot.lane.b32.xlu1 %v10332_v48, %s7450_s11  ;;  %13757 = vst [vmem:[#allocation84_spill] sm:$0xff] %v10354_v38  ;;  %v2913_v23 = vadd.f32 %v2865_v16, %v9858_v2  ;;  %v10364_v11 = vsub.f32 %v2908_v45, %v10303_v63  ;;  %v2914_v27 = vadd.f32 %v2866_v4, %v10063_v44  ;;  %vm3262_vm7 = vmand %vm3166_vm4, %vm3214_vm5  ;;  %vm3216_vm10 = vcmp.lt.f32.partialorder %v10325_v6, 0.5 }
 0x70a   : > { %13756 = vst [vmem:[#allocation60_spill] sm:$0xff] %v10350_v15  ;;  %vm3169_vm0 = vcmp.ge.f32.partialorder %v10350_v15, 0.0  ;;  %vm3217_vm3 = vcmp.lt.f32.partialorder %v10350_v15, 0.5  ;;  %v10385_v44 = vsel %vm3262_vm7, 1.0, %v13760_v59  ;;  %vm3264_vm12 = vmand %vm3168_vm8, %vm3216_vm10  ;;  %v10396_v14 = vpop.permute.xlu0 %2735  ;;  %vm3167_vm14 = vcmp.ge.f32.partialorder %v10310_v37, 0.0 }
 0x70b   : > { %13758 = vst [vmem:[#allocation33_spill] sm:$0xff] %v10364_v11  ;;  %v10372_v61 = vsub.f32 %v2913_v23, %v10270_v0  ;;  %vm3265_vm6 = vmand %vm3169_vm0, %vm3217_vm3  ;;  %v10382_v5 = vsub.f32 %v2914_v27, %v10303_v63  ;;  %v2706_v35 = vpop.permute.xlu1 %2705  ;;  %vm3215_vm15 = vcmp.lt.f32.partialorder %v10310_v37, 0.5  ;;  %v10404_v10 = vsel %vm3264_vm12, 1.0, %v13760_v59 }
 0x70c   : > { %3017 = vrot.lane.b32.xlu0 %v10340_v52, %s7450_s11  ;;  %v10379_v17 = vsel %vm3265_vm6, 1.0, %v13760_v59  ;;  %13763 = vst [vmem:[#allocation66_spill] sm:$0xff] %v10404_v10  ;;  %v2797_v57 = vsel %vm13291_vm2, %v10007_v39, %v2706_v35  ;;  %vm3263_vm3 = vmand %vm3167_vm14, %vm3215_vm15  ;;  %v2765_v16 = vsel %vm13291_vm2, %v2738_v9, %v10007_v39  ;;  %v2781_v45 = vsel %vm13291_vm2, %v2706_v35, %v2738_v9 }
 0x70d   : > { %3079 = vrot.lane.b32.xlu1 %v10345_v43, %s7450_s11  ;;  %13759 = vst [vmem:[#allocation56_spill] sm:$0xff] %v10372_v61  ;;  %13761 = vst [vmem:[#allocation61_spill] sm:$0xff] %v10382_v5  ;;  %v6677_v54 = vpack.i.bf16 %v10379_v17, %v10385_v44  ;;  %vm3171_vm9 = vcmp.ge.f32.partialorder %v10382_v5, 0.0  ;;  %vm3219_vm11 = vcmp.lt.f32.partialorder %v10382_v5, 0.5  ;;  %vm3170_vm0 = vcmp.ge.f32.partialorder %v10372_v61, 0.0 }
 0x70e   : > { %vm3267_vm13 = vmand %vm3171_vm9, %vm3219_vm11  ;;  %vm3218_vm4 = vcmp.lt.f32.partialorder %v10372_v61, 0.5  ;;  %v2825_v4 = vadd.f32 %v2797_v57, %v10104_v62  ;;  %v2708_v23 = vpop.permute.xlu0 %2707  ;;  %v10421_v27 = vsel %vm3263_vm3, 1.0, %v13760_v59  ;;  %v2766_v30 = vsel %vm13291_vm2, %v2740_v28, %v10007_v39 }
 0x70f   : > { %v10401_v42 = vsel %vm3267_vm13, 1.0, %v13760_v59  ;;  %vm3266_vm5 = vmand %vm3170_vm0, %vm3218_vm4  ;;  %13764 = vst [vmem:[#allocation37_spill] sm:$0xff] %v10421_v27  ;;  %vm3161_vm6 = vcmp.ge.f32.partialorder %v10332_v48, 0.0  ;;  %v2827_v9 = vadd.f32 %v2765_v16, %v9858_v2  ;;  %v2763_v35 = vsel %vm13291_vm2, %v2734_v34, %v10007_v39 }
 0x710   : > { %3049 = vrot.lane.b32.xlu0 %v10354_v38, %s7450_s11  ;;  %13762 = vst [vmem:[#allocation41_spill] sm:$0xff] %v10401_v42  ;;  %v6687_v25 = vpack.i.bf16 %v10401_v42, %v10404_v10  ;;  %v2826_v57 = vadd.f32 %v2781_v45, %v10072_v7  ;;  %vm3164_vm7 = vcmp.ge.f32.partialorder %v10354_v38, 0.0  ;;  %vm3209_vm8 = vcmp.lt.f32.partialorder %v10332_v48, 0.5 }
 0x711   : > { %3021 = vrot.lane.b32.xlu1 %v10350_v15, %s7450_s11  ;;  %vm3212_vm9 = vcmp.lt.f32.partialorder %v10354_v38, 0.5  ;;  %v2873_v49 = vadd.f32 %v2827_v9, %v2825_v4  ;;  %vm3257_vm10 = vmand %vm3161_vm6, %vm3209_vm8  ;;  %v2830_v40 = vadd.f32 %v2766_v30, %v9858_v2  ;;  %v2821_v16 = vadd.f32 %v2763_v35, %v9858_v2 }
 0x712   : > { %vm3260_vm11 = vmand %vm3164_vm7, %vm3212_vm9  ;;  %vm3160_vm12 = vcmp.ge.f32.partialorder %v10318_v22, 0.0  ;;  %v2874_v45 = vadd.f32 %v2826_v57, %v2825_v4  ;;  %v2798_v48 = vsel %vm13291_vm2, %v10007_v39, %v2708_v23  ;;  %v2704_v35 = vpop.permute.xlu0 %2703  ;;  %v10457_v38 = vsel %vm3257_vm10, 1.0, %v13760_v59 }
 0x713   : > { %13765 = vst [vmem:[#allocation59_spill] sm:$0xff] %v10457_v38  ;;  %v10460_v6 = vsel %vm3260_vm11, 1.0, %v13760_v59  ;;  %vm3163_vm13 = vcmp.ge.f32.partialorder %v10340_v52, 0.0  ;;  %vm3208_vm14 = vcmp.lt.f32.partialorder %v10318_v22, 0.5  ;;  %v2921_v4 = vadd.f32 %v2873_v49, %v10072_v7 }
 0x714   : > { %3081 = vrot.lane.b32.xlu0 %v10364_v11, %s7450_s11  ;;  %13766 = vst [vmem:[#allocation63_spill] sm:$0xff] %v10460_v6  ;;  %vm3256_vm15 = vmand %vm3160_vm12, %vm3208_vm14  ;;  %v2828_v42 = vadd.f32 %v2798_v48, %v10107_v46  ;;  %vm3211_vm0 = vcmp.lt.f32.partialorder %v10340_v52, 0.5  ;;  %v2922_v49 = vadd.f32 %v2874_v45, %v9858_v2  ;;  %vm3162_vm4 = vcmp.ge.f32.partialorder %v10345_v43, 0.0 }
 0x715   : > { %3053 = vrot.lane.b32.xlu1 %v10372_v61, %s7450_s11  ;;  %vm3259_vm3 = vmand %vm3163_vm13, %vm3211_vm0  ;;  %vm3210_vm6 = vcmp.lt.f32.partialorder %v10345_v43, 0.5  ;;  %vm3213_vm7 = vcmp.lt.f32.partialorder %v10364_v11, 0.5  ;;  %v2780_v45 = vsel %vm13291_vm2, %v2704_v35, %v10396_v14 }
 0x716   : > { %v10483_v48 = vsel %vm3259_vm3, 1.0, %v13760_v59  ;;  %vm3258_vm8 = vmand %vm3162_vm4, %vm3210_vm6  ;;  %v2876_v43 = vadd.f32 %v2830_v40, %v2828_v42 }
 0x718   : > { %6678 = vrot.lane.b32.xlu0 %v6677_v54, %s7450_s11  ;;  %v10424_v54 = vsel %vm3266_vm5, 1.0, %v13760_v59  ;;  %vm3165_vm5 = vcmp.ge.f32.partialorder %v10364_v11, 0.0  ;;  %v10507_v11 = vsub.f32 %v2922_v49, %v10270_v0 }
 0x719   : > { %3085 = vrot.lane.b32.xlu1 %v10382_v5, %s7450_s11  ;;  %v6682_v32 = vpack.i.bf16 %v10424_v54, %v10421_v27  ;;  %v2782_v27 = vsel %vm13291_vm2, %v2708_v23, %v2740_v28  ;;  %v2796_v5 = vsel %vm13291_vm2, %v10007_v39, %v2704_v35  ;;  %v10479_v28 = vsel %vm3256_vm15, 1.0, %v13760_v59  ;;  %vm3261_vm9 = vmand %vm3165_vm5, %vm3213_vm7 }
 0x71a   : > { %13769 = vst [vmem:[#allocation62_spill] sm:$0xff] %v10507_v11  ;;  %v10510_v35 = vsel %vm3258_vm8, 1.0, %v13760_v59  ;;  %vm3179_vm6 = vcmp.ge.f32.partialorder %v10507_v11, 0.0  ;;  %vm3227_vm7 = vcmp.lt.f32.partialorder %v10507_v11, 0.5 }
 0x71b   : > { %13770 = vst [vmem:[#allocation67_spill] sm:$0xff] %v10510_v35 }
 0x71c   : > { %6688 = vrot.lane.b32.xlu0 %v6687_v25, %s7450_s11  ;;  %v2702_v25 = vpop.permute.xlu1 %2701 }
 0x71d   : > { %6683 = vrot.lane.b32.xlu1 %v6682_v32, %s7450_s11  ;;  %v2795_v10 = vsel %vm13291_vm2, %v10007_v39, %v2702_v25  ;;  %v2764_v32 = vsel %vm13291_vm2, %v10396_v14, %v10007_v39  ;;  %v2779_v30 = vsel %vm13291_vm2, %v2702_v25, %v2734_v34  ;;  %v6697_v34 = vpack.i.bf16 %v10460_v6, %v10457_v38 }
 0x71e   : > { %v2819_v37 = vadd.f32 %v2795_v10, %v10120_v51  ;;  %v2875_v25 = vadd.f32 %v2827_v9, %v2826_v57  ;;  %v2820_v7 = vadd.f32 %v2779_v30, %v10089_v13  ;;  %v10489_v10 = vsub.f32 %v2921_v4, %v10264_v60 }
 0x71f   : > { %v2822_v9 = vadd.f32 %v2796_v5, %v10123_v21  ;;  %v6692_v57 = vpack.i.bf16 %v10483_v48, %v10479_v28  ;;  %v2824_v30 = vadd.f32 %v2764_v32, %v9858_v2  ;;  %v10503_v5 = vsel %vm3261_vm9, 1.0, %v13760_v59 }
 0x720   : > { %6698 = vrot.lane.b32.xlu0 %v6697_v34, %s7450_s11  ;;  %13767 = vst [vmem:[#allocation34_spill] sm:$0xff] %v10489_v10  ;;  %v2867_v23 = vadd.f32 %v2821_v16, %v2819_v37  ;;  %v2829_v34 = vadd.f32 %v2782_v27, %v10079_v20  ;;  %13768 = vst [vmem:[#allocation65_spill] sm:$0xff] %v10503_v5  ;;  %v2923_v4 = vadd.f32 %v2875_v25, %v10104_v62  ;;  %v10516_v6 = vpop.permute.xlu1 %2745 }
 0x721   : > { %6693 = vrot.lane.b32.xlu1 %v6692_v57, %s7450_s11  ;;  %v2868_v14 = vadd.f32 %v2820_v7, %v2819_v37  ;;  %v2823_v32 = vadd.f32 %v2780_v45, %v10099_v12  ;;  %v2870_v57 = vadd.f32 %v2824_v30, %v2822_v9  ;;  %v6702_v38 = vpack.i.bf16 %v10503_v5, %v10510_v35 }
 0x722   : > { %v2915_v27 = vadd.f32 %v2867_v23, %v10089_v13  ;;  %v10522_v62 = vsub.f32 %v2923_v4, %v10303_v63  ;;  %v2878_v37 = vadd.f32 %v2830_v40, %v2829_v34  ;;  %v2924_v25 = vadd.f32 %v2876_v43, %v10079_v20 }
 0x723   : > { %v2869_v13 = vadd.f32 %v2821_v16, %v2820_v7  ;;  %v2916_v49 = vadd.f32 %v2868_v14, %v9858_v2  ;;  %v2871_v45 = vadd.f32 %v2823_v32, %v2822_v9  ;;  %v2918_v35 = vadd.f32 %v2870_v57, %v10099_v12  ;;  %v10548_v9 = vpop.permute.xlu0 %2747 }
 0x724   : > { %3027 = vrot.lane.b32.xlu0 %v10489_v10, %s7450_s11  ;;  %13771 = vst [vmem:[#allocation72_spill] sm:$0xff] %v10522_v62  ;;  %v10527_v23 = vsub.f32 %v2915_v27, %v10264_v60  ;;  %v2877_v5 = vadd.f32 %v2829_v34, %v2828_v42  ;;  %v2926_v40 = vadd.f32 %v2878_v37, %v10107_v46  ;;  %vm3178_vm10 = vcmp.ge.f32.partialorder %v10489_v10, 0.0 }
 0x725   : > { %6703 = vrot.lane.b32.xlu1 %v6702_v38, %s7450_s11  ;;  %v10536_v20 = vsub.f32 %v2924_v25, %v10264_v60  ;;  %v2917_v43 = vadd.f32 %v2869_v13, %v10120_v51  ;;  %v10539_v38 = vpop.permute.xlu1 %2741  ;;  %v10542_v16 = vsub.f32 %v2916_v49, %v10270_v0  ;;  %v2872_v12 = vadd.f32 %v2824_v30, %v2823_v32 }
 0x726   : > { %13772 = vst [vmem:[#allocation71_spill] sm:$0xff] %v10527_v23  ;;  %v2919_v42 = vadd.f32 %v2871_v45, %v9858_v2  ;;  %v10546_v7 = vsub.f32 %v2918_v35, %v10264_v60  ;;  %v2925_v46 = vadd.f32 %v2877_v5, %v9858_v2  ;;  %vm3226_vm11 = vcmp.lt.f32.partialorder %v10489_v10, 0.5 }
 0x727   : > { %13773 = vst [vmem:[#allocation47_spill] sm:$0xff] %v10536_v20  ;;  %13774 = vst [vmem:[#allocation30_spill] sm:$0xff] %v10542_v16  ;;  %v10558_v51 = vsub.f32 %v2926_v40, %v10303_v63  ;;  %vm3181_vm12 = vcmp.ge.f32.partialorder %v10536_v20, 0.0  ;;  %vm3229_vm13 = vcmp.lt.f32.partialorder %v10536_v20, 0.5  ;;  %v10563_v30 = vsub.f32 %v2917_v43, %v10303_v63  ;;  %v10572_v35 = vpop.permute.xlu0 %2743 }
 0x728   : > { %3059 = vrot.lane.b32.xlu0 %v10507_v11, %s7450_s11  ;;  %13775 = vst [vmem:[#allocation55_spill] sm:$0xff] %v10546_v7  ;;  %v2920_v34 = vadd.f32 %v2872_v12, %v10123_v21  ;;  %v10567_v5 = vsub.f32 %v2919_v42, %v10270_v0  ;;  %v10570_v4 = vsub.f32 %v2925_v46, %v10270_v0  ;;  %vm3274_vm14 = vmand %vm3178_vm10, %vm3226_vm11  ;;  %vm3180_vm0 = vcmp.ge.f32.partialorder %v10522_v62, 0.0 }
 0x729   : > { %3023 = vrot.lane.b32.xlu1 %v10527_v23, %s7450_s11  ;;  %13776 = vst [vmem:[#allocation68_spill] sm:$0xff] %v10558_v51  ;;  %13777 = vst [vmem:[#allocation27_spill] sm:$0xff] %v10563_v30  ;;  %v2714_v14 = vpop.permute.xlu1 %2713  ;;  %vm3228_vm3 = vcmp.lt.f32.partialorder %v10522_v62, 0.5  ;;  %vm3183_vm4 = vcmp.ge.f32.partialorder %v10558_v51, 0.0  ;;  %vm3231_vm5 = vcmp.lt.f32.partialorder %v10558_v51, 0.5  ;;  %v10591_v32 = vsel %vm3274_vm14, 1.0, %v13760_v59 }
 0x72a   : > { %13778 = vst [vmem:[#allocation40_spill] sm:$0xff] %v10567_v5  ;;  %13779 = vst [vmem:[#allocation38_spill] sm:$0xff] %v10570_v4  ;;  %v10583_v21 = vsub.f32 %v2920_v34, %v10303_v63  ;;  %v2801_v27 = vsel %vm13291_vm2, %v10007_v39, %v2714_v14  ;;  %vm3182_vm9 = vcmp.ge.f32.partialorder %v10570_v4, 0.0  ;;  %vm3230_vm10 = vcmp.lt.f32.partialorder %v10570_v4, 0.5 }
 0x72b   : > { %vm3277_vm15 = vmand %vm3181_vm12, %vm3229_vm13  ;;  %v2769_v25 = vsel %vm13291_vm2, %v10516_v6, %v10007_v39  ;;  %vm3173_vm12 = vcmp.ge.f32.partialorder %v10542_v16, 0.0  ;;  %vm3221_vm13 = vcmp.lt.f32.partialorder %v10542_v16, 0.5  ;;  %v2837_v13 = vadd.f32 %v2801_v27, %v10164_v55  ;;  %v2716_v40 = vpop.permute.xlu0 %2715 }
 0x72c   : > { %3091 = vrot.lane.b32.xlu0 %v10522_v62, %s7450_s11  ;;  %13780 = vst [vmem:[#allocation73_spill] sm:$0xff] %v10583_v21  ;;  %v10594_v57 = vsel %vm3277_vm15, 1.0, %v13760_v59  ;;  %vm10596_vm8 = vmand %vm3180_vm0, %vm3228_vm3  ;;  %vm3176_vm15 = vcmp.ge.f32.partialorder %v10567_v5, 0.0  ;;  %vm3224_vm0 = vcmp.lt.f32.partialorder %v10567_v5, 0.5  ;;  %v2785_v45 = vsel %vm13291_vm2, %v2714_v14, %v10516_v6 }
 0x72d   : > { %3055 = vrot.lane.b32.xlu1 %v10542_v16, %s7450_s11  ;;  %vm3279_vm11 = vmand %vm3183_vm4, %vm3231_vm5  ;;  %v6707_v43 = vpack.i.bf16 %v10594_v57, %v10591_v32  ;;  %v2839_v42 = vadd.f32 %v2769_v25, %v9858_v2  ;;  %v2710_v46 = vpop.permute.xlu1 %2709  ;;  %v10634_v34 = vsel %vm10596_vm8, 1.0, %v13760_v59  ;;  %v2838_v14 = vadd.f32 %v2785_v45, %v10132_v3 }
 0x72e   : > { %vm10613_vm14 = vmand %vm3179_vm6, %vm3227_vm7  ;;  %13787 = vst [vmem:[#allocation57_spill] sm:$0xff] %v10634_v34  ;;  %v10637_v6 = vsel %vm3279_vm11, 1.0, %v13760_v59  ;;  %vm3172_vm6 = vcmp.ge.f32.partialorder %v10527_v23, 0.0  ;;  %vm3220_vm7 = vcmp.lt.f32.partialorder %v10527_v23, 0.5  ;;  %vm3175_vm8 = vcmp.ge.f32.partialorder %v10546_v7, 0.0 }
 0x72f   : > { %vm10626_vm3 = vmand %vm3182_vm9, %vm3230_vm10  ;;  %13788 = vst [vmem:[#allocation46_spill] sm:$0xff] %v10637_v6  ;;  %v2885_v27 = vadd.f32 %v2839_v42, %v2837_v13  ;;  %vm3223_vm9 = vcmp.lt.f32.partialorder %v10546_v7, 0.5  ;;  %v2770_v37 = vsel %vm13291_vm2, %v10548_v9, %v10007_v39  ;;  %v2799_v25 = vsel %vm13291_vm2, %v10007_v39, %v2710_v46 }
 0x730   : > { %3025 = vrot.lane.b32.xlu0 %v10546_v7, %s7450_s11  ;;  %vm3269_vm4 = vmand %vm3173_vm12, %vm3221_vm13  ;;  %v10659_v45 = vsel %vm10613_vm14, 1.0, %v13760_v59  ;;  %v10664_v16 = vsel %vm10626_vm3, 1.0, %v13760_v59  ;;  %v2767_v49 = vsel %vm13291_vm2, %v10539_v38, %v10007_v39  ;;  %v2802_v12 = vsel %vm13291_vm2, %v10007_v39, %v2716_v40 }
 0x731   : > { %3087 = vrot.lane.b32.xlu1 %v10563_v30, %s7450_s11  ;;  %vm3272_vm5 = vmand %vm3176_vm15, %vm3224_vm0  ;;  %13789 = vst [vmem:[#allocation64_spill] sm:$0xff] %v10659_v45  ;;  %vm3174_vm12 = vcmp.ge.f32.partialorder %v10563_v30, 0.0  ;;  %vm3222_vm13 = vcmp.lt.f32.partialorder %v10563_v30, 0.5  ;;  %vm3177_vm14 = vcmp.ge.f32.partialorder %v10583_v21, 0.0  ;;  %vm3225_vm15 = vcmp.lt.f32.partialorder %v10583_v21, 0.5 }
 0x732   : > { %v10670_v23 = vsel %vm3272_vm5, 1.0, %v13760_v59  ;;  %vm10672_vm10 = vmand %vm3172_vm6, %vm3220_vm7  ;;  %v6712_v7 = vpack.i.bf16 %v10664_v16, %v10659_v45  ;;  %v2840_v11 = vadd.f32 %v2802_v12, %v10167_v26  ;;  %v2887_v30 = vadd.f32 %v2839_v42, %v2838_v14 }
 0x733   : > { %13791 = vst [vmem:[#allocation25_spill] sm:$0xff] %v10670_v23  ;;  %vm3271_vm11 = vmand %vm3175_vm8, %vm3223_vm9  ;;  %v2842_v12 = vadd.f32 %v2770_v37, %v9858_v2 }
 0x734   : > { %3057 = vrot.lane.b32.xlu0 %v10567_v5, %s7450_s11  ;;  %v10667_v5 = vsel %vm3269_vm4, 1.0, %v13760_v59  ;;  %vm10713_vm0 = vmand %vm3174_vm12, %vm3222_vm13 }
 0x735   : > { %3029 = vrot.lane.b32.xlu1 %v10536_v20, %s7450_s11  ;;  %13790 = vst [vmem:[#allocation36_spill] sm:$0xff] %v10667_v5  ;;  %v6727_v62 = vpack.i.bf16 %v10670_v23, %v10667_v5  ;;  %vm3273_vm3 = vmand %vm3177_vm14, %vm3225_vm15  ;;  %v10746_v42 = vsel %vm10713_vm0, 1.0, %v13760_v59 }
 0x736   : > { %13797 = vst [vmem:[#allocation39_spill] sm:$0xff] %v10746_v42 }
 0x738   : > { %3089 = vrot.lane.b32.xlu0 %v10583_v21, %s7450_s11 }
 0x739   : > { %3061 = vrot.lane.b32.xlu1 %v10570_v4, %s7450_s11  ;;  %v2712_v4 = vpop.permute.xlu0 %2711 }
 0x73c   : > { %6708 = vrot.lane.b32.xlu0 %v6707_v43, %s7450_s11  ;;  %v6717_v43 = vpack.i.bf16 %v10637_v6, %v10634_v34  ;;  %v2886_v6 = vadd.f32 %v2838_v14, %v2837_v13  ;;  %v2933_v34 = vadd.f32 %v2885_v27, %v10132_v3  ;;  %v2833_v13 = vadd.f32 %v2767_v49, %v9858_v2 }
 0x73d   : > { %3093 = vrot.lane.b32.xlu1 %v10558_v51, %s7450_s11  ;;  %v2783_v51 = vsel %vm13291_vm2, %v2710_v46, %v10539_v38  ;;  %v2800_v3 = vsel %vm13291_vm2, %v10007_v39, %v2712_v4  ;;  %v10708_v27 = vsel %vm10672_vm10, 1.0, %v13760_v59  ;;  %v10711_v38 = vsel %vm3271_vm11, 1.0, %v13760_v59 }
 0x73e   : > { %v2786_v49 = vsel %vm13291_vm2, %v2716_v40, %v10548_v9  ;;  %v2934_v5 = vadd.f32 %v2886_v6, %v9858_v2  ;;  %v10733_v23 = vsub.f32 %v2933_v34, %v10264_v60  ;;  %v2832_v45 = vadd.f32 %v2783_v51, %v10149_v8 }
 0x73f   : > { %v6722_v40 = vpack.i.bf16 %v10711_v38, %v10708_v27  ;;  %v10749_v34 = vsel %vm3273_vm3, 1.0, %v13760_v59  ;;  %v2841_v6 = vadd.f32 %v2786_v49, %v10139_v41  ;;  %v2888_v14 = vadd.f32 %v2842_v12, %v2840_v11  ;;  %v10764_v49 = vpop.permute.xlu1 %2753 }
 0x740   : > { %6718 = vrot.lane.b32.xlu0 %v6717_v43, %s7450_s11  ;;  %v2831_v43 = vadd.f32 %v2799_v25, %v10180_v56  ;;  %v2768_v25 = vsel %vm13291_vm2, %v10572_v35, %v10007_v39  ;;  %13796 = vst [vmem:[#allocation45_spill] sm:$0xff] %v10733_v23  ;;  %13798 = vst [vmem:[#allocation48_spill] sm:$0xff] %v10749_v34  ;;  %vm3190_vm4 = vcmp.ge.f32.partialorder %v10733_v23, 0.0  ;;  %vm3238_vm5 = vcmp.lt.f32.partialorder %v10733_v23, 0.5 }
 0x741   : > { %6713 = vrot.lane.b32.xlu1 %v6712_v7, %s7450_s11  ;;  %v2784_v7 = vsel %vm13291_vm2, %v2712_v4, %v10572_v35  ;;  %v2836_v51 = vadd.f32 %v2768_v25, %v9858_v2  ;;  %v2935_v4 = vadd.f32 %v2887_v30, %v10164_v55  ;;  %v10758_v35 = vsub.f32 %v2934_v5, %v10270_v0  ;;  %vm3286_vm8 = vmand %vm3190_vm4, %vm3238_vm5 }
 0x742   : > { %v2879_v9 = vadd.f32 %v2833_v13, %v2831_v43  ;;  %v2835_v37 = vadd.f32 %v2784_v7, %v10159_v31  ;;  %v6732_v25 = vpack.i.bf16 %v10749_v34, %v10746_v42  ;;  %v2890_v30 = vadd.f32 %v2842_v12, %v2841_v6 }
 0x743   : > { %13799 = vst [vmem:[#allocation85_spill] sm:$0xff] %v10758_v35  ;;  %v10772_v55 = vsub.f32 %v2935_v4, %v10303_v63  ;;  %v2936_v5 = vadd.f32 %v2888_v14, %v10139_v41  ;;  %v2889_v34 = vadd.f32 %v2841_v6, %v2840_v11  ;;  %vm3191_vm14 = vcmp.ge.f32.partialorder %v10758_v35, 0.0 }
 0x744   : > { %6728 = vrot.lane.b32.xlu0 %v6727_v62, %s7450_s11  ;;  %v2834_v62 = vadd.f32 %v2800_v3, %v10183_v36  ;;  %v2880_v3 = vadd.f32 %v2832_v45, %v2831_v43  ;;  %v2927_v46 = vadd.f32 %v2879_v9, %v10149_v8  ;;  %v2881_v8 = vadd.f32 %v2833_v13, %v2832_v45  ;;  %v10788_v13 = vpop.permute.xlu1 %2749 }
 0x745   : > { %6723 = vrot.lane.b32.xlu1 %v6722_v40, %s7450_s11  ;;  %v10766_v40 = vpop.permute.xlu0 %2755  ;;  %13800 = vst [vmem:[#allocation86_spill] sm:$0xff] %v10772_v55  ;;  %v2938_v12 = vadd.f32 %v2890_v30, %v10167_v26  ;;  %v10786_v41 = vsub.f32 %v2936_v5, %v10264_v60  ;;  %v2884_v45 = vadd.f32 %v2836_v51, %v2835_v37  ;;  %vm3192_vm10 = vcmp.ge.f32.partialorder %v10772_v55, 0.0 }
 0x746   : > { %v2882_v21 = vadd.f32 %v2836_v51, %v2834_v62  ;;  %v2928_v43 = vadd.f32 %v2880_v3, %v9858_v2  ;;  %v10777_v9 = vsub.f32 %v2927_v46, %v10264_v60  ;;  %v2883_v7 = vadd.f32 %v2835_v37, %v2834_v62 }
 0x747   : > { %13802 = vst [vmem:[#allocation88_spill] sm:$0xff] %v10786_v41  ;;  %v2929_v62 = vadd.f32 %v2881_v8, %v10180_v56  ;;  %v2937_v26 = vadd.f32 %v2889_v34, %v9858_v2  ;;  %v10808_v56 = vsub.f32 %v2938_v12, %v10303_v63  ;;  %vm3193_vm6 = vcmp.ge.f32.partialorder %v10786_v41, 0.0 }
 0x748   : > { %3035 = vrot.lane.b32.xlu0 %v10733_v23, %s7450_s11  ;;  %13801 = vst [vmem:[#allocation87_spill] sm:$0xff] %v10777_v9  ;;  %v2930_v42 = vadd.f32 %v2882_v21, %v10159_v31  ;;  %v10794_v31 = vsub.f32 %v2928_v43, %v10270_v0  ;;  %v2931_v21 = vadd.f32 %v2883_v7, %v9858_v2  ;;  %vm3241_vm7 = vcmp.lt.f32.partialorder %v10786_v41, 0.5  ;;  %v2722_v14 = vpop.permute.xlu1 %2721 }
 0x749   : > { %6733 = vrot.lane.b32.xlu1 %v6732_v25, %s7450_s11  ;;  %v10790_v4 = vpop.permute.xlu0 %2751  ;;  %13805 = vst [vmem:[#allocation91_spill] sm:$0xff] %v10808_v56  ;;  %v2932_v34 = vadd.f32 %v2884_v45, %v10183_v36  ;;  %v10820_v6 = vsub.f32 %v2937_v26, %v10270_v0  ;;  %vm3289_vm9 = vmand %vm3193_vm6, %vm3241_vm7  ;;  %vm3240_vm11 = vcmp.lt.f32.partialorder %v10772_v55, 0.5  ;;  %vm3195_vm12 = vcmp.ge.f32.partialorder %v10808_v56, 0.0 }
 0x74a   : > { %13803 = vst [vmem:[#allocation89_spill] sm:$0xff] %v10794_v31  ;;  %v10798_v11 = vsub.f32 %v2930_v42, %v10264_v60  ;;  %v10813_v42 = vsub.f32 %v2929_v62, %v10303_v63  ;;  %v10817_v51 = vsub.f32 %v2931_v21, %v10270_v0  ;;  %vm3243_vm13 = vcmp.lt.f32.partialorder %v10808_v56, 0.5  ;;  %vm10846_vm0 = vmand %vm3192_vm10, %vm3240_vm11 }
 0x74b   : > { %13808 = vst [vmem:[#allocation94_spill] sm:$0xff] %v10820_v6  ;;  %v10833_v36 = vsub.f32 %v2932_v34, %v10303_v63  ;;  %v2805_v3 = vsel %vm13291_vm2, %v10007_v39, %v2722_v14  ;;  %vm3239_vm15 = vcmp.lt.f32.partialorder %v10758_v35, 0.5  ;;  %v10841_v46 = vsel %vm3286_vm8, 1.0, %v13760_v59  ;;  %vm3291_vm5 = vmand %vm3195_vm12, %vm3243_vm13 }
 0x74c   : > { %3067 = vrot.lane.b32.xlu0 %v10758_v35, %s7450_s11  ;;  %13804 = vst [vmem:[#allocation90_spill] sm:$0xff] %v10798_v11  ;;  %13806 = vst [vmem:[#allocation92_spill] sm:$0xff] %v10813_v42  ;;  %v10844_v25 = vsel %vm3289_vm9, 1.0, %v13760_v59  ;;  %vm3194_vm3 = vcmp.ge.f32.partialorder %v10820_v6, 0.0  ;;  %vm3242_vm4 = vcmp.lt.f32.partialorder %v10820_v6, 0.5  ;;  %vm3185_vm6 = vcmp.ge.f32.partialorder %v10794_v31, 0.0  ;;  %v2718_v21 = vpop.permute.xlu1 %2717 }
 0x74d   : > { %3031 = vrot.lane.b32.xlu1 %v10777_v9, %s7450_s11  ;;  %13807 = vst [vmem:[#allocation93_spill] sm:$0xff] %v10817_v51  ;;  %v10822_v37 = vpop.permute.xlu0 %2723  ;;  %13809 = vst [vmem:[#allocation95_spill] sm:$0xff] %v10833_v36  ;;  %vm3233_vm7 = vcmp.lt.f32.partialorder %v10794_v31, 0.5  ;;  %v2773_v5 = vsel %vm13291_vm2, %v10764_v49, %v10007_v39  ;;  %vm3188_vm9 = vcmp.ge.f32.partialorder %v10817_v51, 0.0  ;;  %vm3236_vm10 = vcmp.lt.f32.partialorder %v10817_v51, 0.5 }
 0x74e   : > { %13810 = vst [vmem:[#allocation96_spill] sm:$0xff] %v10844_v25  ;;  %vm10864_vm8 = vmand %vm3191_vm14, %vm3239_vm15  ;;  %v2789_v7 = vsel %vm13291_vm2, %v2722_v14, %v10764_v49  ;;  %v2849_v12 = vadd.f32 %v2805_v3, %v10214_v47  ;;  %v6737_v45 = vpack.i.bf16 %v10844_v25, %v10841_v46  ;;  %v10885_v26 = vsel %vm10846_vm0, 1.0, %v13760_v59 }
 0x74f   : > { %vm10878_vm11 = vmand %vm3194_vm3, %vm3242_vm4  ;;  %13817 = vst [vmem:[#allocation97_spill] sm:$0xff] %v10885_v26  ;;  %v10888_v34 = vsel %vm3291_vm5, 1.0, %v13760_v59  ;;  %v2851_v14 = vadd.f32 %v2773_v5, %v9858_v2  ;;  %vm3184_vm14 = vcmp.ge.f32.partialorder %v10777_v9, 0.0  ;;  %vm3232_vm15 = vcmp.lt.f32.partialorder %v10777_v9, 0.5 }
 0x750   : > { %3099 = vrot.lane.b32.xlu0 %v10772_v55, %s7450_s11  ;;  %13818 = vst [vmem:[#allocation98_spill] sm:$0xff] %v10888_v34  ;;  %vm10890_vm12 = vmand %vm3185_vm6, %vm3233_vm7  ;;  %v2850_v3 = vadd.f32 %v2789_v7, %v10192_v24  ;;  %vm3187_vm0 = vcmp.ge.f32.partialorder %v10798_v11, 0.0  ;;  %vm3235_vm3 = vcmp.lt.f32.partialorder %v10798_v11, 0.5  ;;  %v2774_v5 = vsel %vm13291_vm2, %v10766_v40, %v10007_v39 }
 0x751   : > { %3063 = vrot.lane.b32.xlu1 %v10794_v31, %s7450_s11  ;;  %v10862_v8 = vpop.permute.xlu0 %2719  ;;  %vm3284_vm13 = vmand %vm3188_vm9, %vm3236_vm10  ;;  %v2897_v31 = vadd.f32 %v2851_v14, %v2849_v12  ;;  %v10917_v7 = vsel %vm10864_vm8, 1.0, %v13760_v59  ;;  %v10922_v9 = vsel %vm10878_vm11, 1.0, %v13760_v59  ;;  %v10927_v35 = vsel %vm10890_vm12, 1.0, %v13760_v59 }
 0x752   : > { %13821 = vst [vmem:[#allocation99_spill] sm:$0xff] %v10917_v7  ;;  %13822 = vst [vmem:[#allocation100_spill] sm:$0xff] %v10922_v9  ;;  %v2771_v43 = vsel %vm13291_vm2, %v10788_v13, %v10007_v39  ;;  %v2806_v62 = vsel %vm13291_vm2, %v10007_v39, %v10822_v37  ;;  %vm3186_vm6 = vcmp.ge.f32.partialorder %v10813_v42, 0.0  ;;  %vm3234_vm7 = vcmp.lt.f32.partialorder %v10813_v42, 0.5 }
 0x753   : > { %13823 = vst [vmem:[#allocation101_spill] sm:$0xff] %v10927_v35  ;;  %vm10932_vm4 = vmand %vm3184_vm14, %vm3232_vm15  ;;  %v2898_v49 = vadd.f32 %v2850_v3, %v2849_v12  ;;  %vm3189_vm8 = vcmp.ge.f32.partialorder %v10833_v36, 0.0  ;;  %vm3237_vm9 = vcmp.lt.f32.partialorder %v10833_v36, 0.5  ;;  %v6742_v55 = vpack.i.bf16 %v10922_v9, %v10917_v7 }
 0x754   : > { %3033 = vrot.lane.b32.xlu0 %v10798_v11, %s7450_s11  ;;  %vm3283_vm5 = vmand %vm3187_vm0, %vm3235_vm3  ;;  %v2854_v25 = vadd.f32 %v2774_v5, %v9858_v2 }
 0x755   : > { %3095 = vrot.lane.b32.xlu1 %v10813_v42, %s7450_s11  ;;  %vm10981_vm10 = vmand %vm3186_vm6, %vm3234_vm7  ;;  %v2899_v42 = vadd.f32 %v2851_v14, %v2850_v3  ;;  %v2788_v3 = vsel %vm13291_vm2, %v10862_v8, %v10790_v4 }
 0x756   : > { %vm3285_vm11 = vmand %vm3189_vm8, %vm3237_vm9 }
 0x758   : > { %3065 = vrot.lane.b32.xlu0 %v10817_v51, %s7450_s11  ;;  %v6747_v51 = vpack.i.bf16 %v10888_v34, %v10885_v26  ;;  %v2787_v26 = vsel %vm13291_vm2, %v2718_v21, %v10788_v13  ;;  %v2804_v13 = vsel %vm13291_vm2, %v10007_v39, %v10862_v8  ;;  %v2772_v34 = vsel %vm13291_vm2, %v10790_v4, %v10007_v39 }
 0x759   : > { %3037 = vrot.lane.b32.xlu1 %v10786_v41, %s7450_s11  ;;  %v2846_v7 = vadd.f32 %v2804_v13, %v10245_v18  ;;  %v2947_v4 = vadd.f32 %v2899_v42, %v10214_v47 }
 0x75b   : > { %v11047_v47 = vsub.f32 %v2947_v4, %v10303_v63 }
 0x75c   : > { %3097 = vrot.lane.b32.xlu0 %v10833_v36, %s7450_s11 }
 0x75d   : > { %3069 = vrot.lane.b32.xlu1 %v10820_v6, %s7450_s11  ;;  %v10930_v6 = vsel %vm3284_vm13, 1.0, %v13760_v59  ;;  %13833 = vst [vmem:[#allocation107_spill] sm:$0xff] %v11047_v47 }
 0x75e   : > { %13824 = vst [vmem:[#allocation102_spill] sm:$0xff] %v10930_v6  ;;  %v6757_v12 = vpack.i.bf16 %v10930_v6, %v10927_v35  ;;  %v2852_v35 = vadd.f32 %v2806_v62, %v10232_v53  ;;  %v2946_v6 = vadd.f32 %v2898_v49, %v9858_v2 }
 0x760   : > { %6738 = vrot.lane.b32.xlu0 %v6737_v45, %s7450_s11  ;;  %v2803_v45 = vsel %vm13291_vm2, %v10007_v39, %v2718_v21  ;;  %v10974_v21 = vsel %vm10932_vm4, 1.0, %v13760_v59  ;;  %v2844_v39 = vadd.f32 %v2787_v26, %v10209_v50  ;;  %v2848_v26 = vadd.f32 %v2772_v34, %v9858_v2 }
 0x761   : > { %3101 = vrot.lane.b32.xlu1 %v10808_v56, %s7450_s11  ;;  %v2843_v11 = vadd.f32 %v2803_v45, %v10235_v1  ;;  %13827 = vst [vmem:[#allocation103_spill] sm:$0xff] %v10974_v21  ;;  %v2845_v45 = vadd.f32 %v2771_v43, %v9858_v2  ;;  %v2790_v43 = vsel %vm13291_vm2, %v10822_v37, %v10766_v40  ;;  %v11020_v40 = vsel %vm10981_vm10, 1.0, %v13760_v59 }
 0x762   : > { %v11023_v37 = vsel %vm3285_vm11, 1.0, %v13760_v59  ;;  %v2853_v49 = vadd.f32 %v2790_v43, %v10199_v58  ;;  %v11032_v8 = vsub.f32 %v2946_v6, %v10270_v0  ;;  %v2847_v34 = vadd.f32 %v2788_v3, %v10225_v29 }
 0x763   : > { %v2892_v13 = vadd.f32 %v2844_v39, %v2843_v11  ;;  %v6762_v43 = vpack.i.bf16 %v11023_v37, %v11020_v40  ;;  %vm3204_vm4 = vcmp.ge.f32.partialorder %v11047_v47, 0.0 }
 0x764   : > { %6748 = vrot.lane.b32.xlu0 %v6747_v51, %s7450_s11  ;;  %v2945_v51 = vadd.f32 %v2897_v31, %v10192_v24  ;;  %v10977_v24 = vsel %vm3283_vm5, 1.0, %v13760_v59  ;;  %13832 = vst [vmem:[#allocation106_spill] sm:$0xff] %v11032_v8  ;;  %vm3252_vm5 = vcmp.lt.f32.partialorder %v11047_v47, 0.5  ;;  %vm3203_vm8 = vcmp.ge.f32.partialorder %v11032_v8, 0.0 }
 0x765   : > { %13828 = vst [vmem:[#allocation104_spill] sm:$0xff] %v10977_v24  ;;  %6743 = vrot.lane.b32.xlu1 %v6742_v55, %s7450_s11  ;;  %v6752_v14 = vpack.i.bf16 %v10977_v24, %v10974_v21  ;;  %v2894_v21 = vadd.f32 %v2848_v26, %v2846_v7  ;;  %v2902_v24 = vadd.f32 %v2854_v25, %v2853_v49  ;;  %vm3251_vm9 = vcmp.lt.f32.partialorder %v11032_v8, 0.5  ;;  %vm11119_vm10 = vmand %vm3204_vm4, %vm3252_vm5 }
 0x766   : > { %v11008_v55 = vsub.f32 %v2945_v51, %v10264_v60  ;;  %v2900_v51 = vadd.f32 %v2854_v25, %v2852_v35  ;;  %v2940_v42 = vadd.f32 %v2892_v13, %v9858_v2 }
 0x767   : > { %v2942_v25 = vadd.f32 %v2894_v21, %v10225_v29 }
 0x768   : > { %6758 = vrot.lane.b32.xlu0 %v6757_v12, %s7450_s11  ;;  %13831 = vst [vmem:[#allocation105_spill] sm:$0xff] %v11008_v55  ;;  %v2891_v12 = vadd.f32 %v2845_v45, %v2843_v11  ;;  %v2948_v9 = vadd.f32 %v2900_v51, %v10199_v58  ;;  %v2893_v11 = vadd.f32 %v2845_v45, %v2844_v39  ;;  %vm3202_vm12 = vcmp.ge.f32.partialorder %v11008_v55, 0.0 }
 0x769   : > { %6753 = vrot.lane.b32.xlu1 %v6752_v14, %s7450_s11  ;;  %v2950_v58 = vadd.f32 %v2902_v24, %v10232_v53  ;;  %vm3250_vm13 = vcmp.lt.f32.partialorder %v11008_v55, 0.5 }
 0x76a   : > { %v2939_v36 = vadd.f32 %v2891_v12, %v10209_v50  ;;  %v2901_v50 = vadd.f32 %v2853_v49, %v2852_v35  ;;  %v2895_v12 = vadd.f32 %v2847_v34, %v2846_v7  ;;  %v11058_v51 = vsub.f32 %v2948_v9, %v10264_v60  ;;  %vm3298_vm0 = vmand %vm3202_vm12, %vm3250_vm13 }
 0x76b   : > { %v2896_v35 = vadd.f32 %v2848_v26, %v2847_v34  ;;  %v2941_v29 = vadd.f32 %v2893_v11, %v10235_v1  ;;  %v11069_v7 = vsub.f32 %v2940_v42, %v10270_v0  ;;  %v11073_v9 = vsub.f32 %v2942_v25, %v10264_v60 }
 0x76c   : > { %3043 = vrot.lane.b32.xlu0 %v11008_v55, %s7450_s11  ;;  %v11051_v6 = vsub.f32 %v2939_v36, %v10264_v60  ;;  %13835 = vst [vmem:[#allocation109_spill] sm:$0xff] %v11058_v51  ;;  %v2949_v39 = vadd.f32 %v2901_v50, %v9858_v2  ;;  %v2943_v53 = vadd.f32 %v2895_v12, %v9858_v2  ;;  %vm3205_vm14 = vcmp.ge.f32.partialorder %v11058_v51, 0.0 }
 0x76d   : > { %6763 = vrot.lane.b32.xlu1 %v6762_v43, %s7450_s11  ;;  %13836 = vst [vmem:[#allocation110_spill] sm:$0xff] %v11069_v7  ;;  %13837 = vst [vmem:[#allocation111_spill] sm:$0xff] %v11073_v9  ;;  %v11078_v21 = vsub.f32 %v2950_v58, %v10303_v63  ;;  %vm3253_vm15 = vcmp.lt.f32.partialorder %v11058_v51, 0.5  ;;  %v2944_v1 = vadd.f32 %v2896_v35, %v10245_v18  ;;  %v11150_v42 = vsel %vm11119_vm10, 1.0, %v13760_v59 }
 0x76e   : > { %13834 = vst [vmem:[#allocation108_spill] sm:$0xff] %v11051_v6  ;;  %v11090_v24 = vsub.f32 %v2949_v39, %v10270_v0  ;;  %v11093_v45 = vsub.f32 %v2941_v29, %v10303_v63  ;;  %v11096_v26 = vsub.f32 %v2943_v53, %v10270_v0  ;;  %vm3301_vm3 = vmand %vm3205_vm14, %vm3253_vm15  ;;  %v11114_v0 = vsel %vm3298_vm0, 1.0, %v13760_v59 }
 0x76f   : > { %13838 = vst [vmem:[#allocation112_spill] sm:$0xff] %v11078_v21  ;;  %vm3207_vm6 = vcmp.ge.f32.partialorder %v11078_v21, 0.0  ;;  %vm3255_vm7 = vcmp.lt.f32.partialorder %v11078_v21, 0.5  ;;  %v11109_v18 = vsub.f32 %v2944_v1, %v10303_v63  ;;  %v11117_v4 = vsel %vm3301_vm3, 1.0, %v13760_v59  ;;  %vm11131_vm0 = vmand %vm3203_vm8, %vm3251_vm9 }
 0x770   : > { %3075 = vrot.lane.b32.xlu0 %v11032_v8, %s7450_s11  ;;  %13839 = vst [vmem:[#allocation113_spill] sm:$0xff] %v11090_v24  ;;  %13840 = vst [vmem:[#allocation114_spill] sm:$0xff] %v11093_v45  ;;  %vm3206_vm11 = vcmp.ge.f32.partialorder %v11090_v24, 0.0  ;;  %vm3254_vm12 = vcmp.lt.f32.partialorder %v11090_v24, 0.5  ;;  %vm3197_vm14 = vcmp.ge.f32.partialorder %v11069_v7, 0.0  ;;  %vm3245_vm15 = vcmp.lt.f32.partialorder %v11069_v7, 0.5 }
 0x771   : > { %3039 = vrot.lane.b32.xlu1 %v11051_v6, %s7450_s11  ;;  %13841 = vst [vmem:[#allocation115_spill] sm:$0xff] %v11096_v26  ;;  %13842 = vst [vmem:[#allocation116_spill] sm:$0xff] %v11109_v18  ;;  %vm3200_vm3 = vcmp.ge.f32.partialorder %v11096_v26, 0.0  ;;  %vm3248_vm4 = vcmp.lt.f32.partialorder %v11096_v26, 0.5  ;;  %v6767_v43 = vpack.i.bf16 %v11117_v4, %v11114_v0  ;;  %vm3199_vm9 = vcmp.ge.f32.partialorder %v11073_v9, 0.0 }
 0x772   : > { %v10903_v30 = vpop.permute.xlu0 %3019  ;;  %vm3303_vm13 = vmand %vm3207_vm6, %vm3255_vm7  ;;  %vm3196_vm6 = vcmp.ge.f32.partialorder %v11051_v6, 0.0  ;;  %vm3244_vm7 = vcmp.lt.f32.partialorder %v11051_v6, 0.5  ;;  %vm3198_vm10 = vcmp.ge.f32.partialorder %v11093_v45, 0.0  ;;  %v11177_v29 = vsel %vm11131_vm0, 1.0, %v13760_v59 }
 0x773   : > { %vm11139_vm5 = vmand %vm3206_vm11, %vm3254_vm12  ;;  %v11153_v12 = vsel %vm3303_vm13, 1.0, %v13760_v59  ;;  %vm3247_vm11 = vcmp.lt.f32.partialorder %v11073_v9, 0.5  ;;  %vm3246_vm13 = vcmp.lt.f32.partialorder %v11093_v45, 0.5  ;;  %13853 = vst [vmem:[#allocation117_spill] sm:$0xff] %v11177_v29  ;;  %v3553_v2 = vmul.f32 %v10379_v17, %v10350_v15 }
 0x774   : > { %3107 = vrot.lane.b32.xlu0 %v11047_v47, %s7450_s11  ;;  %vm11155_vm8 = vmand %vm3197_vm14, %vm3245_vm15  ;;  %v6777_v39 = vpack.i.bf16 %v11153_v12, %v11150_v42  ;;  %vm3201_vm15 = vcmp.ge.f32.partialorder %v11109_v18, 0.0  ;;  %v11182_v53 = vsel %vm11139_vm5, 1.0, %v13760_v59  ;;  %vm14208_vm5 = vcmp.lt.s32.totalorder %v7900_v19, 64 }
 0x775   : > { %3071 = vrot.lane.b32.xlu1 %v11069_v7, %s7450_s11  ;;  %vm3296_vm12 = vmand %vm3200_vm3, %vm3248_vm4  ;;  %vm3249_vm3 = vcmp.lt.f32.partialorder %v11109_v18, 0.5  ;;  %v11187_v1 = vsel %vm11155_vm8, 1.0, %v13760_v59  ;;  %vm3111_vm4 = vcmp.lt.s32.totalorder %v7900_v19, 96 }
 0x776   : > { %v10958_v56 = vpop.permute.xlu0 %3051  ;;  %vm11164_vm2 = vmand %vm3196_vm6, %vm3244_vm7  ;;  %13854 = vst [vmem:[#allocation118_spill] sm:$0xff] %v11187_v1  ;;  %v11190_v13 = vsel %vm3296_vm12, 1.0, %v13760_v59 }
 0x777   : > { %v10985_v5 = vpop.permute.xlu1 %3015  ;;  %vm3295_vm14 = vmand %vm3199_vm9, %vm3247_vm11  ;;  %13855 = vst [vmem:[#allocation119_spill] sm:$0xff] %v11190_v13  ;;  %v11203_v50 = vsel %vm11164_vm2, 1.0, %v13760_v59  ;;  %v11220_v58 = vsel %vm3111_vm4, %v10903_v30, %v10958_v56  ;;  %vm7451_vm2 = vmmov 0  }
 0x778   : > { %3041 = vrot.lane.b32.xlu0 %v11073_v9, %s7450_s11  ;;  %vm11193_vm6 = vmand %vm3198_vm10, %vm3246_vm13  ;;  %13858 = vst [vmem:[#allocation120_spill] sm:$0xff] %v11203_v50  ;;  %v11206_v25 = vsel %vm3295_vm14, 1.0, %v13760_v59 }
 0x779   : > { %3103 = vrot.lane.b32.xlu1 %v11093_v45, %s7450_s11  ;;  %13859 = vst [vmem:[#allocation121_spill] sm:$0xff] %v11206_v25  ;;  %vm3297_vm0 = vmand %vm3201_vm15, %vm3249_vm3  ;;  %v6772_v45 = vpack.i.bf16 %v11182_v53, %v11177_v29  ;;  %v3554_v29 = vmul.f32 %v10424_v54, %v10372_v61  ;;  %v13868_v61 = vld [vmem:[#allocation41_spill] sm:$0xff] }
 0x77a   : > { %v11005_v62 = vpop.permute.xlu0 %3083  ;;  %13860 = vst [vmem:[#allocation122_spill] sm:$0xff] %v11220_v58  ;;  %vm14209_vm7 = vmmov %vm14208_vm5 }
 0x77b   : > { %v11034_v31 = vpop.permute.xlu1 %3047  ;;  %v11250_v34 = vsel %vm3111_vm4, %v10958_v56, %v11005_v62 }
 0x77c   : > { %3073 = vrot.lane.b32.xlu0 %v11096_v26, %s7450_s11  ;;  %v11239_v26 = vsel %vm3297_vm0, 1.0, %v13760_v59  ;;  %13863 = vst [vmem:[#allocation125_spill] sm:$0xff] %v11250_v34 }
 0x77d   : > { %3045 = vrot.lane.b32.xlu1 %v11058_v51, %s7450_s11 }
 0x77e   : > { %v11040_v14 = vpop.permute.xlu0 %3017 }
 0x77f   : > { %v11054_v3 = vpop.permute.xlu1 %3079 }
 0x780   : > { %3105 = vrot.lane.b32.xlu0 %v11109_v18, %s7450_s11  ;;  %v3550_v18 = vmul.f32 %v10385_v44, %v10285_v33  ;;  %v6782_v33 = vpack.i.bf16 %v11206_v25, %v11203_v50 }
 0x781   : > { %3077 = vrot.lane.b32.xlu1 %v11090_v24, %s7450_s11 }
 0x782   : > { %v11065_v36 = vpop.permute.xlu0 %3049 }
 0x783   : > { %v11087_v60 = vpop.permute.xlu1 %3021 }
 0x784   : > { %6768 = vrot.lane.b32.xlu0 %v6767_v43, %s7450_s11 }
 0x785   : > { %3109 = vrot.lane.b32.xlu1 %v11078_v21, %s7450_s11 }
 0x786   : > { %v11098_v49 = vpop.permute.xlu0 %3081 }
 0x787   : > { %v3054_v63 = vpop.permute.xlu1 %3053 }
 0x788   : > { %6778 = vrot.lane.b32.xlu0 %v6777_v39, %s7450_s11  ;;  %v6787_v39 = vpack.i.bf16 %v11190_v13, %v11187_v1  ;;  %v11225_v6 = vsel %vm3111_vm4, %v11087_v60, %v3054_v63  ;;  %v11236_v13 = vsel %vm11193_vm6, 1.0, %v13760_v59 }
 0x789   : > { %13861 = vst [vmem:[#allocation123_spill] sm:$0xff] %v11225_v6  ;;  %6773 = vrot.lane.b32.xlu1 %v6772_v45, %s7450_s11  ;;  %v3601_v59 = vsub.f32 0.5, %v11225_v6  ;;  %v6792_v54 = vpack.i.bf16 %v11239_v26, %v11236_v13 }
 0x78a   : > { %v11143_v11 = vpop.permute.xlu0 %6678 }
 0x78b   : > { %v3086_v35 = vpop.permute.xlu1 %3085  ;;  %v6681_v1 = vunpack.i.h.bf16 %v11143_v11 }
 0x78c   : > { %v11229_v17 = vsel %vm3111_vm4, %v3054_v63, %v3086_v35  ;;  %v6680_v63 = vunpack.i.l.bf16 %v11143_v11  ;;  %6788 = vrot.lane.b32.xlu0 %v6787_v39, %s7450_s11  ;;  %v11257_v11 = vsel %vm3111_vm4, %v3086_v35, %v11087_v60  ;;  %v3599_v60 = vsub.f32 0.5, %v11250_v34  ;;  %v13870_v34 = vld [vmem:[#allocation37_spill] sm:$0xff] }
 0x78d   : > { %13862 = vst [vmem:[#allocation124_spill] sm:$0xff] %v11229_v17  ;;  %v3602_v45 = vsub.f32 0.5, %v11229_v17  ;;  %13864 = vst [vmem:[#allocation126_spill] sm:$0xff] %v11257_v11  ;;  %6783 = vrot.lane.b32.xlu1 %v6782_v33, %s7450_s11 }
 0x78e   : > { %v6689_v43 = vpop.permute.xlu0 %6688 }
 0x78f   : > { %v6691_v44 = vunpack.i.h.bf16 %v6689_v43  ;;  %v6690_v15 = vunpack.i.l.bf16 %v6689_v43  ;;  %v6684_v9 = vpop.permute.xlu1 %6683  ;;  %v3598_v43 = vsub.f32 0.5, %v11220_v58 }
 0x790   : > { %v6686_v7 = vunpack.i.h.bf16 %v6684_v9  ;;  %v6685_v50 = vunpack.i.l.bf16 %v6684_v9 }
 0x791   : > { %v3531_v35 = vsel %vm3111_vm4, %v6691_v44, %v6681_v1  ;;  %v3530_v33 = vsel %vm3111_vm4, %v6690_v15, %v6680_v63  ;;  %6793 = vrot.lane.b32.xlu1 %v6792_v54, %s7450_s11 }
 0x792   : > { %v3499_v9 = vsel %vm3111_vm4, %v6686_v7, %v6691_v44  ;;  %v3515_v39 = vsel %vm3111_vm4, %v6681_v1, %v6686_v7  ;;  %v3514_v58 = vsel %vm3111_vm4, %v6680_v63, %v6685_v50  ;;  %v3498_v6 = vsel %vm3111_vm4, %v6685_v50, %v6690_v15 }
 0x793   : > { %v3649_v56 = vmul.f32 %v3601_v59, %v3515_v39  ;;  %v3650_v25 = vmul.f32 %v3602_v45, %v3499_v9  ;;  %v3646_v17 = vmul.f32 %v3598_v43, %v3514_v58  ;;  %v11277_v59 = vsel %vm3111_vm4, %v11005_v62, %v10903_v30  ;;  %v6699_v45 = vpop.permute.xlu0 %6698  ;;  %v13867_v39 = vld [vmem:[#allocation61_spill] sm:$0xff]  ;;  %v13869_v62 = vld [vmem:[#allocation31_spill] sm:$0xff] }
 0x794   : > { %13865 = vst [vmem:[#allocation127_spill] sm:$0xff] %v11277_v59  ;;  %v3603_v7 = vsub.f32 0.5, %v11257_v11  ;;  %v3647_v43 = vmul.f32 %v3599_v60, %v3498_v6  ;;  %v3555_v30 = vmul.f32 %v13868_v61, %v13867_v39  ;;  %v3551_v11 = vmul.f32 %v13870_v34, %v13869_v62 }
 0x795   : > { %v3697_v50 = vadd.f32 %v3649_v56, %v3553_v2  ;;  %v3694_v58 = vadd.f32 %v3646_v17, %v3550_v18  ;;  %v3698_v44 = vadd.f32 %v3650_v25, %v3554_v29  ;;  %v3600_v2 = vsub.f32 0.5, %v11277_v59  ;;  %v13874_v25 = vld [vmem:[#allocation54_spill] sm:$0xff]  ;;  %v6694_v56 = vpop.permute.xlu1 %6693 }
 0x796   : > { %v3651_v9 = vmul.f32 %v3603_v7, %v3531_v35  ;;  %v11298_v15 = vsel %vm3111_vm4, %v10985_v5, %v11034_v31  ;;  %v11304_v61 = vsel %vm3111_vm4, %v11040_v14, %v11065_v36  ;;  %v6701_v18 = vunpack.i.h.bf16 %v6699_v45  ;;  %v13875_v17 = vld [vmem:[#allocation66_spill] sm:$0xff] }
 0x797   : > { %v11284_v1 = vmul.f32 2.0, %v3697_v50  ;;  %v11292_v6 = vmul.f32 2.0, %v3694_v58  ;;  %13872 = vst [vmem:[#allocation41_spill] sm:$0xff] %v11298_v15  ;;  %13873 = vst [vmem:[#allocation37_spill] sm:$0xff] %v11304_v61  ;;  %v6700_v29 = vunpack.i.l.bf16 %v6699_v45  ;;  %v3552_v63 = vmul.f32 %v13875_v17, %v13874_v25  ;;  %v11310_v60 = vpop.permute.xlu0 %3027  ;;  %v13907_v25 = vld [vmem:[#allocation62_spill] sm:$0xff] }
 0x798   : > { %v3648_v34 = vmul.f32 %v3600_v2, %v3530_v33  ;;  %v3695_v35 = vadd.f32 %v3647_v43, %v3551_v11  ;;  %v6696_v7 = vunpack.i.h.bf16 %v6694_v56  ;;  %v6695_v50 = vunpack.i.l.bf16 %v6694_v56 }
 0x799   : > { %13866 = vst [vmem:[#allocation128_spill] sm:$0xff] %v11284_v1  ;;  %13871 = vst [vmem:[#allocation61_spill] sm:$0xff] %v11292_v6  ;;  %3790 = vrot.lane.b32.xlu0 %v11284_v1, %s7450_s11  ;;  %v11312_v58 = vmul.f32 2.0, %v3698_v44  ;;  %v3699_v54 = vadd.f32 %v3651_v9, %v3555_v30  ;;  %v3547_v62 = vmul.f32 %v10483_v48, %v10340_v52  ;;  %v3592_v45 = vsub.f32 0.5, %v11298_v15  ;;  %v6704_v30 = vpop.permute.xlu1 %6703 }
 0x79a   : > { %v11321_v17 = vsel %vm3111_vm4, %v11034_v31, %v11054_v3  ;;  %v3595_v33 = vsub.f32 0.5, %v11304_v61  ;;  %3788 = vrot.lane.b32.xlu1 %v11292_v6, %s7450_s11  ;;  %v11330_v11 = vsel %vm3111_vm4, %v11065_v36, %v11098_v49  ;;  %v11336_v48 = vsel %vm3111_vm4, %v11098_v49, %v11040_v14 }
 0x79b   : > { %13876 = vst [vmem:[#allocation66_spill] sm:$0xff] %v11312_v58  ;;  %13877 = vst [vmem:[#allocation129_spill] sm:$0xff] %v11321_v17  ;;  %v3513_v31 = vsel %vm3111_vm4, %v6696_v7, %v6701_v18  ;;  %v3512_v43 = vsel %vm3111_vm4, %v6695_v50, %v6700_v29  ;;  %v3060_v36 = vpop.permute.xlu0 %3059  ;;  %v11344_v2 = vmul.f32 2.0, %v3695_v35  ;;  %v3696_v56 = vadd.f32 %v3648_v34, %v3552_v63 }
 0x79c   : > { %13878 = vst [vmem:[#allocation130_spill] sm:$0xff] %v11330_v11  ;;  %13879 = vst [vmem:[#allocation131_spill] sm:$0xff] %v11336_v48  ;;  %v3643_v9 = vmul.f32 %v3595_v33, %v3513_v31  ;;  %v3640_v44 = vmul.f32 %v3592_v45, %v3512_v43  ;;  %v3544_v14 = vmul.f32 %v10479_v28, %v10318_v22  ;;  %v6706_v49 = vunpack.i.h.bf16 %v6704_v30 }
 0x79d   : > { %3822 = vrot.lane.b32.xlu0 %v11312_v58, %s7450_s11  ;;  %13880 = vst [vmem:[#allocation132_spill] sm:$0xff] %v11344_v2  ;;  %v6705_v15 = vunpack.i.l.bf16 %v6704_v30  ;;  %v11348_v52 = vmul.f32 2.0, %v3699_v54  ;;  %v11354_v61 = vsel %vm3111_vm4, %v11054_v3, %v10985_v5  ;;  %v3593_v45 = vsub.f32 0.5, %v11321_v17  ;;  %v11369_v31 = vpop.permute.xlu1 %3023  ;;  %v13883_v30 = vld [vmem:[#allocation84_spill] sm:$0xff]  ;;  %v13884_v17 = vld [vmem:[#allocation63_spill] sm:$0xff] }
 0x79e   : > { %13881 = vst [vmem:[#allocation133_spill] sm:$0xff] %v11354_v61  ;;  %v3596_v33 = vsub.f32 0.5, %v11330_v11  ;;  %3820 = vrot.lane.b32.xlu1 %v11344_v2, %s7450_s11  ;;  %v3691_v63 = vadd.f32 %v3643_v9, %v3547_v62  ;;  %v3597_v28 = vsub.f32 0.5, %v11336_v48  ;;  %v3497_v34 = vsel %vm3111_vm4, %v6701_v18, %v6706_v49 }
 0x79f   : > { %v3496_v35 = vsel %vm3111_vm4, %v6700_v29, %v6705_v15  ;;  %v3529_v5 = vsel %vm3111_vm4, %v6706_v49, %v6696_v7  ;;  %v3092_v43 = vpop.permute.xlu0 %3091  ;;  %v11371_v62 = vmul.f32 2.0, %v3696_v56  ;;  %v3688_v9 = vadd.f32 %v3640_v44, %v3544_v14  ;;  %v13886_v7 = vld [vmem:[#allocation26_spill] sm:$0xff]  ;;  %v13887_v49 = vld [vmem:[#allocation59_spill] sm:$0xff]  ;;  %v13888_v56 = vld [vmem:[#allocation33_spill] sm:$0xff] }
 0x7a0   : > { %v3644_v3 = vmul.f32 %v3596_v33, %v3497_v34  ;;  %v3641_v54 = vmul.f32 %v3593_v45, %v3496_v35  ;;  %v3548_v18 = vmul.f32 %v13884_v17, %v13883_v30  ;;  %v3528_v29 = vsel %vm3111_vm4, %v6705_v15, %v6695_v50  ;;  %v13889_v33 = vld [vmem:[#allocation65_spill] sm:$0xff] }
 0x7a1   : > { %3854 = vrot.lane.b32.xlu0 %v11348_v52, %s7450_s11  ;;  %13882 = vst [vmem:[#allocation134_spill] sm:$0xff] %v11371_v62  ;;  %v3645_v22 = vmul.f32 %v3597_v28, %v3529_v5  ;;  %v11377_v48 = vmul.f32 2.0, %v3691_v63  ;;  %v3545_v11 = vmul.f32 %v13887_v49, %v13886_v7  ;;  %v3594_v45 = vsub.f32 0.5, %v11354_v61  ;;  %v11388_v15 = vpop.permute.xlu1 %3055  ;;  %v13892_v5 = vld [vmem:[#allocation58_spill] sm:$0xff]  ;;  %v13893_v49 = vld [vmem:[#allocation67_spill] sm:$0xff] }
 0x7a2   : > { %3852 = vrot.lane.b32.xlu1 %v11371_v62, %s7450_s11  ;;  %v3549_v44 = vmul.f32 %v13889_v33, %v13888_v56  ;;  %v3692_v17 = vadd.f32 %v3644_v3, %v3548_v18  ;;  %v11392_v63 = vmul.f32 2.0, %v3688_v9  ;;  %v3546_v7 = vmul.f32 %v13893_v49, %v13892_v5  ;;  %v13901_v5 = vld [vmem:[#allocation57_spill] sm:$0xff]  ;;  %v13905_v56 = vld [vmem:[#allocation38_spill] sm:$0xff] }
 0x7a3   : > { %13885 = vst [vmem:[#allocation63_spill] sm:$0xff] %v11377_v48  ;;  %v3642_v14 = vmul.f32 %v3594_v45, %v3528_v29  ;;  %v11390_v50 = vpop.permute.xlu0 %3025  ;;  %v3689_v28 = vadd.f32 %v3641_v54, %v3545_v11  ;;  %v11431_v49 = vsel %vm3111_vm4, %v3060_v36, %v3092_v43 }
 0x7a4   : > { %13890 = vst [vmem:[#allocation59_spill] sm:$0xff] %v11392_v63  ;;  %v11394_v34 = vmul.f32 2.0, %v3692_v17  ;;  %v3693_v35 = vadd.f32 %v3645_v22, %v3549_v44  ;;  %13898 = vst [vmem:[#allocation138_spill] sm:$0xff] %v11431_v49 }
 0x7a5   : > { %3786 = vrot.lane.b32.xlu0 %v11377_v48, %s7450_s11  ;;  %v11402_v3 = vpop.permute.xlu1 %3087  ;;  %v11406_v29 = vmul.f32 2.0, %v3689_v28  ;;  %v3690_v9 = vadd.f32 %v3642_v14, %v3546_v7  ;;  %v11423_v7 = vsel %vm3111_vm4, %v11310_v60, %v3060_v36  ;;  %v3565_v28 = vmul.f32 %v10594_v57, %v10536_v20 }
 0x7a6   : > { %13891 = vst [vmem:[#allocation65_spill] sm:$0xff] %v11394_v34  ;;  %3784 = vrot.lane.b32.xlu1 %v11392_v63, %s7450_s11  ;;  %v11408_v11 = vmul.f32 2.0, %v3693_v35  ;;  %13897 = vst [vmem:[#allocation137_spill] sm:$0xff] %v11423_v7  ;;  %v3562_v35 = vmul.f32 %v10591_v32, %v10489_v10  ;;  %v13904_v32 = vld [vmem:[#allocation46_spill] sm:$0xff]  ;;  %v3566_v36 = vmul.f32 %v10664_v16, %v13905_v56 }
 0x7a7   : > { %v11404_v18 = vpop.permute.xlu0 %3057  ;;  %13894 = vst [vmem:[#allocation67_spill] sm:$0xff] %v11406_v29  ;;  %v11416_v45 = vmul.f32 2.0, %v3690_v9  ;;  %v11436_v9 = vsel %vm3111_vm4, %v3092_v43, %v11310_v60  ;;  %v3611_v43 = vsub.f32 0.5, %v11431_v49 }
 0x7a8   : > { %13895 = vst [vmem:[#allocation135_spill] sm:$0xff] %v11408_v11  ;;  %13899 = vst [vmem:[#allocation139_spill] sm:$0xff] %v11436_v9 }
 0x7a9   : > { %3818 = vrot.lane.b32.xlu0 %v11394_v34, %s7450_s11  ;;  %v3030_v22 = vpop.permute.xlu1 %3029  ;;  %13896 = vst [vmem:[#allocation136_spill] sm:$0xff] %v11416_v45  ;;  %v3610_v34 = vsub.f32 0.5, %v11423_v7 }
 0x7aa   : > { %3816 = vrot.lane.b32.xlu1 %v11406_v29, %s7450_s11 }
 0x7ab   : > { %v11414_v54 = vpop.permute.xlu0 %3089 }
 0x7ad   : > { %3850 = vrot.lane.b32.xlu0 %v11408_v11, %s7450_s11  ;;  %v3062_v33 = vpop.permute.xlu1 %3061  ;;  %v13903_v11 = vld [vmem:[#allocation68_spill] sm:$0xff] }
 0x7ae   : > { %3848 = vrot.lane.b32.xlu1 %v11416_v45, %s7450_s11  ;;  %v13900_v45 = vld [vmem:[#allocation72_spill] sm:$0xff]  ;;  %v11442_v61 = vsel %vm3111_vm4, %v3030_v22, %v3062_v33  ;;  %v3567_v10 = vmul.f32 %v13904_v32, %v13903_v11 }
 0x7af   : > { %v6709_v44 = vpop.permute.xlu0 %6708  ;;  %v3564_v29 = vmul.f32 %v13901_v5, %v13900_v45  ;;  %13902 = vst [vmem:[#allocation57_spill] sm:$0xff] %v11442_v61  ;;  %v3612_v5 = vsub.f32 0.5, %v11436_v9  ;;  %v3613_v48 = vsub.f32 0.5, %v11442_v61 }
 0x7b0   : > { %v6711_v45 = vunpack.i.h.bf16 %v6709_v44  ;;  %v6710_v30 = vunpack.i.l.bf16 %v6709_v44 }
 0x7b1   : > { %v3094_v17 = vpop.permute.xlu1 %3093 }
 0x7b2   : > { %v11451_v60 = vsel %vm3111_vm4, %v3062_v33, %v3094_v17  ;;  %v11458_v32 = vsel %vm3111_vm4, %v3094_v17, %v3030_v22 }
 0x7b3   : > { %v6719_v14 = vpop.permute.xlu0 %6718  ;;  %13906 = vst [vmem:[#allocation46_spill] sm:$0xff] %v11451_v60  ;;  %v3614_v11 = vsub.f32 0.5, %v11451_v60  ;;  %v3615_v6 = vsub.f32 0.5, %v11458_v32 }
 0x7b4   : > { %v6721_v57 = vunpack.i.h.bf16 %v6719_v14  ;;  %v6720_v20 = vunpack.i.l.bf16 %v6719_v14 }
 0x7b5   : > { %v6714_v63 = vpop.permute.xlu1 %6713 }
 0x7b6   : > { %v6716_v16 = vunpack.i.h.bf16 %v6714_v63  ;;  %v6715_v56 = vunpack.i.l.bf16 %v6714_v63  ;;  %v3534_v33 = vsel %vm3111_vm4, %v6720_v20, %v6710_v30  ;;  %v3535_v9 = vsel %vm3111_vm4, %v6721_v57, %v6711_v45 }
 0x7b7   : > { %v6729_v14 = vpop.permute.xlu0 %6728 }
 0x7b8   : > { %v6731_v49 = vunpack.i.h.bf16 %v6729_v14  ;;  %v3503_v44 = vsel %vm3111_vm4, %v6716_v16, %v6721_v57  ;;  %v3519_v61 = vsel %vm3111_vm4, %v6711_v45, %v6716_v16  ;;  %v3502_v22 = vsel %vm3111_vm4, %v6715_v56, %v6720_v20  ;;  %v13908_v45 = vld [vmem:[#allocation64_spill] sm:$0xff] }
 0x7b9   : > { %v3518_v63 = vsel %vm3111_vm4, %v6710_v30, %v6715_v56  ;;  %v3661_v17 = vmul.f32 %v3613_v48, %v3519_v61  ;;  %v3662_v60 = vmul.f32 %v3614_v11, %v3503_v44  ;;  %v3659_v2 = vmul.f32 %v3611_v43, %v3502_v22  ;;  %v6724_v59 = vpop.permute.xlu1 %6723 }
 0x7ba   : > { %v3658_v7 = vmul.f32 %v3610_v34, %v3518_v63  ;;  %v6730_v1 = vunpack.i.l.bf16 %v6729_v14  ;;  %v6726_v57 = vunpack.i.h.bf16 %v6724_v59  ;;  %v6725_v62 = vunpack.i.l.bf16 %v6724_v59 }
 0x7bb   : > { %v11473_v58 = vpop.permute.xlu0 %3035  ;;  %v3563_v16 = vmul.f32 %v13908_v45, %v13907_v25  ;;  %v11482_v20 = vsel %vm3111_vm4, %v11390_v50, %v11404_v18  ;;  %v3709_v61 = vadd.f32 %v3661_v17, %v3565_v28  ;;  %v11488_v30 = vsel %vm3111_vm4, %v11369_v31, %v11388_v15 }
 0x7bc   : > { %13909 = vst [vmem:[#allocation64_spill] sm:$0xff] %v11482_v20  ;;  %v3706_v48 = vadd.f32 %v3658_v7, %v3562_v35  ;;  %13910 = vst [vmem:[#allocation140_spill] sm:$0xff] %v11488_v30  ;;  %v3660_v56 = vmul.f32 %v3612_v5, %v3534_v33  ;;  %v3663_v34 = vmul.f32 %v3615_v6, %v3535_v9  ;;  %v3607_v28 = vsub.f32 0.5, %v11482_v20  ;;  %v13916_v20 = vld [vmem:[#allocation71_spill] sm:$0xff] }
 0x7bd   : > { %v3710_v59 = vadd.f32 %v3662_v60, %v3566_v36  ;;  %v3517_v11 = vsel %vm3111_vm4, %v6726_v57, %v6731_v49  ;;  %v6734_v43 = vpop.permute.xlu1 %6733  ;;  %v11492_v14 = vmul.f32 2.0, %v3709_v61  ;;  %v3707_v7 = vadd.f32 %v3659_v2, %v3563_v16 }
 0x7be   : > { %v11494_v44 = vmul.f32 2.0, %v3706_v48  ;;  %v3516_v35 = vsel %vm3111_vm4, %v6725_v62, %v6730_v1  ;;  %v6736_v63 = vunpack.i.h.bf16 %v6734_v43  ;;  %v6735_v5 = vunpack.i.l.bf16 %v6734_v43  ;;  %v13915_v48 = vld [vmem:[#allocation55_spill] sm:$0xff] }
 0x7bf   : > { %v11496_v22 = vpop.permute.xlu0 %3067  ;;  %v3604_v6 = vsub.f32 0.5, %v11488_v30  ;;  %v11506_v9 = vsel %vm3111_vm4, %v11388_v15, %v11402_v3  ;;  %3798 = vrot.lane.b32.xlu0 %v11492_v14, %s7450_s11  ;;  %v11516_v2 = vsel %vm3111_vm4, %v11404_v18, %v11414_v54  ;;  %v3655_v36 = vmul.f32 %v3607_v28, %v3517_v11 }
 0x7c0   : > { %13911 = vst [vmem:[#allocation141_spill] sm:$0xff] %v11506_v9  ;;  %3796 = vrot.lane.b32.xlu1 %v11494_v44, %s7450_s11  ;;  %13912 = vst [vmem:[#allocation142_spill] sm:$0xff] %v11516_v2  ;;  %v3711_v60 = vadd.f32 %v3663_v34, %v3567_v10  ;;  %v3708_v33 = vadd.f32 %v3660_v56, %v3564_v29  ;;  %v11520_v15 = vmul.f32 2.0, %v3710_v59  ;;  %v11522_v16 = vmul.f32 2.0, %v3707_v7 }
 0x7c1   : > { %v3652_v17 = vmul.f32 %v3604_v6, %v3516_v35  ;;  %v11518_v45 = vpop.permute.xlu1 %3031  ;;  %v3559_v43 = vmul.f32 %v10711_v38, %v13915_v48  ;;  %v3556_v30 = vmul.f32 %v10708_v27, %v13916_v20  ;;  %v3501_v18 = vsel %vm3111_vm4, %v6731_v49, %v6736_v63 }
 0x7c2   : > { %13913 = vst [vmem:[#allocation143_spill] sm:$0xff] %v11520_v15  ;;  %13914 = vst [vmem:[#allocation144_spill] sm:$0xff] %v11522_v16  ;;  %v3500_v10 = vsel %vm3111_vm4, %v6730_v1, %v6735_v5  ;;  %v11538_v29 = vsel %vm3111_vm4, %v11402_v3, %v11369_v31  ;;  %v3605_v56 = vsub.f32 0.5, %v11506_v9  ;;  %v11545_v38 = vsel %vm3111_vm4, %v11414_v54, %v11390_v50 }
 0x7c3   : > { %v11524_v61 = vpop.permute.xlu0 %3099  ;;  %13917 = vst [vmem:[#allocation145_spill] sm:$0xff] %v11538_v29  ;;  %13918 = vst [vmem:[#allocation146_spill] sm:$0xff] %v11545_v38  ;;  %v3608_v27 = vsub.f32 0.5, %v11516_v2  ;;  %3830 = vrot.lane.b32.xlu0 %v11520_v15, %s7450_s11  ;;  %v3532_v1 = vsel %vm3111_vm4, %v6735_v5, %v6725_v62  ;;  %v11554_v31 = vmul.f32 2.0, %v3711_v60  ;;  %v11556_v3 = vmul.f32 2.0, %v3708_v33  ;;  %v13919_v62 = vld [vmem:[#allocation40_spill] sm:$0xff] }
 0x7c4   : > { %3828 = vrot.lane.b32.xlu1 %v11522_v16, %s7450_s11  ;;  %v3703_v49 = vadd.f32 %v3655_v36, %v3559_v43  ;;  %v3533_v50 = vsel %vm3111_vm4, %v6736_v63, %v6726_v57  ;;  %v3653_v54 = vmul.f32 %v3605_v56, %v3500_v10  ;;  %v3700_v7 = vadd.f32 %v3652_v17, %v3556_v30  ;;  %v13920_v5 = vld [vmem:[#allocation25_spill] sm:$0xff]  ;;  %v13921_v60 = vld [vmem:[#allocation30_spill] sm:$0xff]  ;;  %v13922_v33 = vld [vmem:[#allocation36_spill] sm:$0xff] }
 0x7c5   : > { %v3656_v34 = vmul.f32 %v3608_v27, %v3501_v18  ;;  %v11560_v59 = vpop.permute.xlu1 %3063  ;;  %v3606_v28 = vsub.f32 0.5, %v11538_v29  ;;  %v3609_v35 = vsub.f32 0.5, %v11545_v38  ;;  %v3560_v6 = vmul.f32 %v13920_v5, %v13919_v62  ;;  %v13925_v27 = vld [vmem:[#allocation73_spill] sm:$0xff]  ;;  %v13926_v5 = vld [vmem:[#allocation48_spill] sm:$0xff]  ;;  %v13928_v62 = vld [vmem:[#allocation39_spill] sm:$0xff] }
 0x7c6   : > { %v3557_v36 = vmul.f32 %v13922_v33, %v13921_v60  ;;  %v11576_v30 = vmul.f32 2.0, %v3703_v49  ;;  %v11578_v17 = vmul.f32 2.0, %v3700_v7  ;;  %v3561_v33 = vmul.f32 %v13926_v5, %v13925_v27  ;;  %v13927_v60 = vld [vmem:[#allocation27_spill] sm:$0xff]  ;;  %v13935_v5 = vld [vmem:[#allocation86_spill] sm:$0xff]  ;;  %v13944_v27 = vld [vmem:[#allocation85_spill] sm:$0xff] }
 0x7c7   : > { %v11562_v11 = vpop.permute.xlu0 %3033  ;;  %3862 = vrot.lane.b32.xlu0 %v11554_v31, %s7450_s11  ;;  %v3654_v57 = vmul.f32 %v3606_v28, %v3532_v1  ;;  %v3657_v63 = vmul.f32 %v3609_v35, %v3533_v50  ;;  %v3704_v10 = vadd.f32 %v3656_v34, %v3560_v6  ;;  %v3558_v38 = vmul.f32 %v13928_v62, %v13927_v60 }
 0x7c8   : > { %3860 = vrot.lane.b32.xlu1 %v11556_v3, %s7450_s11  ;;  %13923 = vst [vmem:[#allocation25_spill] sm:$0xff] %v11576_v30  ;;  %13924 = vst [vmem:[#allocation36_spill] sm:$0xff] %v11578_v17  ;;  %v3701_v56 = vadd.f32 %v3653_v54, %v3557_v36  ;;  %v11614_v36 = vsel %vm3111_vm4, %v11473_v58, %v11496_v22 }
 0x7c9   : > { %v11574_v43 = vpop.permute.xlu1 %3095  ;;  %v11590_v49 = vmul.f32 2.0, %v3704_v10  ;;  %v3705_v34 = vadd.f32 %v3657_v63, %v3561_v33  ;;  %v3702_v54 = vadd.f32 %v3654_v57, %v3558_v38  ;;  %v3574_v38 = vmul.f32 %v10841_v46, %v10733_v23  ;;  %13933 = vst [vmem:[#allocation149_spill] sm:$0xff] %v11614_v36  ;;  %v13934_v10 = vld [vmem:[#allocation96_spill] sm:$0xff]  ;;  %v13936_v33 = vld [vmem:[#allocation97_spill] sm:$0xff]  ;;  %v13939_v23 = vld [vmem:[#allocation91_spill] sm:$0xff] }
 0x7ca   : > { %v11592_v50 = vmul.f32 2.0, %v3701_v56  ;;  %v3577_v56 = vmul.f32 %v13934_v10, %v10786_v41  ;;  %v11626_v46 = vsel %vm3111_vm4, %v11496_v22, %v11524_v61  ;;  %v3622_v2 = vsub.f32 0.5, %v11614_v36 }
 0x7cb   : > { %v11580_v18 = vpop.permute.xlu0 %3065  ;;  %3794 = vrot.lane.b32.xlu0 %v11576_v30, %s7450_s11  ;;  %13929 = vst [vmem:[#allocation48_spill] sm:$0xff] %v11590_v49  ;;  %v11600_v35 = vmul.f32 2.0, %v3705_v34  ;;  %v11602_v62 = vmul.f32 2.0, %v3702_v54  ;;  %v11620_v34 = vmul.f32 %v13936_v33, %v13935_v5  ;;  %13937 = vst [vmem:[#allocation96_spill] sm:$0xff] %v11626_v46  ;;  %v13942_v5 = vld [vmem:[#allocation94_spill] sm:$0xff] }
 0x7cc   : > { %3792 = vrot.lane.b32.xlu1 %v11578_v17, %s7450_s11  ;;  %13930 = vst [vmem:[#allocation39_spill] sm:$0xff] %v11592_v50  ;;  %v11647_v17 = vsel %vm3111_vm4, %v11524_v61, %v11473_v58 }
 0x7cd   : > { %v3038_v1 = vpop.permute.xlu1 %3037  ;;  %13931 = vst [vmem:[#allocation147_spill] sm:$0xff] %v11600_v35  ;;  %13932 = vst [vmem:[#allocation148_spill] sm:$0xff] %v11602_v62 }
 0x7cf   : > { %v11594_v7 = vpop.permute.xlu0 %3097  ;;  %3826 = vrot.lane.b32.xlu0 %v11590_v49, %s7450_s11  ;;  %v13945_v49 = vld [vmem:[#allocation99_spill] sm:$0xff] }
 0x7d0   : > { %3824 = vrot.lane.b32.xlu1 %v11592_v50, %s7450_s11  ;;  %v13943_v50 = vld [vmem:[#allocation100_spill] sm:$0xff]  ;;  %v3575_v22 = vmul.f32 %v13945_v49, %v13944_v27 }
 0x7d1   : > { %v3070_v28 = vpop.permute.xlu1 %3069 }
 0x7d2   : > { %v11630_v54 = vsel %vm3111_vm4, %v3038_v1, %v3070_v28 }
 0x7d3   : > { %v6739_v6 = vpop.permute.xlu0 %6738  ;;  %3858 = vrot.lane.b32.xlu0 %v11600_v35, %s7450_s11  ;;  %13938 = vst [vmem:[#allocation97_spill] sm:$0xff] %v11630_v54  ;;  %v3578_v35 = vmul.f32 %v13943_v50, %v13942_v5 }
 0x7d4   : > { %3856 = vrot.lane.b32.xlu1 %v11602_v62, %s7450_s11  ;;  %v13940_v62 = vld [vmem:[#allocation98_spill] sm:$0xff] }
 0x7d5   : > { %v3102_v57 = vpop.permute.xlu1 %3101  ;;  %v3579_v60 = vmul.f32 %v13940_v62, %v13939_v23  ;;  %v3623_v62 = vsub.f32 0.5, %v11626_v46  ;;  %v6741_v23 = vunpack.i.h.bf16 %v6739_v6 }
 0x7d6   : > { %v11636_v10 = vsel %vm3111_vm4, %v3070_v28, %v3102_v57  ;;  %v3625_v28 = vsub.f32 0.5, %v11630_v54  ;;  %v11653_v50 = vsel %vm3111_vm4, %v3102_v57, %v3038_v1 }
 0x7d7   : > { %v6749_v63 = vpop.permute.xlu0 %6748  ;;  %13941 = vst [vmem:[#allocation98_spill] sm:$0xff] %v11636_v10  ;;  %13946 = vst [vmem:[#allocation100_spill] sm:$0xff] %v11653_v50  ;;  %v3626_v49 = vsub.f32 0.5, %v11636_v10 }
 0x7d8   : > { %v6751_v41 = vunpack.i.h.bf16 %v6749_v63  ;;  %v6750_v33 = vunpack.i.l.bf16 %v6749_v63  ;;  %v6740_v63 = vunpack.i.l.bf16 %v6739_v6 }
 0x7d9   : > { %v6744_v20 = vpop.permute.xlu1 %6743 }
 0x7da   : > { %v6746_v27 = vunpack.i.h.bf16 %v6744_v20  ;;  %v6745_v5 = vunpack.i.l.bf16 %v6744_v20  ;;  %v3538_v58 = vsel %vm3111_vm4, %v6750_v33, %v6740_v63  ;;  %v3539_v61 = vsel %vm3111_vm4, %v6751_v41, %v6741_v23 }
 0x7db   : > { %v6759_v30 = vpop.permute.xlu0 %6758 }
 0x7dc   : > { %v6761_v46 = vunpack.i.h.bf16 %v6759_v30  ;;  %v6760_v54 = vunpack.i.l.bf16 %v6759_v30  ;;  %v3507_v6 = vsel %vm3111_vm4, %v6746_v27, %v6751_v41  ;;  %v3523_v36 = vsel %vm3111_vm4, %v6741_v23, %v6746_v27 }
 0x7dd   : > { %v3506_v1 = vsel %vm3111_vm4, %v6745_v5, %v6750_v33  ;;  %v3522_v20 = vsel %vm3111_vm4, %v6740_v63, %v6745_v5  ;;  %v3673_v57 = vmul.f32 %v3625_v28, %v3523_v36  ;;  %v3674_v10 = vmul.f32 %v3626_v49, %v3507_v6  ;;  %v6754_v9 = vpop.permute.xlu1 %6753 }
 0x7de   : > { %v3670_v48 = vmul.f32 %v3622_v2, %v3522_v20  ;;  %v3671_v29 = vmul.f32 %v3623_v62, %v3506_v1  ;;  %v3624_v30 = vsub.f32 0.5, %v11647_v17  ;;  %v3627_v41 = vsub.f32 0.5, %v11653_v50 }
 0x7df   : > { %v11668_v16 = vpop.permute.xlu0 %3043  ;;  %v6756_v25 = vunpack.i.h.bf16 %v6754_v9  ;;  %v6755_v15 = vunpack.i.l.bf16 %v6754_v9  ;;  %v11676_v23 = vsel %vm3111_vm4, %v11518_v45, %v11560_v59  ;;  %v11682_v2 = vsel %vm3111_vm4, %v11562_v11, %v11580_v18 }
 0x7e0   : > { %13947 = vst [vmem:[#allocation99_spill] sm:$0xff] %v11676_v23  ;;  %13948 = vst [vmem:[#allocation150_spill] sm:$0xff] %v11682_v2  ;;  %v3721_v27 = vadd.f32 %v3673_v57, %v3577_v56  ;;  %v3718_v36 = vadd.f32 %v3670_v48, %v3574_v38  ;;  %v3672_v5 = vmul.f32 %v3624_v30, %v3538_v58  ;;  %v3616_v56 = vsub.f32 0.5, %v11676_v23  ;;  %v13955_v23 = vld [vmem:[#allocation87_spill] sm:$0xff] }
 0x7e1   : > { %v3675_v33 = vmul.f32 %v3627_v41, %v3539_v61  ;;  %v3722_v62 = vadd.f32 %v3674_v10, %v3578_v35  ;;  %v3719_v28 = vadd.f32 %v3671_v29, %v3575_v22  ;;  %v3521_v9 = vsel %vm3111_vm4, %v6756_v25, %v6761_v46  ;;  %v6764_v49 = vpop.permute.xlu1 %6763 }
 0x7e2   : > { %v3520_v63 = vsel %vm3111_vm4, %v6755_v15, %v6760_v54  ;;  %v11688_v6 = vmul.f32 2.0, %v3721_v27  ;;  %v11690_v1 = vmul.f32 2.0, %v3718_v36  ;;  %v3619_v48 = vsub.f32 0.5, %v11682_v2  ;;  %v13954_v36 = vld [vmem:[#allocation104_spill] sm:$0xff]  ;;  %v13956_v2 = vld [vmem:[#allocation103_spill] sm:$0xff] }
 0x7e3   : > { %v11692_v20 = vpop.permute.xlu0 %3075  ;;  %v6766_v38 = vunpack.i.h.bf16 %v6764_v49  ;;  %v6765_v35 = vunpack.i.l.bf16 %v6764_v49  ;;  %v11700_v29 = vsel %vm3111_vm4, %v11560_v59, %v11574_v43  ;;  %v11706_v10 = vsel %vm3111_vm4, %v11580_v18, %v11594_v7  ;;  %v13953_v18 = vld [vmem:[#allocation90_spill] sm:$0xff] }
 0x7e4   : > { %13949 = vst [vmem:[#allocation151_spill] sm:$0xff] %v11700_v29  ;;  %13950 = vst [vmem:[#allocation152_spill] sm:$0xff] %v11706_v10  ;;  %3806 = vrot.lane.b32.xlu0 %v11688_v6, %s7450_s11  ;;  %3804 = vrot.lane.b32.xlu1 %v11690_v1, %s7450_s11  ;;  %v3667_v22 = vmul.f32 %v3619_v48, %v3521_v9  ;;  %v3664_v58 = vmul.f32 %v3616_v56, %v3520_v63  ;;  %v11715_v59 = vmul.f32 2.0, %v3722_v62 }
 0x7e5   : > { %v3723_v61 = vadd.f32 %v3675_v33, %v3579_v60  ;;  %v3720_v57 = vadd.f32 %v3672_v5, %v11620_v34  ;;  %v11713_v30 = vpop.permute.xlu1 %3039  ;;  %v11717_v41 = vmul.f32 2.0, %v3719_v28  ;;  %v3571_v49 = vmul.f32 %v13954_v36, %v13953_v18  ;;  %v13961_v36 = vld [vmem:[#allocation102_spill] sm:$0xff] }
 0x7e6   : > { %13951 = vst [vmem:[#allocation153_spill] sm:$0xff] %v11715_v59  ;;  %v3568_v50 = vmul.f32 %v13956_v2, %v13955_v23  ;;  %v3505_v9 = vsel %vm3111_vm4, %v6761_v46, %v6766_v38  ;;  %v3504_v60 = vsel %vm3111_vm4, %v6760_v54, %v6765_v35  ;;  %v11733_v34 = vsel %vm3111_vm4, %v11574_v43, %v11518_v45 }
 0x7e7   : > { %13952 = vst [vmem:[#allocation154_spill] sm:$0xff] %v11717_v41  ;;  %v11719_v27 = vpop.permute.xlu0 %3107  ;;  %13957 = vst [vmem:[#allocation104_spill] sm:$0xff] %v11733_v34  ;;  %v3617_v5 = vsub.f32 0.5, %v11700_v29  ;;  %v11740_v33 = vsel %vm3111_vm4, %v11594_v7, %v11562_v11  ;;  %v3620_v2 = vsub.f32 0.5, %v11706_v10  ;;  %v11747_v46 = vmul.f32 2.0, %v3723_v61 }
 0x7e8   : > { %13958 = vst [vmem:[#allocation103_spill] sm:$0xff] %v11740_v33  ;;  %3838 = vrot.lane.b32.xlu0 %v11715_v59, %s7450_s11  ;;  %3836 = vrot.lane.b32.xlu1 %v11717_v41, %s7450_s11  ;;  %v11749_v45 = vmul.f32 2.0, %v3720_v57  ;;  %v3715_v43 = vadd.f32 %v3667_v22, %v3571_v49  ;;  %v3712_v54 = vadd.f32 %v3664_v58, %v3568_v50  ;;  %v3618_v48 = vsub.f32 0.5, %v11733_v34  ;;  %v13960_v57 = vld [vmem:[#allocation93_spill] sm:$0xff] }
 0x7e9   : > { %v3668_v62 = vmul.f32 %v3620_v2, %v3505_v9  ;;  %v3536_v28 = vsel %vm3111_vm4, %v6765_v35, %v6755_v15  ;;  %v3537_v11 = vsel %vm3111_vm4, %v6766_v38, %v6756_v25  ;;  %v3665_v7 = vmul.f32 %v3617_v5, %v3504_v60  ;;  %v11755_v63 = vpop.permute.xlu1 %3071  ;;  %v13962_v50 = vld [vmem:[#allocation89_spill] sm:$0xff] }
 0x7ea   : > { %13959 = vst [vmem:[#allocation155_spill] sm:$0xff] %v11749_v45  ;;  %v3621_v61 = vsub.f32 0.5, %v11740_v33  ;;  %v3572_v22 = vmul.f32 %v13961_v36, %v13960_v57  ;;  %v13963_v58 = vld [vmem:[#allocation101_spill] sm:$0xff]  ;;  %v3666_v25 = vmul.f32 %v3618_v48, %v3536_v28  ;;  %v11771_v35 = vmul.f32 2.0, %v3715_v43  ;;  %v13966_v36 = vld [vmem:[#allocation95_spill] sm:$0xff] }
 0x7eb   : > { %v11757_v56 = vpop.permute.xlu0 %3041  ;;  %v3569_v49 = vmul.f32 %v13963_v58, %v13962_v50  ;;  %v11773_v9 = vmul.f32 2.0, %v3712_v54  ;;  %v3573_v58 = vmul.f32 %v11023_v37, %v13966_v36  ;;  %v13967_v50 = vld [vmem:[#allocation92_spill] sm:$0xff]  ;;  %v11879_v36 = vmul.f32 %v11348_v52, %v13867_v39 }
 0x7ec   : > { %3870 = vrot.lane.b32.xlu0 %v11747_v46, %s7450_s11  ;;  %3868 = vrot.lane.b32.xlu1 %v11749_v45, %s7450_s11  ;;  %v3669_v15 = vmul.f32 %v3621_v61, %v3537_v11  ;;  %13964 = vst [vmem:[#allocation102_spill] sm:$0xff] %v11771_v35  ;;  %v3716_v5 = vadd.f32 %v3668_v62, %v3572_v22 }
 0x7ed   : > { %v11769_v38 = vpop.permute.xlu1 %3103  ;;  %13965 = vst [vmem:[#allocation101_spill] sm:$0xff] %v11773_v9  ;;  %v3713_v2 = vadd.f32 %v3665_v7, %v3569_v49  ;;  %v3570_v10 = vmul.f32 %v11020_v40, %v13967_v50  ;;  %v3589_v22 = vmul.f32 %v11117_v4, %v11058_v51  ;;  %v3586_v49 = vmul.f32 %v11114_v0, %v11008_v55  ;;  %v13974_v4 = vld [vmem:[#allocation118_spill] sm:$0xff]  ;;  %v13975_v0 = vld [vmem:[#allocation115_spill] sm:$0xff]  ;;  %v13983_v51 = vld [vmem:[#allocation125_spill] sm:$0xff] }
 0x7ee   : > { %v11785_v28 = vmul.f32 2.0, %v3716_v5  ;;  %v3717_v62 = vadd.f32 %v3669_v15, %v3573_v58  ;;  %v3590_v15 = vmul.f32 %v11182_v53, %v11090_v24  ;;  %v13972_v5 = vld [vmem:[#allocation117_spill] sm:$0xff]  ;;  %v13973_v58 = vld [vmem:[#allocation110_spill] sm:$0xff]  ;;  %v13984_v50 = vld [vmem:[#allocation116_spill] sm:$0xff] }
 0x7ef   : > { %v11775_v60 = vpop.permute.xlu0 %3073  ;;  %v11787_v54 = vmul.f32 2.0, %v3713_v2  ;;  %v3714_v7 = vadd.f32 %v3666_v25, %v3570_v10  ;;  %v11805_v10 = vmul.f32 %v11153_v12, %v11078_v21  ;;  %v11809_v25 = vmul.f32 %v11150_v42, %v11047_v47  ;;  %v13976_v42 = vld [vmem:[#allocation119_spill] sm:$0xff]  ;;  %v13978_v53 = vld [vmem:[#allocation121_spill] sm:$0xff]  ;;  %v13982_v21 = vld [vmem:[#allocation122_spill] sm:$0xff] }
 0x7f0   : > { %3802 = vrot.lane.b32.xlu0 %v11771_v35, %s7450_s11  ;;  %3800 = vrot.lane.b32.xlu1 %v11773_v9, %s7450_s11  ;;  %13968 = vst [vmem:[#allocation156_spill] sm:$0xff] %v11785_v28  ;;  %v11795_v37 = vmul.f32 2.0, %v3717_v62  ;;  %v11815_v2 = vmul.f32 %v13972_v5, %v11032_v8  ;;  %v11819_v62 = vmul.f32 %v13974_v4, %v13973_v58  ;;  %v13979_v5 = vld [vmem:[#allocation108_spill] sm:$0xff]  ;;  %v13981_v4 = vld [vmem:[#allocation114_spill] sm:$0xff] }
 0x7f1   : > { %v3046_v43 = vpop.permute.xlu1 %3045  ;;  %13969 = vst [vmem:[#allocation157_spill] sm:$0xff] %v11787_v54  ;;  %v11797_v48 = vmul.f32 2.0, %v3714_v7  ;;  %v11827_v12 = vmul.f32 %v13976_v42, %v13975_v0  ;;  %v13977_v7 = vld [vmem:[#allocation111_spill] sm:$0xff]  ;;  %v13980_v8 = vld [vmem:[#allocation120_spill] sm:$0xff]  ;;  %v11839_v58 = vmul.f32 %v11236_v13, %v13981_v4  ;;  %v11845_v42 = vmul.f32 %v11239_v26, %v13984_v50  ;;  %v13990_v55 = vld [vmem:[#allocation126_spill] sm:$0xff] }
 0x7f2   : > { %13970 = vst [vmem:[#allocation158_spill] sm:$0xff] %v11795_v37  ;;  %v11831_v24 = vmul.f32 %v13978_v53, %v13977_v7  ;;  %v11835_v47 = vmul.f32 %v13980_v8, %v13979_v5  ;;  %v11851_v53 = vsel %vm3111_vm4, %v11668_v16, %v11692_v20  ;;  %v13986_v5 = vld [vmem:[#allocation123_spill] sm:$0xff]  ;;  %v13987_v13 = vld [vmem:[#allocation124_spill] sm:$0xff]  ;;  %v11865_v26 = vsel %vm3111_vm4, %v11719_v27, %v11668_v16  ;;  %v13993_v16 = vld [vmem:[#allocation54_spill] sm:$0xff] }
 0x7f3   : > { %v11789_v11 = vpop.permute.xlu0 %3105  ;;  %13971 = vst [vmem:[#allocation159_spill] sm:$0xff] %v11797_v48  ;;  %13985 = vst [vmem:[#allocation117_spill] sm:$0xff] %v11851_v53  ;;  %v3636_v57 = vsub.f32 0.5, %v11865_v26 }
 0x7f4   : > { %3834 = vrot.lane.b32.xlu0 %v11785_v28, %s7450_s11  ;;  %3832 = vrot.lane.b32.xlu1 %v11787_v54, %s7450_s11  ;;  %13989 = vst [vmem:[#allocation119_spill] sm:$0xff] %v11865_v26 }
 0x7f5   : > { %v3078_v40 = vpop.permute.xlu1 %3077 }
 0x7f6   : > { %v11870_v54 = vsel %vm3111_vm4, %v3046_v43, %v3078_v40 }
 0x7f7   : > { %v6769_v61 = vpop.permute.xlu0 %6768  ;;  %13991 = vst [vmem:[#allocation121_spill] sm:$0xff] %v11870_v54  ;;  %v3637_v23 = vsub.f32 0.5, %v11870_v54 }
 0x7f8   : > { %3866 = vrot.lane.b32.xlu0 %v11795_v37, %s7450_s11  ;;  %3864 = vrot.lane.b32.xlu1 %v11797_v48, %s7450_s11  ;;  %v11859_v48 = vsel %vm3111_vm4, %v11692_v20, %v11719_v27  ;;  %v3634_v37 = vsub.f32 0.5, %v11851_v53  ;;  %v13994_v27 = vld [vmem:[#allocation134_spill] sm:$0xff]  ;;  %v6771_v33 = vunpack.i.h.bf16 %v6769_v61 }
 0x7f9   : > { %v3110_v8 = vpop.permute.xlu1 %3109  ;;  %13988 = vst [vmem:[#allocation118_spill] sm:$0xff] %v11859_v48  ;;  %v11883_v28 = vmul.f32 %v13994_v27, %v13993_v16  ;;  %v3635_v50 = vsub.f32 0.5, %v11859_v48 }
 0x7fa   : > { %v11875_v20 = vsel %vm3111_vm4, %v3078_v40, %v3110_v8  ;;  %v11890_v40 = vsel %vm3111_vm4, %v3110_v8, %v3046_v43 }
 0x7fb   : > { %v6779_v0 = vpop.permute.xlu0 %6778  ;;  %13992 = vst [vmem:[#allocation120_spill] sm:$0xff] %v11875_v20  ;;  %v3638_v35 = vsub.f32 0.5, %v11875_v20  ;;  %v3639_v34 = vsub.f32 0.5, %v11890_v40 }
 0x7fc   : > { %v6781_v7 = vunpack.i.h.bf16 %v6779_v0  ;;  %v6780_v4 = vunpack.i.l.bf16 %v6779_v0  ;;  %v6770_v0 = vunpack.i.l.bf16 %v6769_v61 }
 0x7fd   : > { %v6774_v9 = vpop.permute.xlu1 %6773 }
 0x7fe   : > { %v6776_v52 = vunpack.i.h.bf16 %v6774_v9  ;;  %v6775_v39 = vunpack.i.l.bf16 %v6774_v9  ;;  %v3542_v16 = vsel %vm3111_vm4, %v6780_v4, %v6770_v0  ;;  %v3543_v27 = vsel %vm3111_vm4, %v6781_v7, %v6771_v33 }
 0x7ff   : > { %v6789_v53 = vpop.permute.xlu0 %6788 }
 0x800   : > { %v6791_v48 = vunpack.i.h.bf16 %v6789_v53  ;;  %v3511_v61 = vsel %vm3111_vm4, %v6776_v52, %v6781_v7  ;;  %v3527_v26 = vsel %vm3111_vm4, %v6771_v33, %v6776_v52  ;;  %v3510_v43 = vsel %vm3111_vm4, %v6775_v39, %v6780_v4  ;;  %v13995_v52 = vld [vmem:[#allocation60_spill] sm:$0xff] }
 0x801   : > { %v3526_v9 = vsel %vm3111_vm4, %v6770_v0, %v6775_v39  ;;  %v3685_v8 = vmul.f32 %v3637_v23, %v3527_v26  ;;  %v3686_v20 = vmul.f32 %v3638_v35, %v3511_v61  ;;  %v3683_v18 = vmul.f32 %v3635_v50, %v3510_v43  ;;  %v6784_v29 = vpop.permute.xlu1 %6783  ;;  %v13996_v0 = vld [vmem:[#allocation128_spill] sm:$0xff] }
 0x802   : > { %v3682_v54 = vmul.f32 %v3634_v37, %v3526_v9  ;;  %v6790_v41 = vunpack.i.l.bf16 %v6789_v53  ;;  %v6786_v59 = vunpack.i.h.bf16 %v6784_v29  ;;  %v6785_v45 = vunpack.i.l.bf16 %v6784_v29 }
 0x803   : > { %v11910_v33 = vsel %vm3111_vm4, %v11757_v56, %v11775_v60  ;;  %v3733_v7 = vadd.f32 %v3685_v8, %v3589_v22  ;;  %v3937_v23 = vmul.f32 %v13996_v0, %v13995_v52  ;;  %v11918_v50 = vsel %vm3111_vm4, %v11713_v30, %v11755_v63  ;;  %v14003_v52 = vld [vmem:[#allocation66_spill] sm:$0xff] }
 0x804   : > { %v3730_v4 = vadd.f32 %v3682_v54, %v3586_v49  ;;  %13997 = vst [vmem:[#allocation123_spill] sm:$0xff] %v11918_v50  ;;  %v3684_v35 = vmul.f32 %v3636_v57, %v3542_v16  ;;  %v3687_v37 = vmul.f32 %v3639_v34, %v3543_v27  ;;  %v3734_v29 = vadd.f32 %v3686_v20, %v3590_v15  ;;  %v14000_v20 = vld [vmem:[#allocation61_spill] sm:$0xff] }
 0x805   : > { %v3525_v53 = vsel %vm3111_vm4, %v6786_v59, %v6791_v48  ;;  %v6794_v26 = vpop.permute.xlu1 %6793  ;;  %v11922_v39 = vmul.f32 2.0, %v3733_v7  ;;  %v3731_v54 = vadd.f32 %v3683_v18, %v11815_v2  ;;  %v3631_v49 = vsub.f32 0.5, %v11910_v33  ;;  %v13999_v2 = vld [vmem:[#allocation83_spill] sm:$0xff] }
 0x806   : > { %v11924_v22 = vmul.f32 2.0, %v3730_v4  ;;  %v3524_v61 = vsel %vm3111_vm4, %v6785_v45, %v6790_v41  ;;  %v6796_v43 = vunpack.i.h.bf16 %v6794_v26  ;;  %v6795_v9 = vunpack.i.l.bf16 %v6794_v26  ;;  %v14002_v26 = vld [vmem:[#allocation56_spill] sm:$0xff] }
 0x807   : > { %v3628_v34 = vsub.f32 0.5, %v11918_v50  ;;  %v11935_v15 = vsel %vm3111_vm4, %v11755_v63, %v11769_v38  ;;  %v11941_v18 = vsel %vm3111_vm4, %v11769_v38, %v11713_v30  ;;  %3814 = vrot.lane.b32.xlu0 %v11922_v39, %s7450_s11  ;;  %v3934_v16 = vmul.f32 %v14000_v20, %v13999_v2 }
 0x808   : > { %13998 = vst [vmem:[#allocation126_spill] sm:$0xff] %v11935_v15  ;;  %3812 = vrot.lane.b32.xlu1 %v11924_v22, %s7450_s11  ;;  %v11953_v63 = vsel %vm3111_vm4, %v11775_v60, %v11789_v11  ;;  %v3679_v27 = vmul.f32 %v3631_v49, %v3525_v53  ;;  %v3735_v8 = vadd.f32 %v3687_v37, %v11805_v10  ;;  %v11957_v7 = vmul.f32 2.0, %v3734_v29 }
 0x809   : > { %14001 = vst [vmem:[#allocation54_spill] sm:$0xff] %v11953_v63  ;;  %v3732_v30 = vadd.f32 %v3684_v35, %v11809_v25  ;;  %v3676_v38 = vmul.f32 %v3628_v34, %v3524_v61  ;;  %v11959_v4 = vmul.f32 2.0, %v3731_v54  ;;  %v3938_v20 = vmul.f32 %v14003_v52, %v14002_v26  ;;  %v6836_v34 = vld [vmem:[#allocation10 + $0x40] sm:$0xff]  }
 0x80a   : > { %v3629_v2 = vsub.f32 0.5, %v11935_v15  ;;  %v3630_v50 = vsub.f32 0.5, %v11941_v18  ;;  %v3509_v60 = vsel %vm3111_vm4, %v6791_v48, %v6796_v43  ;;  %v3508_v10 = vsel %vm3111_vm4, %v6790_v41, %v6795_v9  ;;  %v6837_v26 = vld [vmem:[#allocation10] sm:$0xff]   ;;  %6225 = vmatprep.subr.bf16.mxu1 %v6836_v34  ;;  %v6842_v34 = vld [vmem:[#allocation10 + $0x88] sm:$0xff]  }
 0x80b   : > { %v3791_v57 = vpop.permute.xlu0 %3790  ;;  %v11973_v35 = vsel %vm3111_vm4, %v11789_v11, %v11757_v56  ;;  %v3632_v37 = vsub.f32 0.5, %v11953_v63  ;;  %v3540_v52 = vsel %vm3111_vm4, %v6795_v9, %v6785_v45  ;;  %3846 = vrot.lane.b32.xlu0 %v11957_v7, %s7450_s11  ;;  %v11984_v48 = vmul.f32 2.0, %v3735_v8  ;;  %6226 = vmatpush3.bf16.msra.mxu1 %v6837_v26 }
 0x80c   : > { %v3789_v0 = vpop.permute.xlu1 %3788  ;;  %3844 = vrot.lane.b32.xlu1 %v11959_v4, %s7450_s11  ;;  %v11986_v29 = vmul.f32 2.0, %v3732_v30  ;;  %v14004_v56 = vsub.f32 1.0, %v13986_v5  ;;  %v3727_v53 = vadd.f32 %v3679_v27, %v11831_v24  ;;  %v3541_v45 = vsel %vm3111_vm4, %v6796_v43, %v6786_v59  ;;  %v14005_v24 = vld [vmem:[#allocation127_spill] sm:$0xff] }
 0x80d   : > { %v3680_v54 = vmul.f32 %v3632_v37, %v3509_v60  ;;  %v3677_v49 = vmul.f32 %v3629_v2, %v3508_v10  ;;  %v3724_v9 = vadd.f32 %v3676_v38, %v11835_v47  ;;  %v3633_v8 = vsub.f32 0.5, %v11973_v35 }
 0x80e   : > { %v3678_v63 = vmul.f32 %v3630_v50, %v3540_v52  ;;  %v3984_v27 = vsub.f32 1.0, %v14005_v24  ;;  %v14006_v47 = vsub.f32 1.0, %v13982_v21  ;;  %v12010_v2 = vmul.f32 2.0, %v3727_v53  ;;  %v6839_v53 = vld [vmem:[#allocation10 + $0x80] sm:$0xff]  }
 0x80f   : > { %v3823_v25 = vpop.permute.xlu0 %3822  ;;  %3878 = vrot.lane.b32.xlu0 %v11984_v48, %s7450_s11  ;;  %v3681_v43 = vmul.f32 %v3633_v8, %v3541_v45  ;;  %v14007_v38 = vsub.f32 1.0, %v13987_v13  ;;  %v14008_v10 = vsub.f32 1.0, %v13990_v55  ;;  %v3725_v24 = vadd.f32 %v3677_v49, %v11819_v62  ;;  %v6840_v45 = vld [vmem:[#allocation10 + $0x8] sm:$0xff]   ;;  %v14009_v62 = vld [vmem:[#allocation31_spill] sm:$0xff]  ;;  %6393 = vmatprep.subr.bf16.mxu0 %v6839_v53 }
 0x810   : > { %v3899_v41 = vsel %vm3111_vm4, %v3791_v57, %v3823_v25  ;;  %v3821_v61 = vpop.permute.xlu1 %3820  ;;  %3876 = vrot.lane.b32.xlu1 %v11986_v29, %s7450_s11  ;;  %6394 = vmatpush3.bf16.msra.mxu0 %v6839_v53  ;;  %v14027_v13 = vld [vmem:[#allocation67_spill] sm:$0xff] }
 0x811   : > { %v4033_v11 = vmul.f32 %v14004_v56, %v3899_v41  ;;  %v3898_v41 = vsel %vm3111_vm4, %v3789_v0, %v3821_v61  ;;  %v3729_v49 = vadd.f32 %v3681_v43, %v11845_v42  ;;  %v14012_v42 = vld [vmem:[#allocation37_spill] sm:$0xff]  ;;  %6395 = vmatprep.subr.bf16.mxu0 %v6842_v34 }
 0x812   : > { %v4030_v59 = vmul.f32 %v14006_v47, %v3898_v41  ;;  %v3979_v43 = vsub.f32 1.0, %v14012_v42  ;;  %v14024_v42 = vld [vmem:[#allocation129_spill] sm:$0xff] }
 0x813   : > { %v11995_v30 = vadd.f32 %v4033_v11, %v3937_v23  ;;  %v3855_v56 = vpop.permute.xlu0 %3854  ;;  %v12018_v11 = vmul.f32 2.0, %v3724_v9  ;;  %3810 = vrot.lane.b32.xlu0 %v12010_v2, %s7450_s11  ;;  %v12061_v53 = vmul.f32 2.0, %v3729_v49 }
 0x814   : > { %v3883_v50 = vsel %vm3111_vm4, %v3823_v25, %v3855_v56  ;;  %v3915_v23 = vsel %vm3111_vm4, %v3855_v56, %v3791_v57  ;;  %v12016_v52 = vadd.f32 %v4030_v59, %v3934_v16  ;;  %v3853_v41 = vpop.permute.xlu1 %3852  ;;  %v3728_v25 = vadd.f32 %v3680_v54, %v11827_v12  ;;  %v6838_v57 = vld [vmem:[#allocation10 + $0x48] sm:$0xff]   ;;  %v14010_v12 = vld [vmem:[#allocation132_spill] sm:$0xff]  ;;  %6396 = vmatpush3.bf16.msra.mxu0 %v6842_v34 }
 0x815   : > { %v4034_v60 = vmul.f32 %v14007_v38, %v3883_v50  ;;  %v4035_v37 = vmul.f32 %v14008_v10, %v3915_v23  ;;  %v3882_v55 = vsel %vm3111_vm4, %v3821_v61, %v3853_v41  ;;  %v3914_v16 = vsel %vm3111_vm4, %v3853_v41, %v3789_v0  ;;  %3808 = vrot.lane.b32.xlu1 %v12018_v11, %s7450_s11  ;;  %v6841_v0 = vld [vmem:[#allocation10 + $0x50] sm:$0xff]   ;;  %v14015_v41 = vld [vmem:[#allocation41_spill] sm:$0xff] }
 0x816   : > { %v3935_v26 = vmul.f32 %v14010_v12, %v14009_v62  ;;  %v4032_v54 = vmul.f32 %v3984_v27, %v3914_v16  ;;  %v3726_v61 = vadd.f32 %v3678_v63, %v11839_v58  ;;  %6227 = vmatprep.subr.bf16.mxu1 %v6838_v57  ;;  %v12046_v50 = vmul.f32 2.0, %v3728_v25  ;;  %v6843_v27 = vld [vmem:[#allocation10 + $0x10] sm:$0xff]   ;;  %v14013_v63 = vld [vmem:[#allocation82_spill] sm:$0xff] }
 0x817   : > { %v12022_v8 = vadd.f32 %v4034_v60, %v3938_v20  ;;  %v12025_v56 = vadd.f32 %v4035_v37, %v11879_v36  ;;  %v3787_v9 = vpop.permute.xlu0 %3786  ;;  %v14011_v20 = vsub.f32 1.0, %v13983_v51  ;;  %v12048_v23 = vmul.f32 2.0, %v3725_v24  ;;  %6228 = vmatpush3.bf16.msra.mxu1 %v6840_v45  ;;  %v14014_v60 = vld [vmem:[#allocation63_spill] sm:$0xff]  ;;  %v14016_v24 = vld [vmem:[#allocation130_spill] sm:$0xff] }
 0x818   : > { %v12044_v59 = vadd.f32 %v4032_v54, %v11883_v28  ;;  %v3785_v38 = vpop.permute.xlu1 %3784  ;;  %6229 = vmatprep.subr.bf16.mxu1 %v6841_v0  ;;  %3842 = vrot.lane.b32.xlu0 %v12046_v50, %s7450_s11  ;;  %v3931_v10 = vmul.f32 %v14014_v60, %v14013_v63  ;;  %v3976_v25 = vsub.f32 1.0, %v14015_v41  ;;  %v3980_v57 = vsub.f32 1.0, %v14016_v24  ;;  %v14017_v16 = vld [vmem:[#allocation131_spill] sm:$0xff]  ;;  %v6846_v60 = vld [vmem:[#allocation10 + $0x18] sm:$0xff]  }
 0x819   : > { %v4031_v36 = vmul.f32 %v14011_v20, %v3882_v55  ;;  %3840 = vrot.lane.b32.xlu1 %v12048_v23, %s7450_s11  ;;  %v12063_v45 = vmul.f32 2.0, %v3726_v61  ;;  %v3981_v12 = vsub.f32 1.0, %v14017_v16  ;;  %v14018_v20 = vld [vmem:[#allocation53_spill] sm:$0xff]  ;;  %v14023_v24 = vld [vmem:[#allocation135_spill] sm:$0xff]  ;;  %v3977_v62 = vsub.f32 1.0, %v14024_v42 }
 0x81b   : > { %v12041_v47 = vadd.f32 %v4031_v36, %v3935_v26  ;;  %v3819_v58 = vpop.permute.xlu0 %3818  ;;  %6230 = vmatpush3.bf16.msra.mxu1 %v6843_v27  ;;  %v14019_v36 = vld [vmem:[#allocation59_spill] sm:$0xff]  ;;  %v6844_v27 = vld [vmem:[#allocation10 + $0x58] sm:$0xff]  }
 0x81c   : > { %v3897_v28 = vsel %vm3111_vm4, %v3787_v9, %v3819_v58  ;;  %v3817_v55 = vpop.permute.xlu1 %3816  ;;  %v3928_v54 = vmul.f32 %v14019_v36, %v14018_v20  ;;  %3874 = vrot.lane.b32.xlu0 %v12061_v53, %s7450_s11  ;;  %v14022_v36 = vld [vmem:[#allocation33_spill] sm:$0xff]  ;;  %6231 = vmatprep.subr.bf16.mxu1 %v6844_v27 }
 0x81d   : > { %v4027_v37 = vmul.f32 %v3979_v43, %v3897_v28  ;;  %v3896_v0 = vsel %vm3111_vm4, %v3785_v38, %v3817_v55  ;;  %3872 = vrot.lane.b32.xlu1 %v12063_v45, %s7450_s11  ;;  %v6845_v28 = vld [vmem:[#allocation10 + $0x90] sm:$0xff]   ;;  %v3933_v20 = vmul.f32 %v14023_v24, %v14022_v36  ;;  %v6851_v27 = vld [vmem:[#allocation10 + $0xa0] sm:$0xff]   ;;  %v6856_v36 = vld [vmem:[#allocation10 + $0x78] sm:$0xff]  }
 0x81e   : > { %v4024_v49 = vmul.f32 %v3976_v25, %v3896_v0  ;;  %v14025_v25 = vld [vmem:[#allocation133_spill] sm:$0xff]  ;;  %6397 = vmatprep.subr.bf16.mxu0 %v6845_v28 }
 0x81f   : > { %v12066_v26 = vadd.f32 %v4027_v37, %v3931_v10  ;;  %v3851_v43 = vpop.permute.xlu0 %3850  ;;  %v14020_v10 = vld [vmem:[#allocation84_spill] sm:$0xff]  ;;  %v14021_v37 = vld [vmem:[#allocation65_spill] sm:$0xff]  ;;  %v3978_v0 = vsub.f32 1.0, %v14025_v25  ;;  %6232 = vmatpush3.bf16.msra.mxu1 %v6846_v60  ;;  %6398 = vmatpush3.bf16.msra.mxu0 %v6845_v28  ;;  %v6853_v28 = vld [vmem:[#allocation10 + $0x70] sm:$0xff]  }
 0x820   : > { %v3881_v61 = vsel %vm3111_vm4, %v3819_v58, %v3851_v43  ;;  %v3913_v34 = vsel %vm3111_vm4, %v3851_v43, %v3787_v9  ;;  %v3932_v16 = vmul.f32 %v14021_v37, %v14020_v10  ;;  %v12086_v51 = vadd.f32 %v4024_v49, %v3928_v54  ;;  %v14026_v58 = vld [vmem:[#allocation26_spill] sm:$0xff]  ;;  %v3849_v43 = vpop.permute.xlu1 %3848  ;;  %4126 = vrot.lane.b32.xlu0 %v11995_v30, %s7450_s11  ;;  %v6857_v25 = vld [vmem:[#allocation10 + $0xb0] sm:$0xff]  }
 0x821   : > { %v4028_v63 = vmul.f32 %v3980_v57, %v3881_v61  ;;  %v4029_v41 = vmul.f32 %v3981_v12, %v3913_v34  ;;  %v3929_v9 = vmul.f32 %v14027_v13, %v14026_v58  ;;  %v3880_v24 = vsel %vm3111_vm4, %v3817_v55, %v3849_v43  ;;  %4124 = vrot.lane.b32.xlu1 %v12016_v52, %s7450_s11  ;;  %v14028_v13 = vld [vmem:[#allocation58_spill] sm:$0xff]  ;;  %v14029_v12 = vld [vmem:[#allocation136_spill] sm:$0xff]  ;;  %v6847_v55 = vld [vmem:[#allocation10 + $0x60] sm:$0xff]  }
 0x822   : > { %v3912_v57 = vsel %vm3111_vm4, %v3849_v43, %v3785_v38  ;;  %v3930_v54 = vmul.f32 %v14029_v12, %v14028_v13  ;;  %v4025_v49 = vmul.f32 %v3977_v62, %v3880_v24  ;;  %v6848_v61 = vld [vmem:[#allocation10 + $0x98] sm:$0xff]   ;;  %v6849_v34 = vld [vmem:[#allocation10 + $0x20] sm:$0xff]   ;;  %v6850_v38 = vld [vmem:[#allocation10 + $0x68] sm:$0xff]   ;;  %6233 = vmatprep.subr.bf16.mxu1 %v6847_v55  ;;  %v14030_v43 = vmov 0.0  }
 0x823   : > { %v12090_v21 = vadd.f32 %v4028_v63, %v3932_v16  ;;  %v4077_v37 = vadd.f32 %v4029_v41, %v3933_v20  ;;  %v4026_v63 = vmul.f32 %v3978_v0, %v3912_v57  ;;  %6399 = vmatprep.subr.bf16.mxu0 %v6848_v61  ;;  %6234 = vmatpush3.bf16.msra.mxu1 %v6849_v34  ;;  %v6852_v62 = vld [vmem:[#allocation10 + $0x28] sm:$0xff]   ;;  %v6855_v16 = vld [vmem:[#allocation10 + $0x30] sm:$0xff]   ;;  %v14031_v24 = vld [vmem:[#allocation137_spill] sm:$0xff] }
 0x824   : > { %v12102_v41 = vadd.f32 %v4025_v49, %v3929_v9  ;;  %4158 = vrot.lane.b32.xlu0 %v12022_v8, %s7450_s11  ;;  %6400 = vmatpush3.bf16.msra.mxu0 %v6848_v61  ;;  %v6854_v60 = vld [vmem:[#allocation10 + $0xa8] sm:$0xff]   ;;  %v3994_v57 = vsub.f32 1.0, %v14031_v24  ;;  %v14032_v13 = vld [vmem:[#allocation57_spill] sm:$0xff]  ;;  %v14034_v61 = vld [vmem:[#allocation139_spill] sm:$0xff] }
 0x825   : > { %v4074_v20 = vadd.f32 %v4026_v63, %v3930_v54  ;;  %4156 = vrot.lane.b32.xlu1 %v12041_v47, %s7450_s11  ;;  %6235 = vmatprep.subr.bf16.mxu1 %v6850_v38  ;;  %v3997_v12 = vsub.f32 1.0, %v14032_v13  ;;  %v14033_v63 = vld [vmem:[#allocation138_spill] sm:$0xff]  ;;  %v3996_v34 = vsub.f32 1.0, %v14034_v61 }
 0x826   : > { %6401 = vmatprep.subr.bf16.mxu0 %v6851_v27  ;;  %v3995_v55 = vsub.f32 1.0, %v14033_v63 }
 0x827   : > { %6236 = vmatpush3.bf16.msra.mxu1 %v6852_v62 }
 0x828   : > { %4190 = vrot.lane.b32.xlu0 %v12025_v56, %s7450_s11  ;;  %6402 = vmatpush3.bf16.msra.mxu0 %v6851_v27  ;;  %v6858_v56 = vld [vmem:[#allocation10 + $0x38] sm:$0xff]  }
 0x829   : > { %4188 = vrot.lane.b32.xlu1 %v12044_v59, %s7450_s11  ;;  %6237 = vmatprep.subr.bf16.mxu1 %v6853_v28  ;;  %v6859_v59 = vld [vmem:[#allocation10 + $0xb8] sm:$0xff]   ;;  %v14036_v28 = vld [vmem:[#allocation34_spill] sm:$0xff] }
 0x82a   : > { %6403 = vmatprep.subr.bf16.mxu0 %v6854_v60 }
 0x82b   : > { %6238 = vmatpush3.bf16.msra.mxu1 %v6855_v16 }
 0x82c   : > { %4122 = vrot.lane.b32.xlu0 %v12066_v26, %s7450_s11  ;;  %6404 = vmatpush3.bf16.msra.mxu0 %v6854_v60  ;;  %v3946_v60 = vmul.f32 %v11494_v44, %v14036_v28  ;;  %v14044_v44 = vld [vmem:[#allocation62_spill] sm:$0xff]  ;;  %v14061_v28 = vld [vmem:[#allocation147_spill] sm:$0xff] }
 0x82d   : > { %4120 = vrot.lane.b32.xlu1 %v12086_v51, %s7450_s11  ;;  %6239 = vmatprep.subr.bf16.mxu1 %v6856_v36  ;;  %v14037_v36 = vld [vmem:[#allocation46_spill] sm:$0xff] }
 0x82e   : > { %6405 = vmatprep.subr.bf16.mxu0 %v6857_v25 }
 0x82f   : > { %6240 = vmatpush3.bf16.msra.mxu1 %v6858_v56  ;;  %v3999_v56 = vsub.f32 1.0, %v11458_v32 }
 0x830   : > { %4154 = vrot.lane.b32.xlu0 %v12090_v21, %s7450_s11  ;;  %6406 = vmatpush3.bf16.msra.mxu0 %v6857_v25  ;;  %v3998_v25 = vsub.f32 1.0, %v14037_v36 }
 0x831   : > { %4152 = vrot.lane.b32.xlu1 %v12102_v41, %s7450_s11  ;;  %v3799_v0 = vpop.permute.xlu0 %3798  ;;  %6407 = vmatprep.subr.bf16.mxu0 %v6859_v59 }
 0x832   : > { %v3797_v9 = vpop.permute.xlu1 %3796  ;;  %6457 = vmatprep.subr.bf16.mxu1 %v14030_v43  ;;  %v14039_v43 = vld [vmem:[#allocation72_spill] sm:$0xff] }
 0x833   : > { %v3948_v63 = vmul.f32 %v11556_v3, %v14039_v43 }
 0x834   : > { %4186 = vrot.lane.b32.xlu0 %v4077_v37, %s7450_s11  ;;  %6408 = vmatpush3.bf16.msra.mxu0 %v6859_v59  ;;  %v14035_v37 = vld [vmem:[#allocation47_spill] sm:$0xff]  ;;  %v14038_v59 = vld [vmem:[#allocation68_spill] sm:$0xff] }
 0x835   : > { %4184 = vrot.lane.b32.xlu1 %v4074_v20, %s7450_s11  ;;  %v3831_v54 = vpop.permute.xlu0 %3830  ;;  %v3949_v20 = vmul.f32 %v11492_v14, %v14035_v37  ;;  %v3951_v61 = vmul.f32 %v11554_v31, %v14038_v59  ;;  %v14042_v14 = vld [vmem:[#allocation38_spill] sm:$0xff] }
 0x836   : > { %v3829_v49 = vpop.permute.xlu1 %3828  ;;  %v3903_v38 = vsel %vm3111_vm4, %v3799_v0, %v3831_v54 }
 0x837   : > { %v3902_v27 = vsel %vm3111_vm4, %v3797_v9, %v3829_v49  ;;  %v4045_v62 = vmul.f32 %v3997_v12, %v3903_v38  ;;  %v14043_v12 = vld [vmem:[#allocation143_spill] sm:$0xff] }
 0x838   : > { %v4042_v16 = vmul.f32 %v3994_v57, %v3902_v27  ;;  %v3950_v38 = vmul.f32 %v14043_v12, %v14042_v14  ;;  %v14045_v57 = vld [vmem:[#allocation144_spill] sm:$0xff] }
 0x839   : > { %v12141_v24 = vadd.f32 %v4045_v62, %v3949_v20  ;;  %v3863_v37 = vpop.permute.xlu0 %3862  ;;  %v3947_v27 = vmul.f32 %v14045_v57, %v14044_v44  ;;  %v14058_v44 = vld [vmem:[#allocation40_spill] sm:$0xff] }
 0x83a   : > { %v12143_v13 = vadd.f32 %v4042_v16, %v3946_v60  ;;  %v3861_v36 = vpop.permute.xlu1 %3860  ;;  %v3887_v32 = vsel %vm3111_vm4, %v3831_v54, %v3863_v37  ;;  %v3919_v31 = vsel %vm3111_vm4, %v3863_v37, %v3799_v0 }
 0x83b   : > { %14040 = vst [vmem:[#allocation134_spill] sm:$0xff] %v12141_v24  ;;  %v3886_v3 = vsel %vm3111_vm4, %v3829_v49, %v3861_v36  ;;  %v3918_v43 = vsel %vm3111_vm4, %v3861_v36, %v3797_v9  ;;  %v4046_v20 = vmul.f32 %v3998_v25, %v3887_v32  ;;  %v4047_v62 = vmul.f32 %v3999_v56, %v3919_v31  ;;  %v14048_v9 = vld [vmem:[#allocation140_spill] sm:$0xff]  ;;  %v14052_v31 = vld [vmem:[#allocation55_spill] sm:$0xff] }
 0x83c   : > { %14041 = vst [vmem:[#allocation128_spill] sm:$0xff] %v12143_v13  ;;  %v4043_v60 = vmul.f32 %v3995_v55, %v3886_v3  ;;  %v4044_v16 = vmul.f32 %v3996_v34, %v3918_v43  ;;  %4134 = vrot.lane.b32.xlu0 %v12141_v24, %s7450_s11  ;;  %4132 = vrot.lane.b32.xlu1 %v12143_v13, %s7450_s11  ;;  %v3988_v55 = vsub.f32 1.0, %v14048_v9  ;;  %v14049_v34 = vld [vmem:[#allocation64_spill] sm:$0xff]  ;;  %v14053_v3 = vld [vmem:[#allocation25_spill] sm:$0xff] }
 0x83d   : > { %v12161_v54 = vadd.f32 %v4046_v20, %v3950_v38  ;;  %v4095_v59 = vadd.f32 %v4047_v62, %v3951_v61  ;;  %v3795_v49 = vpop.permute.xlu0 %3794  ;;  %v3991_v36 = vsub.f32 1.0, %v14049_v34  ;;  %v14050_v38 = vld [vmem:[#allocation141_spill] sm:$0xff]  ;;  %v3943_v43 = vmul.f32 %v14053_v3, %v14052_v31  ;;  %v14054_v62 = vld [vmem:[#allocation71_spill] sm:$0xff]  ;;  %v14056_v34 = vld [vmem:[#allocation142_spill] sm:$0xff] }
 0x83e   : > { %v12163_v0 = vadd.f32 %v4043_v60, %v3947_v27  ;;  %v4092_v37 = vadd.f32 %v4044_v16, %v3948_v63  ;;  %v3793_v12 = vpop.permute.xlu1 %3792  ;;  %v3989_v57 = vsub.f32 1.0, %v14050_v38  ;;  %v14051_v61 = vld [vmem:[#allocation145_spill] sm:$0xff]  ;;  %v14055_v60 = vld [vmem:[#allocation36_spill] sm:$0xff]  ;;  %v3992_v38 = vsub.f32 1.0, %v14056_v34 }
 0x83f   : > { %14046 = vst [vmem:[#allocation61_spill] sm:$0xff] %v12161_v54  ;;  %v3990_v27 = vsub.f32 1.0, %v14051_v61  ;;  %v3940_v16 = vmul.f32 %v14055_v60, %v14054_v62  ;;  %v14060_v13 = vld [vmem:[#allocation73_spill] sm:$0xff]  ;;  %v14064_v60 = vld [vmem:[#allocation27_spill] sm:$0xff]  ;;  %v14065_v34 = vld [vmem:[#allocation148_spill] sm:$0xff] }
 0x840   : > { %14047 = vst [vmem:[#allocation66_spill] sm:$0xff] %v12163_v0  ;;  %4166 = vrot.lane.b32.xlu0 %v12161_v54, %s7450_s11  ;;  %4164 = vrot.lane.b32.xlu1 %v12163_v0, %s7450_s11  ;;  %v14057_v0 = vld [vmem:[#allocation146_spill] sm:$0xff]  ;;  %v14059_v54 = vld [vmem:[#allocation48_spill] sm:$0xff]  ;;  %v3945_v24 = vmul.f32 %v14061_v28, %v14060_v13  ;;  %v3942_v62 = vmul.f32 %v14065_v34, %v14064_v60 }
 0x841   : > { %v3827_v25 = vpop.permute.xlu0 %3826  ;;  %v3993_v61 = vsub.f32 1.0, %v14057_v0  ;;  %v3944_v14 = vmul.f32 %v14059_v54, %v14058_v44  ;;  %v14070_v60 = vld [vmem:[#allocation96_spill] sm:$0xff] }
 0x842   : > { %v3825_v56 = vpop.permute.xlu1 %3824  ;;  %v3901_v63 = vsel %vm3111_vm4, %v3795_v49, %v3827_v25 }
 0x843   : > { %v3900_v32 = vsel %vm3111_vm4, %v3793_v12, %v3825_v56  ;;  %v4039_v20 = vmul.f32 %v3991_v36, %v3901_v63 }
 0x844   : > { %v4036_v9 = vmul.f32 %v3988_v55, %v3900_v32  ;;  %4198 = vrot.lane.b32.xlu0 %v4095_v59, %s7450_s11  ;;  %4196 = vrot.lane.b32.xlu1 %v4092_v37, %s7450_s11  ;;  %v14062_v55 = vld [vmem:[#allocation30_spill] sm:$0xff]  ;;  %v14063_v32 = vld [vmem:[#allocation39_spill] sm:$0xff] }
 0x845   : > { %v12189_v3 = vadd.f32 %v4039_v20, %v3943_v43  ;;  %v3859_v63 = vpop.permute.xlu0 %3858  ;;  %v3941_v59 = vmul.f32 %v14063_v32, %v14062_v55 }
 0x846   : > { %v12191_v36 = vadd.f32 %v4036_v9, %v3940_v16  ;;  %v3857_v0 = vpop.permute.xlu1 %3856  ;;  %v3885_v37 = vsel %vm3111_vm4, %v3827_v25, %v3859_v63  ;;  %v3917_v54 = vsel %vm3111_vm4, %v3859_v63, %v3795_v49 }
 0x847   : > { %v3884_v13 = vsel %vm3111_vm4, %v3825_v56, %v3857_v0  ;;  %v3916_v28 = vsel %vm3111_vm4, %v3857_v0, %v3793_v12  ;;  %v4040_v9 = vmul.f32 %v3992_v38, %v3885_v37  ;;  %v4041_v43 = vmul.f32 %v3993_v61, %v3917_v54  ;;  %v14068_v38 = vld [vmem:[#allocation149_spill] sm:$0xff]  ;;  %v14071_v37 = vld [vmem:[#allocation88_spill] sm:$0xff] }
 0x848   : > { %v4037_v20 = vmul.f32 %v3989_v57, %v3884_v13  ;;  %v4038_v16 = vmul.f32 %v3990_v27, %v3916_v28  ;;  %4130 = vrot.lane.b32.xlu0 %v12189_v3, %s7450_s11  ;;  %4128 = vrot.lane.b32.xlu1 %v12191_v36, %s7450_s11  ;;  %v4006_v57 = vsub.f32 1.0, %v14068_v38  ;;  %v4007_v0 = vsub.f32 1.0, %v14070_v60  ;;  %v14072_v28 = vld [vmem:[#allocation45_spill] sm:$0xff] }
 0x849   : > { %v12209_v34 = vadd.f32 %v4040_v9, %v3944_v14  ;;  %v4089_v25 = vadd.f32 %v4041_v43, %v3945_v24  ;;  %v14069_v14 = vld [vmem:[#allocation97_spill] sm:$0xff]  ;;  %v3961_v54 = vmul.f32 %v11688_v6, %v14071_v37  ;;  %v3958_v9 = vmul.f32 %v11690_v1, %v14072_v28  ;;  %v14080_v6 = vld [vmem:[#allocation94_spill] sm:$0xff]  ;;  %v14099_v28 = vld [vmem:[#allocation152_spill] sm:$0xff] }
 0x84a   : > { %v12211_v49 = vadd.f32 %v4037_v20, %v3941_v59  ;;  %v4086_v63 = vadd.f32 %v4038_v16, %v3942_v62  ;;  %v4009_v27 = vsub.f32 1.0, %v14069_v14  ;;  %v4008_v62 = vsub.f32 1.0, %v11647_v17  ;;  %v14073_v20 = vld [vmem:[#allocation98_spill] sm:$0xff]  ;;  %v14082_v1 = vld [vmem:[#allocation85_spill] sm:$0xff] }
 0x84b   : > { %14066 = vst [vmem:[#allocation127_spill] sm:$0xff] %v12209_v34  ;;  %v4010_v16 = vsub.f32 1.0, %v14073_v20  ;;  %v14076_v14 = vld [vmem:[#allocation86_spill] sm:$0xff] }
 0x84c   : > { %14067 = vst [vmem:[#allocation132_spill] sm:$0xff] %v12211_v49  ;;  %4162 = vrot.lane.b32.xlu0 %v12209_v34, %s7450_s11  ;;  %4160 = vrot.lane.b32.xlu1 %v12211_v49, %s7450_s11  ;;  %v14077_v49 = vld [vmem:[#allocation155_spill] sm:$0xff] }
 0x84d   : > { %v3960_v55 = vmul.f32 %v14077_v49, %v14076_v14 }
 0x850   : > { %4194 = vrot.lane.b32.xlu0 %v4089_v25, %s7450_s11  ;;  %4192 = vrot.lane.b32.xlu1 %v4086_v63, %s7450_s11  ;;  %v14074_v25 = vld [vmem:[#allocation100_spill] sm:$0xff]  ;;  %v14075_v63 = vld [vmem:[#allocation91_spill] sm:$0xff] }
 0x851   : > { %v4011_v17 = vsub.f32 1.0, %v14074_v25  ;;  %v3963_v38 = vmul.f32 %v11747_v46, %v14075_v63 }
 0x856   : > { %v3807_v12 = vpop.permute.xlu0 %3806  ;;  %v3805_v56 = vpop.permute.xlu1 %3804 }
 0x85a   : > { %v3839_v24 = vpop.permute.xlu0 %3838  ;;  %v3837_v61 = vpop.permute.xlu1 %3836 }
 0x85b   : > { %v3907_v32 = vsel %vm3111_vm4, %v3807_v12, %v3839_v24  ;;  %v3906_v59 = vsel %vm3111_vm4, %v3805_v56, %v3837_v61 }
 0x85c   : > { %v4057_v13 = vmul.f32 %v4009_v27, %v3907_v32  ;;  %v4054_v43 = vmul.f32 %v4006_v57, %v3906_v59  ;;  %v14081_v27 = vld [vmem:[#allocation153_spill] sm:$0xff]  ;;  %v14083_v57 = vld [vmem:[#allocation154_spill] sm:$0xff] }
 0x85d   : > { %v3962_v32 = vmul.f32 %v14081_v27, %v14080_v6  ;;  %v3959_v59 = vmul.f32 %v14083_v57, %v14082_v1  ;;  %v14096_v1 = vld [vmem:[#allocation156_spill] sm:$0xff]  ;;  %v14097_v6 = vld [vmem:[#allocation95_spill] sm:$0xff] }
 0x85e   : > { %v12237_v34 = vadd.f32 %v4057_v13, %v3961_v54  ;;  %v12239_v60 = vadd.f32 %v4054_v43, %v3958_v9  ;;  %v3871_v37 = vpop.permute.xlu0 %3870  ;;  %v3869_v20 = vpop.permute.xlu1 %3868 }
 0x85f   : > { %v3891_v25 = vsel %vm3111_vm4, %v3839_v24, %v3871_v37  ;;  %v3923_v46 = vsel %vm3111_vm4, %v3871_v37, %v3807_v12  ;;  %v3890_v49 = vsel %vm3111_vm4, %v3837_v61, %v3869_v20  ;;  %v3922_v14 = vsel %vm3111_vm4, %v3869_v20, %v3805_v56  ;;  %v14086_v56 = vld [vmem:[#allocation150_spill] sm:$0xff]  ;;  %v14087_v20 = vld [vmem:[#allocation99_spill] sm:$0xff] }
 0x860   : > { %14078 = vst [vmem:[#allocation63_spill] sm:$0xff] %v12237_v34  ;;  %14079 = vst [vmem:[#allocation131_spill] sm:$0xff] %v12239_v60  ;;  %v4058_v54 = vmul.f32 %v4010_v16, %v3891_v25  ;;  %v4059_v13 = vmul.f32 %v4011_v17, %v3923_v46  ;;  %v4055_v9 = vmul.f32 %v4007_v0, %v3890_v49  ;;  %4142 = vrot.lane.b32.xlu0 %v12237_v34, %s7450_s11  ;;  %v14090_v46 = vld [vmem:[#allocation90_spill] sm:$0xff] }
 0x861   : > { %v4056_v43 = vmul.f32 %v4008_v62, %v3922_v14  ;;  %4140 = vrot.lane.b32.xlu1 %v12239_v60, %s7450_s11  ;;  %v4003_v62 = vsub.f32 1.0, %v14086_v56  ;;  %v4000_v16 = vsub.f32 1.0, %v14087_v20  ;;  %v14091_v49 = vld [vmem:[#allocation102_spill] sm:$0xff]  ;;  %v14094_v20 = vld [vmem:[#allocation103_spill] sm:$0xff]  ;;  %v4004_v34 = vsub.f32 1.0, %v14099_v28 }
 0x862   : > { %v12257_v24 = vadd.f32 %v4058_v54, %v3962_v32  ;;  %v4107_v63 = vadd.f32 %v4059_v13, %v3963_v38  ;;  %v12259_v12 = vadd.f32 %v4055_v9, %v3959_v59  ;;  %v3803_v61 = vpop.permute.xlu0 %3802  ;;  %v3801_v27 = vpop.permute.xlu1 %3800  ;;  %v14088_v32 = vld [vmem:[#allocation104_spill] sm:$0xff]  ;;  %v14089_v59 = vld [vmem:[#allocation151_spill] sm:$0xff]  ;;  %v3955_v14 = vmul.f32 %v14091_v49, %v14090_v46  ;;  %v14093_v9 = vld [vmem:[#allocation101_spill] sm:$0xff] }
 0x863   : > { %v4104_v37 = vadd.f32 %v4056_v43, %v3960_v55  ;;  %v4002_v57 = vsub.f32 1.0, %v14088_v32  ;;  %v4001_v25 = vsub.f32 1.0, %v14089_v59  ;;  %v14092_v13 = vld [vmem:[#allocation87_spill] sm:$0xff]  ;;  %v4005_v32 = vsub.f32 1.0, %v14094_v20  ;;  %v14098_v60 = vld [vmem:[#allocation158_spill] sm:$0xff] }
 0x864   : > { %14084 = vst [vmem:[#allocation59_spill] sm:$0xff] %v12257_v24  ;;  %14085 = vst [vmem:[#allocation84_spill] sm:$0xff] %v12259_v12  ;;  %4174 = vrot.lane.b32.xlu0 %v12257_v24, %s7450_s11  ;;  %v3952_v43 = vmul.f32 %v14093_v9, %v14092_v13  ;;  %v3957_v59 = vmul.f32 %v14098_v60, %v14097_v6  ;;  %v14104_v9 = vld [vmem:[#allocation92_spill] sm:$0xff]  ;;  %v14105_v20 = vld [vmem:[#allocation159_spill] sm:$0xff] }
 0x865   : > { %4172 = vrot.lane.b32.xlu1 %v12259_v12, %s7450_s11  ;;  %v14095_v12 = vld [vmem:[#allocation93_spill] sm:$0xff]  ;;  %v3954_v13 = vmul.f32 %v14105_v20, %v14104_v9  ;;  %v14118_v28 = vld [vmem:[#allocation107_spill] sm:$0xff] }
 0x866   : > { %v3835_v0 = vpop.permute.xlu0 %3834  ;;  %v3833_v17 = vpop.permute.xlu1 %3832  ;;  %v3956_v24 = vmul.f32 %v14096_v1, %v14095_v12 }
 0x867   : > { %v3905_v38 = vsel %vm3111_vm4, %v3803_v61, %v3835_v0  ;;  %v3904_v55 = vsel %vm3111_vm4, %v3801_v27, %v3833_v17 }
 0x868   : > { %v4051_v54 = vmul.f32 %v4003_v62, %v3905_v38  ;;  %v4048_v56 = vmul.f32 %v4000_v16, %v3904_v55  ;;  %4206 = vrot.lane.b32.xlu0 %v4107_v63, %s7450_s11  ;;  %v14102_v16 = vld [vmem:[#allocation89_spill] sm:$0xff] }
 0x869   : > { %4204 = vrot.lane.b32.xlu1 %v4104_v37, %s7450_s11  ;;  %v14103_v55 = vld [vmem:[#allocation157_spill] sm:$0xff] }
 0x86a   : > { %v12285_v49 = vadd.f32 %v4051_v54, %v3955_v14  ;;  %v12287_v62 = vadd.f32 %v4048_v56, %v3952_v43  ;;  %v3867_v38 = vpop.permute.xlu0 %3866  ;;  %v3953_v63 = vmul.f32 %v14103_v55, %v14102_v16  ;;  %v3865_v37 = vpop.permute.xlu1 %3864  ;;  %v14116_v16 = vld [vmem:[#allocation112_spill] sm:$0xff] }
 0x86b   : > { %v3889_v1 = vsel %vm3111_vm4, %v3835_v0, %v3867_v38  ;;  %v3921_v60 = vsel %vm3111_vm4, %v3867_v38, %v3803_v61  ;;  %v3888_v6 = vsel %vm3111_vm4, %v3833_v17, %v3865_v37  ;;  %v3920_v56 = vsel %vm3111_vm4, %v3865_v37, %v3801_v27  ;;  %v14108_v17 = vld [vmem:[#allocation75_spill] sm:$0xff] }
 0x86c   : > { %14100 = vst [vmem:[#allocation65_spill] sm:$0xff] %v12285_v49  ;;  %14101 = vst [vmem:[#allocation33_spill] sm:$0xff] %v12287_v62  ;;  %v4052_v14 = vmul.f32 %v4004_v34, %v3889_v1  ;;  %v4053_v54 = vmul.f32 %v4005_v32, %v3921_v60  ;;  %v4049_v43 = vmul.f32 %v4001_v25, %v3888_v6  ;;  %4138 = vrot.lane.b32.xlu0 %v12285_v49, %s7450_s11  ;;  %v14112_v1 = vld [vmem:[#allocation119_spill] sm:$0xff] }
 0x86d   : > { %v4050_v55 = vmul.f32 %v4002_v57, %v3920_v56  ;;  %4136 = vrot.lane.b32.xlu1 %v12287_v62, %s7450_s11  ;;  %v6045_v57 = vmul.f32 -1.442695, %v14108_v17  ;;  %v4020_v60 = vsub.f32 1.0, %v14112_v1  ;;  %v3975_v1 = vmul.f32 %v11984_v48, %v14116_v16 }
 0x86e   : > { %v12305_v0 = vadd.f32 %v4052_v14, %v3956_v24  ;;  %v4101_v9 = vadd.f32 %v4053_v54, %v3957_v59  ;;  %v12307_v61 = vadd.f32 %v4049_v43, %v3953_v63  ;;  %v14109_v24 = vld [vmem:[#allocation78_spill] sm:$0xff]  ;;  %v14110_v59 = vld [vmem:[#allocation121_spill] sm:$0xff]  ;;  %v3972_v62 = vmul.f32 %v11986_v29, %v14118_v28 }
 0x86f   : > { %v4098_v38 = vadd.f32 %v4050_v55, %v3954_v13  ;;  %v6046_v25 = vmul.f32 -1.442695, %v14109_v24  ;;  %v4021_v32 = vsub.f32 1.0, %v14110_v59  ;;  %v14111_v13 = vld [vmem:[#allocation117_spill] sm:$0xff]  ;;  %v14113_v14 = vld [vmem:[#allocation118_spill] sm:$0xff] }
 0x870   : > { %14106 = vst [vmem:[#allocation135_spill] sm:$0xff] %v12305_v0  ;;  %14107 = vst [vmem:[#allocation129_spill] sm:$0xff] %v12307_v61  ;;  %4170 = vrot.lane.b32.xlu0 %v12305_v0, %s7450_s11  ;;  %v4018_v20 = vsub.f32 1.0, %v14111_v13  ;;  %v4019_v54 = vsub.f32 1.0, %v14113_v14  ;;  %v14114_v43 = vld [vmem:[#allocation109_spill] sm:$0xff]  ;;  %v4023_v13 = vsub.f32 1.0, %v11890_v40 }
 0x871   : > { %4168 = vrot.lane.b32.xlu1 %v12307_v61, %s7450_s11  ;;  %v3973_v55 = vmul.f32 %v11922_v39, %v14114_v43  ;;  %v14117_v0 = vld [vmem:[#allocation120_spill] sm:$0xff]  ;;  %v14119_v39 = vld [vmem:[#allocation113_spill] sm:$0xff]  ;;  %7013 = vpow2.f32 %v6046_v25  ;;  %v4015_v25 = vsub.f32 1.0, %v11910_v33 }
 0x872   : > { %v4022_v12 = vsub.f32 1.0, %v14117_v0  ;;  %7015 = vpow2.f32 %v6045_v57 }
 0x874   : > { %4202 = vrot.lane.b32.xlu0 %v4101_v9, %s7450_s11 }
 0x875   : > { %4200 = vrot.lane.b32.xlu1 %v4098_v38, %s7450_s11  ;;  %v14115_v38 = vld [vmem:[#allocation105_spill] sm:$0xff] }
 0x876   : > { %v3970_v59 = vmul.f32 %v11924_v22, %v14115_v38  ;;  %v14120_v22 = vld [vmem:[#allocation106_spill] sm:$0xff] }
 0x879   : > { %v3815_v34 = vpop.permute.xlu0 %3814 }
 0x87a   : > { %v3813_v27 = vpop.permute.xlu1 %3812 }
 0x87d   : > { %v3847_v63 = vpop.permute.xlu0 %3846 }
 0x87e   : > { %v3845_v37 = vpop.permute.xlu1 %3844  ;;  %v3911_v6 = vsel %vm3111_vm4, %v3815_v34, %v3847_v63 }
 0x87f   : > { %v3910_v56 = vsel %vm3111_vm4, %v3813_v27, %v3845_v37  ;;  %v4069_v9 = vmul.f32 %v4021_v32, %v3911_v6  ;;  %v3974_v32 = vmul.f32 %v11957_v7, %v14119_v39 }
 0x880   : > { %v4066_v61 = vmul.f32 %v4018_v20, %v3910_v56  ;;  %v3971_v20 = vmul.f32 %v11959_v4, %v14120_v22 }
 0x881   : > { %v12335_v49 = vadd.f32 %v4069_v9, %v3973_v55  ;;  %v3879_v6 = vpop.permute.xlu0 %3878  ;;  %v14121_v55 = vld [vmem:[#allocation79_spill] sm:$0xff] }
 0x882   : > { %v12337_v14 = vadd.f32 %v4066_v61, %v3970_v59  ;;  %v3877_v40 = vpop.permute.xlu1 %3876  ;;  %v3895_v48 = vsel %vm3111_vm4, %v3847_v63, %v3879_v6  ;;  %v3927_v16 = vsel %vm3111_vm4, %v3879_v6, %v3815_v34  ;;  %v6047_v9 = vmul.f32 -1.442695, %v14121_v55 }
 0x883   : > { %v3894_v29 = vsel %vm3111_vm4, %v3845_v37, %v3877_v40  ;;  %v3926_v28 = vsel %vm3111_vm4, %v3877_v40, %v3813_v27  ;;  %v4070_v61 = vmul.f32 %v4022_v12, %v3895_v48  ;;  %v4071_v59 = vmul.f32 %v4023_v13, %v3927_v16  ;;  %v14122_v12 = vld [vmem:[#allocation76_spill] sm:$0xff]  ;;  %v14123_v37 = vld [vmem:[#allocation123_spill] sm:$0xff] }
 0x884   : > { %v4067_v7 = vmul.f32 %v4019_v54, %v3894_v29  ;;  %v4068_v56 = vmul.f32 %v4020_v60, %v3926_v28  ;;  %7017 = vpow2.f32 %v6047_v9  ;;  %v6048_v27 = vmul.f32 -1.442695, %v14122_v12  ;;  %v14125_v48 = vld [vmem:[#allocation108_spill] sm:$0xff] }
 0x885   : > { %v12352_v4 = vadd.f32 %v4070_v61, %v3974_v32  ;;  %v4119_v38 = vadd.f32 %v4071_v59, %v3975_v1  ;;  %v3811_v34 = vpop.permute.xlu0 %3810  ;;  %v4012_v60 = vsub.f32 1.0, %v14123_v37  ;;  %v14124_v1 = vld [vmem:[#allocation111_spill] sm:$0xff]  ;;  %v3964_v16 = vmul.f32 %v12018_v11, %v14125_v48  ;;  %v14127_v59 = vld [vmem:[#allocation116_spill] sm:$0xff] }
 0x886   : > { %v12354_v63 = vadd.f32 %v4067_v7, %v3971_v20  ;;  %v4116_v43 = vadd.f32 %v4068_v56, %v3972_v62  ;;  %v4014_v62 = vsub.f32 1.0, %v11941_v18  ;;  %v3967_v57 = vmul.f32 %v12010_v2, %v14124_v1  ;;  %v14126_v2 = vld [vmem:[#allocation115_spill] sm:$0xff]  ;;  %v14128_v56 = vld [vmem:[#allocation54_spill] sm:$0xff] }
 0x887   : > { %v3809_v6 = vpop.permute.xlu1 %3808  ;;  %4182 = vrot.lane.b32.xlu0 %v12352_v4, %s7450_s11  ;;  %v4013_v18 = vsub.f32 1.0, %v11935_v15  ;;  %v4017_v28 = vsub.f32 1.0, %v11973_v35  ;;  %v3968_v61 = vmul.f32 %v12046_v50, %v14126_v2  ;;  %v3969_v7 = vmul.f32 %v12061_v53, %v14127_v59  ;;  %v7014_v15 = vpop.eup %7013 }
 0x888   : > { %4180 = vrot.lane.b32.xlu1 %v12354_v63, %s7450_s11  ;;  %v4016_v9 = vsub.f32 1.0, %v14128_v56  ;;  %7019 = vpow2.f32 %v6048_v27  ;;  %v4286_v27 = vsub.f32 1.5, %v13986_v5 }
 0x88a   : > { %v3843_v13 = vpop.permute.xlu0 %3842 }
 0x88b   : > { %v3841_v54 = vpop.permute.xlu1 %3840  ;;  %v3909_v32 = vsel %vm3111_vm4, %v3811_v34, %v3843_v13  ;;  %4214 = vrot.lane.b32.xlu0 %v4119_v38, %s7450_s11  ;;  %v14129_v38 = vld [vmem:[#allocation110_spill] sm:$0xff] }
 0x88c   : > { %v3908_v20 = vsel %vm3111_vm4, %v3809_v6, %v3841_v54  ;;  %v4063_v40 = vmul.f32 %v4015_v25, %v3909_v32  ;;  %4212 = vrot.lane.b32.xlu1 %v4116_v43, %s7450_s11  ;;  %v3965_v43 = vmul.f32 %v12048_v23, %v14129_v38  ;;  %v14130_v32 = vld [vmem:[#allocation114_spill] sm:$0xff] }
 0x88d   : > { %v4060_v29 = vmul.f32 %v4012_v60, %v3908_v20  ;;  %v3966_v20 = vmul.f32 %v12063_v45, %v14130_v32  ;;  %v7016_v45 = vpop.eup %7015 }
 0x88e   : > { %v12381_v25 = vadd.f32 %v4063_v40, %v3967_v57  ;;  %v3875_v60 = vpop.permute.xlu0 %3874 }
 0x88f   : > { %v12383_v11 = vadd.f32 %v4060_v29, %v3964_v16  ;;  %v3873_v35 = vpop.permute.xlu1 %3872  ;;  %v3893_v50 = vsel %vm3111_vm4, %v3843_v13, %v3875_v60  ;;  %v3925_v53 = vsel %vm3111_vm4, %v3875_v60, %v3811_v34 }
 0x890   : > { %v3892_v57 = vsel %vm3111_vm4, %v3841_v54, %v3873_v35  ;;  %v3924_v40 = vsel %vm3111_vm4, %v3873_v35, %v3809_v6  ;;  %v4064_v16 = vmul.f32 %v4016_v9, %v3893_v50  ;;  %v4065_v29 = vmul.f32 %v4017_v28, %v3925_v53  ;;  %4146 = vrot.lane.b32.xlu0 %v12381_v25, %s7450_s11  ;;  %v7018_v28 = vpop.eup %7017 }
 0x891   : > { %v4061_v23 = vmul.f32 %v4013_v18, %v3892_v57  ;;  %v4062_v59 = vmul.f32 %v4014_v62, %v3924_v40  ;;  %4144 = vrot.lane.b32.xlu1 %v12383_v11, %s7450_s11  ;;  %v4457_v9 = vadd.f32 1.0, %v7014_v15  ;;  %v4456_v62 = vadd.f32 1.0, %v7016_v45  ;;  %v14133_v57 = vld [vmem:[#allocation83_spill] sm:$0xff] }
 0x892   : > { %v12401_v13 = vadd.f32 %v4064_v16, %v3968_v61  ;;  %v4113_v34 = vadd.f32 %v4065_v29, %v3969_v7  ;;  %v4127_v32 = vpop.permute.xlu0 %4126  ;;  %v14131_v61 = vld [vmem:[#allocation122_spill] sm:$0xff]  ;;  %v4252_v40 = vmul.f32 %v12016_v52, %v14133_v57 }
 0x893   : > { %v12403_v60 = vadd.f32 %v4061_v23, %v3965_v43  ;;  %v4110_v54 = vadd.f32 %v4062_v59, %v3966_v20  ;;  %v4125_v6 = vpop.permute.xlu1 %4124  ;;  %v4284_v35 = vsub.f32 1.5, %v14131_v61  ;;  %7021 = vrcp.f32 %v4457_v9  ;;  %v14132_v20 = vld [vmem:[#allocation60_spill] sm:$0xff]  ;;  %v7020_v61 = vpop.eup %7019 }
 0x894   : > { %4178 = vrot.lane.b32.xlu0 %v12401_v13, %s7450_s11  ;;  %v4254_v50 = vmul.f32 %v11995_v30, %v14132_v20  ;;  %7023 = vrcp.f32 %v4456_v62  ;;  %v14134_v23 = vld [vmem:[#allocation124_spill] sm:$0xff]  ;;  %v14137_v62 = vld [vmem:[#allocation31_spill] sm:$0xff] }
 0x895   : > { %4176 = vrot.lane.b32.xlu1 %v12403_v60, %s7450_s11  ;;  %v4287_v59 = vsub.f32 1.5, %v14134_v23 }
 0x896   : > { %v4159_v18 = vpop.permute.xlu0 %4158 }
 0x897   : > { %v4157_v7 = vpop.permute.xlu1 %4156  ;;  %v4235_v43 = vsel %vm3111_vm4, %v4127_v32, %v4159_v18  ;;  %v14135_v32 = vld [vmem:[#allocation125_spill] sm:$0xff] }
 0x898   : > { %v4234_v15 = vsel %vm3111_vm4, %v4125_v6, %v4157_v7  ;;  %v4318_v53 = vmul.f32 %v4286_v27, %v4235_v43  ;;  %4210 = vrot.lane.b32.xlu0 %v4113_v34, %s7450_s11  ;;  %v4285_v6 = vsub.f32 1.5, %v14135_v32  ;;  %v14136_v27 = vld [vmem:[#allocation56_spill] sm:$0xff] }
 0x899   : > { %v4316_v16 = vmul.f32 %v4284_v35, %v4234_v15  ;;  %4208 = vrot.lane.b32.xlu1 %v4110_v54, %s7450_s11  ;;  %v4255_v52 = vmul.f32 %v12022_v8, %v14136_v27  ;;  %v4253_v54 = vmul.f32 %v12041_v47, %v14137_v62  ;;  %v4459_v8 = vadd.f32 1.0, %v7020_v61  ;;  %v14141_v61 = vld [vmem:[#allocation41_spill] sm:$0xff] }
 0x89a   : > { %v4350_v5 = vadd.f32 %v4318_v53, %v4254_v50  ;;  %v4191_v45 = vpop.permute.xlu0 %4190  ;;  %v14138_v50 = vld [vmem:[#allocation80_spill] sm:$0xff]  ;;  %v4280_v27 = vsub.f32 1.5, %v14141_v61 }
 0x89b   : > { %v4348_v29 = vadd.f32 %v4316_v16, %v4252_v40  ;;  %v4189_v9 = vpop.permute.xlu1 %4188  ;;  %v4219_v30 = vsel %vm3111_vm4, %v4159_v18, %v4191_v45  ;;  %v6049_v18 = vmul.f32 -1.442695, %v14138_v50  ;;  %v4458_v16 = vadd.f32 1.0, %v7018_v28 }
 0x89c   : > { %v4218_v34 = vsel %vm3111_vm4, %v4157_v7, %v4189_v9  ;;  %v12431_v35 = vmul.f32 0.6666667, %v4350_v5  ;;  %v4319_v15 = vmul.f32 %v4287_v59, %v4219_v30  ;;  %4150 = vrot.lane.b32.xlu0 %v12335_v49, %s7450_s11  ;;  %v14139_v59 = vld [vmem:[#allocation52_spill] sm:$0xff] }
 0x89d   : > { %v12433_v43 = vmul.f32 0.6666667, %v4348_v29  ;;  %v4317_v20 = vmul.f32 %v4285_v6, %v4218_v34  ;;  %4148 = vrot.lane.b32.xlu1 %v12337_v14, %s7450_s11  ;;  %v7022_v23 = vpop.eup %7021  ;;  %7025 = vpow2.f32 %v6049_v18  ;;  %v6050_v45 = vmul.f32 -1.442695, %v14139_v59  ;;  %v14140_v6 = vld [vmem:[#allocation37_spill] sm:$0xff] }
 0x89e   : > { %v4351_v53 = vadd.f32 %v4319_v15, %v4255_v52  ;;  %v4123_v57 = vpop.permute.xlu0 %4122  ;;  %7027 = vrcp.f32 %v4459_v8  ;;  %v4282_v9 = vsub.f32 1.5, %v14140_v6  ;;  %v7024_v34 = vpop.eup %7023  ;;  %v14143_v15 = vld [vmem:[#allocation53_spill] sm:$0xff]  ;;  %v4505_v8 = vmul.f32 %v7022_v23, %v14109_v24 }
 0x89f   : > { %v4349_v7 = vadd.f32 %v4317_v20, %v4253_v54  ;;  %v4121_v40 = vpop.permute.xlu1 %4120  ;;  %v4524_v47 = vpack.c.bf16 %v12431_v35, %v12433_v43  ;;  %7029 = vrcp.f32 %v4458_v16  ;;  %v14142_v54 = vld [vmem:[#allocation82_spill] sm:$0xff]  ;;  %v4248_v20 = vmul.f32 %v12086_v51, %v14143_v15 }
 0x8a0   : > { %v4383_v5 = vmul.f32 0.6666667, %v4351_v53  ;;  %v4250_v35 = vmul.f32 %v12066_v26, %v14142_v54  ;;  %7031 = vpow2.f32 %v6050_v45  ;;  %v14144_v16 = vld [vmem:[#allocation130_spill] sm:$0xff]  ;;  %v4249_v51 = vmul.f32 %v12102_v41, %v14026_v58 }
 0x8a1   : > { %v4381_v29 = vmul.f32 0.6666667, %v4349_v7 }
 0x8a2   : > { %v4155_v30 = vpop.permute.xlu0 %4154 }
 0x8a3   : > { %v4525_v32 = vpack.c.bf16 %v4383_v5, %v4381_v29  ;;  %v4153_v52 = vpop.permute.xlu1 %4152  ;;  %v4233_v62 = vsel %vm3111_vm4, %v4123_v57, %v4155_v30  ;;  %v4283_v5 = vsub.f32 1.5, %v14144_v16  ;;  %v4281_v57 = vsub.f32 1.5, %v14024_v42  ;;  %v14145_v42 = vld [vmem:[#allocation29_spill] sm:$0xff] }
 0x8a4   : > { %v4232_v28 = vsel %vm3111_vm4, %v4121_v40, %v4153_v52  ;;  %v4314_v43 = vmul.f32 %v4282_v9, %v4233_v62  ;;  %v4251_v40 = vmul.f32 %v12090_v21, %v14020_v10  ;;  %v6052_v62 = vmul.f32 -1.442695, %v14145_v42  ;;  %v14147_v16 = vld [vmem:[#allocation57_spill] sm:$0xff] }
 0x8a5   : > { %v4312_v18 = vmul.f32 %v4280_v27, %v4232_v28  ;;  %v4504_v27 = vmul.f32 %v7024_v34, %v14108_v17 }
 0x8a6   : > { %v4346_v53 = vadd.f32 %v4314_v43, %v4250_v35  ;;  %v4187_v29 = vpop.permute.xlu0 %4186  ;;  %v14146_v43 = vld [vmem:[#allocation77_spill] sm:$0xff]  ;;  %7033 = vpow2.f32 %v6052_v62 }
 0x8a7   : > { %v4344_v7 = vadd.f32 %v4312_v18, %v4248_v20  ;;  %v4185_v6 = vpop.permute.xlu1 %4184  ;;  %v4217_v26 = vsel %vm3111_vm4, %v4155_v30, %v4187_v29  ;;  %v7026_v10 = vpop.eup %7025  ;;  %v4520_v35 = vpack.c.bf16 %v4505_v8, %v4504_v27  ;;  %v6051_v15 = vmul.f32 -1.442695, %v14146_v43 }
 0x8a8   : > { %v4216_v24 = vsel %vm3111_vm4, %v4153_v52, %v4185_v6  ;;  %v4378_v23 = vmul.f32 0.6666667, %v4346_v53  ;;  %v4315_v9 = vmul.f32 %v4283_v5, %v4217_v26  ;;  %v7028_v30 = vpop.eup %7027  ;;  %v4294_v5 = vsub.f32 1.5, %v14147_v16  ;;  %v14148_v6 = vld [vmem:[#allocation137_spill] sm:$0xff]  ;;  %v14158_v16 = vld [vmem:[#allocation66_spill] sm:$0xff] }
 0x8a9   : > { %v4376_v45 = vmul.f32 0.6666667, %v4344_v7  ;;  %v4313_v61 = vmul.f32 %v4281_v57, %v4216_v24  ;;  %v7030_v52 = vpop.eup %7029  ;;  %v4507_v53 = vmul.f32 %v7028_v30, %v14122_v12  ;;  %7035 = vpow2.f32 %v6051_v15  ;;  %v14150_v24 = vld [vmem:[#allocation134_spill] sm:$0xff] }
 0x8aa   : > { %v4347_v28 = vadd.f32 %v4315_v9, %v4251_v40  ;;  %v7032_v17 = vpop.eup %7031  ;;  %v4506_v8 = vmul.f32 %v7030_v52, %v14121_v55  ;;  %v4292_v40 = vsub.f32 1.5, %v14148_v6  ;;  %v14151_v55 = vld [vmem:[#allocation34_spill] sm:$0xff]  ;;  %v14152_v9 = vld [vmem:[#allocation128_spill] sm:$0xff] }
 0x8ab   : > { %v4345_v54 = vadd.f32 %v4313_v61, %v4249_v51  ;;  %v4521_v21 = vpack.c.bf16 %v4378_v23, %v4376_v45  ;;  %v4461_v7 = vadd.f32 1.0, %v7032_v17  ;;  %v14149_v51 = vld [vmem:[#allocation47_spill] sm:$0xff]  ;;  %v4460_v45 = vadd.f32 1.0, %v7026_v10  ;;  %v14154_v15 = vld [vmem:[#allocation138_spill] sm:$0xff] }
 0x8ac   : > { %v4379_v58 = vmul.f32 0.6666667, %v4347_v28  ;;  %v4523_v26 = vpack.c.bf16 %v4507_v53, %v4506_v8  ;;  %v4262_v23 = vmul.f32 %v14150_v24, %v14149_v51  ;;  %v4260_v61 = vmul.f32 %v14152_v9, %v14151_v55  ;;  %v14153_v28 = vld [vmem:[#allocation46_spill] sm:$0xff]  ;;  %v14159_v9 = vld [vmem:[#allocation64_spill] sm:$0xff] }
 0x8ad   : > { %v4377_v41 = vmul.f32 0.6666667, %v4345_v54  ;;  %4720 = vmatprep.mubr.bf16.mxu1 %v4521_v21  ;;  %7037 = vrcp.f32 %v4461_v7  ;;  %v4295_v54 = vsub.f32 1.5, %v14153_v28  ;;  %v14155_v10 = vld [vmem:[#allocation38_spill] sm:$0xff] }
 0x8ae   : > { %4721 = vmatmul.mubr.bf16.vlgmr.msra.gmra.mrb[16].mxu1 %v4520_v35  ;;  %v4135_v20 = vpop.permute.xlu0 %4134  ;;  %v4133_v34 = vpop.permute.xlu1 %4132  ;;  %7039 = vrcp.f32 %v4460_v45  ;;  %v14157_v7 = vld [vmem:[#allocation62_spill] sm:$0xff]  ;;  %v14160_v45 = vld [vmem:[#allocation140_spill] sm:$0xff] }
 0x8af   : > { %4728 = vmatprep.mubr.bf16.mxu1 %v4524_v47  ;;  %v4522_v18 = vpack.c.bf16 %v4379_v58, %v4377_v41  ;;  %v4293_v58 = vsub.f32 1.5, %v14154_v15 }
 0x8b0   : > { %v7034_v52 = vpop.eup %7033 }
 0x8b1   : > { %6409 = vmatprep.mubr.bf16.mxu0 %v4522_v18  ;;  %v14156_v18 = vld [vmem:[#allocation61_spill] sm:$0xff] }
 0x8b2   : > { %6410 = vmatmul.mubr.bf16.vlgmr.msra.gmra.mrb[32].mxu0 %v4525_v32  ;;  %v4167_v29 = vpop.permute.xlu0 %4166  ;;  %v4165_v47 = vpop.permute.xlu1 %4164  ;;  %v4263_v17 = vmul.f32 %v14156_v18, %v14155_v10 }
 0x8b3   : > { %v4239_v57 = vsel %vm3111_vm4, %v4135_v20, %v4167_v29  ;;  %v4238_v32 = vsel %vm3111_vm4, %v4133_v34, %v4165_v47  ;;  %v7036_v6 = vpop.eup %7035 }
 0x8b4   : > { %v4326_v12 = vmul.f32 %v4294_v5, %v4239_v57  ;;  %v4324_v27 = vmul.f32 %v4292_v40, %v4238_v32  ;;  %v4261_v5 = vmul.f32 %v14158_v16, %v14157_v7  ;;  %v4462_v32 = vadd.f32 1.0, %v7036_v6 }
 0x8b6   : > { %4729 = vmatmul.mubr.bf16.gmra.mrb[20].mxu1 %v4523_v26  ;;  %v4358_v62 = vadd.f32 %v4326_v12, %v4262_v23  ;;  %v4199_v21 = vpop.permute.xlu0 %4198  ;;  %v4356_v35 = vadd.f32 %v4324_v27, %v4260_v61  ;;  %v4197_v41 = vpop.permute.xlu1 %4196  ;;  %v4463_v26 = vadd.f32 1.0, %v7034_v52  ;;  %v4290_v61 = vsub.f32 1.5, %v14159_v9 }
 0x8b7   : > { %v4223_v30 = vsel %vm3111_vm4, %v4167_v29, %v4199_v21  ;;  %v4222_v53 = vsel %vm3111_vm4, %v4165_v47, %v4197_v41  ;;  %v7038_v21 = vpop.eup %7037 }
 0x8b8   : > { %v4390_v20 = vmul.f32 0.6666667, %v4358_v62  ;;  %v4327_v34 = vmul.f32 %v4295_v54, %v4223_v30  ;;  %v4388_v8 = vmul.f32 0.6666667, %v4356_v35  ;;  %v4325_v57 = vmul.f32 %v4293_v58, %v4222_v53  ;;  %v14161_v58 = vld [vmem:[#allocation71_spill] sm:$0xff] }
 0x8b9   : > { %7041 = vrcp.f32 %v4463_v26  ;;  %v4288_v62 = vsub.f32 1.5, %v14160_v45  ;;  %v4258_v35 = vmul.f32 %v12189_v3, %v14052_v31  ;;  %v4256_v41 = vmul.f32 %v12191_v36, %v14161_v58  ;;  %v14164_v3 = vld [vmem:[#allocation141_spill] sm:$0xff]  ;;  %v14165_v36 = vld [vmem:[#allocation127_spill] sm:$0xff]  ;;  %v14169_v58 = vld [vmem:[#allocation50_spill] sm:$0xff] }
 0x8ba   : > { %v4359_v29 = vadd.f32 %v4327_v34, %v4263_v17  ;;  %v4131_v40 = vpop.permute.xlu0 %4130  ;;  %v4357_v51 = vadd.f32 %v4325_v57, %v4261_v5  ;;  %v4129_v24 = vpop.permute.xlu1 %4128  ;;  %v4530_v23 = vpack.c.bf16 %v4390_v20, %v4388_v8  ;;  %7043 = vrcp.f32 %v4462_v32  ;;  %v14162_v20 = vld [vmem:[#allocation35_spill] sm:$0xff]  ;;  %v14163_v17 = vld [vmem:[#allocation142_spill] sm:$0xff] }
 0x8bb   : > { %v6054_v10 = vmul.f32 -1.442695, %v14162_v20  ;;  %v4291_v34 = vsub.f32 1.5, %v14163_v17  ;;  %v7040_v8 = vpop.eup %7039  ;;  %v4289_v16 = vsub.f32 1.5, %v14164_v3  ;;  %v4509_v57 = vmul.f32 %v7038_v21, %v14139_v59  ;;  %v14168_v45 = vld [vmem:[#allocation51_spill] sm:$0xff] }
 0x8bc   : > { %v4391_v12 = vmul.f32 0.6666667, %v4359_v29  ;;  %v4389_v55 = vmul.f32 0.6666667, %v4357_v51  ;;  %v4259_v29 = vmul.f32 %v14165_v36, %v14058_v44  ;;  %v6053_v59 = vmul.f32 -1.442695, %v14168_v45 }
 0x8bd   : > { %7045 = vpow2.f32 %v6054_v10 }
 0x8be   : > { %v4163_v27 = vpop.permute.xlu0 %4162  ;;  %v4161_v28 = vpop.permute.xlu1 %4160  ;;  %v4531_v54 = vpack.c.bf16 %v4391_v12, %v4389_v55  ;;  %v14167_v12 = vld [vmem:[#allocation132_spill] sm:$0xff]  ;;  %7047 = vpow2.f32 %v6053_v59 }
 0x8bf   : > { %v4237_v47 = vsel %vm3111_vm4, %v4131_v40, %v4163_v27  ;;  %v4236_v15 = vsel %vm3111_vm4, %v4129_v24, %v4161_v28  ;;  %v14166_v24 = vld [vmem:[#allocation30_spill] sm:$0xff] }
 0x8c0   : > { %v4322_v30 = vmul.f32 %v4290_v61, %v4237_v47  ;;  %v4320_v52 = vmul.f32 %v4288_v62, %v4236_v15  ;;  %v4257_v32 = vmul.f32 %v14167_v12, %v14166_v24  ;;  %v4508_v61 = vmul.f32 %v7040_v8, %v14138_v50  ;;  %v14170_v50 = vld [vmem:[#allocation81_spill] sm:$0xff] }
 0x8c2   : > { %v4354_v18 = vadd.f32 %v4322_v30, %v4258_v35  ;;  %v4195_v53 = vpop.permute.xlu0 %4194  ;;  %v4352_v7 = vadd.f32 %v4320_v52, %v4256_v41  ;;  %v4193_v5 = vpop.permute.xlu1 %4192  ;;  %v4526_v21 = vpack.c.bf16 %v4509_v57, %v4508_v61  ;;  %v6055_v41 = vmul.f32 -1.442695, %v14169_v58  ;;  %v14173_v57 = vld [vmem:[#allocation88_spill] sm:$0xff] }
 0x8c3   : > { %v4221_v31 = vsel %vm3111_vm4, %v4163_v27, %v4195_v53  ;;  %v4220_v26 = vsel %vm3111_vm4, %v4161_v28, %v4193_v5  ;;  %v7042_v44 = vpop.eup %7041  ;;  %v6056_v52 = vmul.f32 -1.442695, %v14170_v50 }
 0x8c4   : > { %v4386_v6 = vmul.f32 0.6666667, %v4354_v18  ;;  %v4323_v40 = vmul.f32 %v4291_v34, %v4221_v31  ;;  %v4384_v51 = vmul.f32 0.6666667, %v4352_v7  ;;  %v4321_v55 = vmul.f32 %v4289_v16, %v4220_v26  ;;  %v7044_v28 = vpop.eup %7043  ;;  %v14171_v7 = vld [vmem:[#allocation97_spill] sm:$0xff] }
 0x8c5   : > { %v4511_v15 = vmul.f32 %v7042_v44, %v14145_v42  ;;  %v4510_v10 = vmul.f32 %v7044_v28, %v14146_v43  ;;  %7049 = vpow2.f32 %v6055_v41  ;;  %v4302_v31 = vsub.f32 1.5, %v14171_v7  ;;  %v14172_v16 = vld [vmem:[#allocation149_spill] sm:$0xff]  ;;  %v14174_v43 = vld [vmem:[#allocation63_spill] sm:$0xff] }
 0x8c6   : > { %v4355_v9 = vadd.f32 %v4323_v40, %v4259_v29  ;;  %v4353_v27 = vadd.f32 %v4321_v55, %v4257_v32  ;;  %v4527_v47 = vpack.c.bf16 %v4386_v6, %v4384_v51  ;;  %7051 = vpow2.f32 %v6056_v52  ;;  %v14175_v26 = vld [vmem:[#allocation45_spill] sm:$0xff]  ;;  %v14176_v51 = vld [vmem:[#allocation131_spill] sm:$0xff]  ;;  %v14177_v55 = vld [vmem:[#allocation98_spill] sm:$0xff] }
 0x8c7   : > { %v4529_v18 = vpack.c.bf16 %v4511_v15, %v4510_v10  ;;  %v7046_v17 = vpop.eup %7045  ;;  %v4300_v5 = vsub.f32 1.5, %v14172_v16  ;;  %v4270_v6 = vmul.f32 %v14174_v43, %v14173_v57  ;;  %v4268_v24 = vmul.f32 %v14176_v51, %v14175_v26  ;;  %v14180_v15 = vld [vmem:[#allocation59_spill] sm:$0xff] }
 0x8c8   : > { %v4387_v62 = vmul.f32 0.6666667, %v4355_v9  ;;  %v4385_v35 = vmul.f32 0.6666667, %v4353_v27  ;;  %4736 = vmatprep.mubr.bf16.mxu1 %v4527_v47  ;;  %v7048_v8 = vpop.eup %7047  ;;  %v4303_v9 = vsub.f32 1.5, %v14177_v55  ;;  %v14184_v26 = vld [vmem:[#allocation99_spill] sm:$0xff] }
 0x8c9   : > { %4737 = vmatmul.mubr.bf16.gmra.mrb[24].mxu1 %v4526_v21  ;;  %v4464_v40 = vadd.f32 1.0, %v7048_v8  ;;  %v4296_v51 = vsub.f32 1.5, %v14184_v26 }
 0x8ca   : > { %4744 = vmatprep.mubr.bf16.mxu1 %v4530_v23  ;;  %v4528_v30 = vpack.c.bf16 %v4387_v62, %v4385_v35  ;;  %v4465_v23 = vadd.f32 1.0, %v7046_v17  ;;  %v14178_v62 = vld [vmem:[#allocation96_spill] sm:$0xff]  ;;  %v14181_v17 = vld [vmem:[#allocation85_spill] sm:$0xff] }
 0x8cb   : > { %v4301_v21 = vsub.f32 1.5, %v14178_v62 }
 0x8cc   : > { %6413 = vmatprep.mubr.bf16.mxu0 %v4528_v30  ;;  %7053 = vrcp.f32 %v4465_v23  ;;  %v14179_v30 = vld [vmem:[#allocation94_spill] sm:$0xff] }
 0x8cd   : > { %6414 = vmatmul.mubr.bf16.gmra.mrb[36].mxu0 %v4531_v54  ;;  %v4271_v41 = vmul.f32 %v14180_v15, %v14179_v30  ;;  %7055 = vrcp.f32 %v4464_v40 }
 0x8cf   : > { %v7050_v27 = vpop.eup %7049 }
 0x8d0   : > { %v7052_v35 = vpop.eup %7051  ;;  %v4466_v8 = vadd.f32 1.0, %v7050_v27  ;;  %v14186_v27 = vld [vmem:[#allocation87_spill] sm:$0xff] }
 0x8d1   : > { %4745 = vmatmul.mubr.bf16.gmra.mrb[28].mxu1 %v4529_v18 }
 0x8d2   : > { %v4143_v34 = vpop.permute.xlu0 %4142  ;;  %7057 = vrcp.f32 %v4466_v8 }
 0x8d3   : > { %v4141_v53 = vpop.permute.xlu1 %4140 }
 0x8d6   : > { %v4175_v42 = vpop.permute.xlu0 %4174 }
 0x8d7   : > { %v4243_v3 = vsel %vm3111_vm4, %v4143_v34, %v4175_v42  ;;  %v4173_v54 = vpop.permute.xlu1 %4172  ;;  %v14182_v34 = vld [vmem:[#allocation84_spill] sm:$0xff] }
 0x8d8   : > { %v4334_v36 = vmul.f32 %v4302_v31, %v4243_v3  ;;  %v4242_v29 = vsel %vm3111_vm4, %v4141_v53, %v4173_v54  ;;  %v4269_v53 = vmul.f32 %v14182_v34, %v14181_v17  ;;  %v14191_v34 = vld [vmem:[#allocation151_spill] sm:$0xff] }
 0x8d9   : > { %v4332_v12 = vmul.f32 %v4300_v5, %v4242_v29 }
 0x8da   : > { %v4366_v32 = vadd.f32 %v4334_v36, %v4270_v6  ;;  %v4207_v61 = vpop.permute.xlu0 %4206  ;;  %v14183_v6 = vld [vmem:[#allocation150_spill] sm:$0xff] }
 0x8db   : > { %v4364_v47 = vadd.f32 %v4332_v12, %v4268_v24  ;;  %v4227_v59 = vsel %vm3111_vm4, %v4175_v42, %v4207_v61  ;;  %v4205_v44 = vpop.permute.xlu1 %4204  ;;  %v4467_v42 = vadd.f32 1.0, %v7052_v35  ;;  %v4298_v36 = vsub.f32 1.5, %v14183_v6 }
 0x8dc   : > { %v4398_v28 = vmul.f32 0.6666667, %v4366_v32  ;;  %v4335_v52 = vmul.f32 %v4303_v9, %v4227_v59  ;;  %v4226_v10 = vsel %vm3111_vm4, %v4173_v54, %v4205_v44  ;;  %v7054_v54 = vpop.eup %7053  ;;  %v14185_v32 = vld [vmem:[#allocation65_spill] sm:$0xff] }
 0x8dd   : > { %v4396_v18 = vmul.f32 0.6666667, %v4364_v47  ;;  %v4333_v23 = vmul.f32 %v4301_v21, %v4226_v10  ;;  %7059 = vrcp.f32 %v4467_v42  ;;  %v4266_v55 = vmul.f32 %v14185_v32, %v14090_v46  ;;  %v14187_v47 = vld [vmem:[#allocation33_spill] sm:$0xff]  ;;  %v14188_v21 = vld [vmem:[#allocation70_spill] sm:$0xff] }
 0x8de   : > { %v4367_v7 = vadd.f32 %v4335_v52, %v4271_v41  ;;  %v4139_v31 = vpop.permute.xlu0 %4138  ;;  %v4264_v59 = vmul.f32 %v14187_v47, %v14186_v27  ;;  %v6057_v44 = vmul.f32 -1.442695, %v14188_v21  ;;  %v4513_v41 = vmul.f32 %v7054_v54, %v14162_v20  ;;  %v7056_v52 = vpop.eup %7055  ;;  %v14190_v10 = vld [vmem:[#allocation69_spill] sm:$0xff] }
 0x8df   : > { %v4365_v3 = vadd.f32 %v4333_v23, %v4269_v53  ;;  %v4137_v16 = vpop.permute.xlu1 %4136  ;;  %v4536_v5 = vpack.c.bf16 %v4398_v28, %v4396_v18  ;;  %v14189_v28 = vld [vmem:[#allocation152_spill] sm:$0xff]  ;;  %v6058_v18 = vmul.f32 -1.442695, %v14190_v10  ;;  %v4297_v53 = vsub.f32 1.5, %v14191_v34  ;;  %v14194_v20 = vld [vmem:[#allocation89_spill] sm:$0xff] }
 0x8e0   : > { %v4399_v57 = vmul.f32 0.6666667, %v4367_v7  ;;  %v4299_v30 = vsub.f32 1.5, %v14189_v28  ;;  %v14192_v7 = vld [vmem:[#allocation93_spill] sm:$0xff]  ;;  %7061 = vpow2.f32 %v6057_v44 }
 0x8e1   : > { %v4397_v43 = vmul.f32 0.6666667, %v4365_v3  ;;  %7063 = vpow2.f32 %v6058_v18  ;;  %v14198_v18 = vld [vmem:[#allocation118_spill] sm:$0xff] }
 0x8e2   : > { %v4171_v29 = vpop.permute.xlu0 %4170 }
 0x8e3   : > { %v4241_v40 = vsel %vm3111_vm4, %v4139_v31, %v4171_v29  ;;  %v4169_v24 = vpop.permute.xlu1 %4168  ;;  %v4537_v12 = vpack.c.bf16 %v4399_v57, %v4397_v43  ;;  %v14193_v31 = vld [vmem:[#allocation135_spill] sm:$0xff]  ;;  %v14195_v43 = vld [vmem:[#allocation129_spill] sm:$0xff] }
 0x8e4   : > { %v4330_v9 = vmul.f32 %v4298_v36, %v4241_v40  ;;  %v4240_v61 = vsel %vm3111_vm4, %v4137_v16, %v4169_v24  ;;  %v4267_v42 = vmul.f32 %v14193_v31, %v14192_v7  ;;  %v4265_v6 = vmul.f32 %v14195_v43, %v14194_v20 }
 0x8e5   : > { %v4328_v62 = vmul.f32 %v4296_v51, %v4240_v61  ;;  %v4512_v40 = vmul.f32 %v7056_v52, %v14168_v45  ;;  %v7058_v51 = vpop.eup %7057  ;;  %v14197_v45 = vld [vmem:[#allocation74_spill] sm:$0xff] }
 0x8e6   : > { %v4362_v35 = vadd.f32 %v4330_v9, %v4266_v55  ;;  %v4203_v15 = vpop.permute.xlu0 %4202  ;;  %v4514_v27 = vmul.f32 %v7058_v51, %v14169_v58  ;;  %v6060_v44 = vmul.f32 -1.442695, %v14197_v45  ;;  %v4311_v58 = vsub.f32 1.5, %v14117_v0 }
 0x8e7   : > { %v4360_v46 = vadd.f32 %v4328_v62, %v4264_v59  ;;  %v4225_v17 = vsel %vm3111_vm4, %v4171_v29, %v4203_v15  ;;  %v4201_v23 = vpop.permute.xlu1 %4200  ;;  %v4532_v55 = vpack.c.bf16 %v4513_v41, %v4512_v40  ;;  %v7060_v9 = vpop.eup %7059  ;;  %v14196_v59 = vld [vmem:[#allocation32_spill] sm:$0xff]  ;;  %v4277_v0 = vmul.f32 %v12354_v63, %v14120_v22 }
 0x8e8   : > { %v4394_v8 = vmul.f32 0.6666667, %v4362_v35  ;;  %v4331_v3 = vmul.f32 %v4299_v30, %v4225_v17  ;;  %v4224_v16 = vsel %vm3111_vm4, %v4169_v24, %v4201_v23  ;;  %v4515_v47 = vmul.f32 %v7060_v9, %v14170_v50 }
 0x8e9   : > { %v4392_v57 = vmul.f32 0.6666667, %v4360_v46  ;;  %v4329_v36 = vmul.f32 %v4297_v53, %v4224_v16  ;;  %v6059_v62 = vmul.f32 -1.442695, %v14196_v59  ;;  %v4309_v46 = vsub.f32 1.5, %v14198_v18 }
 0x8ea   : > { %v4363_v54 = vadd.f32 %v4331_v3, %v4267_v42  ;;  %v4535_v35 = vpack.c.bf16 %v4515_v47, %v4514_v27  ;;  %v7062_v28 = vpop.eup %7061  ;;  %v4306_v40 = vsub.f32 1.5, %v11910_v33  ;;  %v4274_v51 = vmul.f32 %v12381_v25, %v14124_v1  ;;  %v14199_v25 = vld [vmem:[#allocation126_spill] sm:$0xff] }
 0x8eb   : > { %v4361_v29 = vadd.f32 %v4329_v36, %v4265_v6  ;;  %v4533_v26 = vpack.c.bf16 %v4394_v8, %v4392_v57  ;;  %7065 = vpow2.f32 %v6059_v62  ;;  %v7064_v30 = vpop.eup %7063  ;;  %v4468_v15 = vadd.f32 1.0, %v7062_v28 }
 0x8ec   : > { %v4395_v32 = vmul.f32 0.6666667, %v4363_v54  ;;  %7067 = vpow2.f32 %v6060_v44  ;;  %v4469_v41 = vadd.f32 1.0, %v7064_v30  ;;  %v4279_v8 = vmul.f32 %v12352_v4, %v14119_v39 }
 0x8ed   : > { %v4393_v61 = vmul.f32 0.6666667, %v4361_v29  ;;  %4752 = vmatprep.mubr.bf16.mxu1 %v4533_v26  ;;  %7069 = vrcp.f32 %v4468_v15  ;;  %v4304_v4 = vsub.f32 1.5, %v14123_v37  ;;  %v4272_v33 = vmul.f32 %v12383_v11, %v14125_v48 }
 0x8ee   : > { %4753 = vmatmul.mubr.bf16.gmra.mrb[32].mxu1 %v4532_v55  ;;  %7071 = vrcp.f32 %v4469_v41  ;;  %v4305_v44 = vsub.f32 1.5, %v14199_v25  ;;  %v4275_v48 = vmul.f32 %v12401_v13, %v14126_v2  ;;  %v14200_v41 = vld [vmem:[#allocation121_spill] sm:$0xff] }
 0x8ef   : > { %4760 = vmatprep.mubr.bf16.mxu1 %v4536_v5  ;;  %v4534_v24 = vpack.c.bf16 %v4395_v32, %v4393_v61 }
 0x8f1   : > { %6417 = vmatprep.mubr.bf16.mxu0 %v4534_v24  ;;  %v4307_v24 = vsub.f32 1.5, %v14128_v56 }
 0x8f2   : > { %6418 = vmatmul.mubr.bf16.gmra.mrb[40].mxu0 %v4537_v12 }
 0x8f5   : > { %v7066_v12 = vpop.eup %7065 }
 0x8f6   : > { %4761 = vmatmul.mubr.bf16.gmra.mrb[36].mxu1 %v4535_v35  ;;  %v7068_v23 = vpop.eup %7067  ;;  %v4470_v42 = vadd.f32 1.0, %v7066_v12  ;;  %v14201_v12 = vld [vmem:[#allocation117_spill] sm:$0xff] }
 0x8f7   : > { %v4471_v20 = vadd.f32 1.0, %v7068_v23  ;;  %v7070_v54 = vpop.eup %7069  ;;  %v4308_v2 = vsub.f32 1.5, %v14201_v12 }
 0x8f8   : > { %7073 = vrcp.f32 %v4470_v42  ;;  %v7072_v39 = vpop.eup %7071  ;;  %v4516_v47 = vmul.f32 %v7070_v54, %v14188_v21  ;;  %v4273_v21 = vmul.f32 %v12403_v60, %v14129_v38  ;;  %v14203_v42 = vld [vmem:[#allocation105_spill] sm:$0xff]  ;;  %v7173_v54 = vld [vmem:[%s7798_s13] sm:$0xff]  }
 0x8f9   : > { %v4183_v5 = vpop.permute.xlu0 %4182  ;;  %7075 = vrcp.f32 %v4471_v20  ;;  %v4517_v37 = vmul.f32 %v7072_v39, %v14190_v10 }
 0x8fa   : > { %v12565_v52 = vpop.permute.xlu1 %4180 }
 0x8fb   : > { %v4538_v18 = vpack.c.bf16 %v4517_v37, %v4516_v47 }
 0x8fd   : > { %v4215_v50 = vpop.permute.xlu0 %4214 }
 0x8fe   : > { %v4213_v17 = vpop.permute.xlu1 %4212  ;;  %v4231_v34 = vsel %vm3111_vm4, %v4183_v5, %v4215_v50 }
 0x8ff   : > { %v4230_v53 = vsel %vm3111_vm4, %v12565_v52, %v4213_v17  ;;  %v4343_v7 = vmul.f32 %v4311_v58, %v4231_v34  ;;  %v4310_v58 = vsub.f32 1.5, %v14200_v41 }
 0x900   : > { %v4341_v31 = vmul.f32 %v4309_v46, %v4230_v53 }
 0x901   : > { %v4375_v3 = vadd.f32 %v4343_v7, %v4279_v8  ;;  %v14202_v8 = vld [vmem:[#allocation109_spill] sm:$0xff] }
 0x902   : > { %v4373_v16 = vadd.f32 %v4341_v31, %v4277_v0  ;;  %v4147_v57 = vpop.permute.xlu0 %4146  ;;  %v7074_v53 = vpop.eup %7073  ;;  %v4278_v7 = vmul.f32 %v12335_v49, %v14202_v8 }
 0x903   : > { %v4145_v43 = vpop.permute.xlu1 %4144  ;;  %v4407_v6 = vmul.f32 0.6666667, %v4375_v3  ;;  %v7076_v0 = vpop.eup %7075  ;;  %v4518_v49 = vmul.f32 %v7074_v53, %v14196_v59 }
 0x904   : > { %v4405_v36 = vmul.f32 0.6666667, %v4373_v16 }
 0x906   : > { %v4179_v29 = vpop.permute.xlu0 %4178  ;;  %v4543_v26 = vpack.c.bf16 %v4407_v6, %v4405_v36  ;;  %v4519_v6 = vmul.f32 %v7076_v0, %v14197_v45 }
 0x907   : > { %v4245_v22 = vsel %vm3111_vm4, %v4147_v57, %v4179_v29  ;;  %v4177_v63 = vpop.permute.xlu1 %4176 }
 0x908   : > { %v4338_v32 = vmul.f32 %v4306_v40, %v4245_v22  ;;  %v4244_v55 = vsel %vm3111_vm4, %v4145_v43, %v4177_v63  ;;  %v4541_v40 = vpack.c.bf16 %v4519_v6, %v4518_v49 }
 0x909   : > { %v4336_v9 = vmul.f32 %v4304_v4, %v4244_v55 }
 0x90a   : > { %v4370_v61 = vadd.f32 %v4338_v32, %v4274_v51  ;;  %v4211_v27 = vpop.permute.xlu0 %4210 }
 0x90b   : > { %v4368_v62 = vadd.f32 %v4336_v9, %v4272_v33  ;;  %v4229_v1 = vsel %vm3111_vm4, %v4179_v29, %v4211_v27  ;;  %v4209_v35 = vpop.permute.xlu1 %4208 }
 0x90c   : > { %v4402_v28 = vmul.f32 0.6666667, %v4370_v61  ;;  %v4339_v11 = vmul.f32 %v4307_v24, %v4229_v1  ;;  %v4228_v56 = vsel %vm3111_vm4, %v4177_v63, %v4209_v35 }
 0x90d   : > { %v4400_v30 = vmul.f32 0.6666667, %v4368_v62  ;;  %v4337_v10 = vmul.f32 %v4305_v44, %v4228_v56 }
 0x90e   : > { %v4371_v15 = vadd.f32 %v4339_v11, %v4275_v48  ;;  %v4151_v50 = vpop.permute.xlu0 %4150 }
 0x90f   : > { %v4369_v46 = vadd.f32 %v4337_v10, %v4273_v21  ;;  %v4247_v17 = vsel %vm3111_vm4, %v4151_v50, %v4183_v5  ;;  %v4149_v13 = vpop.permute.xlu1 %4148  ;;  %v4539_v34 = vpack.c.bf16 %v4402_v28, %v4400_v30  ;;  %v4276_v5 = vmul.f32 %v12337_v14, %v14203_v42 }
 0x910   : > { %v4403_v23 = vmul.f32 0.6666667, %v4371_v15  ;;  %v4342_v38 = vmul.f32 %v4310_v58, %v4247_v17  ;;  %v4246_v60 = vsel %vm3111_vm4, %v4149_v13, %v12565_v52 }
 0x911   : > { %v4401_v31 = vmul.f32 0.6666667, %v4369_v46  ;;  %v4340_v3 = vmul.f32 %v4308_v2, %v4246_v60  ;;  %4768 = vmatprep.mubr.bf16.mxu1 %v4539_v34 }
 0x912   : > { %v4374_v16 = vadd.f32 %v4342_v38, %v4278_v7  ;;  %4769 = vmatmul.mubr.bf16.gmra.mrb[40].mxu1 %v4538_v18 }
 0x913   : > { %v4372_v57 = vadd.f32 %v4340_v3, %v4276_v5  ;;  %v4540_v20 = vpack.c.bf16 %v4403_v23, %v4401_v31 }
 0x914   : > { %v4406_v43 = vmul.f32 0.6666667, %v4374_v16 }
 0x915   : > { %v4404_v36 = vmul.f32 0.6666667, %v4372_v57  ;;  %6421 = vmatprep.mubr.bf16.mxu0 %v4540_v20 }
 0x916   : > { %6422 = vmatmul.mubr.bf16.gmra.mrb[44].mxu0 %v4543_v26 }
 0x917   : > { %v4542_v52 = vpack.c.bf16 %v4406_v43, %v4404_v36  ;;  %6441 = vmatprep.mubr.bf16.mxu0 %v7173_v54 }
 0x919   : > { %4776 = vmatprep.mubr.bf16.mxu1 %v4542_v52 }
 0x91a   : > { %4777 = vmatmul.mubr.bf16.gmra.mrb[44].mxu1 %v4541_v40 }
 0x981   : > { %v6241_v14 = vpop.f32.mrb[16].mxu1 }
 0x982   : > { %v6242_v29 = vpop.f32.mrb[17].mxu1 }
 0x983   : > { %v6243_v39 = vadd.f32 %v6242_v29, %v6241_v14  ;;  %v6244_v22 = vpop.f32.mrb[18].mxu1 }
 0x984   : > { %v6245_v4 = vpop.f32.mrb[19].mxu1 }
 0x985   : > { %v6246_v63 = vadd.f32 %v6245_v4, %v6244_v22  ;;  %v6411_v51 = vpop.f32.mrb[32].mxu0 }
 0x986   : > { %v4819_v32 = vpop.f32.mrb[33].mxu0 }
 0x987   : > { %v4820_v59 = vadd.f32 %v6243_v39, %v4819_v32  ;;  %v6412_v55 = vpop.f32.mrb[34].mxu0 }
 0x988   : > { %v4822_v45 = vpop.f32.mrb[35].mxu0 }
 0x989   : > { %v4823_v33 = vadd.f32 %v6246_v63, %v4822_v45  ;;  %v6247_v9 = vpop.f32.mrb[20].mxu1 }
 0x98a   : > { %v6248_v26 = vpop.f32.mrb[21].mxu1 }
 0x98b   : > { %v4882_v61 = vpack.c.bf16 %v4823_v33, %v4820_v59  ;;  %v6249_v24 = vadd.f32 %v6248_v26, %v6247_v9  ;;  %v6250_v27 = vpop.f32.mrb[22].mxu1 }
 0x98c   : > { %v6251_v47 = vpop.f32.mrb[23].mxu1 }
 0x98d   : > { %v4828_v37 = vadd.f32 %v6411_v51, %v6249_v24  ;;  %v6252_v62 = vadd.f32 %v6251_v47, %v6250_v27  ;;  %6425 = vmatprep.subr.bf16.mxu0 %v4882_v61 }
 0x98e   : > { %6426 = vmatpush3.bf16.msra.mxu0 %v4882_v61 }
 0x98f   : > { %v4831_v1 = vadd.f32 %v6412_v55, %v6252_v62 }
 0x991   : > { %v4883_v25 = vpack.c.bf16 %v4831_v1, %v4828_v37 }
 0x993   : > { %6427 = vmatprep.subr.bf16.mxu0 %v4883_v25 }
 0x994   : > { %6428 = vmatpush3.bf16.msra.mxu0 %v4883_v25 }
 0x99c   : > { %v6253_v44 = vpop.f32.mrb[24].mxu1 }
 0x99d   : > { %v6254_v35 = vpop.f32.mrb[25].mxu1 }
 0x99e   : > { %v6255_v28 = vadd.f32 %v6254_v35, %v6253_v44  ;;  %v6256_v48 = vpop.f32.mrb[26].mxu1 }
 0x99f   : > { %v6257_v11 = vpop.f32.mrb[27].mxu1 }
 0x9a0   : > { %v6258_v56 = vadd.f32 %v6257_v11, %v6256_v48  ;;  %v6415_v30 = vpop.f32.mrb[36].mxu0  ;;  %v7174_v48 = vld [vmem:[%s7798_s13 + $0x8] sm:$0xff]   ;;  %v7175_v11 = vld [vmem:[%s7798_s13 + $0x10] sm:$0xff]  }
 0x9a1   : > { %v4835_v21 = vpop.f32.mrb[37].mxu0 }
 0x9a2   : > { %v4836_v10 = vadd.f32 %v6255_v28, %v4835_v21  ;;  %v6416_v15 = vpop.f32.mrb[38].mxu0  ;;  %v7178_v21 = vld [vmem:[%s7798_s13 + $0x28] sm:$0xff]  }
 0x9a3   : > { %v4838_v41 = vpop.f32.mrb[39].mxu0 }
 0x9a4   : > { %v4839_v58 = vadd.f32 %v6258_v56, %v4838_v41  ;;  %v6259_v50 = vpop.f32.mrb[28].mxu1  ;;  %v7176_v56 = vld [vmem:[%s7798_s13 + $0x18] sm:$0xff]   ;;  %v14204_v41 = vmov 0.0  }
 0x9a5   : > { %v6260_v18 = vpop.f32.mrb[29].mxu1  ;;  %6473 = vmatprep.mubr.msk.bf16.mxu1 %vm7451_vm2, %v14204_v41 }
 0x9a6   : > { %v4884_v46 = vpack.c.bf16 %v4839_v58, %v4836_v10  ;;  %v6261_v17 = vadd.f32 %v6260_v18, %v6259_v50  ;;  %v6262_v12 = vpop.f32.mrb[30].mxu1  ;;  %v7179_v10 = vld [vmem:[%s7798_s13 + $0x30] sm:$0xff]   ;;  %v12626_v58 = vld [vmem:[%s14205_s28] ss:$0 sm:$0xff] }
 0x9a7   : > { %v6263_v2 = vpop.f32.mrb[31].mxu1 }
 0x9a8   : > { %v4844_v13 = vadd.f32 %v6415_v30, %v6261_v17  ;;  %v6264_v34 = vadd.f32 %v6263_v2, %v6262_v12  ;;  %6429 = vmatprep.subr.bf16.mxu0 %v4884_v46  ;;  %v7177_v30 = vld [vmem:[%s7798_s13 + $0x20] sm:$0xff]  }
 0x9a9   : > { %6430 = vmatpush3.bf16.msra.mxu0 %v4884_v46 }
 0x9aa   : > { %v4847_v53 = vadd.f32 %v6416_v15, %v6264_v34  ;;  %v7180_v15 = vld [vmem:[%s7798_s13 + $0x38] sm:$0xff]  }
 0x9ac   : > { %v4885_v23 = vpack.c.bf16 %v4847_v53, %v4844_v13 }
 0x9ae   : > { %6431 = vmatprep.subr.bf16.mxu0 %v4885_v23 }
 0x9af   : > { %6432 = vmatpush3.bf16.msra.mxu0 %v4885_v23 }
 0x9c1   : > { %v6265_v8 = vpop.f32.mrb[32].mxu1 }
 0x9c2   : > { %v6266_v7 = vpop.f32.mrb[33].mxu1 }
 0x9c3   : > { %v6267_v38 = vadd.f32 %v6266_v7, %v6265_v8  ;;  %v6268_v60 = vpop.f32.mrb[34].mxu1 }
 0x9c4   : > { %v6269_v0 = vpop.f32.mrb[35].mxu1 }
 0x9c5   : > { %v6270_v31 = vadd.f32 %v6269_v0, %v6268_v60  ;;  %v6419_v42 = vpop.f32.mrb[40].mxu0 }
 0x9c6   : > { %v4851_v5 = vpop.f32.mrb[41].mxu0 }
 0x9c7   : > { %v4852_v3 = vadd.f32 %v6267_v38, %v4851_v5  ;;  %v6420_v16 = vpop.f32.mrb[42].mxu0 }
 0x9c8   : > { %v4854_v57 = vpop.f32.mrb[43].mxu0 }
 0x9c9   : > { %v4855_v20 = vadd.f32 %v6270_v31, %v4854_v57  ;;  %v6271_v43 = vpop.f32.mrb[36].mxu1 }
 0x9ca   : > { %v6272_v49 = vpop.f32.mrb[37].mxu1 }
 0x9cb   : > { %v4886_v6 = vpack.c.bf16 %v4855_v20, %v4852_v3  ;;  %v6273_v36 = vadd.f32 %v6272_v49, %v6271_v43  ;;  %v6274_v52 = vpop.f32.mrb[38].mxu1 }
 0x9cc   : > { %v6275_v54 = vpop.f32.mrb[39].mxu1 }
 0x9cd   : > { %v4860_v40 = vadd.f32 %v6419_v42, %v6273_v36  ;;  %v6276_v14 = vadd.f32 %v6275_v54, %v6274_v52  ;;  %6433 = vmatprep.subr.bf16.mxu0 %v4886_v6 }
 0x9ce   : > { %6434 = vmatpush3.bf16.msra.mxu0 %v4886_v6 }
 0x9cf   : > { %v4863_v29 = vadd.f32 %v6420_v16, %v6276_v14 }
 0x9d1   : > { %v4887_v39 = vpack.c.bf16 %v4863_v29, %v4860_v40 }
 0x9d3   : > { %6435 = vmatprep.subr.bf16.mxu0 %v4887_v39 }
 0x9d4   : > { %6436 = vmatpush3.bf16.msra.mxu0 %v4887_v39 }
 0x9e5   : > { %v6277_v22 = vpop.f32.mrb[40].mxu1 }
 0x9e6   : > { %v6278_v4 = vpop.f32.mrb[41].mxu1 }
 0x9e7   : > { %v6279_v63 = vadd.f32 %v6278_v4, %v6277_v22  ;;  %v6280_v51 = vpop.f32.mrb[42].mxu1 }
 0x9e8   : > { %v6281_v32 = vpop.f32.mrb[43].mxu1 }
 0x9e9   : > { %v6282_v59 = vadd.f32 %v6281_v32, %v6280_v51  ;;  %v6423_v55 = vpop.f32.mrb[44].mxu0 }
 0x9ea   : > { %v4867_v45 = vpop.f32.mrb[45].mxu0 }
 0x9eb   : > { %v4868_v33 = vadd.f32 %v6279_v63, %v4867_v45  ;;  %v6424_v9 = vpop.f32.mrb[46].mxu0 }
 0x9ec   : > { %v4870_v26 = vpop.f32.mrb[47].mxu0 }
 0x9ed   : > { %v4871_v61 = vadd.f32 %v6282_v59, %v4870_v26  ;;  %v6283_v24 = vpop.f32.mrb[44].mxu1 }
 0x9ee   : > { %v6284_v27 = vpop.f32.mrb[45].mxu1 }
 0x9ef   : > { %v4888_v47 = vpack.c.bf16 %v4871_v61, %v4868_v33  ;;  %v6285_v37 = vadd.f32 %v6284_v27, %v6283_v24  ;;  %v6286_v62 = vpop.f32.mrb[46].mxu1 }
 0x9f0   : > { %v6287_v1 = vpop.f32.mrb[47].mxu1 }
 0x9f1   : > { %v4876_v25 = vadd.f32 %v6423_v55, %v6285_v37  ;;  %v6288_v44 = vadd.f32 %v6287_v1, %v6286_v62  ;;  %6437 = vmatprep.subr.bf16.mxu0 %v4888_v47 }
 0x9f2   : > { %6438 = vmatpush3.bf16.msra.mxu0 %v4888_v47 }
 0x9f3   : > { %v4879_v35 = vadd.f32 %v6424_v9, %v6288_v44 }
 0x9f5   : > { %v4889_v28 = vpack.c.bf16 %v4879_v35, %v4876_v25 }
 0x9f7   : > { %6439 = vmatprep.subr.bf16.mxu0 %v4889_v28 }
 0x9f8   : > { %6440 = vmatpush3.bf16.msra.mxu0 %v4889_v28 }
 0x9fb   : > { %6442 = vmatmul.mubr.bf16.vlgmr.msra.gmra.mrb[48].mxu0 %v7174_v48 }
 0x9fc   : > { %6445 = vmatprep.mubr.bf16.mxu0 %v7175_v11 }
 0xa03   : > { %6446 = vmatmul.mubr.bf16.gmra.mrb[52].mxu0 %v7176_v56 }
 0xa04   : > { %6449 = vmatprep.mubr.bf16.mxu0 %v7177_v30 }
 0xa0b   : > { %6450 = vmatmul.mubr.bf16.gmra.mrb[56].mxu0 %v7178_v21 }
 0xa0c   : > { %6453 = vmatprep.mubr.bf16.mxu0 %v7179_v10 }
 0xa13   : > { %6454 = vmatmul.mubr.bf16.gmra.mrb[60].mxu0 %v7180_v15 }
 0xace   : > { %v6443_v50 = vpop.f32.mrb[48].mxu0 }
 0xacf   : > { %v12629_v18 = vadd.f32 %v6443_v50, %v12626_v58  ;;  %v4931_v46 = vpop.f32.mrb[49].mxu0 }
 0xad0   : > { %v12632_v17 = vadd.f32 %v12626_v58, %v4931_v46  ;;  %v6444_v12 = vpop.f32.mrb[50].mxu0 }
 0xad1   : > { %v6088_v2 = vmul.f32 -1.442695, %v12629_v18  ;;  %v12636_v13 = vadd.f32 %v6444_v12, %v12626_v58  ;;  %v4934_v34 = vpop.f32.mrb[51].mxu0 }
 0xad2   : > { %v6086_v53 = vmul.f32 -1.442695, %v12632_v17  ;;  %v12640_v23 = vadd.f32 %v12626_v58, %v4934_v34 }
 0xad3   : > { %7077 = vpow2.f32 %v6088_v2  ;;  %v6089_v8 = vmul.f32 -1.442695, %v12636_v13 }
 0xad4   : > { %7079 = vpow2.f32 %v6086_v53  ;;  %v6087_v7 = vmul.f32 -1.442695, %v12640_v23 }
 0xad5   : > { %7081 = vpow2.f32 %v6089_v8 }
 0xad6   : > { %7083 = vpow2.f32 %v6087_v7  ;;  %v6447_v38 = vpop.f32.mrb[52].mxu0 }
 0xad7   : > { %v12645_v60 = vadd.f32 %v6447_v38, %v12626_v58  ;;  %v4947_v0 = vpop.f32.mrb[53].mxu0 }
 0xad8   : > { %v12648_v31 = vadd.f32 %v12626_v58, %v4947_v0  ;;  %v6448_v42 = vpop.f32.mrb[54].mxu0 }
 0xad9   : > { %v6092_v5 = vmul.f32 -1.442695, %v12645_v60  ;;  %v12652_v3 = vadd.f32 %v6448_v42, %v12626_v58  ;;  %v4950_v16 = vpop.f32.mrb[55].mxu0 }
 0xada   : > { %v6090_v57 = vmul.f32 -1.442695, %v12648_v31  ;;  %v12656_v20 = vadd.f32 %v12626_v58, %v4950_v16 }
 0xadb   : > { %7085 = vpow2.f32 %v6092_v5  ;;  %v6093_v43 = vmul.f32 -1.442695, %v12652_v3 }
 0xadc   : > { %7087 = vpow2.f32 %v6090_v57  ;;  %v6091_v49 = vmul.f32 -1.442695, %v12656_v20 }
 0xadd   : > { %v7078_v6 = vpop.eup %7077  ;;  %7089 = vpow2.f32 %v6093_v43 }
 0xade   : > { %v7080_v36 = vpop.eup %7079  ;;  %v5044_v52 = vadd.f32 1.0, %v7078_v6  ;;  %7091 = vpow2.f32 %v6091_v49  ;;  %v6451_v54 = vpop.f32.mrb[56].mxu0 }
 0xadf   : > { %v7082_v40 = vpop.eup %7081  ;;  %v5042_v14 = vadd.f32 1.0, %v7080_v36  ;;  %v12661_v29 = vadd.f32 %v6451_v54, %v12626_v58  ;;  %v4963_v39 = vpop.f32.mrb[57].mxu0 }
 0xae0   : > { %v7084_v22 = vpop.eup %7083  ;;  %7093 = vrcp.f32 %v5044_v52  ;;  %v5045_v4 = vadd.f32 1.0, %v7082_v40  ;;  %v12664_v63 = vadd.f32 %v12626_v58, %v4963_v39  ;;  %v6452_v51 = vpop.f32.mrb[58].mxu0 }
 0xae1   : > { %7095 = vrcp.f32 %v5042_v14  ;;  %v5043_v32 = vadd.f32 1.0, %v7084_v22  ;;  %v6096_v59 = vmul.f32 -1.442695, %v12661_v29  ;;  %v12668_v55 = vadd.f32 %v6452_v51, %v12626_v58  ;;  %v4966_v45 = vpop.f32.mrb[59].mxu0 }
 0xae2   : > { %7097 = vrcp.f32 %v5045_v4  ;;  %v6094_v33 = vmul.f32 -1.442695, %v12664_v63  ;;  %v12672_v9 = vadd.f32 %v12626_v58, %v4966_v45 }
 0xae3   : > { %7099 = vrcp.f32 %v5043_v32  ;;  %v6097_v26 = vmul.f32 -1.442695, %v12668_v55 }
 0xae4   : > { %7101 = vpow2.f32 %v6096_v59  ;;  %v6095_v61 = vmul.f32 -1.442695, %v12672_v9 }
 0xae5   : > { %v7086_v24 = vpop.eup %7085  ;;  %7103 = vpow2.f32 %v6094_v33 }
 0xae6   : > { %v7088_v27 = vpop.eup %7087  ;;  %v5048_v47 = vadd.f32 1.0, %v7086_v24  ;;  %7105 = vpow2.f32 %v6097_v26  ;;  %v6455_v37 = vpop.f32.mrb[60].mxu0 }
 0xae7   : > { %v7090_v62 = vpop.eup %7089  ;;  %v5046_v1 = vadd.f32 1.0, %v7088_v27  ;;  %7107 = vpow2.f32 %v6095_v61  ;;  %v12677_v25 = vadd.f32 %v6455_v37, %v12626_v58  ;;  %v4979_v44 = vpop.f32.mrb[61].mxu0 }
 0xae8   : > { %v7092_v35 = vpop.eup %7091  ;;  %7109 = vrcp.f32 %v5048_v47  ;;  %v5049_v28 = vadd.f32 1.0, %v7090_v62  ;;  %v12680_v48 = vadd.f32 %v12626_v58, %v4979_v44  ;;  %v6456_v11 = vpop.f32.mrb[62].mxu0 }
 0xae9   : > { %7111 = vrcp.f32 %v5046_v1  ;;  %v5047_v56 = vadd.f32 1.0, %v7092_v35  ;;  %v6100_v30 = vmul.f32 -1.442695, %v12677_v25  ;;  %v12684_v21 = vadd.f32 %v6456_v11, %v12626_v58  ;;  %v4982_v10 = vpop.f32.mrb[63].mxu0 }
 0xaea   : > { %v7094_v15 = vpop.eup %7093  ;;  %7113 = vrcp.f32 %v5049_v28  ;;  %v6098_v50 = vmul.f32 -1.442695, %v12680_v48  ;;  %v12688_v46 = vadd.f32 %v12626_v58, %v4982_v10 }
 0xaeb   : > { %v7096_v12 = vpop.eup %7095  ;;  %7115 = vrcp.f32 %v5047_v56  ;;  %v6101_v2 = vmul.f32 -1.442695, %v12684_v21  ;;  %v5092_v7 = vmul.f32 %v7094_v15, %v12629_v18 }
 0xaec   : > { %v7098_v34 = vpop.eup %7097  ;;  %7117 = vpow2.f32 %v6100_v30  ;;  %v6099_v53 = vmul.f32 -1.442695, %v12688_v46  ;;  %v5090_v42 = vmul.f32 %v7096_v12, %v12632_v17 }
 0xaed   : > { %v7100_v8 = vpop.eup %7099  ;;  %v5093_v38 = vmul.f32 %v7098_v34, %v12636_v13  ;;  %7119 = vpow2.f32 %v6098_v50  ;;  %v6860_v50 = vld [vmem:[%s7805_s30] sm:$0xff]   ;;  %s14219_s30 = sld [smem:[#allocation166_spill]] }
 0xaee   : > { %v7102_v0 = vpop.eup %7101  ;;  %v5091_v58 = vmul.f32 %v7100_v8, %v12640_v23  ;;  %7121 = vpow2.f32 %v6101_v2 }
 0xaef   : > { %v7104_v5 = vpop.eup %7103  ;;  %v5109_v16 = vpack.c.bf16 %v5093_v38, %v5092_v7  ;;  %v5052_v57 = vadd.f32 1.0, %v7102_v0  ;;  %7123 = vpow2.f32 %v6099_v53 }
 0xaf0   : > { %v7106_v43 = vpop.eup %7105  ;;  %v5108_v49 = vpack.c.bf16 %v5091_v58, %v5090_v42  ;;  %v5050_v6 = vadd.f32 1.0, %v7104_v5 }
 0xaf1   : > { %v7108_v36 = vpop.eup %7107  ;;  %7125 = vrcp.f32 %v5052_v57  ;;  %v5053_v52 = vadd.f32 1.0, %v7106_v43  ;;  %v14206_v57 = vld [vmem:[#allocation49_spill] sm:$0xff] }
 0xaf2   : > { %v7110_v18 = vpop.eup %7109  ;;  %7127 = vrcp.f32 %v5050_v6  ;;  %v5051_v13 = vadd.f32 1.0, %v7108_v36  ;;  %6458 = vmatpush3.bf16.msra.mxu1 %v5108_v49 }
 0xaf3   : > { %v7112_v54 = vpop.eup %7111  ;;  %7129 = vrcp.f32 %v5053_v52  ;;  %6459 = vmatprep.subr.bf16.mxu1 %v14204_v41  ;;  %v5096_v40 = vmul.f32 %v7110_v18, %v12645_v60  ;;  %v6111_v19 = vld [vmem:[%s14219_s30] ss:$0 sm:$0xff] }
 0xaf4   : > { %v7114_v17 = vpop.eup %7113  ;;  %7131 = vrcp.f32 %v5051_v13  ;;  %v5094_v22 = vmul.f32 %v7112_v54, %v12648_v31 }
 0xaf5   : > { %v7116_v23 = vpop.eup %7115  ;;  %v5097_v14 = vmul.f32 %v7114_v17, %v12652_v3 }
 0xaf6   : > { %v7118_v39 = vpop.eup %7117  ;;  %v5095_v4 = vmul.f32 %v7116_v23, %v12656_v20  ;;  %6460 = vmatpush3.bf16.msra.mxu1 %v5109_v16  ;;  %v14207_v23 = vld [vmem:[#allocation28_spill] sm:$0xff] }
 0xaf7   : > { %v7120_v51 = vpop.eup %7119  ;;  %v5111_v32 = vpack.c.bf16 %v5097_v14, %v5096_v40  ;;  %v5056_v59 = vadd.f32 1.0, %v7118_v39  ;;  %6461 = vmatprep.subr.bf16.mxu1 %v14204_v41  ;;  %v5211_v39 = vld [vmem:[%s14210_s16] sm:$0x7] }
 0xaf8   : > { %v7122_v45 = vpop.eup %7121  ;;  %v5110_v33 = vpack.c.bf16 %v5095_v4, %v5094_v22  ;;  %v5054_v26 = vadd.f32 1.0, %v7120_v51 }
 0xaf9   : > { %v7124_v61 = vpop.eup %7123  ;;  %7133 = vrcp.f32 %v5056_v59  ;;  %v5057_v24 = vadd.f32 1.0, %v7122_v45 }
 0xafa   : > { %7135 = vrcp.f32 %v5054_v26  ;;  %v5055_v60 = vadd.f32 1.0, %v7124_v61  ;;  %6462 = vmatpush3.bf16.msra.mxu1 %v5110_v33  ;;  %v14213_v61 = vld [vmem:[#allocation43_spill] sm:$0xff] }
 0xafb   : > { %v7126_v3 = vpop.eup %7125  ;;  %7137 = vrcp.f32 %v5057_v24  ;;  %6463 = vmatprep.subr.bf16.mxu1 %v14204_v41  ;;  %v5260_v24 = vrot.slane %v5211_v39, %v14213_v61 }
 0xafc   : > { %v7128_v31 = vpop.eup %7127  ;;  %7139 = vrcp.f32 %v5055_v60  ;;  %v5100_v47 = vmul.f32 %v7126_v3, %v12661_v29 }
 0xafd   : > { %v7130_v20 = vpop.eup %7129  ;;  %v5098_v62 = vmul.f32 %v7128_v31, %v12664_v63 }
 0xafe   : > { %v7132_v27 = vpop.eup %7131  ;;  %v5101_v37 = vmul.f32 %v7130_v20, %v12668_v55  ;;  %6464 = vmatpush3.bf16.msra.mxu1 %v5111_v32 }
 0xaff   : > { %v5099_v1 = vmul.f32 %v7132_v27, %v12672_v9  ;;  %6465 = vmatprep.subr.bf16.mxu1 %v14204_v41 }
 0xb00   : > { %v5113_v44 = vpack.c.bf16 %v5101_v37, %v5100_v47 }
 0xb01   : > { %v5112_v35 = vpack.c.bf16 %v5099_v1, %v5098_v62 }
 0xb03   : > { %v7134_v28 = vpop.eup %7133  ;;  %6466 = vmatpush3.bf16.msra.mxu1 %v5112_v35 }
 0xb04   : > { %v7136_v11 = vpop.eup %7135  ;;  %6467 = vmatprep.subr.bf16.mxu1 %v14204_v41  ;;  %v5104_v29 = vmul.f32 %v7134_v28, %v12677_v25  ;;  %v14217_v28 = vld [vmem:[#allocation42_spill] sm:$0xff] }
 0xb05   : > { %v7138_v56 = vpop.eup %7137  ;;  %v5102_v63 = vmul.f32 %v7136_v11, %v12680_v48  ;;  %v14218_v11 = vsub.s32 2, %v14217_v28 }
 0xb06   : > { %v7140_v30 = vpop.eup %7139  ;;  %v5105_v55 = vmul.f32 %v7138_v56, %v12684_v21 }
 0xb07   : > { %v5103_v9 = vmul.f32 %v7140_v30, %v12688_v46  ;;  %6468 = vmatpush3.bf16.msra.mxu1 %v5113_v44  ;;  %v14216_v44 = vld [vmem:[#allocation44_spill] sm:$0xff]  ;;  %v5268_v56 = vrot.slane %v5211_v39, %v14218_v11 }
 0xb08   : > { %v5115_v10 = vpack.c.bf16 %v5105_v55, %v5104_v29  ;;  %6469 = vmatprep.subr.bf16.mxu1 %v14204_v41  ;;  %v5264_v35 = vrot.slane %v5211_v39, %v14216_v44 }
 0xb09   : > { %v5114_v15 = vpack.c.bf16 %v5103_v9, %v5102_v63 }
 0xb0b   : > { %6470 = vmatpush3.bf16.msra.mxu1 %v5114_v15 }
 0xb0c   : > { %6471 = vmatprep.subr.bf16.mxu1 %v14204_v41 }
 0xb0f   : > { %6472 = vmatpush3.bf16.msra.mxu1 %v5115_v10 }
 0xb10   : > { %6477 = vmatprep.subr.bf16.mxu1 %v14204_v41 }
 0xb12   : > { %6474 = vmatmul.mubr.bf16.vlgmr.msra.gmra.mrb[48].mxu1 %v6860_v50 }
 0xb13   : > { %6493 = vmatprep.mubr.msk.bf16.mxu1 %vm7451_vm2, %v14204_v41 }
 0xbe5   : > { %v5156_v25 = vpop.f32.mrb[48].mxu1 }
 0xbe6   : > { %v6109_v48 = vmul.f32 -1.442695, %v5156_v25  ;;  %5212 = vrot.lane.b32.xlu1 %v5156_v25, %s7447_s23  ;;  %v6475_v21 = vpop.f32.mrb[49].mxu1 }
 0xbe7   : > { %v5159_v46 = vpop.f32.mrb[50].mxu1 }
 0xbe8   : > { %7141 = vpow2.f32 %v6109_v48  ;;  %v6110_v12 = vmul.f32 -1.442695, %v5159_v46  ;;  %5214 = vrot.lane.b32.xlu0 %v5159_v46, %s7447_s23  ;;  %v6476_v2 = vpop.f32.mrb[51].mxu1  ;;  %s14220_s23 = sld [smem:[#allocation23_spill]] }
 0xbea   : > { %7143 = vpow2.f32 %v6110_v12 }
 0xbee   : > { %p14222_p11 = scmp.ne.s32.totalorder %s14220_s23, 0 }
 0xbf0   : > { %p7357_p2 = pnand %p7356_p8, %p14222_p11 }
 0xbf2   : > { %v7142_v34 = vpop.eup %7141  ;;  %p7358_p6 = pneg %p7357_p2 }
 0xbf3   : > { %v5458_v53 = vadd.f32 1.0, %v7142_v34 }
 0xbf4   : > { %v7144_v8 = vpop.eup %7143 }
 0xbf5   : > { %7145 = vrcp.f32 %v5458_v53  ;;  %v5459_v7 = vadd.f32 1.0, %v7144_v8 }
 0xbf7   : > { %7147 = vrcp.f32 %v5459_v7 }
 0xbff   : > { %v7146_v38 = vpop.eup %7145 }
 0xc00   : > { %v12721_v42 = vmul.f32 %v7146_v38, %v5156_v25 }
 0xc01   : > { %v7148_v0 = vpop.eup %7147 }
 0xc02   : > { %v12723_v58 = vmul.f32 %v7148_v0, %v5159_v46 }
 0xc04   : > { %v5466_v5 = vpack.c.bf16 %v12723_v58, %v12721_v42 }
 0xc58   : > { %v5213_v16 = vpop.permute.xlu1 %5212 }
 0xc59   : > { %v5218_v43 = vsel %vm786_vm1, %v14206_v57, %v5213_v16  ;;  %v5216_v18 = vsel %vm786_vm1, %v5213_v16, %v14206_v57 }
 0xc5a   : > { %v5220_v49 = vadd.f32 %v5218_v43, %v5156_v25  ;;  %v5215_v6 = vpop.permute.xlu0 %5214 }
 0xc5b   : > { %v5219_v36 = vsel %vm786_vm1, %v14206_v57, %v5215_v6  ;;  %v5217_v13 = vsel %vm786_vm1, %v5215_v6, %v14206_v57  ;;  %vm14211_vm1 = vmmov %vm14208_vm5 }
 0xc5c   : > { %v5222_v52 = vadd.f32 %v5219_v36, %v5159_v46  ;;  %5224 = vrot.lane.b32.xlu1 %v5220_v49, %s7448_s10  ;;  %vm14212_vm8 = vmmov %vm14211_vm1 }
 0xc5d   : > { %vm14214_vm9 = vmmov %vm14211_vm1 }
 0xc5e   : > { %5226 = vrot.lane.b32.xlu0 %v5222_v52, %s7448_s10  ;;  %vm14215_vm11 = vmmov %vm14211_vm1 }
 0xc60   : > { %5228 = vrot.lane.b32.xlu1 %v5216_v18, %s7448_s10 }
 0xc62   : > { %5230 = vrot.lane.b32.xlu0 %v5217_v13, %s7448_s10  ;;  %s6144_s10 = sshll.u32 %s7541_s25, 8  ;;  %s7452_s25 = smov [#allocation13]  }
 0xc63   : > { %s12957_s3 = scalar_lea.hbm %s14221_s29, %s6144_s10  ;;  %s7359_s20 = sshll.u32 %s7452_s25, 4  ;;  %s7360_s20 = int_to_ptr.vmem [resolvable:$false] %s7359_s20 }
 0xc64   : > { %p7362_p9 = scmp.lt.s32.totalorder %s12959_s26, %s7360_s20 }
 0xcce   : > { %v5225_v54 = vpop.permute.xlu1 %5224 }
 0xccf   : > { %v5236_v40 = vsel %vm14208_vm5, %v14207_v23, %v5225_v54 }
 0xcd0   : > { %v5227_v17 = vpop.permute.xlu0 %5226  ;;  %v5238_v32 = vadd.f32 %v5236_v40, %v5220_v49 }
 0xcd1   : > { %v5237_v14 = vsel %vm14209_vm7, %v14207_v23, %v5227_v17 }
 0xcd2   : > { %v5229_v22 = vpop.permute.xlu1 %5228  ;;  %v5241_v26 = vadd.f32 %v5237_v14, %v5222_v52 }
 0xcd3   : > { %v5232_v4 = vsel %vm14211_vm1, %v5229_v22, %v14207_v23  ;;  %v5234_v51 = vsel %vm14212_vm8, %v5225_v54, %v5229_v22 }
 0xcd4   : > { %v5239_v59 = vadd.f32 %v5234_v51, %v5216_v18  ;;  %v5240_v45 = vadd.f32 %v5232_v4, %v14206_v57  ;;  %v5231_v33 = vpop.permute.xlu0 %5230 }
 0xcd5   : > { %v5233_v60 = vsel %vm14214_vm9, %v5231_v33, %v14207_v23  ;;  %v5235_v3 = vsel %vm14215_vm11, %v5227_v17, %v5231_v33 }
 0xcd6   : > { %v5244_v31 = vadd.f32 %v5240_v45, %v5238_v32  ;;  %v5245_v20 = vadd.f32 %v5239_v59, %v5238_v32  ;;  %v5246_v27 = vadd.f32 %v5240_v45, %v5239_v59  ;;  %v5242_v47 = vadd.f32 %v5235_v3, %v5217_v13 }
 0xcd7   : > { %v5243_v37 = vadd.f32 %v5233_v60, %v14206_v57 }
 0xcd8   : > { %v5250_v62 = vadd.f32 %v5244_v31, %v5216_v18  ;;  %v5248_v1 = vadd.f32 %v5242_v47, %v5241_v26  ;;  %v5251_v55 = vadd.f32 %v5245_v20, %v14206_v57  ;;  %v5252_v63 = vadd.f32 %v5246_v27, %v5220_v49 }
 0xcd9   : > { %v5247_v30 = vadd.f32 %v5243_v37, %v5241_v26  ;;  %v5249_v29 = vadd.f32 %v5243_v37, %v5242_v47 }
 0xcda   : > { %v12769_v9 = vsub.f32 %v5250_v62, %v5260_v24  ;;  %v5254_v10 = vadd.f32 %v5248_v1, %v14206_v57  ;;  %v12780_v46 = vsub.f32 %v5251_v55, %v5264_v35  ;;  %v12782_v12 = vsub.f32 %v5252_v63, %v5268_v56 }
 0xcdb   : > { %v5253_v15 = vadd.f32 %v5247_v30, %v5217_v13  ;;  %v5255_v50 = vadd.f32 %v5249_v29, %v5222_v52 }
 0xcdc   : > { %v12772_v25 = vsub.f32 %v5254_v10, %v5264_v35  ;;  %5278 = vrot.lane.b32.xlu1 %v12769_v9, %s7450_s11  ;;  %vm5296_vm12 = vcmp.ge.f32.partialorder %v12769_v9, 0.0  ;;  %vm5302_vm13 = vcmp.lt.f32.partialorder %v12769_v9, 0.5  ;;  %vm5297_vm7 = vcmp.ge.f32.partialorder %v12780_v46, 0.0 }
 0xcdd   : > { %v12776_v48 = vsub.f32 %v5253_v15, %v5260_v24  ;;  %v12778_v21 = vsub.f32 %v5255_v50, %v5268_v56  ;;  %vm5308_vm5 = vmand %vm5296_vm12, %vm5302_vm13  ;;  %vm5303_vm1 = vcmp.lt.f32.partialorder %v12780_v46, 0.5  ;;  %vm5298_vm9 = vcmp.ge.f32.partialorder %v12782_v12, 0.0 }
 0xcde   : > { %vm5300_vm3 = vcmp.ge.f32.partialorder %v12772_v25, 0.0  ;;  %vm5306_vm6 = vcmp.lt.f32.partialorder %v12772_v25, 0.5  ;;  %vm5304_vm11 = vcmp.lt.f32.partialorder %v12782_v12, 0.5  ;;  %v6103_v34 = vsel %vm5308_vm5, 1.0, %v14204_v41  ;;  %vm5309_vm12 = vmand %vm5297_vm7, %vm5303_vm1 }
 0xcdf   : > { %5280 = vrot.lane.b32.xlu0 %v12776_v48, %s7450_s11  ;;  %vm5299_vm10 = vcmp.ge.f32.partialorder %v12776_v48, 0.0  ;;  %vm5305_vm14 = vcmp.lt.f32.partialorder %v12776_v48, 0.5  ;;  %vm5301_vm0 = vcmp.ge.f32.partialorder %v12778_v21, 0.0  ;;  %vm5307_vm2 = vcmp.lt.f32.partialorder %v12778_v21, 0.5  ;;  %vm5312_vm8 = vmand %vm5300_vm3, %vm5306_vm6 }
 0xce0   : > { %5282 = vrot.lane.b32.xlu1 %v12780_v46, %s7450_s11  ;;  %vm5311_vm15 = vmand %vm5299_vm10, %vm5305_vm14  ;;  %v6107_v8 = vsel %vm5312_vm8, 1.0, %v14204_v41  ;;  %v6104_v38 = vsel %vm5309_vm12, 1.0, %v14204_v41  ;;  %v5344_v23 = vmul.f32 %v6103_v34, %v12769_v9 }
 0xce1   : > { %v6106_v2 = vsel %vm5311_vm15, 1.0, %v14204_v41  ;;  %vm5313_vm10 = vmand %vm5301_vm0, %vm5307_vm2  ;;  %v6802_v0 = vpack.i.bf16 %v6107_v8, %v6104_v38  ;;  %v5345_v55 = vmul.f32 %v6104_v38, %v12780_v46  ;;  %v5348_v63 = vmul.f32 %v6107_v8, %v12772_v25 }
 0xce2   : > { %v6797_v53 = vpack.i.bf16 %v6106_v2, %v6103_v34  ;;  %vm5310_vm13 = vmand %vm5298_vm9, %vm5304_vm11  ;;  %v6108_v7 = vsel %vm5313_vm10, 1.0, %v14204_v41  ;;  %v5347_v40 = vmul.f32 %v6106_v2, %v12776_v48 }
 0xce3   : > { %5284 = vrot.lane.b32.xlu0 %v12772_v25, %s7450_s11  ;;  %v6105_v16 = vsel %vm5310_vm13, 1.0, %v14204_v41 }
 0xce4   : > { %5286 = vrot.lane.b32.xlu1 %v12782_v12, %s7450_s11  ;;  %v6807_v57 = vpack.i.bf16 %v6108_v7, %v6105_v16 }
 0xce7   : > { %5288 = vrot.lane.b32.xlu0 %v12778_v21, %s7450_s11 }
 0xce8   : > { %6798 = vrot.lane.b32.xlu1 %v6797_v53, %s7450_s11 }
 0xceb   : > { %6803 = vrot.lane.b32.xlu0 %v6802_v0, %s7450_s11 }
 0xcec   : > { %6808 = vrot.lane.b32.xlu1 %v6807_v57, %s7450_s11 }
 0xd4e   : > { %v5279_v43 = vpop.permute.xlu1 %5278 }
 0xd51   : > { %v5281_v49 = vpop.permute.xlu0 %5280 }
 0xd52   : > { %v5283_v6 = vpop.permute.xlu1 %5282 }
 0xd53   : > { %v12817_v13 = vsel %vm3111_vm4, %v5279_v43, %v5283_v6 }
 0xd54   : > { %v5350_v22 = vsub.f32 0.5, %v12817_v13 }
 0xd55   : > { %v5285_v36 = vpop.permute.xlu0 %5284 }
 0xd56   : > { %v5287_v52 = vpop.permute.xlu1 %5286  ;;  %v12821_v54 = vsel %vm3111_vm4, %v5281_v49, %v5285_v36 }
 0xd57   : > { %v12827_v14 = vsel %vm3111_vm4, %v5283_v6, %v5287_v52  ;;  %v12831_v39 = vsel %vm3111_vm4, %v5287_v52, %v5279_v43  ;;  %v5353_v4 = vsub.f32 0.5, %v12821_v54  ;;  %v5346_v43 = vmul.f32 %v6105_v16, %v12782_v12  ;;  %v6861_v16 = vld [vmem:[#allocation11 + $0x40] sm:$0xff]  }
 0xd58   : > { %v5351_v60 = vsub.f32 0.5, %v12827_v14  ;;  %v5352_v3 = vsub.f32 0.5, %v12831_v39  ;;  %6330 = vmatprep.subr.bf16.mxu0 %v6861_v16 }
 0xd59   : > { %v5289_v18 = vpop.permute.xlu0 %5288 }
 0xd5a   : > { %v6799_v17 = vpop.permute.xlu1 %6798  ;;  %v12837_v51 = vsel %vm3111_vm4, %v5285_v36, %v5289_v18  ;;  %v12841_v32 = vsel %vm3111_vm4, %v5289_v18, %v5281_v49  ;;  %v5349_v49 = vmul.f32 %v6108_v7, %v12778_v21  ;;  %v6862_v7 = vld [vmem:[#allocation11] sm:$0xff]  }
 0xd5b   : > { %v6801_v45 = vunpack.i.h.bf16 %v6799_v17  ;;  %v6800_v33 = vunpack.i.l.bf16 %v6799_v17  ;;  %v5354_v27 = vsub.f32 0.5, %v12837_v51  ;;  %v5355_v47 = vsub.f32 0.5, %v12841_v32  ;;  %v6863_v17 = vld [vmem:[#allocation11 + $0x48] sm:$0xff]   ;;  %6331 = vmatpush3.bf16.msra.mxu0 %v6862_v7 }
 0xd5c   : > { %6332 = vmatprep.subr.bf16.mxu0 %v6863_v17 }
 0xd5d   : > { %v6804_v59 = vpop.permute.xlu0 %6803 }
 0xd5e   : > { %v6806_v26 = vunpack.i.h.bf16 %v6804_v59  ;;  %v6805_v61 = vunpack.i.l.bf16 %v6804_v59  ;;  %v6809_v24 = vpop.permute.xlu1 %6808  ;;  %v6868_v59 = vld [vmem:[#allocation11 + $0x10] sm:$0xff]  }
 0xd5f   : > { %v6811_v31 = vunpack.i.h.bf16 %v6809_v24  ;;  %v6810_v20 = vunpack.i.l.bf16 %v6809_v24  ;;  %v6872_v24 = vld [vmem:[#allocation11 + $0x60] sm:$0xff]  }
 0xd60   : > { %v5340_v37 = vsel %vm3111_vm4, %v6800_v33, %v6805_v61  ;;  %v5341_v62 = vsel %vm3111_vm4, %v6801_v45, %v6806_v26 }
 0xd61   : > { %v5356_v1 = vmul.f32 %v5350_v22, %v5340_v37  ;;  %v5359_v44 = vmul.f32 %v5353_v4, %v5341_v62  ;;  %v5339_v35 = vsel %vm3111_vm4, %v6806_v26, %v6811_v31  ;;  %v5338_v28 = vsel %vm3111_vm4, %v6805_v61, %v6810_v20  ;;  %v6867_v22 = vld [vmem:[#allocation11 + $0x88] sm:$0xff]   ;;  %v6866_v4 = vld [vmem:[#allocation11 + $0x50] sm:$0xff]   ;;  %v6871_v26 = vld [vmem:[#allocation11 + $0x18] sm:$0xff]  }
 0xd62   : > { %v5360_v11 = vmul.f32 %v5354_v27, %v5339_v35  ;;  %v5342_v56 = vsel %vm3111_vm4, %v6810_v20, %v6800_v33  ;;  %v5343_v30 = vsel %vm3111_vm4, %v6811_v31, %v6801_v45  ;;  %v5357_v29 = vmul.f32 %v5351_v60, %v5338_v28  ;;  %v6870_v45 = vld [vmem:[#allocation11 + $0x90] sm:$0xff]   ;;  %v6869_v33 = vld [vmem:[#allocation11 + $0x58] sm:$0xff]   ;;  %v6874_v60 = vld [vmem:[#allocation11 + $0x20] sm:$0xff]  }
 0xd63   : > { %v5362_v10 = vadd.f32 %v5356_v1, %v5344_v23  ;;  %v5365_v15 = vadd.f32 %v5359_v44, %v5347_v40  ;;  %v5358_v50 = vmul.f32 %v5352_v3, %v5342_v56  ;;  %v5361_v2 = vmul.f32 %v5355_v47, %v5343_v30  ;;  %v6864_v23 = vld [vmem:[#allocation11 + $0x80] sm:$0xff]   ;;  %v6865_v40 = vld [vmem:[#allocation11 + $0x8] sm:$0xff]   ;;  %v6873_v61 = vld [vmem:[#allocation11 + $0x98] sm:$0xff]  }
 0xd64   : > { %v5363_v0 = vadd.f32 %v5357_v29, %v5345_v55  ;;  %v5366_v57 = vadd.f32 %v5360_v11, %v5348_v63  ;;  %6478 = vmatpush3.bf16.msra.mxu1 %v6864_v23  ;;  %6333 = vmatpush3.bf16.msra.mxu0 %v6865_v40  ;;  %v6875_v3 = vld [vmem:[#allocation11 + $0x68] sm:$0xff]   ;;  %v6876_v31 = vld [vmem:[#allocation11 + $0xa0] sm:$0xff]   ;;  %v5398_v37 = vsub.f32 1.0, %v12817_v13  ;;  %v5401_v62 = vsub.f32 1.0, %v12821_v54 }
 0xd65   : > { %v12861_v34 = vmul.f32 2.0, %v5362_v10  ;;  %v12863_v53 = vmul.f32 2.0, %v5365_v15  ;;  %v5364_v6 = vadd.f32 %v5358_v50, %v5346_v43  ;;  %v5367_v36 = vadd.f32 %v5361_v2, %v5349_v49  ;;  %6479 = vmatprep.subr.bf16.mxu1 %v14204_v41  ;;  %6334 = vmatprep.subr.bf16.mxu0 %v6866_v4  ;;  %v6877_v20 = vld [vmem:[#allocation11 + $0x28] sm:$0xff]   ;;  %v6878_v2 = vld [vmem:[#allocation11 + $0x70] sm:$0xff]  }
 0xd66   : > { %v12871_v8 = vmul.f32 2.0, %v5363_v0  ;;  %v12873_v38 = vmul.f32 2.0, %v5366_v57  ;;  %v5399_v35 = vsub.f32 1.0, %v12827_v14  ;;  %v5400_v28 = vsub.f32 1.0, %v12831_v39  ;;  %v6879_v0 = vld [vmem:[#allocation11 + $0xa8] sm:$0xff]   ;;  %v6882_v4 = vld [vmem:[#allocation11 + $0xb0] sm:$0xff]  }
 0xd67   : > { %5374 = vrot.lane.b32.xlu0 %v12861_v34, %s7450_s11  ;;  %5376 = vrot.lane.b32.xlu1 %v12863_v53, %s7450_s11  ;;  %v12879_v52 = vmul.f32 2.0, %v5364_v6  ;;  %v12881_v18 = vmul.f32 2.0, %v5367_v36  ;;  %v5392_v30 = vmul.f32 %v12861_v34, %v12769_v9  ;;  %v5395_v55 = vmul.f32 %v12863_v53, %v12776_v48  ;;  %v6880_v36 = vld [vmem:[#allocation11 + $0x30] sm:$0xff]  }
 0xd68   : > { %6480 = vmatpush3.bf16.msra.mxu1 %v6867_v22  ;;  %6335 = vmatpush3.bf16.msra.mxu0 %v6868_v59  ;;  %v5402_v10 = vsub.f32 1.0, %v12837_v51  ;;  %v5403_v15 = vsub.f32 1.0, %v12841_v32  ;;  %v5393_v39 = vmul.f32 %v12871_v8, %v12780_v46  ;;  %v5396_v50 = vmul.f32 %v12873_v38, %v12772_v25  ;;  %v6881_v22 = vld [vmem:[#allocation11 + $0x78] sm:$0xff]  }
 0xd69   : > { %6481 = vmatprep.subr.bf16.mxu1 %v14204_v41  ;;  %6336 = vmatprep.subr.bf16.mxu0 %v6869_v33  ;;  %v5394_v34 = vmul.f32 %v12879_v52, %v12782_v12  ;;  %v5397_v53 = vmul.f32 %v12881_v18, %v12778_v21  ;;  %v6883_v59 = vld [vmem:[#allocation11 + $0x38] sm:$0xff]  }
 0xd6b   : > { %5378 = vrot.lane.b32.xlu0 %v12871_v8, %s7450_s11  ;;  %5380 = vrot.lane.b32.xlu1 %v12873_v38, %s7450_s11 }
 0xd6c   : > { %6482 = vmatpush3.bf16.msra.mxu1 %v6870_v45  ;;  %6337 = vmatpush3.bf16.msra.mxu0 %v6871_v26  ;;  %v6884_v45 = vld [vmem:[#allocation11 + $0xb8] sm:$0xff]  }
 0xd6d   : > { %6483 = vmatprep.subr.bf16.mxu1 %v14204_v41  ;;  %6338 = vmatprep.subr.bf16.mxu0 %v6872_v24 }
 0xd6f   : > { %5382 = vrot.lane.b32.xlu0 %v12879_v52, %s7450_s11  ;;  %5384 = vrot.lane.b32.xlu1 %v12881_v18, %s7450_s11 }
 0xd70   : > { %6484 = vmatpush3.bf16.msra.mxu1 %v6873_v61  ;;  %6339 = vmatpush3.bf16.msra.mxu0 %v6874_v60  ;;  %v5436_v61 = vsub.f32 1.5, %v12817_v13  ;;  %v5438_v60 = vsub.f32 1.5, %v12821_v54 }
 0xd71   : > { %6485 = vmatprep.subr.bf16.mxu1 %v14204_v41  ;;  %6340 = vmatprep.subr.bf16.mxu0 %v6875_v3 }
 0xd74   : > { %6486 = vmatpush3.bf16.msra.mxu1 %v6876_v31  ;;  %6341 = vmatpush3.bf16.msra.mxu0 %v6877_v20 }
 0xd75   : > { %6487 = vmatprep.subr.bf16.mxu1 %v14204_v41  ;;  %6342 = vmatprep.subr.bf16.mxu0 %v6878_v2 }
 0xd78   : > { %6488 = vmatpush3.bf16.msra.mxu1 %v6879_v0  ;;  %6343 = vmatpush3.bf16.msra.mxu0 %v6880_v36 }
 0xd79   : > { %6489 = vmatprep.subr.bf16.mxu1 %v14204_v41  ;;  %6344 = vmatprep.subr.bf16.mxu0 %v6881_v22 }
 0xd7c   : > { %6490 = vmatpush3.bf16.msra.mxu1 %v6882_v4  ;;  %6345 = vmatpush3.bf16.msra.mxu0 %v6883_v59 }
 0xd7d   : > { %6491 = vmatprep.subr.bf16.mxu1 %v14204_v41 }
 0xd80   : > { %6492 = vmatpush3.bf16.msra.mxu1 %v6884_v45 }
 0xdd9   : > { %v5375_v27 = vpop.permute.xlu0 %5374  ;;  %v5377_v47 = vpop.permute.xlu1 %5376 }
 0xddd   : > { %v5379_v1 = vpop.permute.xlu0 %5378  ;;  %v5381_v44 = vpop.permute.xlu1 %5380 }
 0xdde   : > { %v5388_v11 = vsel %vm3111_vm4, %v5375_v27, %v5379_v1  ;;  %v5389_v56 = vsel %vm3111_vm4, %v5377_v47, %v5381_v44 }
 0xddf   : > { %v5404_v29 = vmul.f32 %v5398_v37, %v5388_v11  ;;  %v5407_v63 = vmul.f32 %v5401_v62, %v5389_v56  ;;  %v5437_v62 = vsub.f32 1.5, %v12827_v14 }
 0xde1   : > { %v5410_v57 = vadd.f32 %v5404_v29, %v5392_v30  ;;  %v5413_v43 = vadd.f32 %v5407_v63, %v5395_v55  ;;  %v5383_v49 = vpop.permute.xlu0 %5382  ;;  %v5385_v6 = vpop.permute.xlu1 %5384 }
 0xde2   : > { %v5386_v32 = vsel %vm3111_vm4, %v5379_v1, %v5383_v49  ;;  %v5390_v8 = vsel %vm3111_vm4, %v5383_v49, %v5375_v27  ;;  %v5387_v38 = vsel %vm3111_vm4, %v5381_v44, %v5385_v6  ;;  %v5391_v16 = vsel %vm3111_vm4, %v5385_v6, %v5377_v47 }
 0xde3   : > { %v5405_v12 = vmul.f32 %v5399_v35, %v5386_v32  ;;  %v5406_v7 = vmul.f32 %v5400_v28, %v5390_v8  ;;  %v5408_v52 = vmul.f32 %v5402_v10, %v5387_v38  ;;  %v5409_v17 = vmul.f32 %v5403_v15, %v5391_v16  ;;  %5416 = vrot.lane.b32.xlu0 %v5410_v57, %s7450_s11 }
 0xde4   : > { %5418 = vrot.lane.b32.xlu1 %v5413_v43, %s7450_s11  ;;  %v5432_v20 = vmul.f32 %v5410_v57, %v12769_v9  ;;  %v5434_v47 = vmul.f32 %v5413_v43, %v12776_v48  ;;  %v5439_v44 = vsub.f32 1.5, %v12837_v51 }
 0xde5   : > { %v5411_v21 = vadd.f32 %v5405_v12, %v5393_v39  ;;  %v5412_v18 = vadd.f32 %v5406_v7, %v5394_v34  ;;  %v5414_v23 = vadd.f32 %v5408_v52, %v5396_v50  ;;  %v5415_v40 = vadd.f32 %v5409_v17, %v5397_v53 }
 0xde7   : > { %5420 = vrot.lane.b32.xlu0 %v5411_v21, %s7450_s11  ;;  %v5433_v9 = vmul.f32 %v5411_v21, %v12780_v46  ;;  %v5435_v29 = vmul.f32 %v5414_v23, %v12772_v25 }
 0xde8   : > { %5422 = vrot.lane.b32.xlu1 %v5414_v23, %s7450_s11 }
 0xdeb   : > { %5424 = vrot.lane.b32.xlu0 %v5412_v18, %s7450_s11 }
 0xdec   : > { %5426 = vrot.lane.b32.xlu1 %v5415_v40, %s7450_s11  ;;  %s7361_s11 = scalar_lea.vmem %s7360_s20, 512 }
 0xded   : > { %p7363_p10 = scmp.lt.s32.totalorder %s7361_s11, %s7355_s7 }
 0xdef   : > { %p7364_p4 = por %p7363_p10, %p7362_p9 }
 0xdf1   : > { %p7365_p0 = pnand %p7364_p4, %p7358_p6 }
 0xe55   : > { %v5417_v33 = vpop.permute.xlu0 %5416 }
 0xe56   : > { %v5419_v26 = vpop.permute.xlu1 %5418 }
 0xe59   : > { %v5421_v24 = vpop.permute.xlu0 %5420 }
 0xe5a   : > { %v5430_v3 = vsel %vm3111_vm4, %v5417_v33, %v5421_v24  ;;  %v5423_v31 = vpop.permute.xlu1 %5422 }
 0xe5b   : > { %v5440_v27 = vmul.f32 %v5436_v61, %v5430_v3  ;;  %v5431_v41 = vsel %vm3111_vm4, %v5419_v26, %v5423_v31 }
 0xe5c   : > { %v5442_v37 = vmul.f32 %v5438_v60, %v5431_v41 }
 0xe5d   : > { %v5444_v1 = vadd.f32 %v5440_v27, %v5432_v20  ;;  %v5425_v13 = vpop.permute.xlu0 %5424 }
 0xe5e   : > { %v5446_v54 = vadd.f32 %v5442_v37, %v5434_v47  ;;  %v5428_v35 = vsel %vm3111_vm4, %v5421_v24, %v5425_v13  ;;  %v5427_v28 = vpop.permute.xlu1 %5426 }
 0xe5f   : > { %v5448_v11 = vmul.f32 0.6666667, %v5444_v1  ;;  %v5441_v56 = vmul.f32 %v5437_v62, %v5428_v35  ;;  %v5429_v30 = vsel %vm3111_vm4, %v5423_v31, %v5427_v28 }
 0xe60   : > { %v5450_v48 = vmul.f32 0.6666667, %v5446_v54  ;;  %v5443_v14 = vmul.f32 %v5439_v44, %v5429_v30 }
 0xe61   : > { %v5445_v55 = vadd.f32 %v5441_v56, %v5433_v9 }
 0xe62   : > { %v5447_v63 = vadd.f32 %v5443_v14, %v5435_v29  ;;  %v5467_v10 = vpack.c.bf16 %v5450_v48, %v5448_v11 }
 0xe63   : > { %v5449_v51 = vmul.f32 0.6666667, %v5445_v55 }
 0xe64   : > { %v5451_v15 = vmul.f32 0.6666667, %v5447_v63  ;;  %5652 = vmatprep.mubr.bf16.mxu0 %v5467_v10 }
 0xe65   : > { %5653 = vmatmul.mubr.bf16.vlgmr.msra.gmra.mrb[64].mxu0 %v5466_v5 }
 0xe66   : > { %v5468_v39 = vpack.c.bf16 %v5451_v15, %v5449_v51 }
 0xe68   : > { %6494 = vmatmul.mubr.bf16.vlgmr.msra.gmra.mrb[52].mxu1 %v5468_v39 }
 0xf38   : > { %v6346_v46 = vpop.f32.mrb[64].mxu0 }
 0xf39   : > { %v6347_v50 = vpop.f32.mrb[65].mxu0 }
 0xf3a   : > { %v6348_v25 = vadd.f32 %v6347_v50, %v6346_v46  ;;  %v6349_v2 = vpop.f32.mrb[66].mxu0 }
 0xf3b   : > { %v6350_v0 = vpop.f32.mrb[67].mxu0  ;;  %v5695_v57 = vpop.f32.mrb[52].mxu1 }
 0xf3c   : > { %v6351_v43 = vadd.f32 %v6350_v0, %v6349_v2  ;;  %v5655_v34 = vadd.f32 %v6348_v25, %v6111_v19  ;;  %v6495_v49 = vpop.f32.mrb[53].mxu1 }
 0xf3d   : > { %v5698_v53 = vpop.f32.mrb[54].mxu1 }
 0xf3e   : > { %v5696_v6 = vadd.f32 %v5695_v57, %v5655_v34  ;;  %v5658_v36 = vadd.f32 %v6351_v43, %v6111_v19  ;;  %v6496_v42 = vpop.f32.mrb[55].mxu1 }
 0xf40   : > { %v5699_v58 = vadd.f32 %v5698_v53, %v5658_v36  ;;  %5702 = vmax.xlane.f32.xlu0 %v5696_v6 }
 0xf42   : > { %5704 = vmax.xlane.f32.xlu1 %v5699_v58 }
 0xfcd   : > { %v5703_v5 = vpop.xlane.xlu0 %5702 }
 0xfce   : > { %v5706_v32 = vsub.f32 %v5696_v6, %v5703_v5 }
 0xfcf   : > { %v5705_v8 = vpop.xlane.xlu1 %5704 }
 0xfd0   : > { %v5708_v38 = vmul.f32 1.442695, %v5706_v32  ;;  %v5707_v16 = vsub.f32 %v5699_v58, %v5705_v8 }
 0xfd2   : > { %7149 = vpow2.f32 %v5708_v38  ;;  %v5710_v12 = vmul.f32 1.442695, %v5707_v16 }
 0xfd4   : > { %7151 = vpow2.f32 %v5710_v12 }
 0xfdc   : > { %v7150_v7 = vpop.eup %7149 }
 0xfdd   : > { %5712 = vadd.xlane.f32.xlu0 %v7150_v7 }
 0xfde   : > { %v7152_v52 = vpop.eup %7151 }
 0xfe1   : > { %5714 = vadd.xlane.f32.xlu0 %v7152_v52 }
0x106a   : > { %v5713_v17 = vpop.xlane.xlu0 %5712 }
0x106b   : > { %7153 = vlog2.f32 %v5713_v17 }
0x106e   : > { %v5715_v21 = vpop.xlane.xlu0 %5714 }
0x106f   : > { %7155 = vlog2.f32 %v5715_v21 }
0x1075   : > { %v7154_v18 = vpop.eup %7153 }
0x1076   : > { %v5717_v23 = vmul.f32 0.6931472, %v7154_v18 }
0x1078   : > { %v5720_v40 = vadd.f32 %v5717_v23, %v5703_v5 }
0x1079   : > { %v7156_v22 = vpop.eup %7155 }
0x107a   : > { %v5722_v4 = vsub.f32 %v5696_v6, %v5720_v40  ;;  %v5719_v59 = vmul.f32 0.6931472, %v7156_v22 }
0x107c   : > { %5724 = vst [vmem:[%s552_s18] sm:$0xff] %v5722_v4  ;;  %v5721_v45 = vadd.f32 %v5719_v59, %v5705_v8 }
0x107e   : > { %v5723_v33 = vsub.f32 %v5699_v58, %v5721_v45 }
0x1080   : > { %5725 = vst [vmem:[%s552_s18 + $0x8] sm:$0xff] %v5723_v33 }
0x1081   : > { %7368 = shalt.err (!%p7365_p0)
}
0x1082   : > { %s7369_s1 = scalar_lea.hbm %s12957_s3, 256  ;;  %s7373_s17 = scalar_lea.hbm %s14221_s29, 1024 }
0x1083   : > { %p7370_p7 = scmp.ne.s32.totalorder %s12957_s3, %s7369_s1  ;;  %p7374_p5 = scmp.lt.u32.totalorder %s12957_s3, %s14221_s29 }
0x1084   : > { %p7375_p12 = scmp.lt.u32.totalorder %s7373_s17, %s7369_s1  ;;  %p7377_p8 = scmp.lt.u32.totalorder %s7369_s1, %s12957_s3 }
0x1085   : > { %p7371_p1 = pnand %p7370_p7, %p14222_p11 }
0x1086   : > { %p7376_p3 = por %p7375_p12, %p7374_p5 }
0x1087   : > { %p7372_p13 = pneg %p7371_p1 }
0x1088   : > { %p7378_p2 = por %p7377_p8, %p7376_p3 }
0x108a   : > { %p7379_p6 = pnand %p7378_p2, %p7372_p13 }
0x108c   : > { %7382 = shalt.err (!%p7379_p6)
}
0x108d   : > { %s7453_s13 = smov 128   ;;  %s7454_s27 = smov 8  }
0x108e   : > { %6515 = dma.vmem_to_hbm [thread:$0]  (%p14222_p11), %s12959_s26, 256, %s12957_s3, %s5727_s5, %s7453_s13, %s7453_s13, %s7454_s27  }
0x108f PF: > { %s14223_s30 = sld [smem:[#allocation19_spill]]  ;;  %s14224_s14 = sld [smem:[#allocation24_spill]] }
0x1090   : > { %p6548_p9 = scmp.ge.s32.totalorder %s7433_s24, 2 }
0x1095   : > { %s5755_s10 = sand.u32 1, %s14223_s30   ;;  %p14225_p10 = scmp.ne.s32.totalorder %s14224_s14, 0 }
0x1096   : > { %s5756_s18 = scalar_lea.sflag [#allocation4], %s5755_s10 }
0x1097   : > { %p6538_p4 = pnand %p6548_p9, %p14225_p10 }
0x1099   : > { %7416 = dma.done.wait (!%p6538_p4), %s5756_s18, 256  }
0x109a   : > { %7418 = vsyncadd (!%p6538_p4), %s5756_s18, 4294967040  ;;  %s14226_s24 = sld [smem:[#allocation21_spill]]  ;;  %s14227_s8 = sld [smem:[#allocation20_spill]] }
0x109b   : > { %s14228_s23 = sld [smem:[#allocation22_spill]]  ;;  %s14229_s21 = smov %s7425_s22 }
0x10a0   : > { %p30_p0 = scmp.ge.s32.totalorder %s14226_s24, 6   ;;  %s14230_s22 = smov %s14227_s8 }
0x10a2   :  { %32 = sbr.rel (!%p30_p0) target bundleno = 18 (0x12), region = 149 }
0x10a9   :  { %5761 = vsyncpa [#allocation3], 1 }
0x10aa   :  { %5763 = vsyncpa [#allocation3 + $0x1], 1 }
0x10ab   :  { %5764 = vsyncpa [#allocation6], 1 }
0x10ac   :  { %5766 = vsyncpa [#allocation6 + $0x1], 1 }
0x10ad   :  { %5767 = vsyncpa [#allocation9], 1 }
0x10ae   :  { %5768 = vsyncpa [#allocation12], 1 }
0x10af   :  { %5769 = vsyncpa [#allocation4], 1 }
0x10b0   :  { %5771 = vsyncpa [#allocation4 + $0x1], 1 }

</bundles_post_ra>
